<compile_context>
chip_gen: v7x
topology: tpu7x:2x2x1
jax: 0.10.0
libtpu: 0.0.40
codegen_flags: <defaults>
</compile_context>

<pallas_src>
import functools
import math

import jax
import jax.numpy as jnp
from jax import lax
from jax.experimental import pallas as pl
from jax.experimental.pallas import tpu as pltpu

ACT_DT = jnp.bfloat16                         # activation / weight dtype in HBM
F32 = jnp.float32
NEG_VAL = float(jnp.finfo(jnp.float32).min)   # get_negative_inf_value(torch.float32)
LN_EPS = 1e-5                                 # torch nn.LayerNorm default
ATTN_SEQ_ALIGN = 512                          # S padded to a multiple of this when S > 512


def _default_vmem_limit():
    """Per-generation VMEM budget: ~3/4 of physical (≈48 MiB v7x, ≈96 MiB v5e/v6e)."""
    phys = 64 * 1024 * 1024
    try:
        info = pltpu.get_tpu_info()
        phys = int(getattr(info, "vmem_capacity_bytes", phys)) or phys
    except Exception:
        pass
    return max(32 * 1024 * 1024, min(int(phys * 3 // 4), 100 * 1024 * 1024))


VMEM_LIMIT = _default_vmem_limit()


# ----------------------------- tiling helpers --------------------------------

def _round_up(x, m):
    return ((x + m - 1) // m) * m


def _pick_tile(dim, max_tile, align, *, min_divisor=None, pad_ok=True):
    """Pick (tile, padded_dim) for one matmul/LN dimension.

    Preference order: (a) whole dim if it fits max_tile (no tiling, no pad);
    (b) largest divisor of dim that is a multiple of `align` (no pad);
    (c) pad dim up to a multiple of an aligned max_tile (if pad_ok);
    (d) whole (unpadded) dim as a single full-extent block."""
    if dim <= max_tile:
        return dim, dim
    t = (max_tile // align) * align
    best = 0
    while t >= align:
        if dim % t == 0:
            best = t
            break
        t -= align
    if best and (min_divisor is None or best >= min_divisor):
        return best, dim
    if pad_ok:
        t = (max_tile // align) * align
        return t, _round_up(dim, t)
    return dim, dim


# ----------------------------- in-kernel math ---------------------------------

def _erf_approx(x):
    # Abramowitz & Stegun 7.1.26 rational approximation, |err| < ~1e-4 with the EUP
    # approximate reciprocal — far below bf16 resolution; matches torch nn.GELU() (exact).
    a1, a2, a3, a4, a5 = (0.254829592, -0.284496736, 1.421413741,
                          -1.453152027, 1.061405429)
    sign = jnp.where(x >= 0.0, 1.0, -1.0)
    z = jnp.abs(x)
    t = pl.reciprocal(1.0 + 0.3275911 * z, approx=True)   # EUP slot, frees VALU
    poly = ((((a5 * t + a4) * t + a3) * t + a2) * t + a1) * t
    return sign * (1.0 - poly * jnp.exp(-z * z))


def _gelu_exact_f32(x):
    return 0.5 * x * (1.0 + _erf_approx(x * 0.7071067811865476))


# ----------------------------- Pallas kernels ---------------------------------

def _matmul_kernel(*refs, n_k, has_bias, has_res, activation):
    # grid = (M/tm, N/tn, K/tk); K innermost ("arbitrary"); f32 accumulator scratch.
    # Epilogue (last K step): + bias, GELU, residual + gate * result — all fused.
    x_ref, w_ref = refs[0], refs[1]
    i = 2
    if has_bias:
        b_ref = refs[i]
        i += 1
    if has_res:
        r_ref, g_ref = refs[i], refs[i + 1]
        i += 2
    o_ref, acc_ref = refs[i], refs[i + 1]

    @pl.when(pl.program_id(2) == 0)
    def _():
        acc_ref[...] = jnp.zeros_like(acc_ref)

    acc_ref[...] += jnp.dot(x_ref[...], w_ref[...],
                            preferred_element_type=jnp.float32)

    @pl.when(pl.program_id(2) == n_k - 1)
    def _():
        acc = acc_ref[...]
        if has_bias:
            acc = acc + b_ref[...].astype(jnp.float32)
        if activation == "gelu":
            acc = _gelu_exact_f32(acc)
        if has_res:
            acc = r_ref[...].astype(jnp.float32) + g_ref[...].astype(jnp.float32) * acc
        o_ref[...] = acc.astype(o_ref.dtype)


def _layernorm_kernel(x_ref, w_ref, b_ref, o_ref):
    x = x_ref[...].astype(jnp.float32)
    mean = jnp.mean(x, axis=-1, keepdims=True)
    var = jnp.mean((x - mean) ** 2, axis=-1, keepdims=True)
    y = (x - mean) * lax.rsqrt(var + LN_EPS)
    o_ref[...] = (y * w_ref[...].astype(jnp.float32)
                  + b_ref[...].astype(jnp.float32)).astype(o_ref.dtype)


def _flash_attn_kernel(q_ref, k_ref, v_ref, mvc_ref, mvr_ref, kpad_ref, o_ref,
                       m_scr, l_scr, acc_scr):
    # grid = (B, H, Sq/tq, Skv/tkv); one head per step (lane-dense 128-padded head slabs
    # selected by the BlockSpec index maps); online-softmax state (m, l, acc) persists
    # across the innermost "arbitrary" KV axis.
    ki = pl.program_id(3)

    @pl.when(ki == 0)
    def _():
        m_scr[...] = jnp.full(m_scr.shape, -jnp.inf, m_scr.dtype)
        l_scr[...] = jnp.zeros(l_scr.shape, l_scr.dtype)
        acc_scr[...] = jnp.zeros(acc_scr.shape, acc_scr.dtype)

    q = q_ref[0]                                    # (tq,  hd_pad) bf16, scale folded into Wq
    k = k_ref[0]                                    # (tkv, hd_pad) bf16
    v = v_ref[0]                                    # (tkv, hd_pad) bf16

    # maskless SDPA (reference ordering, pre-scaled):
    #   scores = scale*QK^T + scale*outer(mv_q, mv_k)*finfo(f32).min + key_only_pad_mask
    s = lax.dot_general(q, k, (((1,), (1,)), ((), ())),
                        preferred_element_type=jnp.float32)       # (tq, tkv)
    s = s + (mvc_ref[0] * mvr_ref[0] + kpad_ref[0])

    m_prev = m_scr[...]                             # (tq, 1)
    m_new = jnp.maximum(m_prev, jnp.max(s, axis=-1, keepdims=True))
    alpha = jnp.exp(m_prev - m_new)
    p = jnp.exp(s - m_new)                          # (tq, tkv) f32
    l_scr[...] = alpha * l_scr[...] + jnp.sum(p, axis=-1, keepdims=True)
    acc_scr[...] = alpha * acc_scr[...] + jnp.dot(p.astype(v.dtype), v,
                                                  preferred_element_type=jnp.float32)
    m_scr[...] = m_new

    @pl.when(ki == pl.num_programs(3) - 1)
    def _():
        inv_l = pl.reciprocal(l_scr[...], approx=True)
        o_ref[0] = (acc_scr[...] * inv_l).astype(o_ref.dtype)


# ----------------------------- Pallas wrappers --------------------------------

def pallas_linear(x, w, b=None, activation=None, residual=None, gate=None,
                  *, tm=512, tn=768, tk=1024):
    """Tiled matmul with fused bias / GELU / residual+gate epilogue.
    bf16 operands, f32 accumulation; divisor-based tiles (no K padding)."""
    orig_shape = x.shape
    K = orig_shape[-1]
    N = w.shape[1]
    x2 = x.reshape(-1, K)
    M = x2.shape[0]

    tm, Mp = _pick_tile(M, tm, 8, min_divisor=128)
    tn, Np = _pick_tile(N, tn, 128, min_divisor=256)
    tk, Kp = _pick_tile(K, tk, 128, min_divisor=256, pad_ok=False)  # never pad K

    if Mp != M:
        x2 = jnp.pad(x2, ((0, Mp - M), (0, 0)))
    wp = w if Np == N else jnp.pad(w, ((0, 0), (0, Np - N)))

    has_bias = b is not None
    has_res = residual is not None

    args = [x2, wp]
    in_specs = [pl.BlockSpec((tm, tk), lambda i, j, k: (i, k)),
                pl.BlockSpec((tk, tn), lambda i, j, k: (k, j))]
    if has_bias:
        b2 = b.reshape(1, N)
        if Np != N:
            b2 = jnp.pad(b2, ((0, 0), (0, Np - N)))
        args.append(b2)
        in_specs.append(pl.BlockSpec((1, tn), lambda i, j, k: (0, j)))
    if has_res:
        r2 = residual.reshape(-1, N)
        if (Mp, Np) != (M, N):
            r2 = jnp.pad(r2, ((0, Mp - M), (0, Np - N)))
        g = (jnp.ones((1,), jnp.float32) if gate is None
             else gate.astype(jnp.float32).reshape(1))
        args.extend([r2, g.reshape(1, 1)])
        in_specs.append(pl.BlockSpec((tm, tn), lambda i, j, k: (i, j)))
        in_specs.append(pl.BlockSpec((1, 1), lambda i, j, k: (0, 0)))

    grid = (Mp // tm, Np // tn, Kp // tk)
    kernel = functools.partial(_matmul_kernel, n_k=grid[2], has_bias=has_bias,
                               has_res=has_res, activation=activation)
    flops = 2 * Mp * Np * Kp
    bytes_accessed = (Mp * Kp + Kp * Np + 2 * Mp * Np) * x2.dtype.itemsize

    y = pl.pallas_call(
        kernel,
        out_shape=jax.ShapeDtypeStruct((Mp, Np), x.dtype),
        grid=grid,
        in_specs=in_specs,
        out_specs=pl.BlockSpec((tm, tn), lambda i, j, k: (i, j)),
        scratch_shapes=[pltpu.VMEM((tm, tn), jnp.float32)],
        compiler_params=pltpu.CompilerParams(
            dimension_semantics=("parallel", "parallel", "arbitrary"),
            vmem_limit_bytes=VMEM_LIMIT),
        cost_estimate=pl.CostEstimate(
            flops=flops,
            transcendentals=Mp * Np if activation == "gelu" else 0,
            bytes_accessed=bytes_accessed),
    )(*args)

    if (Mp, Np) != (M, N):
        y = y[:M, :N]
    return y.reshape(orig_shape[:-1] + (N,))


def pallas_layernorm(x, w, b, *, tm=1024):
    shp = x.shape
    D = shp[-1]
    x2 = x.reshape(-1, D)
    M = x2.shape[0]
    tm, Mp = _pick_tile(M, tm, 8, min_divisor=128)
    if Mp != M:
        x2 = jnp.pad(x2, ((0, Mp - M), (0, 0)))
    y = pl.pallas_call(
        _layernorm_kernel,
        out_shape=jax.ShapeDtypeStruct((Mp, D), x.dtype),
        grid=(Mp // tm,),
        in_specs=[pl.BlockSpec((tm, D), lambda i: (i, 0)),
                  pl.BlockSpec((1, D), lambda i: (0, 0)),
                  pl.BlockSpec((1, D), lambda i: (0, 0))],
        out_specs=pl.BlockSpec((tm, D), lambda i: (i, 0)),
        compiler_params=pltpu.CompilerParams(
            dimension_semantics=("parallel",),
            vmem_limit_bytes=VMEM_LIMIT),
    )(x2, w.reshape(1, D), b.reshape(1, D))
    if Mp != M:
        y = y[:M]
    return y.reshape(shp)


def pallas_flash_attention(qkv, mvc, mvr, kpad, num_heads, head_dim_pad,
                           *, tq=256, tkv=512):
    """qkv: (B, S, 3*H*hd_pad) bf16, head-padded layout [Q heads | K heads | V heads],
    scale already folded into the Q slab.  Returns (B, S, H*hd_pad)."""
    B, S, _ = qkv.shape
    H = num_heads
    Dp = H * head_dim_pad
    if S <= tkv:
        tq_, tkv_ = S, S
    else:
        tq_ = tq if S % tq == 0 else S
        tkv_ = tkv if S % tkv == 0 else S

    grid = (B, H, S // tq_, S // tkv_)
    return pl.pallas_call(
        _flash_attn_kernel,
        out_shape=jax.ShapeDtypeStruct((B, S, Dp), qkv.dtype),
        grid=grid,
        in_specs=[
            pl.BlockSpec((1, tq_, head_dim_pad), lambda b, h, qi, ki: (b, qi, h)),
            pl.BlockSpec((1, tkv_, head_dim_pad), lambda b, h, qi, ki: (b, ki, H + h)),
            pl.BlockSpec((1, tkv_, head_dim_pad), lambda b, h, qi, ki: (b, ki, 2 * H + h)),
            pl.BlockSpec((1, tq_, 1), lambda b, h, qi, ki: (b, qi, 0)),
            pl.BlockSpec((1, 1, tkv_), lambda b, h, qi, ki: (b, 0, ki)),
            pl.BlockSpec((1, 1, tkv_), lambda b, h, qi, ki: (0, 0, ki)),
        ],
        out_specs=pl.BlockSpec((1, tq_, head_dim_pad), lambda b, h, qi, ki: (b, qi, h)),
        scratch_shapes=[pltpu.VMEM((tq_, 1), jnp.float32),
                        pltpu.VMEM((tq_, 1), jnp.float32),
                        pltpu.VMEM((tq_, head_dim_pad), jnp.float32)],
        compiler_params=pltpu.CompilerParams(
            dimension_semantics=("parallel", "parallel", "parallel", "arbitrary"),
            vmem_limit_bytes=VMEM_LIMIT),
    )(qkv, qkv, qkv, mvc, mvr, kpad)


# ----------------------------- model glue (plain JAX) -------------------------

def get_all_supported_aspect_ratios(max_image_tiles):
    ratios = []
    for w in range(1, max_image_tiles + 1):
        for h in range(1, max_image_tiles + 1):
            if w * h <= max_image_tiles:
                ratios.append((w, h))
    return ratios


def convert_aspect_ratios_to_ids(aspect_ratios, max_image_tiles):
    table = jnp.asarray(get_all_supported_aspect_ratios(max_image_tiles), dtype=jnp.int32)
    match = jnp.all(aspect_ratios[:, None, :] == table[None, :, :], axis=-1)
    return (jnp.argmax(match, axis=-1) + 1).astype(jnp.int32)


def apply_aspect_ratio_embedding(x, ar_ids, table, gate, max_tiles, width):
    # PrecomputedAspectRatioEmbedding (gated)
    emb = table[ar_ids].reshape(-1, max_tiles, 1, width)
    return x + emb * jnp.tanh(gate)


def apply_precomputed_position_embedding(x, ar_ids, params, max_tiles, ntok, width):
    g = jnp.tanh(params["pos_gate"])
    x = x + (1.0 - g) * params["pos_embed"].reshape(1, 1, ntok, width)
    tile_pe = params["pos_tile_embed"][ar_ids].reshape(-1, max_tiles, ntok, width)
    return x + g * tile_pe


def build_attention_mask_vectors(ar, ntok, num_chunks, ntok8, seq, seq_pad, scale):
    """Mask-gen vectors of the maskless-SDPA trick.

    mv = 1.0 on reference-padded tokens (mult8 pad / unused tiles), 0.0 on valid tokens;
    mask[q,k] = mv[q]*mv[k]*finfo.min (matches the reference).  The attention-only S padding
    (seq -> seq_pad) gets a KEY-ONLY additive term so those columns are excluded for every
    query.  Everything is pre-scaled by `scale` because the softmax scale is folded into Q."""
    B = ar.shape[0]
    valid_chunks = (ar[:, 0] * ar[:, 1]).astype(jnp.int32)
    chunk_ok = jnp.arange(num_chunks)[None, :, None] < valid_chunks[:, None, None]
    tok_ok = jnp.arange(ntok8)[None, None, :] < ntok
    mv = jnp.where(chunk_ok & tok_ok, 0.0, 1.0).astype(jnp.float32).reshape(B, seq)
    if seq_pad != seq:
        mv = jnp.pad(mv, ((0, 0), (0, seq_pad - seq)), constant_values=1.0)
    neg_scaled = NEG_VAL * scale
    mvc = mv[:, :, None]                                    # (B, S, 1)  query side (0/1)
    mvr = (mv * neg_scaled)[:, None, :]                     # (B, 1, S)  key side, pre-scaled
    kpad = jnp.where(jnp.arange(seq_pad) >= seq, neg_scaled, 0.0).astype(jnp.float32)
    kpad = kpad[None, None, :]                              # (1, 1, S)  key-only (new padding)
    return mvc, mvr, kpad


def image_attention(x, mvc, mvr, kpad, p, num_heads, head_dim_pad, residual, gate):
    # fused Q|K|V projection directly into the head-padded layout (B, S, 3*H*hd_pad),
    # softmax scale folded into the Q weight slab; residual (+gate) fused into the wo matmul.
    qkv = pallas_linear(x, p["w_qkv"])
    attn = pallas_flash_attention(qkv, mvc, mvr, kpad, num_heads, head_dim_pad)
    return pallas_linear(attn, p["wo"], residual=residual, gate=gate)


def image_feed_forward(x, p, residual, gate):
    # bias + exact-erf GELU fused into the c_fc epilogue; residual (+gate) fused into c_proj.
    h = pallas_linear(x, p["c_fc_w"], p["c_fc_b"], activation="gelu")
    return pallas_linear(h, p["c_proj_w"], p["c_proj_b"], residual=residual, gate=gate)


def image_transformer_block(x, mvc, mvr, kpad, p, num_heads, head_dim_pad, gated):
    gate_a = jnp.tanh(p["gate_attn"].astype(jnp.float32)).reshape(1) if gated else None
    gate_f = jnp.tanh(p["gate_ffn"].astype(jnp.float32)).reshape(1) if gated else None
    h = pallas_layernorm(x, p["ln1_w"], p["ln1_b"])
    x = image_attention(h, mvc, mvr, kpad, p, num_heads, head_dim_pad,
                        residual=x, gate=gate_a)
    h = pallas_layernorm(x, p["ln2_w"], p["ln2_b"])
    x = image_feed_forward(h, p, residual=x, gate=gate_f)
    return x


def image_transformer(x, mvc, mvr, kpad, layers, num_heads, head_dim_pad, gated,
                      return_intermediate=None):
    out = []
    for idx, p in enumerate(layers):
        if return_intermediate is not None and idx in return_intermediate:
            out.append(x)
        x = image_transformer_block(x, mvc, mvr, kpad, p, num_heads, head_dim_pad, gated)
    if return_intermediate is not None:
        int_x = jnp.stack(out, axis=2)        # (B, S, n_int, D)
        int_x = jnp.swapaxes(int_x, 2, -1)    # (B, S, D, n_int)
        return x, int_x
    return x


def vision_encoder_forward(params, cfg, images, aspect_ratios, ar_ids):
    if images.ndim == 5:
        ncm = 1
        bsz, num_chunks, nch, h, w = images.shape
    else:
        bsz, ncm, num_chunks, nch, h, w = images.shape
    dim = cfg.hidden_size
    ksz = cfg.patch_size
    num_heads = cfg.attention_heads
    head_dim = dim // num_heads
    head_dim_pad = _round_up(head_dim, 128)
    scale = 1.0 / math.sqrt(head_dim)

    images = images.reshape(bsz * ncm * num_chunks, nch, h, w).astype(ACT_DT)
    ar = aspect_ratios.reshape(bsz * ncm, 2)
    Bp = bsz * ncm

    # conv1 = ColumnParallelConv2dPatch: unfold + tiled Pallas matmul (no bias)
    xu = images.reshape(-1, nch, h // ksz, ksz, w // ksz, ksz)
    xu = xu.transpose(0, 2, 4, 1, 3, 5).reshape(
        Bp * num_chunks, (h // ksz) * (w // ksz), nch * ksz * ksz)
    x = pallas_linear(xu, params["conv1_w"])
    ntok = x.shape[1]

    # pre-tile positional embedding (gated, precomputed)
    x = x.reshape(Bp, num_chunks, ntok, dim)
    x = apply_aspect_ratio_embedding(x, ar_ids, params["pre_tile_embed"],
                                     params["pre_tile_gate"], cfg.max_num_tiles, dim)
    x = x.reshape(Bp * num_chunks, ntok, dim)

    # class embedding (prepended token)
    cls = jnp.broadcast_to(params["class_embedding"].reshape(1, 1, dim),
                           (x.shape[0], 1, dim)).astype(x.dtype)
    x = jnp.concatenate([cls, x], axis=1)
    ntok += 1

    # gated positional embedding
    x = x.reshape(Bp, num_chunks, ntok, dim)
    x = apply_precomputed_position_embedding(x, ar_ids, params, cfg.max_num_tiles, ntok, dim)

    # ln_pre (tiled Pallas LN)
    x = pallas_layernorm(x, params["ln_pre_w"], params["ln_pre_b"])

    # expand_num_tokens_to_mult8
    npad = (-ntok) % 8
    if npad:
        x = jnp.pad(x, ((0, 0), (0, 0), (0, npad), (0, 0)))
    ntok8 = ntok + npad
    seq = num_chunks * ntok8
    x = x.reshape(Bp, seq, dim)

    # attention-only sequence padding (key-only masked) so the KV tile never falls back
    # to the full sequence; M = Bp*seq_pad is also a clean multiple for every linear/LN.
    seq_pad = _round_up(seq, ATTN_SEQ_ALIGN) if seq > ATTN_SEQ_ALIGN else seq
    if seq_pad != seq:
        x = jnp.pad(x, ((0, 0), (0, seq_pad - seq), (0, 0)))
    mvc, mvr, kpad = build_attention_mask_vectors(ar, ntok, num_chunks, ntok8,
                                                  seq, seq_pad, scale)

    x, int_x = image_transformer(x, mvc, mvr, kpad, params["layers"], num_heads,
                                 head_dim_pad, gated=False,
                                 return_intermediate=cfg.intermediate_layers_indices)
    x = pallas_layernorm(x, params["ln_post_w"], params["ln_post_b"])

    # post-tile embedding needs the per-chunk layout: drop the attention-only padding first
    x = x[:, :seq].reshape(Bp, num_chunks, ntok8, dim)
    x = apply_aspect_ratio_embedding(x, ar_ids, params["post_tile_embed"],
                                     params["post_tile_gate"], cfg.max_num_tiles, dim)
    x = x.reshape(Bp, seq, dim)
    if seq_pad != seq:
        x = jnp.pad(x, ((0, 0), (0, seq_pad - seq), (0, 0)))
    x = image_transformer(x, mvc, mvr, kpad, params["global_layers"], num_heads,
                          head_dim_pad, gated=True)

    # contract_num_tokens_from_mult8 (+ drop the attention-only padding)
    x = x[:, :seq].reshape(Bp, num_chunks, ntok8, dim)[:, :, :ntok, :]
    x = x.reshape(bsz, ncm, num_chunks, ntok, dim)

    n_int = int_x.shape[-1]
    int_x = int_x[:, :seq].reshape(Bp, num_chunks, ntok8, dim * n_int)[:, :, :ntok, :]
    int_x = int_x.reshape(bsz, ncm, num_chunks, ntok, dim * n_int)

    return jnp.concatenate([x, int_x], axis=-1)


def neuron_mllama_vision_forward(params, cfg, images, aspect_ratios):
    ar_ids = convert_aspect_ratios_to_ids(aspect_ratios.reshape(-1, 2), cfg.max_num_tiles)
    vision_tokens = vision_encoder_forward(params, cfg, images, aspect_ratios, ar_ids)
    # vision_projection (ColumnParallelLinear with bias, gather_output=True)
    return pallas_linear(vision_tokens, params["proj_w"], params["proj_b"])


# ----------------------------- config & params --------------------------------

class VisionConfig:
    hidden_size = 32
    image_size = 32
    patch_size = 8
    num_hidden_layers = 2
    attention_heads = 4
    num_channels = 3
    num_global_layers = 1
    max_num_tiles = 4
    intermediate_layers_indices = (1,)
    mlp_ratio = 4.0


def _prep_attn_weights(wq, wk, wv, wo, num_heads, head_dim, head_dim_pad):
    """Fuse Q|K|V into one weight, pad each head to head_dim_pad (zero columns) so every
    per-head slab is 128-lane aligned, and fold the softmax scale into the Q slab.
    wo gets matching zero rows so the padded V columns contribute nothing."""
    D = wq.shape[0]
    scale = 1.0 / math.sqrt(head_dim)

    def pad_cols(w, s=1.0):
        w = (w.astype(jnp.float32) * s).reshape(D, num_heads, head_dim)
        w = jnp.pad(w, ((0, 0), (0, 0), (0, head_dim_pad - head_dim)))
        return w.reshape(D, num_heads * head_dim_pad).astype(ACT_DT)

    w_qkv = jnp.concatenate([pad_cols(wq, scale), pad_cols(wk), pad_cols(wv)], axis=1)
    wo_p = wo.astype(jnp.float32).reshape(num_heads, head_dim, D)
    wo_p = jnp.pad(wo_p, ((0, 0), (0, head_dim_pad - head_dim), (0, 0)))
    wo_p = wo_p.reshape(num_heads * head_dim_pad, D).astype(ACT_DT)
    return w_qkv, wo_p


def make_params(key, cfg, text_hidden_size):
    width = cfg.hidden_size
    ksz = cfg.patch_size
    grid = cfg.image_size // ksz
    ntok = grid * grid + 1
    n_ar = len(get_all_supported_aspect_ratios(cfg.max_num_tiles))
    mlp_hidden = int(cfg.mlp_ratio * width)
    num_heads = cfg.attention_heads
    head_dim = width // num_heads
    head_dim_pad = _round_up(head_dim, 128)
    scale = width ** -0.5
    keys = iter(jax.random.split(key, 128))

    def nrm(shape, s=0.02):
        return (s * jax.random.normal(next(keys), shape)).astype(ACT_DT)

    def block_params(gated):
        wq, wk, wv, wo = (nrm((width, width)) for _ in range(4))
        w_qkv, wo_p = _prep_attn_weights(wq, wk, wv, wo, num_heads, head_dim, head_dim_pad)
        p = {
            "w_qkv": w_qkv,                                    # (D, 3*H*hd_pad), scale folded
            "wo": wo_p,                                        # (H*hd_pad, D), zero pad rows
            "ln1_w": jnp.ones((width,), ACT_DT), "ln1_b": jnp.zeros((width,), ACT_DT),
            "ln2_w": jnp.ones((width,), ACT_DT), "ln2_b": jnp.zeros((width,), ACT_DT),
            "c_fc_w": nrm((width, mlp_hidden)), "c_fc_b": nrm((mlp_hidden,)),
            "c_proj_w": nrm((mlp_hidden, width)), "c_proj_b": nrm((width,)),
        }
        if gated:
            # nonzero gates so the gated (global) path is actually exercised
            p["gate_attn"] = jnp.asarray(0.25, ACT_DT)
            p["gate_ffn"] = jnp.asarray(0.25, ACT_DT)
        return p

    params = {
        "conv1_w": nrm((cfg.num_channels * ksz * ksz, width)),
        "class_embedding": (scale * jax.random.normal(next(keys), (width,))).astype(ACT_DT),
        "pre_tile_embed": nrm((n_ar + 1, cfg.max_num_tiles * width)),
        "pre_tile_gate": jnp.asarray(0.3, ACT_DT),
        "post_tile_embed": nrm((n_ar + 1, cfg.max_num_tiles * width)),
        "post_tile_gate": jnp.asarray(0.3, ACT_DT),
        "pos_embed": (scale * jax.random.normal(next(keys), (ntok, width))).astype(ACT_DT),
        "pos_tile_embed": nrm((n_ar + 1, cfg.max_num_tiles * ntok * width)),
        "pos_gate": jnp.asarray(0.2, ACT_DT),
        "ln_pre_w": jnp.ones((width,), ACT_DT), "ln_pre_b": jnp.zeros((width,), ACT_DT),
        "ln_post_w": jnp.ones((width,), ACT_DT), "ln_post_b": jnp.zeros((width,), ACT_DT),
        "layers": [block_params(False) for _ in range(cfg.num_hidden_layers)],
        "global_layers": [block_params(True) for _ in range(cfg.num_global_layers)],
        "proj_w": nrm(((len(cfg.intermediate_layers_indices) + 1) * width, text_hidden_size)),
        "proj_b": nrm((text_hidden_size,)),
    }
    return params


# ----------------------------- main --------------------------------------------

if __name__ == "__main__":
    cfg = VisionConfig()
    text_hidden = 64

    key = jax.random.PRNGKey(0)
    pkey, ikey = jax.random.split(key)
    params = make_params(pkey, cfg, text_hidden)

    bsz = 2
    images = jax.random.normal(
        ikey,
        (bsz, cfg.max_num_tiles, cfg.num_channels, cfg.image_size, cfg.image_size),
        dtype=jnp.float32)
    aspect_ratios = jnp.asarray([[1, 2], [2, 2]], dtype=jnp.int32)

    fwd = jax.jit(functools.partial(neuron_mllama_vision_forward, params, cfg))
    out = jax.block_until_ready(fwd(images, aspect_ratios))

    ntok = (cfg.image_size // cfg.patch_size) ** 2 + 1
    assert out.shape == (bsz, 1, cfg.max_num_tiles, ntok, text_hidden), out.shape
    assert bool(jnp.all(jnp.isfinite(out.astype(jnp.float32))))
    print("KERNEL_OK")
</pallas_src>

<mosaic_0001>
module attributes {stable_mosaic.version = 11 : i64} {
  func.func @_matmul_kernel(%arg0: i32, %arg1: i32, %arg2: i32, %arg3: memref<128x192xbf16, #tpu.memory_space<vmem>>, %arg4: memref<192x32xbf16, #tpu.memory_space<vmem>>, %arg5: memref<128x32xbf16, #tpu.memory_space<vmem>>, %arg6: memref<128x32xf32, #tpu.memory_space<vmem>>) attributes {dimension_semantics = [#tpu.dimension_semantics<parallel>, #tpu.dimension_semantics<parallel>, #tpu.dimension_semantics<arbitrary>], iteration_bounds = array<i64: 1, 1, 1>, scalar_prefetch = 0 : i64, scratch_operands = 1 : i64, tpu.core_type = #tpu.core_type<tc>, window_params = [{transform_indices = @transform_0, window_bounds = array<i64: 128, 192>}, {transform_indices = @transform_1, window_bounds = array<i64: 192, 32>}, {transform_indices = @transform_2, window_bounds = array<i64: 128, 32>}]} {
    %c0_i32 = arith.constant 0 : i32
    %0 = arith.cmpi eq, %arg2, %c0_i32 : i32
    %1 = arith.extui %0 : i1 to i32
    %c0_i32_0 = arith.constant 0 : i32
    %2 = arith.cmpi ne, %1, %c0_i32_0 : i32
    scf.if %2 {
      %cst_10 = arith.constant 0.000000e+00 : f32
      %12 = vector.broadcast %cst_10 : f32 to vector<128x32xf32>
      %c0_11 = arith.constant 0 : index
      %c0_12 = arith.constant 0 : index
      %13 = vector.load %arg6[%c0_11, %c0_12] : memref<128x32xf32, #tpu.memory_space<vmem>>, vector<128x32xf32>
      tpu.vector_store %arg6[%c0_11, %c0_12], %12 {strides = array<i32>} : memref<128x32xf32, #tpu.memory_space<vmem>>, vector<128x32xf32>,
    } else {
    }
    %c0 = arith.constant 0 : index
    %c0_1 = arith.constant 0 : index
    %3 = vector.load %arg6[%c0, %c0_1] : memref<128x32xf32, #tpu.memory_space<vmem>>, vector<128x32xf32>
    %c0_2 = arith.constant 0 : index
    %c0_3 = arith.constant 0 : index
    %4 = vector.load %arg3[%c0_2, %c0_3] : memref<128x192xbf16, #tpu.memory_space<vmem>>, vector<128x192xbf16>
    %c0_4 = arith.constant 0 : index
    %c0_5 = arith.constant 0 : index
    %5 = vector.load %arg4[%c0_4, %c0_5] : memref<192x32xbf16, #tpu.memory_space<vmem>>, vector<192x32xbf16>
    %cst = arith.constant dense<0.000000e+00> : vector<128x32xf32>
    %6 = tpu.matmul %4, %5, %cst {dimension_numbers = #tpu.dot_dimension_numbers<[1], [0], [0], [1], [0, 0, 1, 1], [], []>} : vector<128x192xbf16>, vector<192x32xbf16>, vector<128x32xf32> -> vector<128x32xf32>
    %7 = arith.addf %3, %6 : vector<128x32xf32>
    %c0_6 = arith.constant 0 : index
    %c0_7 = arith.constant 0 : index
    %8 = vector.load %arg6[%c0_6, %c0_7] : memref<128x32xf32, #tpu.memory_space<vmem>>, vector<128x32xf32>
    tpu.vector_store %arg6[%c0_6, %c0_7], %7 {strides = array<i32>} : memref<128x32xf32, #tpu.memory_space<vmem>>, vector<128x32xf32>,
    %c0_i32_8 = arith.constant 0 : i32
    %9 = arith.cmpi eq, %arg2, %c0_i32_8 : i32
    %10 = arith.extui %9 : i1 to i32
    %c0_i32_9 = arith.constant 0 : i32
    %11 = arith.cmpi ne, %10, %c0_i32_9 : i32
    scf.if %11 {
      %c0_10 = arith.constant 0 : index
      %c0_11 = arith.constant 0 : index
      %12 = vector.load %arg6[%c0_10, %c0_11] : memref<128x32xf32, #tpu.memory_space<vmem>>, vector<128x32xf32>
      %13 = arith.truncf %12 : vector<128x32xf32> to vector<128x32xbf16>
      %c0_12 = arith.constant 0 : index
      %c0_13 = arith.constant 0 : index
      %14 = vector.load %arg5[%c0_12, %c0_13] : memref<128x32xbf16, #tpu.memory_space<vmem>>, vector<128x32xbf16>
      tpu.vector_store %arg5[%c0_12, %c0_13], %13 {strides = array<i32>} : memref<128x32xbf16, #tpu.memory_space<vmem>>, vector<128x32xbf16>,
    } else {
    }
    return
  }
  func.func @transform_0(%arg0: i32, %arg1: i32, %arg2: i32) -> (i32, i32) {
    %c0_i32 = arith.constant 0 : i32
    return %arg0, %arg2 : i32, i32
  }
  func.func @transform_1(%arg0: i32, %arg1: i32, %arg2: i32) -> (i32, i32) {
    %c0_i32 = arith.constant 0 : i32
    return %arg2, %arg1 : i32, i32
  }
  func.func @transform_2(%arg0: i32, %arg1: i32, %arg2: i32) -> (i32, i32) {
    %c0_i32 = arith.constant 0 : i32
    return %arg0, %arg1 : i32, i32
  }
}

module attributes {stable_mosaic.version = 11 : i64} {
  func.func @_layernorm_kernel(%arg0: i32, %arg1: memref<136x32xbf16, #tpu.memory_space<vmem>>, %arg2: memref<1x32xbf16, #tpu.memory_space<vmem>>, %arg3: memref<1x32xbf16, #tpu.memory_space<vmem>>, %arg4: memref<136x32xbf16, #tpu.memory_space<vmem>>) attributes {dimension_semantics = [#tpu.dimension_semantics<parallel>], iteration_bounds = array<i64: 1>, scalar_prefetch = 0 : i64, scratch_operands = 0 : i64, tpu.core_type = #tpu.core_type<tc>, window_params = [{transform_indices = @transform_0, window_bounds = array<i64: 136, 32>}, {pipeline_mode = #tpu.pipeline_mode<synchronous>, transform_indices = @transform_1, window_bounds = array<i64: 1, 32>}, {pipeline_mode = #tpu.pipeline_mode<synchronous>, transform_indices = @transform_2, window_bounds = array<i64: 1, 32>}, {transform_indices = @transform_3, window_bounds = array<i64: 136, 32>}]} {
    %c0 = arith.constant 0 : index
    %c0_0 = arith.constant 0 : index
    %0 = vector.load %arg1[%c0, %c0_0] : memref<136x32xbf16, #tpu.memory_space<vmem>>, vector<136x32xbf16>
    %1 = arith.extf %0 : vector<136x32xbf16> to vector<136x32xf32>
    %cst = arith.constant dense<0.000000e+00> : vector<136xf32>
    %2 = vector.multi_reduction <add>, %1, %cst [1] : vector<136x32xf32> to vector<136xf32>
    %3 = vector.shape_cast %2 : vector<136xf32> to vector<136x1xf32>
    %cst_1 = arith.constant 3.200000e+01 : f32
    %4 = vector.broadcast %cst_1 : f32 to vector<136x1xf32>
    %5 = arith.divf %3, %4 : vector<136x1xf32>
    %6 = vector.broadcast %5 : vector<136x1xf32> to vector<136x32xf32>
    %7 = arith.subf %1, %6 : vector<136x32xf32>
    %8 = arith.mulf %7, %7 : vector<136x32xf32>
    %cst_2 = arith.constant dense<0.000000e+00> : vector<136xf32>
    %9 = vector.multi_reduction <add>, %8, %cst_2 [1] : vector<136x32xf32> to vector<136xf32>
    %10 = vector.shape_cast %9 : vector<136xf32> to vector<136x1xf32>
    %cst_3 = arith.constant 3.200000e+01 : f32
    %11 = vector.broadcast %cst_3 : f32 to vector<136x1xf32>
    %12 = arith.divf %10, %11 : vector<136x1xf32>
    %13 = vector.broadcast %5 : vector<136x1xf32> to vector<136x32xf32>
    %14 = arith.subf %1, %13 : vector<136x32xf32>
    %cst_4 = arith.constant 9.99999974E-6 : f32
    %15 = vector.broadcast %cst_4 : f32 to vector<136x1xf32>
    %16 = arith.addf %12, %15 : vector<136x1xf32>
    %17 = math.rsqrt %16 : vector<136x1xf32>
    %18 = vector.broadcast %17 : vector<136x1xf32> to vector<136x32xf32>
    %19 = arith.mulf %14, %18 : vector<136x32xf32>
    %c0_5 = arith.constant 0 : index
    %c0_6 = arith.constant 0 : index
    %20 = vector.load %arg2[%c0_5, %c0_6] : memref<1x32xbf16, #tpu.memory_space<vmem>>, vector<1x32xbf16>
    %21 = arith.extf %20 : vector<1x32xbf16> to vector<1x32xf32>
    %22 = vector.broadcast %21 : vector<1x32xf32> to vector<136x32xf32>
    %23 = arith.mulf %19, %22 : vector<136x32xf32>
    %c0_7 = arith.constant 0 : index
    %c0_8 = arith.constant 0 : index
    %24 = vector.load %arg3[%c0_7, %c0_8] : memref<1x32xbf16, #tpu.memory_space<vmem>>, vector<1x32xbf16>
    %25 = arith.extf %24 : vector<1x32xbf16> to vector<1x32xf32>
    %26 = vector.broadcast %25 : vector<1x32xf32> to vector<136x32xf32>
    %27 = arith.addf %23, %26 : vector<136x32xf32>
    %28 = arith.truncf %27 : vector<136x32xf32> to vector<136x32xbf16>
    %c0_9 = arith.constant 0 : index
    %c0_10 = arith.constant 0 : index
    %29 = vector.load %arg4[%c0_9, %c0_10] : memref<136x32xbf16, #tpu.memory_space<vmem>>, vector<136x32xbf16>
    tpu.vector_store %arg4[%c0_9, %c0_10], %28 {strides = array<i32>} : memref<136x32xbf16, #tpu.memory_space<vmem>>, vector<136x32xbf16>,
    return
  }
  func.func @transform_0(%arg0: i32) -> (i32, i32) {
    %c0_i32 = arith.constant 0 : i32
    %c0_i32_0 = arith.constant 0 : i32
    return %arg0, %c0_i32 : i32, i32
  }
  func.func @transform_1(%arg0: i32) -> (i32, i32) {
    %c0_i32 = arith.constant 0 : i32
    %c0_i32_0 = arith.constant 0 : i32
    %c0_i32_1 = arith.constant 0 : i32
    return %c0_i32, %c0_i32_0 : i32, i32
  }
  func.func @transform_2(%arg0: i32) -> (i32, i32) {
    %c0_i32 = arith.constant 0 : i32
    %c0_i32_0 = arith.constant 0 : i32
    %c0_i32_1 = arith.constant 0 : i32
    return %c0_i32, %c0_i32_0 : i32, i32
  }
  func.func @transform_3(%arg0: i32) -> (i32, i32) {
    %c0_i32 = arith.constant 0 : i32
    %c0_i32_0 = arith.constant 0 : i32
    return %arg0, %c0_i32 : i32, i32
  }
}

module attributes {stable_mosaic.version = 11 : i64} {
  func.func @_layernorm_kernel(%arg0: i32, %arg1: memref<192x32xbf16, #tpu.memory_space<vmem>>, %arg2: memref<1x32xbf16, #tpu.memory_space<vmem>>, %arg3: memref<1x32xbf16, #tpu.memory_space<vmem>>, %arg4: memref<192x32xbf16, #tpu.memory_space<vmem>>) attributes {dimension_semantics = [#tpu.dimension_semantics<parallel>], iteration_bounds = array<i64: 1>, scalar_prefetch = 0 : i64, scratch_operands = 0 : i64, tpu.core_type = #tpu.core_type<tc>, window_params = [{transform_indices = @transform_0, window_bounds = array<i64: 192, 32>}, {pipeline_mode = #tpu.pipeline_mode<synchronous>, transform_indices = @transform_1, window_bounds = array<i64: 1, 32>}, {pipeline_mode = #tpu.pipeline_mode<synchronous>, transform_indices = @transform_2, window_bounds = array<i64: 1, 32>}, {transform_indices = @transform_3, window_bounds = array<i64: 192, 32>}]} {
    %c0 = arith.constant 0 : index
    %c0_0 = arith.constant 0 : index
    %0 = vector.load %arg1[%c0, %c0_0] : memref<192x32xbf16, #tpu.memory_space<vmem>>, vector<192x32xbf16>
    %1 = arith.extf %0 : vector<192x32xbf16> to vector<192x32xf32>
    %cst = arith.constant dense<0.000000e+00> : vector<192xf32>
    %2 = vector.multi_reduction <add>, %1, %cst [1] : vector<192x32xf32> to vector<192xf32>
    %3 = vector.shape_cast %2 : vector<192xf32> to vector<192x1xf32>
    %cst_1 = arith.constant 3.200000e+01 : f32
    %4 = vector.broadcast %cst_1 : f32 to vector<192x1xf32>
    %5 = arith.divf %3, %4 : vector<192x1xf32>
    %6 = vector.broadcast %5 : vector<192x1xf32> to vector<192x32xf32>
    %7 = arith.subf %1, %6 : vector<192x32xf32>
    %8 = arith.mulf %7, %7 : vector<192x32xf32>
    %cst_2 = arith.constant dense<0.000000e+00> : vector<192xf32>
    %9 = vector.multi_reduction <add>, %8, %cst_2 [1] : vector<192x32xf32> to vector<192xf32>
    %10 = vector.shape_cast %9 : vector<192xf32> to vector<192x1xf32>
    %cst_3 = arith.constant 3.200000e+01 : f32
    %11 = vector.broadcast %cst_3 : f32 to vector<192x1xf32>
    %12 = arith.divf %10, %11 : vector<192x1xf32>
    %13 = vector.broadcast %5 : vector<192x1xf32> to vector<192x32xf32>
    %14 = arith.subf %1, %13 : vector<192x32xf32>
    %cst_4 = arith.constant 9.99999974E-6 : f32
    %15 = vector.broadcast %cst_4 : f32 to vector<192x1xf32>
    %16 = arith.addf %12, %15 : vector<192x1xf32>
    %17 = math.rsqrt %16 : vector<192x1xf32>
    %18 = vector.broadcast %17 : vector<192x1xf32> to vector<192x32xf32>
    %19 = arith.mulf %14, %18 : vector<192x32xf32>
    %c0_5 = arith.constant 0 : index
    %c0_6 = arith.constant 0 : index
    %20 = vector.load %arg2[%c0_5, %c0_6] : memref<1x32xbf16, #tpu.memory_space<vmem>>, vector<1x32xbf16>
    %21 = arith.extf %20 : vector<1x32xbf16> to vector<1x32xf32>
    %22 = vector.broadcast %21 : vector<1x32xf32> to vector<192x32xf32>
    %23 = arith.mulf %19, %22 : vector<192x32xf32>
    %c0_7 = arith.constant 0 : index
    %c0_8 = arith.constant 0 : index
    %24 = vector.load %arg3[%c0_7, %c0_8] : memref<1x32xbf16, #tpu.memory_space<vmem>>, vector<1x32xbf16>
    %25 = arith.extf %24 : vector<1x32xbf16> to vector<1x32xf32>
    %26 = vector.broadcast %25 : vector<1x32xf32> to vector<192x32xf32>
    %27 = arith.addf %23, %26 : vector<192x32xf32>
    %28 = arith.truncf %27 : vector<192x32xf32> to vector<192x32xbf16>
    %c0_9 = arith.constant 0 : index
    %c0_10 = arith.constant 0 : index
    %29 = vector.load %arg4[%c0_9, %c0_10] : memref<192x32xbf16, #tpu.memory_space<vmem>>, vector<192x32xbf16>
    tpu.vector_store %arg4[%c0_9, %c0_10], %28 {strides = array<i32>} : memref<192x32xbf16, #tpu.memory_space<vmem>>, vector<192x32xbf16>,
    return
  }
  func.func @transform_0(%arg0: i32) -> (i32, i32) {
    %c0_i32 = arith.constant 0 : i32
    %c0_i32_0 = arith.constant 0 : i32
    return %arg0, %c0_i32 : i32, i32
  }
  func.func @transform_1(%arg0: i32) -> (i32, i32) {
    %c0_i32 = arith.constant 0 : i32
    %c0_i32_0 = arith.constant 0 : i32
    %c0_i32_1 = arith.constant 0 : i32
    return %c0_i32, %c0_i32_0 : i32, i32
  }
  func.func @transform_2(%arg0: i32) -> (i32, i32) {
    %c0_i32 = arith.constant 0 : i32
    %c0_i32_0 = arith.constant 0 : i32
    %c0_i32_1 = arith.constant 0 : i32
    return %c0_i32, %c0_i32_0 : i32, i32
  }
  func.func @transform_3(%arg0: i32) -> (i32, i32) {
    %c0_i32 = arith.constant 0 : i32
    %c0_i32_0 = arith.constant 0 : i32
    return %arg0, %c0_i32 : i32, i32
  }
}

module attributes {stable_mosaic.version = 11 : i64} {
  func.func @_matmul_kernel(%arg0: i32, %arg1: i32, %arg2: i32, %arg3: memref<192x32xbf16, #tpu.memory_space<vmem>>, %arg4: memref<32x768xbf16, #tpu.memory_space<vmem>>, %arg5: memref<192x768xbf16, #tpu.memory_space<vmem>>, %arg6: memref<192x768xf32, #tpu.memory_space<vmem>>) attributes {dimension_semantics = [#tpu.dimension_semantics<parallel>, #tpu.dimension_semantics<parallel>, #tpu.dimension_semantics<arbitrary>], iteration_bounds = array<i64: 1, 2, 1>, scalar_prefetch = 0 : i64, scratch_operands = 1 : i64, tpu.core_type = #tpu.core_type<tc>, window_params = [{transform_indices = @transform_0, window_bounds = array<i64: 192, 32>}, {transform_indices = @transform_1, window_bounds = array<i64: 32, 768>}, {transform_indices = @transform_2, window_bounds = array<i64: 192, 768>}]} {
    %c0_i32 = arith.constant 0 : i32
    %0 = arith.cmpi eq, %arg2, %c0_i32 : i32
    %1 = arith.extui %0 : i1 to i32
    %c0_i32_0 = arith.constant 0 : i32
    %2 = arith.cmpi ne, %1, %c0_i32_0 : i32
    scf.if %2 {
      %cst_10 = arith.constant 0.000000e+00 : f32
      %12 = vector.broadcast %cst_10 : f32 to vector<192x768xf32>
      %c0_11 = arith.constant 0 : index
      %c0_12 = arith.constant 0 : index
      %13 = vector.load %arg6[%c0_11, %c0_12] : memref<192x768xf32, #tpu.memory_space<vmem>>, vector<192x768xf32>
      tpu.vector_store %arg6[%c0_11, %c0_12], %12 {strides = array<i32>} : memref<192x768xf32, #tpu.memory_space<vmem>>, vector<192x768xf32>,
    } else {
    }
    %c0 = arith.constant 0 : index
    %c0_1 = arith.constant 0 : index
    %3 = vector.load %arg6[%c0, %c0_1] : memref<192x768xf32, #tpu.memory_space<vmem>>, vector<192x768xf32>
    %c0_2 = arith.constant 0 : index
    %c0_3 = arith.constant 0 : index
    %4 = vector.load %arg3[%c0_2, %c0_3] : memref<192x32xbf16, #tpu.memory_space<vmem>>, vector<192x32xbf16>
    %c0_4 = arith.constant 0 : index
    %c0_5 = arith.constant 0 : index
    %5 = vector.load %arg4[%c0_4, %c0_5] : memref<32x768xbf16, #tpu.memory_space<vmem>>, vector<32x768xbf16>
    %cst = arith.constant dense<0.000000e+00> : vector<192x768xf32>
    %6 = tpu.matmul %4, %5, %cst {dimension_numbers = #tpu.dot_dimension_numbers<[1], [0], [0], [1], [0, 0, 1, 1], [], []>} : vector<192x32xbf16>, vector<32x768xbf16>, vector<192x768xf32> -> vector<192x768xf32>
    %7 = arith.addf %3, %6 : vector<192x768xf32>
    %c0_6 = arith.constant 0 : index
    %c0_7 = arith.constant 0 : index
    %8 = vector.load %arg6[%c0_6, %c0_7] : memref<192x768xf32, #tpu.memory_space<vmem>>, vector<192x768xf32>
    tpu.vector_store %arg6[%c0_6, %c0_7], %7 {strides = array<i32>} : memref<192x768xf32, #tpu.memory_space<vmem>>, vector<192x768xf32>,
    %c0_i32_8 = arith.constant 0 : i32
    %9 = arith.cmpi eq, %arg2, %c0_i32_8 : i32
    %10 = arith.extui %9 : i1 to i32
    %c0_i32_9 = arith.constant 0 : i32
    %11 = arith.cmpi ne, %10, %c0_i32_9 : i32
    scf.if %11 {
      %c0_10 = arith.constant 0 : index
      %c0_11 = arith.constant 0 : index
      %12 = vector.load %arg6[%c0_10, %c0_11] : memref<192x768xf32, #tpu.memory_space<vmem>>, vector<192x768xf32>
      %13 = arith.truncf %12 : vector<192x768xf32> to vector<192x768xbf16>
      %c0_12 = arith.constant 0 : index
      %c0_13 = arith.constant 0 : index
      %14 = vector.load %arg5[%c0_12, %c0_13] : memref<192x768xbf16, #tpu.memory_space<vmem>>, vector<192x768xbf16>
      tpu.vector_store %arg5[%c0_12, %c0_13], %13 {strides = array<i32>} : memref<192x768xbf16, #tpu.memory_space<vmem>>, vector<192x768xbf16>,
    } else {
    }
    return
  }
  func.func @transform_0(%arg0: i32, %arg1: i32, %arg2: i32) -> (i32, i32) {
    %c0_i32 = arith.constant 0 : i32
    return %arg0, %arg2 : i32, i32
  }
  func.func @transform_1(%arg0: i32, %arg1: i32, %arg2: i32) -> (i32, i32) {
    %c0_i32 = arith.constant 0 : i32
    return %arg2, %arg1 : i32, i32
  }
  func.func @transform_2(%arg0: i32, %arg1: i32, %arg2: i32) -> (i32, i32) {
    %c0_i32 = arith.constant 0 : i32
    return %arg0, %arg1 : i32, i32
  }
}

module attributes {stable_mosaic.version = 11 : i64} {
  func.func @_flash_attn_kernel(%arg0: i32, %arg1: i32, %arg2: i32, %arg3: i32, %arg4: memref<1x96x128xbf16, #tpu.memory_space<vmem>>, %arg5: memref<1x96x128xbf16, #tpu.memory_space<vmem>>, %arg6: memref<1x96x128xbf16, #tpu.memory_space<vmem>>, %arg7: memref<1x96x1xf32, #tpu.memory_space<vmem>>, %arg8: memref<1x1x96xf32, #tpu.memory_space<vmem>>, %arg9: memref<1x1x96xf32, #tpu.memory_space<vmem>>, %arg10: memref<1x96x128xbf16, #tpu.memory_space<vmem>>, %arg11: memref<96x1xf32, #tpu.memory_space<vmem>>, %arg12: memref<96x1xf32, #tpu.memory_space<vmem>>, %arg13: memref<96x128xf32, #tpu.memory_space<vmem>>) attributes {dimension_semantics = [#tpu.dimension_semantics<parallel>, #tpu.dimension_semantics<parallel>, #tpu.dimension_semantics<parallel>, #tpu.dimension_semantics<arbitrary>], iteration_bounds = array<i64: 2, 4, 1, 1>, scalar_prefetch = 0 : i64, scratch_operands = 3 : i64, tpu.core_type = #tpu.core_type<tc>, window_params = [{transform_indices = @transform_0, window_bounds = array<i64: 1, 96, 128>}, {transform_indices = @transform_1, window_bounds = array<i64: 1, 96, 128>}, {transform_indices = @transform_2, window_bounds = array<i64: 1, 96, 128>}, {transform_indices = @transform_3, window_bounds = array<i64: 1, 96, 1>}, {transform_indices = @transform_4, window_bounds = array<i64: 1, 1, 96>}, {transform_indices = @transform_5, window_bounds = array<i64: 1, 1, 96>}, {transform_indices = @transform_6, window_bounds = array<i64: 1, 96, 128>}]} {
    %c0_i32 = arith.constant 0 : i32
    %0 = arith.cmpi eq, %arg3, %c0_i32 : i32
    %1 = arith.extui %0 : i1 to i32
    %c0_i32_0 = arith.constant 0 : i32
    %2 = arith.cmpi ne, %1, %c0_i32_0 : i32
    scf.if %2 {
      %cst_35 = arith.constant 0xFF800000 : f32
      %48 = vector.broadcast %cst_35 : f32 to vector<96x1xf32>
      %c0_36 = arith.constant 0 : index
      %c0_37 = arith.constant 0 : index
      %49 = vector.load %arg11[%c0_36, %c0_37] : memref<96x1xf32, #tpu.memory_space<vmem>>, vector<96x1xf32>
      tpu.vector_store %arg11[%c0_36, %c0_37], %48 {strides = array<i32>} : memref<96x1xf32, #tpu.memory_space<vmem>>, vector<96x1xf32>,
      %cst_38 = arith.constant 0.000000e+00 : f32
      %50 = vector.broadcast %cst_38 : f32 to vector<96x1xf32>
      %c0_39 = arith.constant 0 : index
      %c0_40 = arith.constant 0 : index
      %51 = vector.load %arg12[%c0_39, %c0_40] : memref<96x1xf32, #tpu.memory_space<vmem>>, vector<96x1xf32>
      tpu.vector_store %arg12[%c0_39, %c0_40], %50 {strides = array<i32>} : memref<96x1xf32, #tpu.memory_space<vmem>>, vector<96x1xf32>,
      %cst_41 = arith.constant 0.000000e+00 : f32
      %52 = vector.broadcast %cst_41 : f32 to vector<96x128xf32>
      %c0_42 = arith.constant 0 : index
      %c0_43 = arith.constant 0 : index
      %53 = vector.load %arg13[%c0_42, %c0_43] : memref<96x128xf32, #tpu.memory_space<vmem>>, vector<96x128xf32>
      tpu.vector_store %arg13[%c0_42, %c0_43], %52 {strides = array<i32>} : memref<96x128xf32, #tpu.memory_space<vmem>>, vector<96x128xf32>,
    } else {
    }
    %c0 = arith.constant 0 : index
    %c0_1 = arith.constant 0 : index
    %c0_2 = arith.constant 0 : index
    %3 = vector.load %arg4[%c0, %c0_1, %c0_2] : memref<1x96x128xbf16, #tpu.memory_space<vmem>>, vector<1x96x128xbf16>
    %4 = vector.shape_cast %3 : vector<1x96x128xbf16> to vector<96x128xbf16>
    %c0_3 = arith.constant 0 : index
    %c0_4 = arith.constant 0 : index
    %c0_5 = arith.constant 0 : index
    %5 = vector.load %arg5[%c0_3, %c0_4, %c0_5] : memref<1x96x128xbf16, #tpu.memory_space<vmem>>, vector<1x96x128xbf16>
    %6 = vector.shape_cast %5 : vector<1x96x128xbf16> to vector<96x128xbf16>
    %c0_6 = arith.constant 0 : index
    %c0_7 = arith.constant 0 : index
    %c0_8 = arith.constant 0 : index
    %7 = vector.load %arg6[%c0_6, %c0_7, %c0_8] : memref<1x96x128xbf16, #tpu.memory_space<vmem>>, vector<1x96x128xbf16>
    %8 = vector.shape_cast %7 : vector<1x96x128xbf16> to vector<96x128xbf16>
    %cst = arith.constant dense<0.000000e+00> : vector<96x96xf32>
    %9 = tpu.matmul %4, %6, %cst {dimension_numbers = #tpu.dot_dimension_numbers<[1], [1], [0], [0], [0, 0, 1, 0], [], []>} : vector<96x128xbf16>, vector<96x128xbf16>, vector<96x96xf32> -> vector<96x96xf32>
    %c0_9 = arith.constant 0 : index
    %c0_10 = arith.constant 0 : index
    %c0_11 = arith.constant 0 : index
    %10 = vector.load %arg7[%c0_9, %c0_10, %c0_11] : memref<1x96x1xf32, #tpu.memory_space<vmem>>, vector<1x96x1xf32>
    %11 = vector.shape_cast %10 : vector<1x96x1xf32> to vector<96x1xf32>
    %c0_12 = arith.constant 0 : index
    %c0_13 = arith.constant 0 : index
    %c0_14 = arith.constant 0 : index
    %12 = vector.load %arg8[%c0_12, %c0_13, %c0_14] : memref<1x1x96xf32, #tpu.memory_space<vmem>>, vector<1x1x96xf32>
    %13 = vector.shape_cast %12 : vector<1x1x96xf32> to vector<1x96xf32>
    %14 = vector.broadcast %11 : vector<96x1xf32> to vector<96x96xf32>
    %15 = vector.broadcast %13 : vector<1x96xf32> to vector<96x96xf32>
    %16 = arith.mulf %14, %15 : vector<96x96xf32>
    %c0_15 = arith.constant 0 : index
    %c0_16 = arith.constant 0 : index
    %c0_17 = arith.constant 0 : index
    %17 = vector.load %arg9[%c0_15, %c0_16, %c0_17] : memref<1x1x96xf32, #tpu.memory_space<vmem>>, vector<1x1x96xf32>
    %18 = vector.shape_cast %17 : vector<1x1x96xf32> to vector<1x96xf32>
    %19 = vector.broadcast %18 : vector<1x96xf32> to vector<96x96xf32>
    %20 = arith.addf %16, %19 : vector<96x96xf32>
    %21 = arith.addf %9, %20 : vector<96x96xf32>
    %c0_18 = arith.constant 0 : index
    %c0_19 = arith.constant 0 : index
    %22 = vector.load %arg11[%c0_18, %c0_19] : memref<96x1xf32, #tpu.memory_space<vmem>>, vector<96x1xf32>
    %cst_20 = arith.constant dense<0xFF800000> : vector<96xf32>
    %23 = vector.multi_reduction <maximumf>, %21, %cst_20 [1] : vector<96x96xf32> to vector<96xf32>
    %24 = vector.shape_cast %23 : vector<96xf32> to vector<96x1xf32>
    %25 = arith.maximumf %22, %24 : vector<96x1xf32>
    %26 = arith.subf %22, %25 : vector<96x1xf32>
    %27 = math.exp %26 : vector<96x1xf32>
    %28 = vector.broadcast %25 : vector<96x1xf32> to vector<96x96xf32>
    %29 = arith.subf %21, %28 : vector<96x96xf32>
    %30 = math.exp %29 : vector<96x96xf32>
    %c0_21 = arith.constant 0 : index
    %c0_22 = arith.constant 0 : index
    %31 = vector.load %arg12[%c0_21, %c0_22] : memref<96x1xf32, #tpu.memory_space<vmem>>, vector<96x1xf32>
    %32 = arith.mulf %27, %31 : vector<96x1xf32>
    %cst_23 = arith.constant dense<0.000000e+00> : vector<96xf32>
    %33 = vector.multi_reduction <add>, %30, %cst_23 [1] : vector<96x96xf32> to vector<96xf32>
    %34 = vector.shape_cast %33 : vector<96xf32> to vector<96x1xf32>
    %35 = arith.addf %32, %34 : vector<96x1xf32>
    %c0_24 = arith.constant 0 : index
    %c0_25 = arith.constant 0 : index
    %36 = vector.load %arg12[%c0_24, %c0_25] : memref<96x1xf32, #tpu.memory_space<vmem>>, vector<96x1xf32>
    tpu.vector_store %arg12[%c0_24, %c0_25], %35 {strides = array<i32>} : memref<96x1xf32, #tpu.memory_space<vmem>>, vector<96x1xf32>,
    %c0_26 = arith.constant 0 : index
    %c0_27 = arith.constant 0 : index
    %37 = vector.load %arg13[%c0_26, %c0_27] : memref<96x128xf32, #tpu.memory_space<vmem>>, vector<96x128xf32>
    %38 = vector.broadcast %27 : vector<96x1xf32> to vector<96x128xf32>
    %39 = arith.mulf %38, %37 : vector<96x128xf32>
    %40 = arith.truncf %30 : vector<96x96xf32> to vector<96x96xbf16>
    %cst_28 = arith.constant dense<0.000000e+00> : vector<96x128xf32>
    %41 = tpu.matmul %40, %8, %cst_28 {dimension_numbers = #tpu.dot_dimension_numbers<[1], [0], [0], [1], [0, 0, 1, 1], [], []>} : vector<96x96xbf16>, vector<96x128xbf16>, vector<96x128xf32> -> vector<96x128xf32>
    %42 = arith.addf %39, %41 : vector<96x128xf32>
    %c0_29 = arith.constant 0 : index
    %c0_30 = arith.constant 0 : index
    %43 = vector.load %arg13[%c0_29, %c0_30] : memref<96x128xf32, #tpu.memory_space<vmem>>, vector<96x128xf32>
    tpu.vector_store %arg13[%c0_29, %c0_30], %42 {strides = array<i32>} : memref<96x128xf32, #tpu.memory_space<vmem>>, vector<96x128xf32>,
    %c0_31 = arith.constant 0 : index
    %c0_32 = arith.constant 0 : index
    %44 = vector.load %arg11[%c0_31, %c0_32] : memref<96x1xf32, #tpu.memory_space<vmem>>, vector<96x1xf32>
    tpu.vector_store %arg11[%c0_31, %c0_32], %25 {strides = array<i32>} : memref<96x1xf32, #tpu.memory_space<vmem>>, vector<96x1xf32>,
    %c0_i32_33 = arith.constant 0 : i32
    %45 = arith.cmpi eq, %arg3, %c0_i32_33 : i32
    %46 = arith.extui %45 : i1 to i32
    %c0_i32_34 = arith.constant 0 : i32
    %47 = arith.cmpi ne, %46, %c0_i32_34 : i32
    scf.if %47 {
      %c0_35 = arith.constant 0 : index
      %c0_36 = arith.constant 0 : index
      %48 = vector.load %arg12[%c0_35, %c0_36] : memref<96x1xf32, #tpu.memory_space<vmem>>, vector<96x1xf32>
      %49 = tpu.reciprocal %48 {approx = true} : vector<96x1xf32> -> vector<96x1xf32>
      %c0_37 = arith.constant 0 : index
      %c0_38 = arith.constant 0 : index
      %50 = vector.load %arg13[%c0_37, %c0_38] : memref<96x128xf32, #tpu.memory_space<vmem>>, vector<96x128xf32>
      %51 = vector.broadcast %49 : vector<96x1xf32> to vector<96x128xf32>
      %52 = arith.mulf %50, %51 : vector<96x128xf32>
      %53 = arith.truncf %52 : vector<96x128xf32> to vector<96x128xbf16>
      %c0_39 = arith.constant 0 : index
      %c0_40 = arith.constant 0 : index
      %c0_41 = arith.constant 0 : index
      %54 = vector.load %arg10[%c0_39, %c0_40, %c0_41] : memref<1x96x128xbf16, #tpu.memory_space<vmem>>, vector<1x96x128xbf16>
      %55 = vector.shape_cast %54 : vector<1x96x128xbf16> to vector<96x128xbf16>
      %56 = vector.shape_cast %53 : vector<96x128xbf16> to vector<1x96x128xbf16>
      tpu.vector_store %arg10[%c0_39, %c0_40, %c0_41], %56 {strides = array<i32>} : memref<1x96x128xbf16, #tpu.memory_space<vmem>>, vector<1x96x128xbf16>,
    } else {
    }
    return
  }
  func.func @transform_0(%arg0: i32, %arg1: i32, %arg2: i32, %arg3: i32) -> (i32, i32, i32) {
    %c0_i32 = arith.constant 0 : i32
    return %arg0, %arg2, %arg1 : i32, i32, i32
  }
  func.func @transform_1(%arg0: i32, %arg1: i32, %arg2: i32, %arg3: i32) -> (i32, i32, i32) {
    %c4_i32 = arith.constant 4 : i32
    %0 = arith.addi %c4_i32, %arg1 : i32
    %c0_i32 = arith.constant 0 : i32
    return %arg0, %arg3, %0 : i32, i32, i32
  }
  func.func @transform_2(%arg0: i32, %arg1: i32, %arg2: i32, %arg3: i32) -> (i32, i32, i32) {
    %c8_i32 = arith.constant 8 : i32
    %0 = arith.addi %c8_i32, %arg1 : i32
    %c0_i32 = arith.constant 0 : i32
    return %arg0, %arg3, %0 : i32, i32, i32
  }
  func.func @transform_3(%arg0: i32, %arg1: i32, %arg2: i32, %arg3: i32) -> (i32, i32, i32) {
    %c0_i32 = arith.constant 0 : i32
    %c0_i32_0 = arith.constant 0 : i32
    return %arg0, %arg2, %c0_i32 : i32, i32, i32
  }
  func.func @transform_4(%arg0: i32, %arg1: i32, %arg2: i32, %arg3: i32) -> (i32, i32, i32) {
    %c0_i32 = arith.constant 0 : i32
    %c0_i32_0 = arith.constant 0 : i32
    return %arg0, %c0_i32, %arg3 : i32, i32, i32
  }
  func.func @transform_5(%arg0: i32, %arg1: i32, %arg2: i32, %arg3: i32) -> (i32, i32, i32) {
    %c0_i32 = arith.constant 0 : i32
    %c0_i32_0 = arith.constant 0 : i32
    %c0_i32_1 = arith.constant 0 : i32
    return %c0_i32, %c0_i32_0, %arg3 : i32, i32, i32
  }
  func.func @transform_6(%arg0: i32, %arg1: i32, %arg2: i32, %arg3: i32) -> (i32, i32, i32) {
    %c0_i32 = arith.constant 0 : i32
    return %arg0, %arg2, %arg1 : i32, i32, i32
  }
}

module attributes {stable_mosaic.version = 11 : i64} {
  func.func @_matmul_kernel(%arg0: i32, %arg1: i32, %arg2: i32, %arg3: memref<192x512xbf16, #tpu.memory_space<vmem>>, %arg4: memref<512x32xbf16, #tpu.memory_space<vmem>>, %arg5: memref<192x32xbf16, #tpu.memory_space<vmem>>, %arg6: memref<1x1xf32, #tpu.memory_space<vmem>>, %arg7: memref<192x32xbf16, #tpu.memory_space<vmem>>, %arg8: memref<192x32xf32, #tpu.memory_space<vmem>>) attributes {dimension_semantics = [#tpu.dimension_semantics<parallel>, #tpu.dimension_semantics<parallel>, #tpu.dimension_semantics<arbitrary>], iteration_bounds = array<i64: 1, 1, 1>, scalar_prefetch = 0 : i64, scratch_operands = 1 : i64, tpu.core_type = #tpu.core_type<tc>, window_params = [{transform_indices = @transform_0, window_bounds = array<i64: 192, 512>}, {transform_indices = @transform_1, window_bounds = array<i64: 512, 32>}, {transform_indices = @transform_2, window_bounds = array<i64: 192, 32>}, {pipeline_mode = #tpu.pipeline_mode<synchronous>, transform_indices = @transform_3, window_bounds = array<i64: 1, 1>}, {transform_indices = @transform_4, window_bounds = array<i64: 192, 32>}]} {
    %c0_i32 = arith.constant 0 : i32
    %0 = arith.cmpi eq, %arg2, %c0_i32 : i32
    %1 = arith.extui %0 : i1 to i32
    %c0_i32_0 = arith.constant 0 : i32
    %2 = arith.cmpi ne, %1, %c0_i32_0 : i32
    scf.if %2 {
      %cst_10 = arith.constant 0.000000e+00 : f32
      %12 = vector.broadcast %cst_10 : f32 to vector<192x32xf32>
      %c0_11 = arith.constant 0 : index
      %c0_12 = arith.constant 0 : index
      %13 = vector.load %arg8[%c0_11, %c0_12] : memref<192x32xf32, #tpu.memory_space<vmem>>, vector<192x32xf32>
      tpu.vector_store %arg8[%c0_11, %c0_12], %12 {strides = array<i32>} : memref<192x32xf32, #tpu.memory_space<vmem>>, vector<192x32xf32>,
    } else {
    }
    %c0 = arith.constant 0 : index
    %c0_1 = arith.constant 0 : index
    %3 = vector.load %arg8[%c0, %c0_1] : memref<192x32xf32, #tpu.memory_space<vmem>>, vector<192x32xf32>
    %c0_2 = arith.constant 0 : index
    %c0_3 = arith.constant 0 : index
    %4 = vector.load %arg3[%c0_2, %c0_3] : memref<192x512xbf16, #tpu.memory_space<vmem>>, vector<192x512xbf16>
    %c0_4 = arith.constant 0 : index
    %c0_5 = arith.constant 0 : index
    %5 = vector.load %arg4[%c0_4, %c0_5] : memref<512x32xbf16, #tpu.memory_space<vmem>>, vector<512x32xbf16>
    %cst = arith.constant dense<0.000000e+00> : vector<192x32xf32>
    %6 = tpu.matmul %4, %5, %cst {dimension_numbers = #tpu.dot_dimension_numbers<[1], [0], [0], [1], [0, 0, 1, 1], [], []>} : vector<192x512xbf16>, vector<512x32xbf16>, vector<192x32xf32> -> vector<192x32xf32>
    %7 = arith.addf %3, %6 : vector<192x32xf32>
    %c0_6 = arith.constant 0 : index
    %c0_7 = arith.constant 0 : index
    %8 = vector.load %arg8[%c0_6, %c0_7] : memref<192x32xf32, #tpu.memory_space<vmem>>, vector<192x32xf32>
    tpu.vector_store %arg8[%c0_6, %c0_7], %7 {strides = array<i32>} : memref<192x32xf32, #tpu.memory_space<vmem>>, vector<192x32xf32>,
    %c0_i32_8 = arith.constant 0 : i32
    %9 = arith.cmpi eq, %arg2, %c0_i32_8 : i32
    %10 = arith.extui %9 : i1 to i32
    %c0_i32_9 = arith.constant 0 : i32
    %11 = arith.cmpi ne, %10, %c0_i32_9 : i32
    scf.if %11 {
      %c0_10 = arith.constant 0 : index
      %c0_11 = arith.constant 0 : index
      %12 = vector.load %arg8[%c0_10, %c0_11] : memref<192x32xf32, #tpu.memory_space<vmem>>, vector<192x32xf32>
      %c0_12 = arith.constant 0 : index
      %c0_13 = arith.constant 0 : index
      %13 = vector.load %arg5[%c0_12, %c0_13] : memref<192x32xbf16, #tpu.memory_space<vmem>>, vector<192x32xbf16>
      %14 = arith.extf %13 : vector<192x32xbf16> to vector<192x32xf32>
      %c0_14 = arith.constant 0 : index
      %c0_15 = arith.constant 0 : index
      %15 = vector.load %arg6[%c0_14, %c0_15] : memref<1x1xf32, #tpu.memory_space<vmem>>, vector<1x1xf32>
      %16 = vector.broadcast %15 : vector<1x1xf32> to vector<192x32xf32>
      %17 = arith.mulf %16, %12 : vector<192x32xf32>
      %18 = arith.addf %14, %17 : vector<192x32xf32>
      %19 = arith.truncf %18 : vector<192x32xf32> to vector<192x32xbf16>
      %c0_16 = arith.constant 0 : index
      %c0_17 = arith.constant 0 : index
      %20 = vector.load %arg7[%c0_16, %c0_17] : memref<192x32xbf16, #tpu.memory_space<vmem>>, vector<192x32xbf16>
      tpu.vector_store %arg7[%c0_16, %c0_17], %19 {strides = array<i32>} : memref<192x32xbf16, #tpu.memory_space<vmem>>, vector<192x32xbf16>,
    } else {
    }
    return
  }
  func.func @transform_0(%arg0: i32, %arg1: i32, %arg2: i32) -> (i32, i32) {
    %c0_i32 = arith.constant 0 : i32
    return %arg0, %arg2 : i32, i32
  }
  func.func @transform_1(%arg0: i32, %arg1: i32, %arg2: i32) -> (i32, i32) {
    %c0_i32 = arith.constant 0 : i32
    return %arg2, %arg1 : i32, i32
  }
  func.func @transform_2(%arg0: i32, %arg1: i32, %arg2: i32) -> (i32, i32) {
    %c0_i32 = arith.constant 0 : i32
    return %arg0, %arg1 : i32, i32
  }
  func.func @transform_3(%arg0: i32, %arg1: i32, %arg2: i32) -> (i32, i32) {
    %c0_i32 = arith.constant 0 : i32
    %c0_i32_0 = arith.constant 0 : i32
    %c0_i32_1 = arith.constant 0 : i32
    return %c0_i32, %c0_i32_0 : i32, i32
  }
  func.func @transform_4(%arg0: i32, %arg1: i32, %arg2: i32) -> (i32, i32) {
    %c0_i32 = arith.constant 0 : i32
    return %arg0, %arg1 : i32, i32
  }
}

module attributes {stable_mosaic.version = 11 : i64} {
  func.func @_matmul_kernel(%arg0: i32, %arg1: i32, %arg2: i32, %arg3: memref<192x32xbf16, #tpu.memory_space<vmem>>, %arg4: memref<32x128xbf16, #tpu.memory_space<vmem>>, %arg5: memref<1x128xbf16, #tpu.memory_space<vmem>>, %arg6: memref<192x128xbf16, #tpu.memory_space<vmem>>, %arg7: memref<192x128xf32, #tpu.memory_space<vmem>>) attributes {dimension_semantics = [#tpu.dimension_semantics<parallel>, #tpu.dimension_semantics<parallel>, #tpu.dimension_semantics<arbitrary>], iteration_bounds = array<i64: 1, 1, 1>, scalar_prefetch = 0 : i64, scratch_operands = 1 : i64, tpu.core_type = #tpu.core_type<tc>, window_params = [{transform_indices = @transform_0, window_bounds = array<i64: 192, 32>}, {transform_indices = @transform_1, window_bounds = array<i64: 32, 128>}, {transform_indices = @transform_2, window_bounds = array<i64: 1, 128>}, {transform_indices = @transform_3, window_bounds = array<i64: 192, 128>}]} {
    %c0_i32 = arith.constant 0 : i32
    %0 = arith.cmpi eq, %arg2, %c0_i32 : i32
    %1 = arith.extui %0 : i1 to i32
    %c0_i32_0 = arith.constant 0 : i32
    %2 = arith.cmpi ne, %1, %c0_i32_0 : i32
    scf.if %2 {
      %cst_10 = arith.constant 0.000000e+00 : f32
      %12 = vector.broadcast %cst_10 : f32 to vector<192x128xf32>
      %c0_11 = arith.constant 0 : index
      %c0_12 = arith.constant 0 : index
      %13 = vector.load %arg7[%c0_11, %c0_12] : memref<192x128xf32, #tpu.memory_space<vmem>>, vector<192x128xf32>
      tpu.vector_store %arg7[%c0_11, %c0_12], %12 {strides = array<i32>} : memref<192x128xf32, #tpu.memory_space<vmem>>, vector<192x128xf32>,
    } else {
    }
    %c0 = arith.constant 0 : index
    %c0_1 = arith.constant 0 : index
    %3 = vector.load %arg7[%c0, %c0_1] : memref<192x128xf32, #tpu.memory_space<vmem>>, vector<192x128xf32>
    %c0_2 = arith.constant 0 : index
    %c0_3 = arith.constant 0 : index
    %4 = vector.load %arg3[%c0_2, %c0_3] : memref<192x32xbf16, #tpu.memory_space<vmem>>, vector<192x32xbf16>
    %c0_4 = arith.constant 0 : index
    %c0_5 = arith.constant 0 : index
    %5 = vector.load %arg4[%c0_4, %c0_5] : memref<32x128xbf16, #tpu.memory_space<vmem>>, vector<32x128xbf16>
    %cst = arith.constant dense<0.000000e+00> : vector<192x128xf32>
    %6 = tpu.matmul %4, %5, %cst {dimension_numbers = #tpu.dot_dimension_numbers<[1], [0], [0], [1], [0, 0, 1, 1], [], []>} : vector<192x32xbf16>, vector<32x128xbf16>, vector<192x128xf32> -> vector<192x128xf32>
    %7 = arith.addf %3, %6 : vector<192x128xf32>
    %c0_6 = arith.constant 0 : index
    %c0_7 = arith.constant 0 : index
    %8 = vector.load %arg7[%c0_6, %c0_7] : memref<192x128xf32, #tpu.memory_space<vmem>>, vector<192x128xf32>
    tpu.vector_store %arg7[%c0_6, %c0_7], %7 {strides = array<i32>} : memref<192x128xf32, #tpu.memory_space<vmem>>, vector<192x128xf32>,
    %c0_i32_8 = arith.constant 0 : i32
    %9 = arith.cmpi eq, %arg2, %c0_i32_8 : i32
    %10 = arith.extui %9 : i1 to i32
    %c0_i32_9 = arith.constant 0 : i32
    %11 = arith.cmpi ne, %10, %c0_i32_9 : i32
    scf.if %11 {
      %c0_10 = arith.constant 0 : index
      %c0_11 = arith.constant 0 : index
      %12 = vector.load %arg7[%c0_10, %c0_11] : memref<192x128xf32, #tpu.memory_space<vmem>>, vector<192x128xf32>
      %c0_12 = arith.constant 0 : index
      %c0_13 = arith.constant 0 : index
      %13 = vector.load %arg5[%c0_12, %c0_13] : memref<1x128xbf16, #tpu.memory_space<vmem>>, vector<1x128xbf16>
      %14 = arith.extf %13 : vector<1x128xbf16> to vector<1x128xf32>
      %15 = vector.broadcast %14 : vector<1x128xf32> to vector<192x128xf32>
      %16 = arith.addf %12, %15 : vector<192x128xf32>
      %cst_14 = arith.constant 5.000000e-01 : f32
      %17 = vector.broadcast %cst_14 : f32 to vector<192x128xf32>
      %18 = arith.mulf %17, %16 : vector<192x128xf32>
      %cst_15 = arith.constant 0.707106769 : f32
      %19 = vector.broadcast %cst_15 : f32 to vector<192x128xf32>
      %20 = arith.mulf %16, %19 : vector<192x128xf32>
      %cst_16 = arith.constant 0.000000e+00 : f32
      %21 = vector.broadcast %cst_16 : f32 to vector<192x128xf32>
      %22 = arith.cmpf oge, %20, %21 : vector<192x128xf32>
      %cst_17 = arith.constant 1.000000e+00 : f32
      %cst_18 = arith.constant -1.000000e+00 : f32
      %23 = vector.broadcast %cst_17 : f32 to vector<192x128xf32>
      %24 = vector.broadcast %cst_18 : f32 to vector<192x128xf32>
      %25 = arith.select %22, %23, %24 : vector<192x128xi1>, vector<192x128xf32>
      %26 = math.absf %20 : vector<192x128xf32>
      %cst_19 = arith.constant 0.327591091 : f32
      %27 = vector.broadcast %cst_19 : f32 to vector<192x128xf32>
      %28 = arith.mulf %27, %26 : vector<192x128xf32>
      %cst_20 = arith.constant 1.000000e+00 : f32
      %29 = vector.broadcast %cst_20 : f32 to vector<192x128xf32>
      %30 = arith.addf %29, %28 : vector<192x128xf32>
      %31 = tpu.reciprocal %30 {approx = true} : vector<192x128xf32> -> vector<192x128xf32>
      %cst_21 = arith.constant 1.06140542 : f32
      %32 = vector.broadcast %cst_21 : f32 to vector<192x128xf32>
      %33 = arith.mulf %32, %31 : vector<192x128xf32>
      %cst_22 = arith.constant -1.45315206 : f32
      %34 = vector.broadcast %cst_22 : f32 to vector<192x128xf32>
      %35 = arith.addf %33, %34 : vector<192x128xf32>
      %36 = arith.mulf %35, %31 : vector<192x128xf32>
      %cst_23 = arith.constant 1.42141378 : f32
      %37 = vector.broadcast %cst_23 : f32 to vector<192x128xf32>
      %38 = arith.addf %36, %37 : vector<192x128xf32>
      %39 = arith.mulf %38, %31 : vector<192x128xf32>
      %cst_24 = arith.constant -0.284496725 : f32
      %40 = vector.broadcast %cst_24 : f32 to vector<192x128xf32>
      %41 = arith.addf %39, %40 : vector<192x128xf32>
      %42 = arith.mulf %41, %31 : vector<192x128xf32>
      %cst_25 = arith.constant 0.254829586 : f32
      %43 = vector.broadcast %cst_25 : f32 to vector<192x128xf32>
      %44 = arith.addf %42, %43 : vector<192x128xf32>
      %45 = arith.mulf %44, %31 : vector<192x128xf32>
      %cst_26 = arith.constant 0.000000e+00 : f32
      %46 = vector.broadcast %cst_26 : f32 to vector<192x128xf32>
      %47 = arith.subf %46, %26 : vector<192x128xf32>
      %48 = arith.mulf %47, %26 : vector<192x128xf32>
      %49 = math.exp %48 : vector<192x128xf32>
      %50 = arith.mulf %45, %49 : vector<192x128xf32>
      %cst_27 = arith.constant 1.000000e+00 : f32
      %51 = vector.broadcast %cst_27 : f32 to vector<192x128xf32>
      %52 = arith.subf %51, %50 : vector<192x128xf32>
      %53 = arith.mulf %25, %52 : vector<192x128xf32>
      %cst_28 = arith.constant 1.000000e+00 : f32
      %54 = vector.broadcast %cst_28 : f32 to vector<192x128xf32>
      %55 = arith.addf %54, %53 : vector<192x128xf32>
      %56 = arith.mulf %18, %55 : vector<192x128xf32>
      %57 = arith.truncf %56 : vector<192x128xf32> to vector<192x128xbf16>
      %c0_29 = arith.constant 0 : index
      %c0_30 = arith.constant 0 : index
      %58 = vector.load %arg6[%c0_29, %c0_30] : memref<192x128xbf16, #tpu.memory_space<vmem>>, vector<192x128xbf16>
      tpu.vector_store %arg6[%c0_29, %c0_30], %57 {strides = array<i32>} : memref<192x128xbf16, #tpu.memory_space<vmem>>, vector<192x128xbf16>,
    } else {
    }
    return
  }
  func.func @transform_0(%arg0: i32, %arg1: i32, %arg2: i32) -> (i32, i32) {
    %c0_i32 = arith.constant 0 : i32
    return %arg0, %arg2 : i32, i32
  }
  func.func @transform_1(%arg0: i32, %arg1: i32, %arg2: i32) -> (i32, i32) {
    %c0_i32 = arith.constant 0 : i32
    return %arg2, %arg1 : i32, i32
  }
  func.func @transform_2(%arg0: i32, %arg1: i32, %arg2: i32) -> (i32, i32) {
    %c0_i32 = arith.constant 0 : i32
    %c0_i32_0 = arith.constant 0 : i32
    return %c0_i32, %arg1 : i32, i32
  }
  func.func @transform_3(%arg0: i32, %arg1: i32, %arg2: i32) -> (i32, i32) {
    %c0_i32 = arith.constant 0 : i32
    return %arg0, %arg1 : i32, i32
  }
}

module attributes {stable_mosaic.version = 11 : i64} {
  func.func @_matmul_kernel(%arg0: i32, %arg1: i32, %arg2: i32, %arg3: memref<192x128xbf16, #tpu.memory_space<vmem>>, %arg4: memref<128x32xbf16, #tpu.memory_space<vmem>>, %arg5: memref<1x32xbf16, #tpu.memory_space<vmem>>, %arg6: memref<192x32xbf16, #tpu.memory_space<vmem>>, %arg7: memref<1x1xf32, #tpu.memory_space<vmem>>, %arg8: memref<192x32xbf16, #tpu.memory_space<vmem>>, %arg9: memref<192x32xf32, #tpu.memory_space<vmem>>) attributes {dimension_semantics = [#tpu.dimension_semantics<parallel>, #tpu.dimension_semantics<parallel>, #tpu.dimension_semantics<arbitrary>], iteration_bounds = array<i64: 1, 1, 1>, scalar_prefetch = 0 : i64, scratch_operands = 1 : i64, tpu.core_type = #tpu.core_type<tc>, window_params = [{transform_indices = @transform_0, window_bounds = array<i64: 192, 128>}, {transform_indices = @transform_1, window_bounds = array<i64: 128, 32>}, {transform_indices = @transform_2, window_bounds = array<i64: 1, 32>}, {transform_indices = @transform_3, window_bounds = array<i64: 192, 32>}, {pipeline_mode = #tpu.pipeline_mode<synchronous>, transform_indices = @transform_4, window_bounds = array<i64: 1, 1>}, {transform_indices = @transform_5, window_bounds = array<i64: 192, 32>}]} {
    %c0_i32 = arith.constant 0 : i32
    %0 = arith.cmpi eq, %arg2, %c0_i32 : i32
    %1 = arith.extui %0 : i1 to i32
    %c0_i32_0 = arith.constant 0 : i32
    %2 = arith.cmpi ne, %1, %c0_i32_0 : i32
    scf.if %2 {
      %cst_10 = arith.constant 0.000000e+00 : f32
      %12 = vector.broadcast %cst_10 : f32 to vector<192x32xf32>
      %c0_11 = arith.constant 0 : index
      %c0_12 = arith.constant 0 : index
      %13 = vector.load %arg9[%c0_11, %c0_12] : memref<192x32xf32, #tpu.memory_space<vmem>>, vector<192x32xf32>
      tpu.vector_store %arg9[%c0_11, %c0_12], %12 {strides = array<i32>} : memref<192x32xf32, #tpu.memory_space<vmem>>, vector<192x32xf32>,
    } else {
    }
    %c0 = arith.constant 0 : index
    %c0_1 = arith.constant 0 : index
    %3 = vector.load %arg9[%c0, %c0_1] : memref<192x32xf32, #tpu.memory_space<vmem>>, vector<192x32xf32>
    %c0_2 = arith.constant 0 : index
    %c0_3 = arith.constant 0 : index
    %4 = vector.load %arg3[%c0_2, %c0_3] : memref<192x128xbf16, #tpu.memory_space<vmem>>, vector<192x128xbf16>
    %c0_4 = arith.constant 0 : index
    %c0_5 = arith.constant 0 : index
    %5 = vector.load %arg4[%c0_4, %c0_5] : memref<128x32xbf16, #tpu.memory_space<vmem>>, vector<128x32xbf16>
    %cst = arith.constant dense<0.000000e+00> : vector<192x32xf32>
    %6 = tpu.matmul %4, %5, %cst {dimension_numbers = #tpu.dot_dimension_numbers<[1], [0], [0], [1], [0, 0, 1, 1], [], []>} : vector<192x128xbf16>, vector<128x32xbf16>, vector<192x32xf32> -> vector<192x32xf32>
    %7 = arith.addf %3, %6 : vector<192x32xf32>
    %c0_6 = arith.constant 0 : index
    %c0_7 = arith.constant 0 : index
    %8 = vector.load %arg9[%c0_6, %c0_7] : memref<192x32xf32, #tpu.memory_space<vmem>>, vector<192x32xf32>
    tpu.vector_store %arg9[%c0_6, %c0_7], %7 {strides = array<i32>} : memref<192x32xf32, #tpu.memory_space<vmem>>, vector<192x32xf32>,
    %c0_i32_8 = arith.constant 0 : i32
    %9 = arith.cmpi eq, %arg2, %c0_i32_8 : i32
    %10 = arith.extui %9 : i1 to i32
    %c0_i32_9 = arith.constant 0 : i32
    %11 = arith.cmpi ne, %10, %c0_i32_9 : i32
    scf.if %11 {
      %c0_10 = arith.constant 0 : index
      %c0_11 = arith.constant 0 : index
      %12 = vector.load %arg9[%c0_10, %c0_11] : memref<192x32xf32, #tpu.memory_space<vmem>>, vector<192x32xf32>
      %c0_12 = arith.constant 0 : index
      %c0_13 = arith.constant 0 : index
      %13 = vector.load %arg5[%c0_12, %c0_13] : memref<1x32xbf16, #tpu.memory_space<vmem>>, vector<1x32xbf16>
      %14 = arith.extf %13 : vector<1x32xbf16> to vector<1x32xf32>
      %15 = vector.broadcast %14 : vector<1x32xf32> to vector<192x32xf32>
      %16 = arith.addf %12, %15 : vector<192x32xf32>
      %c0_14 = arith.constant 0 : index
      %c0_15 = arith.constant 0 : index
      %17 = vector.load %arg6[%c0_14, %c0_15] : memref<192x32xbf16, #tpu.memory_space<vmem>>, vector<192x32xbf16>
      %18 = arith.extf %17 : vector<192x32xbf16> to vector<192x32xf32>
      %c0_16 = arith.constant 0 : index
      %c0_17 = arith.constant 0 : index
      %19 = vector.load %arg7[%c0_16, %c0_17] : memref<1x1xf32, #tpu.memory_space<vmem>>, vector<1x1xf32>
      %20 = vector.broadcast %19 : vector<1x1xf32> to vector<192x32xf32>
      %21 = arith.mulf %20, %16 : vector<192x32xf32>
      %22 = arith.addf %18, %21 : vector<192x32xf32>
      %23 = arith.truncf %22 : vector<192x32xf32> to vector<192x32xbf16>
      %c0_18 = arith.constant 0 : index
      %c0_19 = arith.constant 0 : index
      %24 = vector.load %arg8[%c0_18, %c0_19] : memref<192x32xbf16, #tpu.memory_space<vmem>>, vector<192x32xbf16>
      tpu.vector_store %arg8[%c0_18, %c0_19], %23 {strides = array<i32>} : memref<192x32xbf16, #tpu.memory_space<vmem>>, vector<192x32xbf16>,
    } else {
    }
    return
  }
  func.func @transform_0(%arg0: i32, %arg1: i32, %arg2: i32) -> (i32, i32) {
    %c0_i32 = arith.constant 0 : i32
    return %arg0, %arg2 : i32, i32
  }
  func.func @transform_1(%arg0: i32, %arg1: i32, %arg2: i32) -> (i32, i32) {
    %c0_i32 = arith.constant 0 : i32
    return %arg2, %arg1 : i32, i32
  }
  func.func @transform_2(%arg0: i32, %arg1: i32, %arg2: i32) -> (i32, i32) {
    %c0_i32 = arith.constant 0 : i32
    %c0_i32_0 = arith.constant 0 : i32
    return %c0_i32, %arg1 : i32, i32
  }
  func.func @transform_3(%arg0: i32, %arg1: i32, %arg2: i32) -> (i32, i32) {
    %c0_i32 = arith.constant 0 : i32
    return %arg0, %arg1 : i32, i32
  }
  func.func @transform_4(%arg0: i32, %arg1: i32, %arg2: i32) -> (i32, i32) {
    %c0_i32 = arith.constant 0 : i32
    %c0_i32_0 = arith.constant 0 : i32
    %c0_i32_1 = arith.constant 0 : i32
    return %c0_i32, %c0_i32_0 : i32, i32
  }
  func.func @transform_5(%arg0: i32, %arg1: i32, %arg2: i32) -> (i32, i32) {
    %c0_i32 = arith.constant 0 : i32
    return %arg0, %arg1 : i32, i32
  }
}

module attributes {stable_mosaic.version = 11 : i64} {
  func.func @_matmul_kernel(%arg0: i32, %arg1: i32, %arg2: i32, %arg3: memref<136x64xbf16, #tpu.memory_space<vmem>>, %arg4: memref<64x64xbf16, #tpu.memory_space<vmem>>, %arg5: memref<1x64xbf16, #tpu.memory_space<vmem>>, %arg6: memref<136x64xbf16, #tpu.memory_space<vmem>>, %arg7: memref<136x64xf32, #tpu.memory_space<vmem>>) attributes {dimension_semantics = [#tpu.dimension_semantics<parallel>, #tpu.dimension_semantics<parallel>, #tpu.dimension_semantics<arbitrary>], iteration_bounds = array<i64: 1, 1, 1>, scalar_prefetch = 0 : i64, scratch_operands = 1 : i64, tpu.core_type = #tpu.core_type<tc>, window_params = [{transform_indices = @transform_0, window_bounds = array<i64: 136, 64>}, {transform_indices = @transform_1, window_bounds = array<i64: 64, 64>}, {transform_indices = @transform_2, window_bounds = array<i64: 1, 64>}, {transform_indices = @transform_3, window_bounds = array<i64: 136, 64>}]} {
    %c0_i32 = arith.constant 0 : i32
    %0 = arith.cmpi eq, %arg2, %c0_i32 : i32
    %1 = arith.extui %0 : i1 to i32
    %c0_i32_0 = arith.constant 0 : i32
    %2 = arith.cmpi ne, %1, %c0_i32_0 : i32
    scf.if %2 {
      %cst_10 = arith.constant 0.000000e+00 : f32
      %12 = vector.broadcast %cst_10 : f32 to vector<136x64xf32>
      %c0_11 = arith.constant 0 : index
      %c0_12 = arith.constant 0 : index
      %13 = vector.load %arg7[%c0_11, %c0_12] : memref<136x64xf32, #tpu.memory_space<vmem>>, vector<136x64xf32>
      tpu.vector_store %arg7[%c0_11, %c0_12], %12 {strides = array<i32>} : memref<136x64xf32, #tpu.memory_space<vmem>>, vector<136x64xf32>,
    } else {
    }
    %c0 = arith.constant 0 : index
    %c0_1 = arith.constant 0 : index
    %3 = vector.load %arg7[%c0, %c0_1] : memref<136x64xf32, #tpu.memory_space<vmem>>, vector<136x64xf32>
    %c0_2 = arith.constant 0 : index
    %c0_3 = arith.constant 0 : index
    %4 = vector.load %arg3[%c0_2, %c0_3] : memref<136x64xbf16, #tpu.memory_space<vmem>>, vector<136x64xbf16>
    %c0_4 = arith.constant 0 : index
    %c0_5 = arith.constant 0 : index
    %5 = vector.load %arg4[%c0_4, %c0_5] : memref<64x64xbf16, #tpu.memory_space<vmem>>, vector<64x64xbf16>
    %cst = arith.constant dense<0.000000e+00> : vector<136x64xf32>
    %6 = tpu.matmul %4, %5, %cst {dimension_numbers = #tpu.dot_dimension_numbers<[1], [0], [0], [1], [0, 0, 1, 1], [], []>} : vector<136x64xbf16>, vector<64x64xbf16>, vector<136x64xf32> -> vector<136x64xf32>
    %7 = arith.addf %3, %6 : vector<136x64xf32>
    %c0_6 = arith.constant 0 : index
    %c0_7 = arith.constant 0 : index
    %8 = vector.load %arg7[%c0_6, %c0_7] : memref<136x64xf32, #tpu.memory_space<vmem>>, vector<136x64xf32>
    tpu.vector_store %arg7[%c0_6, %c0_7], %7 {strides = array<i32>} : memref<136x64xf32, #tpu.memory_space<vmem>>, vector<136x64xf32>,
    %c0_i32_8 = arith.constant 0 : i32
    %9 = arith.cmpi eq, %arg2, %c0_i32_8 : i32
    %10 = arith.extui %9 : i1 to i32
    %c0_i32_9 = arith.constant 0 : i32
    %11 = arith.cmpi ne, %10, %c0_i32_9 : i32
    scf.if %11 {
      %c0_10 = arith.constant 0 : index
      %c0_11 = arith.constant 0 : index
      %12 = vector.load %arg7[%c0_10, %c0_11] : memref<136x64xf32, #tpu.memory_space<vmem>>, vector<136x64xf32>
      %c0_12 = arith.constant 0 : index
      %c0_13 = arith.constant 0 : index
      %13 = vector.load %arg5[%c0_12, %c0_13] : memref<1x64xbf16, #tpu.memory_space<vmem>>, vector<1x64xbf16>
      %14 = arith.extf %13 : vector<1x64xbf16> to vector<1x64xf32>
      %15 = vector.broadcast %14 : vector<1x64xf32> to vector<136x64xf32>
      %16 = arith.addf %12, %15 : vector<136x64xf32>
      %17 = arith.truncf %16 : vector<136x64xf32> to vector<136x64xbf16>
      %c0_14 = arith.constant 0 : index
      %c0_15 = arith.constant 0 : index
      %18 = vector.load %arg6[%c0_14, %c0_15] : memref<136x64xbf16, #tpu.memory_space<vmem>>, vector<136x64xbf16>
      tpu.vector_store %arg6[%c0_14, %c0_15], %17 {strides = array<i32>} : memref<136x64xbf16, #tpu.memory_space<vmem>>, vector<136x64xbf16>,
    } else {
    }
    return
  }
  func.func @transform_0(%arg0: i32, %arg1: i32, %arg2: i32) -> (i32, i32) {
    %c0_i32 = arith.constant 0 : i32
    return %arg0, %arg2 : i32, i32
  }
  func.func @transform_1(%arg0: i32, %arg1: i32, %arg2: i32) -> (i32, i32) {
    %c0_i32 = arith.constant 0 : i32
    return %arg2, %arg1 : i32, i32
  }
  func.func @transform_2(%arg0: i32, %arg1: i32, %arg2: i32) -> (i32, i32) {
    %c0_i32 = arith.constant 0 : i32
    %c0_i32_0 = arith.constant 0 : i32
    return %c0_i32, %arg1 : i32, i32
  }
  func.func @transform_3(%arg0: i32, %arg1: i32, %arg2: i32) -> (i32, i32) {
    %c0_i32 = arith.constant 0 : i32
    return %arg0, %arg1 : i32, i32
  }
}

</mosaic_0001>

<bundles_post_ra>
// kernel: neuron_mllama_vision_forward.25
= control target key start
LH: loop header
LB: loop body
LE: loop exit
PB: predicated region body
PF: predicated region fallthrough
CT: control target
= control target key end

     0   :  { %vm16_vm0 = vcmask 261120   ;;  %v622_v0 = vmov 0   ;;  %v623_v2 = vmov 0.0   ;;  %vm233_vm1 = vcmask 523264   ;;  %s851_s1 = inlined_call_operand.vmem [shape: bf16[192,32], index: 1, kind: input, shape index: {}]   ;;  %s852_s0 = inlined_call_operand.vmem [shape: bf16[128,192], index: 0, kind: input, shape index: {}]   ;;  %s853_s2 = inlined_call_operand.vmem [shape: bf16[128,32], index: 2, kind: output, shape index: {}]  }
   0x1   :  { %258 = vmatprep.subr.bf16.mxu0 %v622_v0  ;;  %560 = vmatprep.subr.bf16.mxu1 %v622_v0  ;;  %v586_v1 = vld [vmem:[%s851_s1] sm:$0xff]   ;;  %17 = vst.msk [vmem:[#allocation2] sm:$0xff] %vm16_vm0, %v623_v2  ;;  %18 = vst.msk [vmem:[#allocation2 + $0x8] sm:$0xff] %vm16_vm0, %v623_v2  ;;  %v587_v3 = vld [vmem:[%s851_s1 + $0x8] sm:$0xff]   ;;  %vm471_vm2 = vcmask 257024  }
   0x2   :  { %19 = vst.msk [vmem:[#allocation2 + $0x10] sm:$0xff] %vm16_vm0, %v623_v2  ;;  %20 = vst.msk [vmem:[#allocation2 + $0x18] sm:$0xff] %vm16_vm0, %v623_v2  ;;  %259 = vmatpush1.bf16.msra.mxu0 %v586_v1  ;;  %572 = vmatpush1.bf16.msra.mxu1 %v586_v1  ;;  %v588_v4 = vld [vmem:[%s851_s1 + $0x10] sm:$0xff]   ;;  %v589_v5 = vld [vmem:[%s851_s1 + $0x18] sm:$0xff]  }
   0x3   :  { %21 = vst.msk [vmem:[#allocation2 + $0x20] sm:$0xff] %vm16_vm0, %v623_v2  ;;  %22 = vst.msk [vmem:[#allocation2 + $0x28] sm:$0xff] %vm16_vm0, %v623_v2  ;;  %260 = vmatprep.subr.bf16.mxu0 %v622_v0  ;;  %561 = vmatprep.subr.bf16.mxu1 %v622_v0  ;;  %v600_v6 = vld [vmem:[%s852_s0 + $0x4] ss:$8 sps:$4 sm:$0xff]   ;;  %v592_v10 = vld [vmem:[%s851_s1 + $0x30] sm:$0xff]  }
   0x4   :  { %23 = vst.msk [vmem:[#allocation2 + $0x30] sm:$0xff] %vm16_vm0, %v623_v2  ;;  %24 = vst.msk [vmem:[#allocation2 + $0x38] sm:$0xff] %vm16_vm0, %v623_v2  ;;  %v590_v7 = vld [vmem:[%s851_s1 + $0x20] sm:$0xff]   ;;  %520 = vmatprep.mubr.msk.bf16.mxu0 %vm233_vm1, %v600_v6  ;;  %v591_v9 = vld [vmem:[%s851_s1 + $0x28] sm:$0xff]  }
   0x5   :  { %25 = vst.msk [vmem:[#allocation2 + $0x40] sm:$0xff] %vm16_vm0, %v623_v2  ;;  %26 = vst.msk [vmem:[#allocation2 + $0x48] sm:$0xff] %vm16_vm0, %v623_v2  ;;  %v603_v8 = vld [vmem:[%s852_s0 + $0x44] ss:$8 sps:$4 sm:$0xff]   ;;  %v593_v11 = vld [vmem:[%s851_s1 + $0x38] sm:$0xff]  }
   0x6   :  { %27 = vst.msk [vmem:[#allocation2 + $0x50] sm:$0xff] %vm16_vm0, %v623_v2  ;;  %28 = vst.msk [vmem:[#allocation2 + $0x58] sm:$0xff] %vm16_vm0, %v623_v2  ;;  %261 = vmatpush1.bf16.msra.mxu0 %v587_v3  ;;  %573 = vmatpush1.bf16.msra.mxu1 %v587_v3  ;;  %v594_v12 = vld [vmem:[%s851_s1 + $0x40] sm:$0xff]   ;;  %v595_v13 = vld [vmem:[%s851_s1 + $0x48] sm:$0xff]  }
   0x7   :  { %29 = vst.msk [vmem:[#allocation2 + $0x60] sm:$0xff] %vm16_vm0, %v623_v2  ;;  %30 = vst.msk [vmem:[#allocation2 + $0x68] sm:$0xff] %vm16_vm0, %v623_v2  ;;  %262 = vmatprep.subr.bf16.mxu0 %v622_v0  ;;  %562 = vmatprep.subr.bf16.mxu1 %v622_v0  ;;  %v596_v14 = vld [vmem:[%s851_s1 + $0x50] sm:$0xff]   ;;  %v597_v15 = vld [vmem:[%s851_s1 + $0x58] sm:$0xff]  }
   0x8   :  { %31 = vst.msk [vmem:[#allocation2 + $0x70] sm:$0xff] %vm16_vm0, %v623_v2  ;;  %32 = vst.msk [vmem:[#allocation2 + $0x78] sm:$0xff] %vm16_vm0, %v623_v2  ;;  %524 = vmatprep.mubr.msk.bf16.mxu1 %vm233_vm1, %v603_v8  ;;  %v598_v16 = vld [vmem:[%s852_s0] ss:$8 sps:$4 sm:$0xff]   ;;  %v604_v18 = vld [vmem:[%s852_s0 + $0x14] ss:$8 sps:$4 sm:$0xff]  }
   0x9   :  { %v601_v17 = vld [vmem:[%s852_s0 + $0x40] ss:$8 sps:$4 sm:$0xff]   ;;  %v606_v19 = vld [vmem:[%s852_s0 + $0x54] ss:$8 sps:$4 sm:$0xff]   ;;  %v608_v20 = vld [vmem:[%s852_s0 + $0x10] ss:$8 sps:$4 sm:$0xff]  }
   0xa   :  { %263 = vmatpush1.bf16.msra.mxu0 %v588_v4  ;;  %574 = vmatpush1.bf16.msra.mxu1 %v588_v4  ;;  %v609_v21 = vld [vmem:[%s852_s0 + $0x50] ss:$8 sps:$4 sm:$0xff]   ;;  %v610_v22 = vld [vmem:[%s852_s0 + $0x24] ss:$8 sps:$4 sm:$0xff]   ;;  %v614_v24 = vld [vmem:[%s852_s0 + $0x20] ss:$8 sps:$4 sm:$0xff]  }
   0xb   :  { %264 = vmatprep.subr.bf16.mxu0 %v622_v0  ;;  %563 = vmatprep.subr.bf16.mxu1 %v622_v0  ;;  %v612_v23 = vld [vmem:[%s852_s0 + $0x64] ss:$8 sps:$4 sm:$0xff]   ;;  %v615_v25 = vld [vmem:[%s852_s0 + $0x60] ss:$8 sps:$4 sm:$0xff]   ;;  %v616_v26 = vld [vmem:[%s852_s0 + $0x34] ss:$8 sps:$4 sm:$0xff]  }
   0xc   :  { %v618_v27 = vld [vmem:[%s852_s0 + $0x74] ss:$8 sps:$4 sm:$0xff]   ;;  %v620_v28 = vld [vmem:[%s852_s0 + $0x30] ss:$8 sps:$4 sm:$0xff]   ;;  %v33_v30 = vld [vmem:[#allocation2] sm:$0xff] }
   0xd   :  { %v621_v29 = vld [vmem:[%s852_s0 + $0x70] ss:$8 sps:$4 sm:$0xff]   ;;  %v41_v31 = vld [vmem:[#allocation2 + $0x40] sm:$0xff]  ;;  %v34_v34 = vld [vmem:[#allocation2 + $0x8] sm:$0xff] }
   0xe   :  { %265 = vmatpush1.bf16.msra.mxu0 %v589_v5  ;;  %575 = vmatpush1.bf16.msra.mxu1 %v589_v5  ;;  %v42_v35 = vld [vmem:[#allocation2 + $0x48] sm:$0xff]  ;;  %v35_v46 = vld [vmem:[#allocation2 + $0x10] sm:$0xff]  ;;  %v36_v50 = vld [vmem:[#allocation2 + $0x18] sm:$0xff] }
   0xf   :  { %266 = vmatprep.subr.bf16.mxu0 %v622_v0  ;;  %564 = vmatprep.subr.bf16.mxu1 %v622_v0  ;;  %v43_v47 = vld [vmem:[#allocation2 + $0x50] sm:$0xff]  ;;  %v44_v51 = vld [vmem:[#allocation2 + $0x58] sm:$0xff]  ;;  %v37_v6 = vld [vmem:[#allocation2 + $0x20] sm:$0xff] }
  0x12   :  { %267 = vmatpush1.bf16.msra.mxu0 %v590_v7  ;;  %576 = vmatpush1.bf16.msra.mxu1 %v590_v7  ;;  %v45_v7 = vld [vmem:[#allocation2 + $0x60] sm:$0xff] }
  0x13   :  { %268 = vmatprep.subr.bf16.mxu0 %v622_v0  ;;  %565 = vmatprep.subr.bf16.mxu1 %v622_v0 }
  0x16   :  { %269 = vmatpush1.bf16.msra.mxu0 %v591_v9  ;;  %577 = vmatpush1.bf16.msra.mxu1 %v591_v9 }
  0x17   :  { %270 = vmatprep.subr.bf16.mxu0 %v622_v0  ;;  %566 = vmatprep.subr.bf16.mxu1 %v622_v0 }
  0x1a   :  { %271 = vmatpush1.bf16.msra.mxu0 %v592_v10  ;;  %578 = vmatpush1.bf16.msra.mxu1 %v592_v10  ;;  %v38_v10 = vld [vmem:[#allocation2 + $0x28] sm:$0xff] }
  0x1b   :  { %272 = vmatprep.subr.bf16.mxu0 %v622_v0  ;;  %567 = vmatprep.subr.bf16.mxu1 %v622_v0 }
  0x1e   :  { %273 = vmatpush1.bf16.msra.mxu0 %v593_v11  ;;  %579 = vmatpush1.bf16.msra.mxu1 %v593_v11  ;;  %v46_v11 = vld [vmem:[#allocation2 + $0x68] sm:$0xff] }
  0x1f   :  { %274 = vmatprep.subr.bf16.mxu0 %v622_v0  ;;  %568 = vmatprep.subr.bf16.mxu1 %v622_v0 }
  0x22   :  { %275 = vmatpush1.bf16.msra.mxu0 %v594_v12  ;;  %580 = vmatpush1.bf16.msra.mxu1 %v594_v12 }
  0x23   :  { %276 = vmatprep.subr.bf16.mxu0 %v622_v0  ;;  %569 = vmatprep.subr.bf16.mxu1 %v622_v0 }
  0x26   :  { %277 = vmatpush1.bf16.msra.mxu0 %v595_v13  ;;  %581 = vmatpush1.bf16.msra.mxu1 %v595_v13 }
  0x27   :  { %278 = vmatprep.subr.bf16.mxu0 %v622_v0  ;;  %570 = vmatprep.subr.bf16.mxu1 %v622_v0 }
  0x2a   :  { %279 = vmatpush1.bf16.msra.mxu0 %v596_v14  ;;  %582 = vmatpush1.bf16.msra.mxu1 %v596_v14 }
  0x2b   :  { %280 = vmatprep.subr.bf16.mxu0 %v622_v0  ;;  %571 = vmatprep.subr.bf16.mxu1 %v622_v0 }
  0x2e   :  { %281 = vmatpush1.bf16.msra.mxu0 %v597_v15  ;;  %583 = vmatpush1.bf16.msra.mxu1 %v597_v15 }
  0x31   :  { %291 = vmatmul.mubr.bf16.vlgmr.msra.gmra.mrb[0].mxu0 %v598_v16  ;;  %323 = vmatmul.mubr.bf16.vlgmr.msra.gmra.mrb[0].mxu1 %v601_v17 }
  0x32   :  { %521 = vmatprep.mubr.msk.bf16.mxu0 %vm233_vm1, %v604_v18  ;;  %525 = vmatprep.mubr.msk.bf16.mxu1 %vm233_vm1, %v606_v19 }
  0x39   :  { %299 = vmatmul.mubr.bf16.gmra.mrb[4].mxu0 %v608_v20  ;;  %331 = vmatmul.mubr.bf16.gmra.mrb[4].mxu1 %v609_v21 }
  0x3a   :  { %522 = vmatprep.mubr.msk.bf16.mxu0 %vm233_vm1, %v610_v22  ;;  %526 = vmatprep.mubr.msk.bf16.mxu1 %vm233_vm1, %v612_v23 }
  0x41   :  { %307 = vmatmul.mubr.bf16.gmra.mrb[8].mxu0 %v614_v24  ;;  %339 = vmatmul.mubr.bf16.gmra.mrb[8].mxu1 %v615_v25 }
  0x42   :  { %523 = vmatprep.mubr.msk.bf16.mxu0 %vm233_vm1, %v616_v26  ;;  %527 = vmatprep.mubr.msk.bf16.mxu1 %vm233_vm1, %v618_v27 }
  0x49   :  { %315 = vmatmul.mubr.bf16.gmra.mrb[12].mxu0 %v620_v28  ;;  %347 = vmatmul.mubr.bf16.gmra.mrb[12].mxu1 %v621_v29 }
 0x104   :  { %v292_v32 = vpop.f32.mrb[0].mxu0  ;;  %v324_v33 = vpop.f32.mrb[0].mxu1 }
 0x105   :  { %v355_v36 = vadd.f32 %v292_v32, %v33_v30  ;;  %v363_v37 = vadd.f32 %v324_v33, %v41_v31  ;;  %v294_v38 = vpop.f32.mrb[1].mxu0  ;;  %v326_v39 = vpop.f32.mrb[1].mxu1  ;;  %v39_v30 = vld [vmem:[#allocation2 + $0x30] sm:$0xff] }
 0x106   :  { %v295_v40 = vpop.f32.mrb[2].mxu0  ;;  %v327_v41 = vpop.f32.mrb[2].mxu1  ;;  %v47_v31 = vld [vmem:[#allocation2 + $0x70] sm:$0xff] }
 0x107   :  { %372 = vst.msk [vmem:[#allocation2] sm:$0xff] %vm16_vm0, %v355_v36  ;;  %380 = vst.msk [vmem:[#allocation2 + $0x40] sm:$0xff] %vm16_vm0, %v363_v37  ;;  %v356_v42 = vadd.f32 %v295_v40, %v34_v34  ;;  %v364_v43 = vadd.f32 %v327_v41, %v42_v35  ;;  %v297_v44 = vpop.f32.mrb[3].mxu0  ;;  %v329_v45 = vpop.f32.mrb[3].mxu1  ;;  %v40_v34 = vld [vmem:[#allocation2 + $0x38] sm:$0xff] }
 0x108   :  { %v48_v35 = vld [vmem:[#allocation2 + $0x78] sm:$0xff] }
 0x109   :  { %373 = vst.msk [vmem:[#allocation2 + $0x8] sm:$0xff] %vm16_vm0, %v356_v42  ;;  %381 = vst.msk [vmem:[#allocation2 + $0x48] sm:$0xff] %vm16_vm0, %v364_v43 }
 0x10c   :  { %v300_v48 = vpop.f32.mrb[4].mxu0  ;;  %v332_v49 = vpop.f32.mrb[4].mxu1 }
 0x10d   :  { %v357_v52 = vadd.f32 %v300_v48, %v35_v46  ;;  %v365_v53 = vadd.f32 %v332_v49, %v43_v47  ;;  %v302_v54 = vpop.f32.mrb[5].mxu0  ;;  %v334_v55 = vpop.f32.mrb[5].mxu1 }
 0x10e   :  { %v391_v56 = vld [vmem:[#allocation2] sm:$0xff]  ;;  %v303_v58 = vpop.f32.mrb[6].mxu0  ;;  %v335_v59 = vpop.f32.mrb[6].mxu1 }
 0x10f   :  { %v399_v57 = vld [vmem:[#allocation2 + $0x40] sm:$0xff]  ;;  %v544_v60 = vpack.c.bf16 %v391_v56, %v391_v56  ;;  %374 = vst.msk [vmem:[#allocation2 + $0x10] sm:$0xff] %vm16_vm0, %v357_v52  ;;  %382 = vst.msk [vmem:[#allocation2 + $0x50] sm:$0xff] %vm16_vm0, %v365_v53  ;;  %v358_v62 = vadd.f32 %v303_v58, %v36_v50  ;;  %v366_v63 = vadd.f32 %v335_v59, %v44_v51  ;;  %v305_v0 = vpop.f32.mrb[7].mxu0  ;;  %v337_v1 = vpop.f32.mrb[7].mxu1 }
 0x110   :  { %v552_v61 = vpack.c.bf16 %v399_v57, %v399_v57  ;;  %v392_v2 = vld [vmem:[#allocation2 + $0x8] sm:$0xff] }
 0x111   :  { %v400_v3 = vld [vmem:[#allocation2 + $0x48] sm:$0xff]  ;;  %472 = vst.msk [vmem:[%s853_s2] sm:$0xf] %vm471_vm2, %v544_v60  ;;  %v545_v4 = vpack.c.bf16 %v392_v2, %v392_v2 }
 0x112   :  { %480 = vst.msk [vmem:[%s853_s2 + $0x20] sm:$0xf] %vm471_vm2, %v552_v61  ;;  %v553_v5 = vpack.c.bf16 %v400_v3, %v400_v3 }
 0x113   :  { %375 = vst.msk [vmem:[#allocation2 + $0x18] sm:$0xff] %vm16_vm0, %v358_v62  ;;  %383 = vst.msk [vmem:[#allocation2 + $0x58] sm:$0xff] %vm16_vm0, %v366_v63 }
 0x114   :  { %473 = vst.msk [vmem:[%s853_s2 + $0x4] sm:$0xf] %vm471_vm2, %v545_v4  ;;  %481 = vst.msk [vmem:[%s853_s2 + $0x24] sm:$0xf] %vm471_vm2, %v553_v5  ;;  %v308_v8 = vpop.f32.mrb[8].mxu0  ;;  %v340_v9 = vpop.f32.mrb[8].mxu1 }
 0x115   :  { %v359_v12 = vadd.f32 %v308_v8, %v37_v6  ;;  %v367_v13 = vadd.f32 %v340_v9, %v45_v7  ;;  %v310_v14 = vpop.f32.mrb[9].mxu0  ;;  %v342_v15 = vpop.f32.mrb[9].mxu1 }
 0x116   :  { %v393_v16 = vld [vmem:[#allocation2 + $0x10] sm:$0xff]  ;;  %v311_v18 = vpop.f32.mrb[10].mxu0  ;;  %v343_v19 = vpop.f32.mrb[10].mxu1 }
 0x117   :  { %v401_v17 = vld [vmem:[#allocation2 + $0x50] sm:$0xff]  ;;  %v546_v20 = vpack.c.bf16 %v393_v16, %v393_v16  ;;  %376 = vst.msk [vmem:[#allocation2 + $0x20] sm:$0xff] %vm16_vm0, %v359_v12  ;;  %384 = vst.msk [vmem:[#allocation2 + $0x60] sm:$0xff] %vm16_vm0, %v367_v13  ;;  %v360_v22 = vadd.f32 %v311_v18, %v38_v10  ;;  %v368_v23 = vadd.f32 %v343_v19, %v46_v11  ;;  %v313_v24 = vpop.f32.mrb[11].mxu0  ;;  %v345_v25 = vpop.f32.mrb[11].mxu1 }
 0x118   :  { %v554_v21 = vpack.c.bf16 %v401_v17, %v401_v17 }
 0x119   :  { %474 = vst.msk [vmem:[%s853_s2 + $0x8] sm:$0xf] %vm471_vm2, %v546_v20 }
 0x11a   :  { %v394_v26 = vld [vmem:[#allocation2 + $0x18] sm:$0xff]  ;;  %482 = vst.msk [vmem:[%s853_s2 + $0x28] sm:$0xf] %vm471_vm2, %v554_v21 }
 0x11b   :  { %v402_v27 = vld [vmem:[#allocation2 + $0x58] sm:$0xff]  ;;  %v547_v28 = vpack.c.bf16 %v394_v26, %v394_v26  ;;  %377 = vst.msk [vmem:[#allocation2 + $0x28] sm:$0xff] %vm16_vm0, %v360_v22  ;;  %385 = vst.msk [vmem:[#allocation2 + $0x68] sm:$0xff] %vm16_vm0, %v368_v23 }
 0x11c   :  { %v555_v29 = vpack.c.bf16 %v402_v27, %v402_v27  ;;  %v316_v32 = vpop.f32.mrb[12].mxu0  ;;  %v348_v33 = vpop.f32.mrb[12].mxu1 }
 0x11d   :  { %475 = vst.msk [vmem:[%s853_s2 + $0xc] sm:$0xf] %vm471_vm2, %v547_v28  ;;  %v361_v36 = vadd.f32 %v316_v32, %v39_v30  ;;  %v369_v37 = vadd.f32 %v348_v33, %v47_v31  ;;  %v318_v38 = vpop.f32.mrb[13].mxu0  ;;  %v350_v39 = vpop.f32.mrb[13].mxu1 }
 0x11e   :  { %483 = vst.msk [vmem:[%s853_s2 + $0x2c] sm:$0xf] %vm471_vm2, %v555_v29  ;;  %v395_v40 = vld [vmem:[#allocation2 + $0x20] sm:$0xff]  ;;  %v319_v42 = vpop.f32.mrb[14].mxu0  ;;  %v351_v43 = vpop.f32.mrb[14].mxu1 }
 0x11f   :  { %v403_v41 = vld [vmem:[#allocation2 + $0x60] sm:$0xff]  ;;  %v548_v44 = vpack.c.bf16 %v395_v40, %v395_v40  ;;  %378 = vst.msk [vmem:[#allocation2 + $0x30] sm:$0xff] %vm16_vm0, %v361_v36  ;;  %386 = vst.msk [vmem:[#allocation2 + $0x70] sm:$0xff] %vm16_vm0, %v369_v37  ;;  %v362_v46 = vadd.f32 %v319_v42, %v40_v34  ;;  %v370_v47 = vadd.f32 %v351_v43, %v48_v35  ;;  %v321_v48 = vpop.f32.mrb[15].mxu0  ;;  %v353_v49 = vpop.f32.mrb[15].mxu1 }
 0x120   :  { %v556_v45 = vpack.c.bf16 %v403_v41, %v403_v41 }
 0x121   :  { %476 = vst.msk [vmem:[%s853_s2 + $0x10] sm:$0xf] %vm471_vm2, %v548_v44 }
 0x122   :  { %v396_v50 = vld [vmem:[#allocation2 + $0x28] sm:$0xff]  ;;  %484 = vst.msk [vmem:[%s853_s2 + $0x30] sm:$0xf] %vm471_vm2, %v556_v45 }
 0x123   :  { %v404_v51 = vld [vmem:[#allocation2 + $0x68] sm:$0xff]  ;;  %v549_v52 = vpack.c.bf16 %v396_v50, %v396_v50  ;;  %379 = vst.msk [vmem:[#allocation2 + $0x38] sm:$0xff] %vm16_vm0, %v362_v46  ;;  %387 = vst.msk [vmem:[#allocation2 + $0x78] sm:$0xff] %vm16_vm0, %v370_v47 }
 0x124   :  { %v557_v53 = vpack.c.bf16 %v404_v51, %v404_v51 }
 0x125   :  { %477 = vst.msk [vmem:[%s853_s2 + $0x14] sm:$0xf] %vm471_vm2, %v549_v52 }
 0x126   :  { %485 = vst.msk [vmem:[%s853_s2 + $0x34] sm:$0xf] %vm471_vm2, %v557_v53  ;;  %v397_v54 = vld [vmem:[#allocation2 + $0x30] sm:$0xff] }
 0x127   :  { %v405_v55 = vld [vmem:[#allocation2 + $0x70] sm:$0xff]  ;;  %v550_v56 = vpack.c.bf16 %v397_v54, %v397_v54 }
 0x128   :  { %v558_v57 = vpack.c.bf16 %v405_v55, %v405_v55 }
 0x129   :  { %478 = vst.msk [vmem:[%s853_s2 + $0x18] sm:$0xf] %vm471_vm2, %v550_v56 }
 0x12a   :  { %v398_v58 = vld [vmem:[#allocation2 + $0x38] sm:$0xff]  ;;  %486 = vst.msk [vmem:[%s853_s2 + $0x38] sm:$0xf] %vm471_vm2, %v558_v57 }
 0x12b   :  { %v406_v59 = vld [vmem:[#allocation2 + $0x78] sm:$0xff]  ;;  %v551_v60 = vpack.c.bf16 %v398_v58, %v398_v58 }
 0x12c   :  { %v559_v61 = vpack.c.bf16 %v406_v59, %v406_v59 }
 0x12d   :  { %479 = vst.msk [vmem:[%s853_s2 + $0x1c] sm:$0xf] %vm471_vm2, %v551_v60 }
 0x12e   :  { %487 = vst.msk [vmem:[%s853_s2 + $0x3c] sm:$0xf] %vm471_vm2, %v559_v61 }

// kernel: neuron_mllama_vision_forward.26
= control target key start
LH: loop header
LB: loop body
LE: loop exit
PB: predicated region body
PF: predicated region fallthrough
CT: control target
= control target key end

     0   :  { %vm48_vm0 = vcmask 261120   ;;  %vm386_vm1 = vcmask 257024   ;;  %s888_s0 = inlined_call_operand.vmem [shape: bf16[136,32], index: 0, kind: input, shape index: {}]   ;;  %s889_s1 = inlined_call_operand.vmem [shape: bf16[1,32], index: 1, kind: input, shape index: {}]   ;;  %s890_s2 = inlined_call_operand.vmem [shape: bf16[1,32], index: 2, kind: input, shape index: {}]   ;;  %s891_s3 = inlined_call_operand.vmem [shape: bf16[136,32], index: 3, kind: output, shape index: {}]  }
   0x1   :  { %v538_v0 = vld [vmem:[%s888_s0] sm:$0xff]   ;;  %v543_v1 = vld [vmem:[%s888_s0 + $0x8] sm:$0xff]   ;;  %v552_v6 = vld [vmem:[%s888_s0 + $0x10] sm:$0xff]  }
   0x2   :  { %v444_v2 = vunpack.c.l.bf16 %v538_v0  ;;  %v448_v3 = vunpack.c.l.bf16 %v543_v1  ;;  %v445_v4 = vunpack.c.h.bf16 %v538_v0  ;;  %v449_v5 = vunpack.c.h.bf16 %v543_v1  ;;  %v567_v13 = vld [vmem:[%s888_s0 + $0x18] sm:$0xff]   ;;  %v580_v18 = vld [vmem:[%s888_s0 + $0x20] sm:$0xff]   ;;  %v593_v23 = vld [vmem:[%s888_s0 + $0x28] sm:$0xff]  }
   0x3   :  { %v452_v11 = vunpack.c.l.bf16 %v552_v6  ;;  %v453_v12 = vunpack.c.h.bf16 %v552_v6  ;;  %v456_v16 = vunpack.c.l.bf16 %v567_v13  ;;  %v457_v17 = vunpack.c.h.bf16 %v567_v13  ;;  %v606_v28 = vld [vmem:[%s888_s0 + $0x30] sm:$0xff]   ;;  %v619_v33 = vld [vmem:[%s888_s0 + $0x38] sm:$0xff]   ;;  %v632_v38 = vld [vmem:[%s888_s0 + $0x40] sm:$0xf] }
   0x4   :  { %v49_v7 = vsel %vm48_vm0, %v444_v2, 0.0  ;;  %v55_v8 = vsel %vm48_vm0, %v448_v3, 0.0  ;;  %v52_v9 = vsel %vm48_vm0, %v445_v4, 0.0  ;;  %v58_v10 = vsel %vm48_vm0, %v449_v5, 0.0 }
   0x5   :  { %50 = vadd.xlane.f32.xlu0 %v49_v7  ;;  %56 = vadd.xlane.f32.xlu1 %v55_v8  ;;  %v61_v14 = vsel %vm48_vm0, %v452_v11, 0.0  ;;  %v64_v15 = vsel %vm48_vm0, %v453_v12, 0.0  ;;  %v67_v19 = vsel %vm48_vm0, %v456_v16, 0.0  ;;  %v70_v20 = vsel %vm48_vm0, %v457_v17, 0.0 }
   0x6   :  { %v460_v21 = vunpack.c.l.bf16 %v580_v18  ;;  %v461_v22 = vunpack.c.h.bf16 %v580_v18  ;;  %v464_v26 = vunpack.c.l.bf16 %v593_v23  ;;  %v465_v27 = vunpack.c.h.bf16 %v593_v23 }
   0x7   :  { %v468_v31 = vunpack.c.l.bf16 %v606_v28  ;;  %v469_v32 = vunpack.c.h.bf16 %v606_v28  ;;  %v472_v36 = vunpack.c.l.bf16 %v619_v33  ;;  %v473_v37 = vunpack.c.h.bf16 %v619_v33 }
   0x8   :  { %v73_v24 = vsel %vm48_vm0, %v460_v21, 0.0  ;;  %v76_v25 = vsel %vm48_vm0, %v461_v22, 0.0  ;;  %v79_v29 = vsel %vm48_vm0, %v464_v26, 0.0  ;;  %v82_v30 = vsel %vm48_vm0, %v465_v27, 0.0 }
   0x9   :  { %53 = vadd.xlane.f32.xlu0 %v52_v9  ;;  %59 = vadd.xlane.f32.xlu1 %v58_v10  ;;  %v85_v34 = vsel %vm48_vm0, %v468_v31, 0.0  ;;  %v88_v35 = vsel %vm48_vm0, %v469_v32, 0.0  ;;  %v91_v39 = vsel %vm48_vm0, %v472_v36, 0.0  ;;  %v94_v40 = vsel %vm48_vm0, %v473_v37, 0.0 }
   0xa   :  { %v47_v41 = vunpack.c.l.bf16 %v632_v38 }
   0xc   :  { %v97_v42 = vsel %vm48_vm0, %v47_v41, 0.0 }
   0xd   :  { %62 = vadd.xlane.f32.xlu0 %v61_v14  ;;  %65 = vadd.xlane.f32.xlu1 %v64_v15 }
  0x11   :  { %68 = vadd.xlane.f32.xlu0 %v67_v19  ;;  %71 = vadd.xlane.f32.xlu1 %v70_v20 }
  0x15   :  { %74 = vadd.xlane.f32.xlu0 %v73_v24  ;;  %77 = vadd.xlane.f32.xlu1 %v76_v25 }
  0x19   :  { %80 = vadd.xlane.f32.xlu0 %v79_v29  ;;  %83 = vadd.xlane.f32.xlu1 %v82_v30 }
  0x1d   :  { %86 = vadd.xlane.f32.xlu0 %v85_v34  ;;  %89 = vadd.xlane.f32.xlu1 %v88_v35 }
  0x21   :  { %92 = vadd.xlane.f32.xlu0 %v91_v39  ;;  %95 = vadd.xlane.f32.xlu1 %v94_v40 }
  0x25   :  { %98 = vadd.xlane.f32.xlu0 %v97_v42 }
  0x92   :  { %v51_v43 = vpop.xlane.xlu0 %50  ;;  %v57_v44 = vpop.xlane.xlu1 %56 }
  0x93   :  { %v101_v45 = vmul.f32 0.03125, %v51_v43  ;;  %v103_v46 = vmul.f32 0.03125, %v57_v44 }
  0x95   :  { %v644_v47 = vsub.f32 %v444_v2, %v101_v45  ;;  %v646_v48 = vsub.f32 %v448_v3, %v103_v46 }
  0x96   :  { %v54_v49 = vpop.xlane.xlu0 %53  ;;  %v60_v50 = vpop.xlane.xlu1 %59 }
  0x97   :  { %v102_v51 = vmul.f32 0.03125, %v54_v49  ;;  %v104_v52 = vmul.f32 0.03125, %v60_v50  ;;  %v135_v53 = vmul.f32 %v644_v47, %v644_v47  ;;  %v137_v54 = vmul.f32 %v646_v48, %v646_v48 }
  0x99   :  { %v654_v55 = vsub.f32 %v445_v4, %v102_v51  ;;  %v658_v56 = vsub.f32 %v449_v5, %v104_v52  ;;  %v152_v57 = vsel %vm48_vm0, %v135_v53, 0.0  ;;  %v158_v60 = vsel %vm48_vm0, %v137_v54, 0.0 }
  0x9a   :  { %153 = vadd.xlane.f32.xlu1 %v152_v57  ;;  %v63_v58 = vpop.xlane.xlu0 %62  ;;  %v66_v59 = vpop.xlane.xlu1 %65 }
  0x9b   :  { %v105_v61 = vmul.f32 0.03125, %v63_v58  ;;  %v106_v62 = vmul.f32 0.03125, %v66_v59  ;;  %v136_v63 = vmul.f32 %v654_v55, %v654_v55  ;;  %v138_v0 = vmul.f32 %v658_v56, %v658_v56 }
  0x9d   :  { %v668_v1 = vsub.f32 %v452_v11, %v105_v61  ;;  %v672_v2 = vsub.f32 %v453_v12, %v106_v62  ;;  %v155_v3 = vsel %vm48_vm0, %v136_v63, 0.0  ;;  %v161_v7 = vsel %vm48_vm0, %v138_v0, 0.0 }
  0x9e   :  { %159 = vadd.xlane.f32.xlu1 %v158_v60  ;;  %156 = vadd.xlane.f32.xlu0 %v155_v3  ;;  %v69_v4 = vpop.xlane.xlu0 %68  ;;  %v72_v5 = vpop.xlane.xlu1 %71 }
  0x9f   :  { %v107_v8 = vmul.f32 0.03125, %v69_v4  ;;  %v108_v9 = vmul.f32 0.03125, %v72_v5  ;;  %v139_v10 = vmul.f32 %v668_v1, %v668_v1  ;;  %v140_v11 = vmul.f32 %v672_v2, %v672_v2 }
  0xa1   :  { %v682_v6 = vsub.f32 %v456_v16, %v107_v8  ;;  %v686_v12 = vsub.f32 %v457_v17, %v108_v9  ;;  %v164_v14 = vsel %vm48_vm0, %v139_v10, 0.0  ;;  %v167_v20 = vsel %vm48_vm0, %v140_v11, 0.0 }
  0xa2   :  { %162 = vadd.xlane.f32.xlu0 %v161_v7  ;;  %165 = vadd.xlane.f32.xlu1 %v164_v14  ;;  %v75_v15 = vpop.xlane.xlu0 %74  ;;  %v78_v19 = vpop.xlane.xlu1 %77  ;;  %v273_v11 = vlaneseq }
  0xa3   :  { %v109_v24 = vmul.f32 0.03125, %v75_v15  ;;  %v110_v25 = vmul.f32 0.03125, %v78_v19  ;;  %v141_v29 = vmul.f32 %v682_v6, %v682_v6  ;;  %v142_v16 = vmul.f32 %v686_v12, %v686_v12 }
  0xa5   :  { %v696_v13 = vsub.f32 %v460_v21, %v109_v24  ;;  %v700_v17 = vsub.f32 %v461_v22, %v110_v25  ;;  %v170_v30 = vsel %vm48_vm0, %v141_v29, 0.0  ;;  %v173_v39 = vsel %vm48_vm0, %v142_v16, 0.0  ;;  %v271_v24 = vld [vmem:[%s889_s1] sm:$0x1] }
  0xa6   :  { %168 = vadd.xlane.f32.xlu0 %v167_v20  ;;  %171 = vadd.xlane.f32.xlu1 %v170_v30  ;;  %v81_v34 = vpop.xlane.xlu0 %80  ;;  %v84_v35 = vpop.xlane.xlu1 %83  ;;  %v274_v20 = vshrl.u32 %v273_v11, 7 }
  0xa7   :  { %v111_v40 = vmul.f32 0.03125, %v81_v34  ;;  %v112_v42 = vmul.f32 0.03125, %v84_v35  ;;  %v143_v43 = vmul.f32 %v696_v13, %v696_v13  ;;  %v144_v21 = vmul.f32 %v700_v17, %v700_v17  ;;  %v294_v34 = vld [vmem:[%s890_s2] sm:$0x1] }
  0xa9   :  { %v710_v18 = vsub.f32 %v464_v26, %v111_v40  ;;  %v714_v22 = vsub.f32 %v465_v27, %v112_v42  ;;  %v176_v44 = vsel %vm48_vm0, %v143_v43, 0.0  ;;  %v179_v49 = vsel %vm48_vm0, %v144_v21, 0.0 }
  0xaa   :  { %174 = vadd.xlane.f32.xlu0 %v173_v39  ;;  %177 = vadd.xlane.f32.xlu1 %v176_v44  ;;  %v87_v45 = vpop.xlane.xlu0 %86  ;;  %v90_v46 = vpop.xlane.xlu1 %89  ;;  %v272_v40 = vunpack.c.l.bf16 %v271_v24  ;;  %v275_v42 = vsub.s32 0, %v274_v20  ;;  %v295_v44 = vunpack.c.l.bf16 %v294_v34 }
  0xab   :  { %v113_v50 = vmul.f32 0.03125, %v87_v45  ;;  %v114_v51 = vmul.f32 0.03125, %v90_v46  ;;  %v145_v52 = vmul.f32 %v710_v18, %v710_v18  ;;  %v146_v26 = vmul.f32 %v714_v22, %v714_v22 }
  0xad   :  { %v724_v23 = vsub.f32 %v468_v31, %v113_v50  ;;  %v728_v27 = vsub.f32 %v469_v32, %v114_v51  ;;  %v182_v53 = vsel %vm48_vm0, %v145_v52, 0.0  ;;  %v185_v58 = vsel %vm48_vm0, %v146_v26, 0.0 }
  0xae   :  { %180 = vadd.xlane.f32.xlu0 %v179_v49  ;;  %183 = vadd.xlane.f32.xlu1 %v182_v53  ;;  %v93_v54 = vpop.xlane.xlu0 %92  ;;  %v96_v57 = vpop.xlane.xlu1 %95  ;;  %v765_v51 = vrot.slane %v272_v40, %v275_v42 }
  0xaf   :  { %v115_v59 = vmul.f32 0.03125, %v93_v54  ;;  %v116_v60 = vmul.f32 0.03125, %v96_v57  ;;  %v147_v61 = vmul.f32 %v724_v23, %v724_v23  ;;  %v148_v31 = vmul.f32 %v728_v27, %v728_v27 }
  0xb0   :  { %v767_v54 = vrot.slane %v295_v44, %v275_v42 }
  0xb1   :  { %v738_v28 = vsub.f32 %v472_v36, %v115_v59  ;;  %v742_v32 = vsub.f32 %v473_v37, %v116_v60  ;;  %v188_v62 = vsel %vm48_vm0, %v147_v61, 0.0  ;;  %v191_v3 = vsel %vm48_vm0, %v148_v31, 0.0 }
  0xb2   :  { %186 = vadd.xlane.f32.xlu0 %v185_v58  ;;  %189 = vadd.xlane.f32.xlu1 %v188_v62  ;;  %v99_v63 = vpop.xlane.xlu0 %98 }
  0xb3   :  { %v117_v0 = vmul.f32 0.03125, %v99_v63  ;;  %v149_v4 = vmul.f32 %v738_v28, %v738_v28  ;;  %v150_v5 = vmul.f32 %v742_v32, %v742_v32 }
  0xb5   :  { %v752_v36 = vsub.f32 %v47_v41, %v117_v0  ;;  %v194_v33 = vsel %vm48_vm0, %v149_v4, 0.0  ;;  %v197_v37 = vsel %vm48_vm0, %v150_v5, 0.0 }
  0xb6   :  { %192 = vadd.xlane.f32.xlu0 %v191_v3  ;;  %195 = vadd.xlane.f32.xlu1 %v194_v33 }
  0xb7   :  { %v151_v7 = vmul.f32 %v752_v36, %v752_v36 }
  0xb9   :  { %v200_v8 = vsel %vm48_vm0, %v151_v7, 0.0 }
  0xba   :  { %198 = vadd.xlane.f32.xlu0 %v197_v37  ;;  %201 = vadd.xlane.f32.xlu1 %v200_v8 }
 0x127   :  { %v154_v9 = vpop.xlane.xlu1 %153 }
 0x128   :  { %v203_v10 = vmul.f32 0.03125, %v154_v9 }
 0x12a   :  { %v220_v14 = vadd.f32 1e-05, %v203_v10 }
 0x12b   :  { %v160_v38 = vpop.xlane.xlu1 %159  ;;  %v157_v41 = vpop.xlane.xlu0 %156 }
 0x12c   :  { %481 = vrsqrt.f32 %v220_v14  ;;  %v205_v15 = vmul.f32 0.03125, %v160_v38  ;;  %v204_v19 = vmul.f32 0.03125, %v157_v41 }
 0x12e   :  { %v222_v25 = vadd.f32 1e-05, %v205_v15  ;;  %v221_v29 = vadd.f32 1e-05, %v204_v19 }
 0x12f   :  { %v166_v16 = vpop.xlane.xlu1 %165  ;;  %v163_v30 = vpop.xlane.xlu0 %162 }
 0x130   :  { %483 = vrsqrt.f32 %v222_v25  ;;  %v207_v35 = vmul.f32 0.03125, %v166_v16  ;;  %v206_v39 = vmul.f32 0.03125, %v163_v30 }
 0x131   :  { %485 = vrsqrt.f32 %v221_v29 }
 0x132   :  { %v224_v43 = vadd.f32 1e-05, %v207_v35  ;;  %v223_v21 = vadd.f32 1e-05, %v206_v39 }
 0x133   :  { %v172_v45 = vpop.xlane.xlu1 %171  ;;  %v169_v46 = vpop.xlane.xlu0 %168 }
 0x134   :  { %487 = vrsqrt.f32 %v224_v43  ;;  %v209_v49 = vmul.f32 0.03125, %v172_v45  ;;  %v208_v50 = vmul.f32 0.03125, %v169_v46 }
 0x135   :  { %489 = vrsqrt.f32 %v223_v21 }
 0x136   :  { %v482_v52 = vpop.eup %481  ;;  %v226_v26 = vadd.f32 1e-05, %v209_v49  ;;  %v225_v53 = vadd.f32 1e-05, %v208_v50 }
 0x137   :  { %v254_v57 = vmul.f32 %v482_v52, %v644_v47  ;;  %v178_v58 = vpop.xlane.xlu1 %177  ;;  %v175_v59 = vpop.xlane.xlu0 %174 }
 0x138   :  { %491 = vrsqrt.f32 %v226_v26  ;;  %v211_v60 = vmul.f32 0.03125, %v178_v58  ;;  %v210_v61 = vmul.f32 0.03125, %v175_v59 }
 0x139   :  { %v277_v31 = vmul.f32 %v765_v51, %v254_v57  ;;  %493 = vrsqrt.f32 %v225_v53 }
 0x13a   :  { %v484_v62 = vpop.eup %483  ;;  %v228_v63 = vadd.f32 1e-05, %v211_v60  ;;  %v227_v0 = vadd.f32 1e-05, %v210_v61 }
 0x13b   :  { %v486_v3 = vpop.eup %485  ;;  %v300_v4 = vadd.f32 %v767_v54, %v277_v31  ;;  %v256_v5 = vmul.f32 %v484_v62, %v646_v48  ;;  %v184_v33 = vpop.xlane.xlu1 %183 }
 0x13c   :  { %v181_v37 = vpop.xlane.xlu0 %180  ;;  %v255_v47 = vmul.f32 %v486_v3, %v654_v55  ;;  %495 = vrsqrt.f32 %v228_v63  ;;  %v213_v7 = vmul.f32 0.03125, %v184_v33 }
 0x13d   :  { %v212_v8 = vmul.f32 0.03125, %v181_v37  ;;  %v425_v9 = vpack.c.bf16 %v300_v4, %v300_v4  ;;  %v279_v10 = vmul.f32 %v765_v51, %v256_v5  ;;  %497 = vrsqrt.f32 %v227_v0 }
 0x13e   :  { %v488_v11 = vpop.eup %487  ;;  %v278_v14 = vmul.f32 %v765_v51, %v255_v47  ;;  %v230_v38 = vadd.f32 1e-05, %v213_v7 }
 0x13f   :  { %v229_v41 = vadd.f32 1e-05, %v212_v8  ;;  %v490_v15 = vpop.eup %489  ;;  %387 = vst.msk [vmem:[%s891_s3] sm:$0xf] %vm386_vm1, %v425_v9  ;;  %v302_v48 = vadd.f32 %v767_v54, %v279_v10  ;;  %v258_v55 = vmul.f32 %v488_v11, %v668_v1  ;;  %v190_v19 = vpop.xlane.xlu1 %189 }
 0x140   :  { %v187_v20 = vpop.xlane.xlu0 %186  ;;  %v301_v24 = vadd.f32 %v767_v54, %v278_v14  ;;  %v257_v25 = vmul.f32 %v490_v15, %v658_v56  ;;  %499 = vrsqrt.f32 %v230_v38  ;;  %v215_v29 = vmul.f32 0.03125, %v190_v19 }
 0x141   :  { %v427_v16 = vpack.c.bf16 %v302_v48, %v302_v48  ;;  %v281_v30 = vmul.f32 %v765_v51, %v258_v55  ;;  %501 = vrsqrt.f32 %v229_v41  ;;  %v214_v34 = vmul.f32 0.03125, %v187_v20 }
 0x142   :  { %v492_v35 = vpop.eup %491  ;;  %v426_v39 = vpack.c.bf16 %v301_v24, %v301_v24  ;;  %v280_v40 = vmul.f32 %v765_v51, %v257_v25  ;;  %v232_v42 = vadd.f32 1e-05, %v215_v29 }
 0x143   :  { %v494_v43 = vpop.eup %493  ;;  %389 = vst.msk [vmem:[%s891_s3 + $0x8] sm:$0xf] %vm386_vm1, %v427_v16  ;;  %v304_v56 = vadd.f32 %v767_v54, %v281_v30  ;;  %v260_v1 = vmul.f32 %v492_v35, %v682_v6  ;;  %v231_v21 = vadd.f32 1e-05, %v214_v34  ;;  %v196_v44 = vpop.xlane.xlu1 %195 }
 0x144   :  { %v193_v45 = vpop.xlane.xlu0 %192  ;;  %388 = vst.msk [vmem:[%s891_s3 + $0x4] sm:$0xf] %vm386_vm1, %v426_v39  ;;  %v303_v46 = vadd.f32 %v767_v54, %v280_v40  ;;  %v259_v49 = vmul.f32 %v494_v43, %v672_v2  ;;  %503 = vrsqrt.f32 %v232_v42  ;;  %v217_v50 = vmul.f32 0.03125, %v196_v44 }
 0x145   :  { %v429_v52 = vpack.c.bf16 %v304_v56, %v304_v56  ;;  %v283_v26 = vmul.f32 %v765_v51, %v260_v1  ;;  %505 = vrsqrt.f32 %v231_v21  ;;  %v216_v53 = vmul.f32 0.03125, %v193_v45 }
 0x146   :  { %v496_v6 = vpop.eup %495  ;;  %v428_v57 = vpack.c.bf16 %v303_v46, %v303_v46  ;;  %v282_v58 = vmul.f32 %v765_v51, %v259_v49  ;;  %v234_v59 = vadd.f32 1e-05, %v217_v50 }
 0x147   :  { %v498_v60 = vpop.eup %497  ;;  %391 = vst.msk [vmem:[%s891_s3 + $0x10] sm:$0xf] %vm386_vm1, %v429_v52  ;;  %v306_v2 = vadd.f32 %v767_v54, %v283_v26  ;;  %v262_v61 = vmul.f32 %v496_v6, %v696_v13  ;;  %v233_v31 = vadd.f32 1e-05, %v216_v53  ;;  %v202_v62 = vpop.xlane.xlu1 %201 }
 0x148   :  { %v199_v63 = vpop.xlane.xlu0 %198  ;;  %390 = vst.msk [vmem:[%s891_s3 + $0xc] sm:$0xf] %vm386_vm1, %v428_v57  ;;  %v305_v0 = vadd.f32 %v767_v54, %v282_v58  ;;  %v261_v3 = vmul.f32 %v498_v60, %v686_v12  ;;  %507 = vrsqrt.f32 %v234_v59  ;;  %v219_v4 = vmul.f32 0.03125, %v202_v62 }
 0x149   :  { %v431_v5 = vpack.c.bf16 %v306_v2, %v306_v2  ;;  %v285_v33 = vmul.f32 %v765_v51, %v262_v61  ;;  %509 = vrsqrt.f32 %v233_v31  ;;  %v218_v37 = vmul.f32 0.03125, %v199_v63 }
 0x14a   :  { %v500_v13 = vpop.eup %499  ;;  %v430_v47 = vpack.c.bf16 %v305_v0, %v305_v0  ;;  %v284_v7 = vmul.f32 %v765_v51, %v261_v3  ;;  %v236_v8 = vadd.f32 1e-05, %v219_v4 }
 0x14b   :  { %v502_v9 = vpop.eup %501  ;;  %393 = vst.msk [vmem:[%s891_s3 + $0x18] sm:$0xf] %vm386_vm1, %v431_v5  ;;  %v308_v12 = vadd.f32 %v767_v54, %v285_v33  ;;  %v264_v10 = vmul.f32 %v500_v13, %v710_v18  ;;  %v235_v11 = vadd.f32 1e-05, %v218_v37 }
 0x14c   :  { %392 = vst.msk [vmem:[%s891_s3 + $0x14] sm:$0xf] %vm386_vm1, %v430_v47  ;;  %v307_v14 = vadd.f32 %v767_v54, %v284_v7  ;;  %v263_v38 = vmul.f32 %v502_v9, %v700_v17  ;;  %511 = vrsqrt.f32 %v236_v8 }
 0x14d   :  { %v433_v41 = vpack.c.bf16 %v308_v12, %v308_v12  ;;  %v287_v15 = vmul.f32 %v765_v51, %v264_v10  ;;  %513 = vrsqrt.f32 %v235_v11 }
 0x14e   :  { %v504_v48 = vpop.eup %503  ;;  %v432_v55 = vpack.c.bf16 %v307_v14, %v307_v14  ;;  %v286_v19 = vmul.f32 %v765_v51, %v263_v38 }
 0x14f   :  { %v506_v18 = vpop.eup %505  ;;  %395 = vst.msk [vmem:[%s891_s3 + $0x20] sm:$0xf] %vm386_vm1, %v433_v41  ;;  %v310_v20 = vadd.f32 %v767_v54, %v287_v15  ;;  %v266_v24 = vmul.f32 %v504_v48, %v724_v23 }
 0x150   :  { %394 = vst.msk [vmem:[%s891_s3 + $0x1c] sm:$0xf] %vm386_vm1, %v432_v55  ;;  %v309_v17 = vadd.f32 %v767_v54, %v286_v19  ;;  %v265_v25 = vmul.f32 %v506_v18, %v714_v22 }
 0x151   :  { %v435_v29 = vpack.c.bf16 %v310_v20, %v310_v20  ;;  %v289_v16 = vmul.f32 %v765_v51, %v266_v24 }
 0x152   :  { %v508_v30 = vpop.eup %507  ;;  %v434_v34 = vpack.c.bf16 %v309_v17, %v309_v17  ;;  %v288_v35 = vmul.f32 %v765_v51, %v265_v25 }
 0x153   :  { %v510_v39 = vpop.eup %509  ;;  %397 = vst.msk [vmem:[%s891_s3 + $0x28] sm:$0xf] %vm386_vm1, %v435_v29  ;;  %v312_v23 = vadd.f32 %v767_v54, %v289_v16  ;;  %v268_v40 = vmul.f32 %v508_v30, %v738_v28 }
 0x154   :  { %396 = vst.msk [vmem:[%s891_s3 + $0x24] sm:$0xf] %vm386_vm1, %v434_v34  ;;  %v311_v22 = vadd.f32 %v767_v54, %v288_v35  ;;  %v267_v42 = vmul.f32 %v510_v39, %v728_v27 }
 0x155   :  { %v437_v43 = vpack.c.bf16 %v312_v23, %v312_v23  ;;  %v291_v56 = vmul.f32 %v765_v51, %v268_v40 }
 0x156   :  { %v512_v1 = vpop.eup %511  ;;  %v436_v21 = vpack.c.bf16 %v311_v22, %v311_v22  ;;  %v290_v44 = vmul.f32 %v765_v51, %v267_v42 }
 0x157   :  { %v514_v45 = vpop.eup %513  ;;  %399 = vst.msk [vmem:[%s891_s3 + $0x30] sm:$0xf] %vm386_vm1, %v437_v43  ;;  %v314_v28 = vadd.f32 %v767_v54, %v291_v56  ;;  %v270_v46 = vmul.f32 %v512_v1, %v752_v36 }
 0x158   :  { %398 = vst.msk [vmem:[%s891_s3 + $0x2c] sm:$0xf] %vm386_vm1, %v436_v21  ;;  %v313_v27 = vadd.f32 %v767_v54, %v290_v44  ;;  %v269_v49 = vmul.f32 %v514_v45, %v742_v32 }
 0x159   :  { %v439_v50 = vpack.c.bf16 %v314_v28, %v314_v28  ;;  %v293_v52 = vmul.f32 %v765_v51, %v270_v46 }
 0x15a   :  { %v438_v26 = vpack.c.bf16 %v313_v27, %v313_v27  ;;  %v292_v53 = vmul.f32 %v765_v51, %v269_v49 }
 0x15b   :  { %401 = vst.msk [vmem:[%s891_s3 + $0x38] sm:$0xf] %vm386_vm1, %v439_v50  ;;  %v316_v36 = vadd.f32 %v767_v54, %v293_v52 }
 0x15c   :  { %400 = vst.msk [vmem:[%s891_s3 + $0x34] sm:$0xf] %vm386_vm1, %v438_v26  ;;  %v315_v32 = vadd.f32 %v767_v54, %v292_v53 }
 0x15d   :  { %v441_v6 = vpack.c.bf16 %v316_v36, %v316_v36 }
 0x15e   :  { %v440_v57 = vpack.c.bf16 %v315_v32, %v315_v32 }
 0x15f   :  { %403 = vst.msk [vmem:[%s891_s3 + $0x40] sm:$0xf] %vm386_vm1, %v441_v6 }
 0x160   :  { %402 = vst.msk [vmem:[%s891_s3 + $0x3c] sm:$0xf] %vm386_vm1, %v440_v57 }

// kernel: neuron_mllama_vision_forward.27
= control target key start
LH: loop header
LB: loop body
LE: loop exit
PB: predicated region body
PF: predicated region fallthrough
CT: control target
= control target key end

     0   :  { %vm62_vm0 = vcmask 261120   ;;  %vm532_vm1 = vcmask 257024   ;;  %s1238_s0 = inlined_call_operand.vmem [shape: bf16[192,32], index: 0, kind: input, shape index: {}]   ;;  %s1239_s1 = inlined_call_operand.vmem [shape: bf16[1,32], index: 1, kind: input, shape index: {}]   ;;  %s1240_s2 = inlined_call_operand.vmem [shape: bf16[1,32], index: 2, kind: input, shape index: {}]   ;;  %s1241_s3 = inlined_call_operand.vmem [shape: bf16[192,32], index: 3, kind: output, shape index: {}]  }
   0x1   :  { %v739_v0 = vld [vmem:[%s1238_s0] sm:$0xff]   ;;  %v744_v1 = vld [vmem:[%s1238_s0 + $0x8] sm:$0xff]   ;;  %v753_v6 = vld [vmem:[%s1238_s0 + $0x10] sm:$0xff]  }
   0x2   :  { %v611_v2 = vunpack.c.l.bf16 %v739_v0  ;;  %v615_v3 = vunpack.c.l.bf16 %v744_v1  ;;  %v612_v4 = vunpack.c.h.bf16 %v739_v0  ;;  %v616_v5 = vunpack.c.h.bf16 %v744_v1  ;;  %v772_v13 = vld [vmem:[%s1238_s0 + $0x18] sm:$0xff]   ;;  %v785_v18 = vld [vmem:[%s1238_s0 + $0x20] sm:$0xff]   ;;  %v798_v23 = vld [vmem:[%s1238_s0 + $0x28] sm:$0xff]  }
   0x3   :  { %v619_v11 = vunpack.c.l.bf16 %v753_v6  ;;  %v620_v12 = vunpack.c.h.bf16 %v753_v6  ;;  %v623_v16 = vunpack.c.l.bf16 %v772_v13  ;;  %v624_v17 = vunpack.c.h.bf16 %v772_v13  ;;  %v811_v28 = vld [vmem:[%s1238_s0 + $0x30] sm:$0xff]   ;;  %v824_v33 = vld [vmem:[%s1238_s0 + $0x38] sm:$0xff]   ;;  %v837_v38 = vld [vmem:[%s1238_s0 + $0x40] sm:$0xff]  }
   0x4   :  { %v63_v7 = vsel %vm62_vm0, %v611_v2, 0.0  ;;  %v69_v8 = vsel %vm62_vm0, %v615_v3, 0.0  ;;  %v66_v9 = vsel %vm62_vm0, %v612_v4, 0.0  ;;  %v72_v10 = vsel %vm62_vm0, %v616_v5, 0.0  ;;  %v850_v43 = vld [vmem:[%s1238_s0 + $0x48] sm:$0xff]   ;;  %v863_v48 = vld [vmem:[%s1238_s0 + $0x50] sm:$0xff]  }
   0x5   :  { %64 = vadd.xlane.f32.xlu0 %v63_v7  ;;  %70 = vadd.xlane.f32.xlu1 %v69_v8  ;;  %v75_v14 = vsel %vm62_vm0, %v619_v11, 0.0  ;;  %v78_v15 = vsel %vm62_vm0, %v620_v12, 0.0  ;;  %v81_v19 = vsel %vm62_vm0, %v623_v16, 0.0  ;;  %v84_v20 = vsel %vm62_vm0, %v624_v17, 0.0  ;;  %v876_v53 = vld [vmem:[%s1238_s0 + $0x58] sm:$0xff]  }
   0x6   :  { %v627_v21 = vunpack.c.l.bf16 %v785_v18  ;;  %v628_v22 = vunpack.c.h.bf16 %v785_v18  ;;  %v631_v26 = vunpack.c.l.bf16 %v798_v23  ;;  %v632_v27 = vunpack.c.h.bf16 %v798_v23 }
   0x7   :  { %v635_v31 = vunpack.c.l.bf16 %v811_v28  ;;  %v636_v32 = vunpack.c.h.bf16 %v811_v28  ;;  %v639_v36 = vunpack.c.l.bf16 %v824_v33  ;;  %v640_v37 = vunpack.c.h.bf16 %v824_v33 }
   0x8   :  { %v87_v24 = vsel %vm62_vm0, %v627_v21, 0.0  ;;  %v90_v25 = vsel %vm62_vm0, %v628_v22, 0.0  ;;  %v93_v29 = vsel %vm62_vm0, %v631_v26, 0.0  ;;  %v96_v30 = vsel %vm62_vm0, %v632_v27, 0.0 }
   0x9   :  { %67 = vadd.xlane.f32.xlu0 %v66_v9  ;;  %73 = vadd.xlane.f32.xlu1 %v72_v10  ;;  %v99_v34 = vsel %vm62_vm0, %v635_v31, 0.0  ;;  %v102_v35 = vsel %vm62_vm0, %v636_v32, 0.0  ;;  %v105_v39 = vsel %vm62_vm0, %v639_v36, 0.0  ;;  %v108_v40 = vsel %vm62_vm0, %v640_v37, 0.0 }
   0xa   :  { %v643_v41 = vunpack.c.l.bf16 %v837_v38  ;;  %v644_v42 = vunpack.c.h.bf16 %v837_v38  ;;  %v647_v46 = vunpack.c.l.bf16 %v850_v43  ;;  %v648_v47 = vunpack.c.h.bf16 %v850_v43 }
   0xb   :  { %v651_v51 = vunpack.c.l.bf16 %v863_v48  ;;  %v652_v52 = vunpack.c.h.bf16 %v863_v48  ;;  %v655_v56 = vunpack.c.l.bf16 %v876_v53  ;;  %v656_v57 = vunpack.c.h.bf16 %v876_v53 }
   0xc   :  { %v111_v44 = vsel %vm62_vm0, %v643_v41, 0.0  ;;  %v114_v45 = vsel %vm62_vm0, %v644_v42, 0.0  ;;  %v117_v49 = vsel %vm62_vm0, %v647_v46, 0.0  ;;  %v120_v50 = vsel %vm62_vm0, %v648_v47, 0.0 }
   0xd   :  { %76 = vadd.xlane.f32.xlu0 %v75_v14  ;;  %79 = vadd.xlane.f32.xlu1 %v78_v15  ;;  %v123_v54 = vsel %vm62_vm0, %v651_v51, 0.0  ;;  %v126_v55 = vsel %vm62_vm0, %v652_v52, 0.0  ;;  %v129_v58 = vsel %vm62_vm0, %v655_v56, 0.0  ;;  %v132_v59 = vsel %vm62_vm0, %v656_v57, 0.0 }
  0x11   :  { %82 = vadd.xlane.f32.xlu0 %v81_v19  ;;  %85 = vadd.xlane.f32.xlu1 %v84_v20 }
  0x15   :  { %88 = vadd.xlane.f32.xlu0 %v87_v24  ;;  %91 = vadd.xlane.f32.xlu1 %v90_v25 }
  0x19   :  { %94 = vadd.xlane.f32.xlu0 %v93_v29  ;;  %97 = vadd.xlane.f32.xlu1 %v96_v30 }
  0x1d   :  { %100 = vadd.xlane.f32.xlu0 %v99_v34  ;;  %103 = vadd.xlane.f32.xlu1 %v102_v35 }
  0x21   :  { %106 = vadd.xlane.f32.xlu0 %v105_v39  ;;  %109 = vadd.xlane.f32.xlu1 %v108_v40 }
  0x25   :  { %112 = vadd.xlane.f32.xlu0 %v111_v44  ;;  %115 = vadd.xlane.f32.xlu1 %v114_v45 }
  0x29   :  { %118 = vadd.xlane.f32.xlu0 %v117_v49  ;;  %121 = vadd.xlane.f32.xlu1 %v120_v50 }
  0x2d   :  { %124 = vadd.xlane.f32.xlu0 %v123_v54  ;;  %127 = vadd.xlane.f32.xlu1 %v126_v55 }
  0x31   :  { %130 = vadd.xlane.f32.xlu0 %v129_v58  ;;  %133 = vadd.xlane.f32.xlu1 %v132_v59 }
  0x92   :  { %v65_v60 = vpop.xlane.xlu0 %64  ;;  %v71_v61 = vpop.xlane.xlu1 %70 }
  0x93   :  { %v136_v62 = vmul.f32 0.03125, %v65_v60  ;;  %v138_v63 = vmul.f32 0.03125, %v71_v61 }
  0x95   :  { %v894_v7 = vsub.f32 %v611_v2, %v136_v62  ;;  %v898_v8 = vsub.f32 %v615_v3, %v138_v63 }
  0x96   :  { %v68_v9 = vpop.xlane.xlu0 %67  ;;  %v74_v10 = vpop.xlane.xlu1 %73 }
  0x97   :  { %v137_v14 = vmul.f32 0.03125, %v68_v9  ;;  %v139_v15 = vmul.f32 0.03125, %v74_v10  ;;  %v184_v19 = vmul.f32 %v894_v7, %v894_v7  ;;  %v186_v20 = vmul.f32 %v898_v8, %v898_v8 }
  0x99   :  { %v906_v24 = vsub.f32 %v612_v4, %v137_v14  ;;  %v910_v2 = vsub.f32 %v616_v5, %v139_v15  ;;  %v208_v3 = vsel %vm62_vm0, %v184_v19, 0.0  ;;  %v214_v30 = vsel %vm62_vm0, %v186_v20, 0.0 }
  0x9a   :  { %209 = vadd.xlane.f32.xlu0 %v208_v3  ;;  %v77_v25 = vpop.xlane.xlu0 %76  ;;  %v80_v29 = vpop.xlane.xlu1 %79 }
  0x9b   :  { %v140_v34 = vmul.f32 0.03125, %v77_v25  ;;  %v141_v35 = vmul.f32 0.03125, %v80_v29  ;;  %v185_v39 = vmul.f32 %v906_v24, %v906_v24  ;;  %v187_v0 = vmul.f32 %v910_v2, %v910_v2 }
  0x9d   :  { %v920_v1 = vsub.f32 %v619_v11, %v140_v34  ;;  %v924_v4 = vsub.f32 %v620_v12, %v141_v35  ;;  %v211_v5 = vsel %vm62_vm0, %v185_v39, 0.0  ;;  %v217_v45 = vsel %vm62_vm0, %v187_v0, 0.0 }
  0x9e   :  { %215 = vadd.xlane.f32.xlu0 %v214_v30  ;;  %212 = vadd.xlane.f32.xlu1 %v211_v5  ;;  %v83_v40 = vpop.xlane.xlu0 %82  ;;  %v86_v44 = vpop.xlane.xlu1 %85 }
  0x9f   :  { %v142_v49 = vmul.f32 0.03125, %v83_v40  ;;  %v143_v50 = vmul.f32 0.03125, %v86_v44  ;;  %v188_v54 = vmul.f32 %v920_v1, %v920_v1  ;;  %v189_v11 = vmul.f32 %v924_v4, %v924_v4 }
  0xa1   :  { %v934_v6 = vsub.f32 %v623_v16, %v142_v49  ;;  %v938_v12 = vsub.f32 %v624_v17, %v143_v50  ;;  %v220_v55 = vsel %vm62_vm0, %v188_v54, 0.0  ;;  %v223_v60 = vsel %vm62_vm0, %v189_v11, 0.0 }
  0xa2   :  { %218 = vadd.xlane.f32.xlu1 %v217_v45  ;;  %221 = vadd.xlane.f32.xlu0 %v220_v55  ;;  %v89_v58 = vpop.xlane.xlu0 %88  ;;  %v92_v59 = vpop.xlane.xlu1 %91 }
  0xa3   :  { %v144_v61 = vmul.f32 0.03125, %v89_v58  ;;  %v145_v62 = vmul.f32 0.03125, %v92_v59  ;;  %v190_v63 = vmul.f32 %v934_v6, %v934_v6  ;;  %v191_v16 = vmul.f32 %v938_v12, %v938_v12 }
  0xa5   :  { %v948_v13 = vsub.f32 %v627_v21, %v144_v61  ;;  %v952_v17 = vsub.f32 %v628_v22, %v145_v62  ;;  %v226_v9 = vsel %vm62_vm0, %v190_v63, 0.0  ;;  %v229_v15 = vsel %vm62_vm0, %v191_v16, 0.0 }
  0xa6   :  { %224 = vadd.xlane.f32.xlu1 %v223_v60  ;;  %227 = vadd.xlane.f32.xlu0 %v226_v9  ;;  %v95_v10 = vpop.xlane.xlu0 %94  ;;  %v98_v14 = vpop.xlane.xlu1 %97 }
  0xa7   :  { %v146_v19 = vmul.f32 0.03125, %v95_v10  ;;  %v147_v20 = vmul.f32 0.03125, %v98_v14  ;;  %v192_v3 = vmul.f32 %v948_v13, %v948_v13  ;;  %v193_v21 = vmul.f32 %v952_v17, %v952_v17 }
  0xa9   :  { %v962_v18 = vsub.f32 %v631_v26, %v146_v19  ;;  %v966_v22 = vsub.f32 %v632_v27, %v147_v20  ;;  %v232_v25 = vsel %vm62_vm0, %v192_v3, 0.0  ;;  %v235_v34 = vsel %vm62_vm0, %v193_v21, 0.0 }
  0xaa   :  { %230 = vadd.xlane.f32.xlu1 %v229_v15  ;;  %233 = vadd.xlane.f32.xlu0 %v232_v25  ;;  %v101_v29 = vpop.xlane.xlu0 %100  ;;  %v104_v30 = vpop.xlane.xlu1 %103 }
  0xab   :  { %v148_v35 = vmul.f32 0.03125, %v101_v29  ;;  %v149_v39 = vmul.f32 0.03125, %v104_v30  ;;  %v194_v0 = vmul.f32 %v962_v18, %v962_v18  ;;  %v195_v26 = vmul.f32 %v966_v22, %v966_v22 }
  0xad   :  { %v976_v23 = vsub.f32 %v635_v31, %v148_v35  ;;  %v980_v27 = vsub.f32 %v636_v32, %v149_v39  ;;  %v238_v5 = vsel %vm62_vm0, %v194_v0, 0.0  ;;  %v241_v45 = vsel %vm62_vm0, %v195_v26, 0.0 }
  0xae   :  { %236 = vadd.xlane.f32.xlu1 %v235_v34  ;;  %239 = vadd.xlane.f32.xlu0 %v238_v5  ;;  %v107_v40 = vpop.xlane.xlu0 %106  ;;  %v110_v44 = vpop.xlane.xlu1 %109 }
  0xaf   :  { %v150_v49 = vmul.f32 0.03125, %v107_v40  ;;  %v151_v50 = vmul.f32 0.03125, %v110_v44  ;;  %v196_v54 = vmul.f32 %v976_v23, %v976_v23  ;;  %v197_v31 = vmul.f32 %v980_v27, %v980_v27 }
  0xb1   :  { %v990_v28 = vsub.f32 %v639_v36, %v150_v49  ;;  %v994_v32 = vsub.f32 %v640_v37, %v151_v50  ;;  %v244_v11 = vsel %vm62_vm0, %v196_v54, 0.0  ;;  %v247_v59 = vsel %vm62_vm0, %v197_v31, 0.0 }
  0xb2   :  { %242 = vadd.xlane.f32.xlu1 %v241_v45  ;;  %245 = vadd.xlane.f32.xlu0 %v244_v11  ;;  %v113_v55 = vpop.xlane.xlu0 %112  ;;  %v116_v58 = vpop.xlane.xlu1 %115  ;;  %v378_v11 = vlaneseq }
  0xb3   :  { %v152_v60 = vmul.f32 0.03125, %v113_v55  ;;  %v153_v61 = vmul.f32 0.03125, %v116_v58  ;;  %v198_v62 = vmul.f32 %v990_v28, %v990_v28  ;;  %v199_v36 = vmul.f32 %v994_v32, %v994_v32 }
  0xb5   :  { %v1004_v33 = vsub.f32 %v643_v41, %v152_v60  ;;  %v1008_v37 = vsub.f32 %v644_v42, %v153_v61  ;;  %v250_v63 = vsel %vm62_vm0, %v198_v62, 0.0  ;;  %v253_v10 = vsel %vm62_vm0, %v199_v36, 0.0  ;;  %v376_v36 = vld [vmem:[%s1239_s1] sm:$0x1] }
  0xb6   :  { %248 = vadd.xlane.f32.xlu1 %v247_v59  ;;  %251 = vadd.xlane.f32.xlu0 %v250_v63  ;;  %v119_v16 = vpop.xlane.xlu0 %118  ;;  %v122_v9 = vpop.xlane.xlu1 %121  ;;  %v379_v62 = vshrl.u32 %v378_v11, 7 }
  0xb7   :  { %v154_v14 = vmul.f32 0.03125, %v119_v16  ;;  %v155_v15 = vmul.f32 0.03125, %v122_v9  ;;  %v200_v19 = vmul.f32 %v1004_v33, %v1004_v33  ;;  %v201_v41 = vmul.f32 %v1008_v37, %v1008_v37 }
  0xb9   :  { %v1018_v38 = vsub.f32 %v647_v46, %v154_v14  ;;  %v1022_v42 = vsub.f32 %v648_v47, %v155_v15  ;;  %v256_v20 = vsel %vm62_vm0, %v200_v19, 0.0  ;;  %v259_v25 = vsel %vm62_vm0, %v201_v41, 0.0  ;;  %v406_v14 = vld [vmem:[%s1240_s2] sm:$0x1] }
  0xba   :  { %254 = vadd.xlane.f32.xlu1 %v253_v10  ;;  %257 = vadd.xlane.f32.xlu0 %v256_v20  ;;  %v125_v3 = vpop.xlane.xlu0 %124  ;;  %v128_v21 = vpop.xlane.xlu1 %127  ;;  %v377_v41 = vunpack.c.l.bf16 %v376_v36  ;;  %v380_v20 = vsub.s32 0, %v379_v62 }
  0xbb   :  { %v156_v29 = vmul.f32 0.03125, %v125_v3  ;;  %v157_v30 = vmul.f32 0.03125, %v128_v21  ;;  %v202_v34 = vmul.f32 %v1018_v38, %v1018_v38  ;;  %v203_v46 = vmul.f32 %v1022_v42, %v1022_v42 }
  0xbd   :  { %v1032_v43 = vsub.f32 %v651_v51, %v156_v29  ;;  %v1036_v47 = vsub.f32 %v652_v52, %v157_v30  ;;  %v262_v35 = vsel %vm62_vm0, %v202_v34, 0.0  ;;  %v265_v26 = vsel %vm62_vm0, %v203_v46, 0.0 }
  0xbe   :  { %260 = vadd.xlane.f32.xlu1 %v259_v25  ;;  %263 = vadd.xlane.f32.xlu0 %v262_v35  ;;  %v131_v39 = vpop.xlane.xlu0 %130  ;;  %v134_v0 = vpop.xlane.xlu1 %133  ;;  %v407_v25 = vunpack.c.l.bf16 %v406_v14  ;;  %v1066_v35 = vrot.slane %v377_v41, %v380_v20 }
  0xbf   :  { %v158_v5 = vmul.f32 0.03125, %v131_v39  ;;  %v159_v40 = vmul.f32 0.03125, %v134_v0  ;;  %v204_v44 = vmul.f32 %v1032_v43, %v1032_v43  ;;  %v205_v51 = vmul.f32 %v1036_v47, %v1036_v47 }
  0xc1   :  { %v1046_v48 = vsub.f32 %v655_v56, %v158_v5  ;;  %v1050_v52 = vsub.f32 %v656_v57, %v159_v40  ;;  %v268_v45 = vsel %vm62_vm0, %v204_v44, 0.0  ;;  %v271_v49 = vsel %vm62_vm0, %v205_v51, 0.0 }
  0xc2   :  { %266 = vadd.xlane.f32.xlu1 %v265_v26  ;;  %269 = vadd.xlane.f32.xlu0 %v268_v45  ;;  %v1068_v5 = vrot.slane %v407_v25, %v380_v20 }
  0xc3   :  { %v206_v50 = vmul.f32 %v1046_v48, %v1046_v48  ;;  %v207_v54 = vmul.f32 %v1050_v52, %v1050_v52 }
  0xc5   :  { %v274_v31 = vsel %vm62_vm0, %v206_v50, 0.0  ;;  %v277_v53 = vsel %vm62_vm0, %v207_v54, 0.0 }
  0xc6   :  { %272 = vadd.xlane.f32.xlu1 %v271_v49  ;;  %275 = vadd.xlane.f32.xlu0 %v274_v31 }
  0xca   :  { %278 = vadd.xlane.f32.xlu1 %v277_v53 }
 0x127   :  { %v210_v56 = vpop.xlane.xlu0 %209 }
 0x128   :  { %v280_v57 = vmul.f32 0.03125, %v210_v56 }
 0x12a   :  { %v304_v55 = vadd.f32 1e-05, %v280_v57 }
 0x12b   :  { %v213_v58 = vpop.xlane.xlu1 %212  ;;  %v216_v59 = vpop.xlane.xlu0 %215 }
 0x12c   :  { %668 = vrsqrt.f32 %v304_v55  ;;  %v281_v60 = vmul.f32 0.03125, %v213_v58  ;;  %v282_v61 = vmul.f32 0.03125, %v216_v59 }
 0x12e   :  { %v305_v63 = vadd.f32 1e-05, %v281_v60  ;;  %v306_v16 = vadd.f32 1e-05, %v282_v61 }
 0x12f   :  { %v219_v9 = vpop.xlane.xlu1 %218  ;;  %v222_v10 = vpop.xlane.xlu0 %221 }
 0x130   :  { %670 = vrsqrt.f32 %v305_v63  ;;  %v283_v15 = vmul.f32 0.03125, %v219_v9  ;;  %v284_v19 = vmul.f32 0.03125, %v222_v10 }
 0x131   :  { %672 = vrsqrt.f32 %v306_v16 }
 0x132   :  { %v307_v3 = vadd.f32 1e-05, %v283_v15  ;;  %v308_v21 = vadd.f32 1e-05, %v284_v19 }
 0x133   :  { %v225_v29 = vpop.xlane.xlu1 %224  ;;  %v228_v30 = vpop.xlane.xlu0 %227 }
 0x134   :  { %674 = vrsqrt.f32 %v307_v3  ;;  %v285_v34 = vmul.f32 0.03125, %v225_v29  ;;  %v286_v46 = vmul.f32 0.03125, %v228_v30 }
 0x135   :  { %676 = vrsqrt.f32 %v308_v21 }
 0x136   :  { %v669_v39 = vpop.eup %668  ;;  %v309_v0 = vadd.f32 1e-05, %v285_v34  ;;  %v310_v26 = vadd.f32 1e-05, %v286_v46 }
 0x137   :  { %v352_v40 = vmul.f32 %v669_v39, %v894_v7  ;;  %v231_v44 = vpop.xlane.xlu1 %230  ;;  %v234_v51 = vpop.xlane.xlu0 %233 }
 0x138   :  { %678 = vrsqrt.f32 %v309_v0  ;;  %v287_v45 = vmul.f32 0.03125, %v231_v44  ;;  %v288_v49 = vmul.f32 0.03125, %v234_v51 }
 0x139   :  { %v382_v50 = vmul.f32 %v1066_v35, %v352_v40  ;;  %680 = vrsqrt.f32 %v310_v26 }
 0x13a   :  { %v671_v54 = vpop.eup %670  ;;  %v311_v31 = vadd.f32 1e-05, %v287_v45  ;;  %v312_v53 = vadd.f32 1e-05, %v288_v49 }
 0x13b   :  { %v673_v56 = vpop.eup %672  ;;  %v412_v57 = vadd.f32 %v1068_v5, %v382_v50  ;;  %v353_v11 = vmul.f32 %v671_v54, %v906_v24  ;;  %v237_v55 = vpop.xlane.xlu1 %236 }
 0x13c   :  { %v240_v58 = vpop.xlane.xlu0 %239  ;;  %v354_v7 = vmul.f32 %v673_v56, %v898_v8  ;;  %682 = vrsqrt.f32 %v311_v31  ;;  %v289_v59 = vmul.f32 0.03125, %v237_v55 }
 0x13d   :  { %v290_v60 = vmul.f32 0.03125, %v240_v58  ;;  %v585_v61 = vpack.c.bf16 %v412_v57, %v412_v57  ;;  %v383_v62 = vmul.f32 %v1066_v35, %v353_v11  ;;  %684 = vrsqrt.f32 %v312_v53 }
 0x13e   :  { %v675_v36 = vpop.eup %674  ;;  %v384_v63 = vmul.f32 %v1066_v35, %v354_v7  ;;  %v313_v16 = vadd.f32 1e-05, %v289_v59 }
 0x13f   :  { %v314_v9 = vadd.f32 1e-05, %v290_v60  ;;  %v677_v10 = vpop.eup %676  ;;  %533 = vst.msk [vmem:[%s1241_s3] sm:$0xf] %vm532_vm1, %v585_v61  ;;  %v413_v8 = vadd.f32 %v1068_v5, %v383_v62  ;;  %v355_v24 = vmul.f32 %v675_v36, %v910_v2  ;;  %v243_v14 = vpop.xlane.xlu1 %242 }
 0x140   :  { %v246_v15 = vpop.xlane.xlu0 %245  ;;  %v414_v19 = vadd.f32 %v1068_v5, %v384_v63  ;;  %v356_v41 = vmul.f32 %v677_v10, %v920_v1  ;;  %686 = vrsqrt.f32 %v313_v16  ;;  %v291_v20 = vmul.f32 0.03125, %v243_v14 }
 0x141   :  { %v586_v3 = vpack.c.bf16 %v413_v8, %v413_v8  ;;  %v385_v21 = vmul.f32 %v1066_v35, %v355_v24  ;;  %688 = vrsqrt.f32 %v314_v9  ;;  %v292_v25 = vmul.f32 0.03125, %v246_v15 }
 0x142   :  { %v679_v29 = vpop.eup %678  ;;  %v587_v30 = vpack.c.bf16 %v414_v19, %v414_v19  ;;  %v386_v34 = vmul.f32 %v1066_v35, %v356_v41  ;;  %v315_v46 = vadd.f32 1e-05, %v291_v20 }
 0x143   :  { %v681_v39 = vpop.eup %680  ;;  %534 = vst.msk [vmem:[%s1241_s3 + $0x4] sm:$0xf] %vm532_vm1, %v586_v3  ;;  %v415_v2 = vadd.f32 %v1068_v5, %v385_v21  ;;  %v357_v1 = vmul.f32 %v679_v29, %v924_v4  ;;  %v316_v0 = vadd.f32 1e-05, %v292_v25  ;;  %v249_v26 = vpop.xlane.xlu1 %248 }
 0x144   :  { %v252_v40 = vpop.xlane.xlu0 %251  ;;  %535 = vst.msk [vmem:[%s1241_s3 + $0x8] sm:$0xf] %vm532_vm1, %v587_v30  ;;  %v416_v44 = vadd.f32 %v1068_v5, %v386_v34  ;;  %v358_v51 = vmul.f32 %v681_v39, %v934_v6  ;;  %690 = vrsqrt.f32 %v315_v46  ;;  %v293_v45 = vmul.f32 0.03125, %v249_v26 }
 0x145   :  { %v588_v49 = vpack.c.bf16 %v415_v2, %v415_v2  ;;  %v387_v50 = vmul.f32 %v1066_v35, %v357_v1  ;;  %692 = vrsqrt.f32 %v316_v0  ;;  %v294_v54 = vmul.f32 0.03125, %v252_v40 }
 0x146   :  { %v683_v4 = vpop.eup %682  ;;  %v589_v31 = vpack.c.bf16 %v416_v44, %v416_v44  ;;  %v388_v53 = vmul.f32 %v1066_v35, %v358_v51  ;;  %v317_v56 = vadd.f32 1e-05, %v293_v45 }
 0x147   :  { %v685_v57 = vpop.eup %684  ;;  %536 = vst.msk [vmem:[%s1241_s3 + $0xc] sm:$0xf] %vm532_vm1, %v588_v49  ;;  %v417_v6 = vadd.f32 %v1068_v5, %v387_v50  ;;  %v359_v11 = vmul.f32 %v683_v4, %v938_v12  ;;  %v318_v55 = vadd.f32 1e-05, %v294_v54  ;;  %v255_v58 = vpop.xlane.xlu1 %254 }
 0x148   :  { %v258_v7 = vpop.xlane.xlu0 %257  ;;  %537 = vst.msk [vmem:[%s1241_s3 + $0x10] sm:$0xf] %vm532_vm1, %v589_v31  ;;  %v418_v59 = vadd.f32 %v1068_v5, %v388_v53  ;;  %v360_v60 = vmul.f32 %v685_v57, %v948_v13  ;;  %694 = vrsqrt.f32 %v317_v56  ;;  %v295_v61 = vmul.f32 0.03125, %v255_v58 }
 0x149   :  { %v590_v62 = vpack.c.bf16 %v417_v6, %v417_v6  ;;  %v389_v36 = vmul.f32 %v1066_v35, %v359_v11  ;;  %696 = vrsqrt.f32 %v318_v55  ;;  %v296_v63 = vmul.f32 0.03125, %v258_v7 }
 0x14a   :  { %v687_v12 = vpop.eup %686  ;;  %v591_v16 = vpack.c.bf16 %v418_v59, %v418_v59  ;;  %v390_v9 = vmul.f32 %v1066_v35, %v360_v60  ;;  %v319_v10 = vadd.f32 1e-05, %v295_v61 }
 0x14b   :  { %v689_v8 = vpop.eup %688  ;;  %538 = vst.msk [vmem:[%s1241_s3 + $0x14] sm:$0xf] %vm532_vm1, %v590_v62  ;;  %v419_v13 = vadd.f32 %v1068_v5, %v389_v36  ;;  %v361_v24 = vmul.f32 %v687_v12, %v952_v17  ;;  %v320_v14 = vadd.f32 1e-05, %v296_v63  ;;  %v261_v15 = vpop.xlane.xlu1 %260 }
 0x14c   :  { %v264_v19 = vpop.xlane.xlu0 %263  ;;  %539 = vst.msk [vmem:[%s1241_s3 + $0x18] sm:$0xf] %vm532_vm1, %v591_v16  ;;  %v420_v41 = vadd.f32 %v1068_v5, %v390_v9  ;;  %v362_v20 = vmul.f32 %v689_v8, %v962_v18  ;;  %698 = vrsqrt.f32 %v319_v10  ;;  %v297_v3 = vmul.f32 0.03125, %v261_v15 }
 0x14d   :  { %v592_v21 = vpack.c.bf16 %v419_v13, %v419_v13  ;;  %v391_v25 = vmul.f32 %v1066_v35, %v361_v24  ;;  %700 = vrsqrt.f32 %v320_v14  ;;  %v298_v29 = vmul.f32 0.03125, %v264_v19 }
 0x14e   :  { %v691_v17 = vpop.eup %690  ;;  %v593_v30 = vpack.c.bf16 %v420_v41, %v420_v41  ;;  %v392_v34 = vmul.f32 %v1066_v35, %v362_v20  ;;  %v321_v46 = vadd.f32 1e-05, %v297_v3 }
 0x14f   :  { %v693_v39 = vpop.eup %692  ;;  %540 = vst.msk [vmem:[%s1241_s3 + $0x1c] sm:$0xf] %vm532_vm1, %v592_v21  ;;  %v421_v18 = vadd.f32 %v1068_v5, %v391_v25  ;;  %v363_v2 = vmul.f32 %v691_v17, %v966_v22  ;;  %v322_v1 = vadd.f32 1e-05, %v298_v29  ;;  %v267_v0 = vpop.xlane.xlu1 %266 }
 0x150   :  { %v270_v26 = vpop.xlane.xlu0 %269  ;;  %541 = vst.msk [vmem:[%s1241_s3 + $0x20] sm:$0xf] %vm532_vm1, %v593_v30  ;;  %v422_v40 = vadd.f32 %v1068_v5, %v392_v34  ;;  %v364_v44 = vmul.f32 %v693_v39, %v976_v23  ;;  %702 = vrsqrt.f32 %v321_v46  ;;  %v299_v51 = vmul.f32 0.03125, %v267_v0 }
 0x151   :  { %v594_v45 = vpack.c.bf16 %v421_v18, %v421_v18  ;;  %v393_v49 = vmul.f32 %v1066_v35, %v363_v2  ;;  %704 = vrsqrt.f32 %v322_v1  ;;  %v300_v50 = vmul.f32 0.03125, %v270_v26 }
 0x152   :  { %v695_v22 = vpop.eup %694  ;;  %v595_v54 = vpack.c.bf16 %v422_v40, %v422_v40  ;;  %v394_v4 = vmul.f32 %v1066_v35, %v364_v44  ;;  %v323_v31 = vadd.f32 1e-05, %v299_v51 }
 0x153   :  { %v697_v53 = vpop.eup %696  ;;  %542 = vst.msk [vmem:[%s1241_s3 + $0x24] sm:$0xf] %vm532_vm1, %v594_v45  ;;  %v423_v23 = vadd.f32 %v1068_v5, %v393_v49  ;;  %v365_v56 = vmul.f32 %v695_v22, %v980_v27  ;;  %v324_v57 = vadd.f32 1e-05, %v300_v50  ;;  %v273_v6 = vpop.xlane.xlu1 %272 }
 0x154   :  { %v276_v11 = vpop.xlane.xlu0 %275  ;;  %543 = vst.msk [vmem:[%s1241_s3 + $0x28] sm:$0xf] %vm532_vm1, %v595_v54  ;;  %v424_v55 = vadd.f32 %v1068_v5, %v394_v4  ;;  %v366_v58 = vmul.f32 %v697_v53, %v990_v28  ;;  %706 = vrsqrt.f32 %v323_v31  ;;  %v301_v7 = vmul.f32 0.03125, %v273_v6 }
 0x155   :  { %v596_v59 = vpack.c.bf16 %v423_v23, %v423_v23  ;;  %v395_v60 = vmul.f32 %v1066_v35, %v365_v56  ;;  %708 = vrsqrt.f32 %v324_v57  ;;  %v302_v61 = vmul.f32 0.03125, %v276_v11 }
 0x156   :  { %v699_v27 = vpop.eup %698  ;;  %v597_v62 = vpack.c.bf16 %v424_v55, %v424_v55  ;;  %v396_v36 = vmul.f32 %v1066_v35, %v366_v58  ;;  %v325_v63 = vadd.f32 1e-05, %v301_v7 }
 0x157   :  { %v701_v12 = vpop.eup %700  ;;  %544 = vst.msk [vmem:[%s1241_s3 + $0x2c] sm:$0xf] %vm532_vm1, %v596_v59  ;;  %v425_v28 = vadd.f32 %v1068_v5, %v395_v60  ;;  %v367_v16 = vmul.f32 %v699_v27, %v994_v32  ;;  %v326_v9 = vadd.f32 1e-05, %v302_v61  ;;  %v279_v10 = vpop.xlane.xlu1 %278 }
 0x158   :  { %545 = vst.msk [vmem:[%s1241_s3 + $0x30] sm:$0xf] %vm532_vm1, %v597_v62  ;;  %v426_v8 = vadd.f32 %v1068_v5, %v396_v36  ;;  %v368_v13 = vmul.f32 %v701_v12, %v1004_v33  ;;  %710 = vrsqrt.f32 %v325_v63  ;;  %v303_v24 = vmul.f32 0.03125, %v279_v10 }
 0x159   :  { %v598_v14 = vpack.c.bf16 %v425_v28, %v425_v28  ;;  %v397_v15 = vmul.f32 %v1066_v35, %v367_v16  ;;  %712 = vrsqrt.f32 %v326_v9 }
 0x15a   :  { %v703_v19 = vpop.eup %702  ;;  %v599_v41 = vpack.c.bf16 %v426_v8, %v426_v8  ;;  %v398_v32 = vmul.f32 %v1066_v35, %v368_v13  ;;  %v327_v20 = vadd.f32 1e-05, %v303_v24 }
 0x15b   :  { %v705_v3 = vpop.eup %704  ;;  %546 = vst.msk [vmem:[%s1241_s3 + $0x34] sm:$0xf] %vm532_vm1, %v598_v14  ;;  %v427_v21 = vadd.f32 %v1068_v5, %v397_v15  ;;  %v369_v33 = vmul.f32 %v703_v19, %v1008_v37 }
 0x15c   :  { %547 = vst.msk [vmem:[%s1241_s3 + $0x38] sm:$0xf] %vm532_vm1, %v599_v41  ;;  %v428_v25 = vadd.f32 %v1068_v5, %v398_v32  ;;  %v370_v29 = vmul.f32 %v705_v3, %v1018_v38  ;;  %714 = vrsqrt.f32 %v327_v20 }
 0x15d   :  { %v600_v17 = vpack.c.bf16 %v427_v21, %v427_v21  ;;  %v399_v30 = vmul.f32 %v1066_v35, %v369_v33 }
 0x15e   :  { %v707_v34 = vpop.eup %706  ;;  %v601_v46 = vpack.c.bf16 %v428_v25, %v428_v25  ;;  %v400_v39 = vmul.f32 %v1066_v35, %v370_v29 }
 0x15f   :  { %v709_v18 = vpop.eup %708  ;;  %548 = vst.msk [vmem:[%s1241_s3 + $0x3c] sm:$0xf] %vm532_vm1, %v600_v17  ;;  %v429_v37 = vadd.f32 %v1068_v5, %v399_v30  ;;  %v371_v2 = vmul.f32 %v707_v34, %v1022_v42 }
 0x160   :  { %549 = vst.msk [vmem:[%s1241_s3 + $0x40] sm:$0xf] %vm532_vm1, %v601_v46  ;;  %v430_v38 = vadd.f32 %v1068_v5, %v400_v39  ;;  %v372_v1 = vmul.f32 %v709_v18, %v1032_v43 }
 0x161   :  { %v602_v0 = vpack.c.bf16 %v429_v37, %v429_v37  ;;  %v401_v26 = vmul.f32 %v1066_v35, %v371_v2 }
 0x162   :  { %v711_v40 = vpop.eup %710  ;;  %v603_v44 = vpack.c.bf16 %v430_v38, %v430_v38  ;;  %v402_v51 = vmul.f32 %v1066_v35, %v372_v1 }
 0x163   :  { %v713_v45 = vpop.eup %712  ;;  %550 = vst.msk [vmem:[%s1241_s3 + $0x44] sm:$0xf] %vm532_vm1, %v602_v0  ;;  %v431_v42 = vadd.f32 %v1068_v5, %v401_v26  ;;  %v373_v49 = vmul.f32 %v711_v40, %v1036_v47 }
 0x164   :  { %551 = vst.msk [vmem:[%s1241_s3 + $0x48] sm:$0xf] %vm532_vm1, %v603_v44  ;;  %v432_v43 = vadd.f32 %v1068_v5, %v402_v51  ;;  %v374_v50 = vmul.f32 %v713_v45, %v1046_v48 }
 0x165   :  { %v604_v22 = vpack.c.bf16 %v431_v42, %v431_v42  ;;  %v403_v54 = vmul.f32 %v1066_v35, %v373_v49 }
 0x166   :  { %v715_v4 = vpop.eup %714  ;;  %v605_v31 = vpack.c.bf16 %v432_v43, %v432_v43  ;;  %v404_v53 = vmul.f32 %v1066_v35, %v374_v50 }
 0x167   :  { %552 = vst.msk [vmem:[%s1241_s3 + $0x4c] sm:$0xf] %vm532_vm1, %v604_v22  ;;  %v433_v47 = vadd.f32 %v1068_v5, %v403_v54  ;;  %v375_v23 = vmul.f32 %v715_v4, %v1050_v52 }
 0x168   :  { %553 = vst.msk [vmem:[%s1241_s3 + $0x50] sm:$0xf] %vm532_vm1, %v605_v31  ;;  %v434_v48 = vadd.f32 %v1068_v5, %v404_v53 }
 0x169   :  { %v606_v56 = vpack.c.bf16 %v433_v47, %v433_v47  ;;  %v405_v57 = vmul.f32 %v1066_v35, %v375_v23 }
 0x16a   :  { %v607_v6 = vpack.c.bf16 %v434_v48, %v434_v48 }
 0x16b   :  { %554 = vst.msk [vmem:[%s1241_s3 + $0x54] sm:$0xf] %vm532_vm1, %v606_v56  ;;  %v435_v11 = vadd.f32 %v1068_v5, %v405_v57 }
 0x16c   :  { %555 = vst.msk [vmem:[%s1241_s3 + $0x58] sm:$0xf] %vm532_vm1, %v607_v6 }
 0x16d   :  { %v608_v52 = vpack.c.bf16 %v435_v11, %v435_v11 }
 0x16f   :  { %556 = vst.msk [vmem:[%s1241_s3 + $0x5c] sm:$0xf] %vm532_vm1, %v608_v52 }

// kernel: neuron_mllama_vision_forward.28
= control target key start
LH: loop header
LB: loop body
LE: loop exit
PB: predicated region body
PF: predicated region fallthrough
CT: control target
= control target key end

     0   :  { %s2741_s9 = smov 0   ;;  %s2743_s10 = smov 0   ;;  %s3164_s0 = inlined_call_operand.vmem [shape: bf16[192,32], index: 0, kind: input, shape index: {}]   ;;  %s3165_s1 = inlined_call_operand.vmem [shape: bf16[32,1536], index: 1, kind: input, shape index: {}]   ;;  %s3166_s2 = inlined_call_operand.vmem [shape: bf16[192,1536], index: 2, kind: output, shape index: {}]  }
   0x1   :  { %s2745_s11 = smov 0   ;;  %s2747_s12 = smov 0  }
   0x2   :  { %s2749_s13 = smov 0  }
   0x3 LB: > { %s27_s14 = sadd.s32 1, %s2719_s12  ;;  %s2391_s15 = sadd.s32 4294967295, %s2723_s13   ;;  %s2723_s13 = sphi %s2749_s13, %s12_s13   ;;  %s2719_s12 = sphi %s2747_s12, %s3171_s12   ;;  %s2715_s11 = sphi %s2745_s11, %s3170_s11   ;;  %s2711_s10 = sphi %s2743_s10, %s3169_s10   ;;  %s2707_s9 = sphi %s2741_s9, %s3168_s9  }
   0x4   : > { %p29_p0 = scmp.ge.s32.totalorder %s27_s14, 2  ;;  %p75_p1 = scmp.ne.s32.totalorder %s2711_s10, %s2707_s9 }
   0x5   : > { %p76_p2 = scmp.eq.s32.totalorder %s2723_s13, 0  ;;  %p107_p4 = scmp.eq.s32.totalorder %s2391_s15, 1 }
   0x6   : > { %s3173_s14 = smov (%p29_p0, %s27_s14), 0  ;;  %s68_s17 = sadd.s32 1, %s2711_s10 }
   0x7   : > { %p77_p3 = por %p76_p2, %p75_p1  ;;  %s64_s16 = ssub.s32 %s2719_s12, %s3173_s14 }
   0x8   : > { %p66_p5 = scmp.eq.s32.totalorder %s64_s16, 0  ;;  %p2776_p6 = por %p107_p4, %p75_p1 }
   0x9   : > { %p2395_p7 = scmp.ge.s32.totalorder %s2723_s13, 2 }
   0xa   : > { %s2781_s19 = scalar_select %p66_p5, %s2711_s10, %s68_s17  }
   0xb   : > { %141 = sbr.rel (%p2395_p7) target bundleno = 29 (0x1d), region = 20 }
  0x12   : > { %144 = sbr.rel (!%p77_p3) target bundleno = 29 (0x1d), region = 24  ;;  %s146_s20 = sand.u32 (%p77_p3), 1, %s2711_s10  }
  0x13   : > { %s2533_s21 = smul.u32 (%p77_p3), 24, %s2719_s12 }
  0x14   : > { %s2611_s22 = smul.u32 (%p77_p3), 96, %s146_s20 }
  0x15   : > { %s154_s25 = scalar_lea.vmem (%p77_p3), %s3165_s1, %s2533_s21 }
  0x16   : > { %v167_v0 = vld [vmem:[%s154_s25] sm:$0xff] (%p77_p3)  ;;  %v169_v1 = vld [vmem:[%s154_s25 + $0x8] sm:$0xff] (%p77_p3)  ;;  %v171_v2 = vld [vmem:[%s154_s25 + $0x10] sm:$0xff] (%p77_p3)  ;;  %s148_s26 = scalar_lea.vmem (%p77_p3), [#allocation3], %s2611_s22 }
  0x17   : > { %168 = vst [vmem:[%s148_s26] sm:$0xff] (%p77_p3), %v167_v0  ;;  %170 = vst [vmem:[%s148_s26 + $0x8] sm:$0xff] (%p77_p3), %v169_v1  ;;  %v173_v3 = vld [vmem:[%s154_s25 + $0x30] sm:$0xff] (%p77_p3)  ;;  %v175_v4 = vld [vmem:[%s154_s25 + $0x38] sm:$0xff] (%p77_p3) }
  0x18   : > { %172 = vst [vmem:[%s148_s26 + $0x10] sm:$0xff] (%p77_p3), %v171_v2  ;;  %v177_v5 = vld [vmem:[%s154_s25 + $0x40] sm:$0xff] (%p77_p3)  ;;  %174 = vst [vmem:[%s148_s26 + $0x18] sm:$0xff] (%p77_p3), %v173_v3  ;;  %v181_v7 = vld [vmem:[%s154_s25 + $0x68] sm:$0xff] (%p77_p3) }
  0x19   : > { %176 = vst [vmem:[%s148_s26 + $0x20] sm:$0xff] %v175_v4  ;;  %178 = vst [vmem:[%s148_s26 + $0x28] sm:$0xff] %v177_v5  ;;  %v179_v6 = vld [vmem:[%s154_s25 + $0x60] sm:$0xff]  ;;  %v183_v8 = vld [vmem:[%s154_s25 + $0x70] sm:$0xff] }
  0x1a   : > { %180 = vst [vmem:[%s148_s26 + $0x30] sm:$0xff] %v179_v6  ;;  %182 = vst [vmem:[%s148_s26 + $0x38] sm:$0xff] %v181_v7  ;;  %v185_v9 = vld [vmem:[%s154_s25 + $0x90] sm:$0xff]  ;;  %v187_v10 = vld [vmem:[%s154_s25 + $0x98] sm:$0xff] }
  0x1b   : > { %184 = vst [vmem:[%s148_s26 + $0x40] sm:$0xff] %v183_v8  ;;  %v189_v11 = vld [vmem:[%s154_s25 + $0xa0] sm:$0xff]  ;;  %186 = vst [vmem:[%s148_s26 + $0x48] sm:$0xff] %v185_v9 }
  0x1c   : > { %188 = vst [vmem:[%s148_s26 + $0x50] sm:$0xff] %v187_v10  ;;  %190 = vst [vmem:[%s148_s26 + $0x58] sm:$0xff] %v189_v11 }
  0x1d PF: > { %p2397_p8 = scmp.ge.s32.totalorder %s2723_s13, 1  ;;  %p195_p9 = scmp.lt.s32.totalorder %s2723_s13, 3 }
  0x1f   : > { %p196_p10 = pnand %p2397_p8, %p195_p9 }
  0x20   : > { %s202_s27 = sand.u32 (!%p196_p10), 1, %s2707_s9   ;;  %v2725_v12 = vmov (!%p196_p10), 0   ;;  %v2661_v17 = vld [vmem:[%s3164_s0] sm:$0xff] (!%p196_p10)   ;;  %vm692_vm0 = vcmask (!%p196_p10), 261120   ;;  %v2808_v18 = vld [vmem:[%s3164_s0 + $0x30] sm:$0xff] (!%p196_p10)   ;;  %v2669_v27 = vld [vmem:[%s3164_s0 + $0x8] sm:$0xff] (!%p196_p10)  }
  0x21   : > { %199 = sbr.rel (%p196_p10) target bundleno = 408 (0x198), region = 47  ;;  %761 = vmatprep.mubr.bf16.mxu0 (!%p196_p10), %v2725_v12  ;;  %821 = vmatprep.mubr.bf16.mxu1 (!%p196_p10), %v2725_v12  ;;  %v2670_v28 = vld [vmem:[%s3164_s0 + $0x38] sm:$0xff] (!%p196_p10)   ;;  %v2671_v29 = vld [vmem:[%s3164_s0 + $0x10] sm:$0xff] (!%p196_p10)   ;;  %v2672_v30 = vld [vmem:[%s3164_s0 + $0x40] sm:$0xff] (!%p196_p10)  }
  0x22   : > { %s2612_s28 = smul.u32 (!%p196_p10), 96, %s202_s27  ;;  %v2673_v31 = vld [vmem:[%s3164_s0 + $0x18] sm:$0xff] (!%p196_p10)   ;;  %v2674_v32 = vld [vmem:[%s3164_s0 + $0x48] sm:$0xff] (!%p196_p10)   ;;  %v2681_v33 = vld [vmem:[%s3164_s0 + $0x20] sm:$0xff] (!%p196_p10)  }
  0x23   : > { %v2682_v34 = vld [vmem:[%s3164_s0 + $0x50] sm:$0xff] (!%p196_p10)   ;;  %v2683_v35 = vld [vmem:[%s3164_s0 + $0x28] sm:$0xff] (!%p196_p10)   ;;  %v2684_v36 = vld [vmem:[%s3164_s0 + $0x58] sm:$0xff] (!%p196_p10)   ;;  %s2613_s7 = smul.u32 (!%p196_p10), 576, %s202_s27 }
  0x24   : > { %s2796_s29 = scalar_lea.vmem (!%p196_p10), [#allocation3], %s2612_s28 }
  0x25   : > { %v2655_v13 = vld [vmem:[%s2796_s29 + $0x4] ss:$24 sps:$4 sm:$0xff] (!%p196_p10)   ;;  %v2657_v14 = vld [vmem:[%s2796_s29] ss:$24 sps:$4 sm:$0xff] (!%p196_p10)   ;;  %v2658_v15 = vld [vmem:[%s2796_s29 + $0x34] ss:$24 sps:$4 sm:$0xff] (!%p196_p10)  }
  0x26   : > { %729 = vmatprep.subr.bf16.mxu0 (!%p196_p10), %v2655_v13  ;;  %2607 = vmatprep.subr.bf16.mxu1 (!%p196_p10), %v2655_v13  ;;  %v2660_v16 = vld [vmem:[%s2796_s29 + $0x30] ss:$24 sps:$4 sm:$0xff] (!%p196_p10)   ;;  %v2665_v19 = vld [vmem:[%s2796_s29 + $0xc] ss:$24 sps:$4 sm:$0xff] (!%p196_p10)   ;;  %v2677_v24 = vld [vmem:[%s2796_s29 + $0x3c] ss:$24 sps:$4 sm:$0xff] (!%p196_p10)  }
  0x27   : > { %730 = vmatpush1.bf16.msra.mxu0 (!%p196_p10), %v2657_v14  ;;  %2609 = vmatpush1.bf16.msra.mxu1 (!%p196_p10), %v2657_v14  ;;  %v2668_v20 = vld [vmem:[%s2796_s29 + $0x14] ss:$24 sps:$4 sm:$0xff] (!%p196_p10)   ;;  %v2663_v21 = vld [vmem:[%s2796_s29 + $0x8] ss:$24 sps:$4 sm:$0xff] (!%p196_p10)   ;;  %v2675_v23 = vld [vmem:[%s2796_s29 + $0x38] ss:$24 sps:$4 sm:$0xff] (!%p196_p10)  }
  0x28   : > { %731 = vmatprep.subr.bf16.mxu0 %v2658_v15  ;;  %2608 = vmatprep.subr.bf16.mxu1 %v2658_v15  ;;  %v2666_v22 = vld [vmem:[%s2796_s29 + $0x10] ss:$24 sps:$4 sm:$0xff]   ;;  %v2678_v25 = vld [vmem:[%s2796_s29 + $0x40] ss:$24 sps:$4 sm:$0xff]   ;;  %v2680_v26 = vld [vmem:[%s2796_s29 + $0x44] ss:$24 sps:$4 sm:$0xff]  }
  0x29   : > { %s2923_s8 = scalar_lea.vmem [#allocation4], %s2613_s7  ;;  %s2606_s9 = smul.u32 (%p2776_p6), 24, %s2715_s11 }
  0x2b   : > { %732 = vmatpush1.bf16.msra.mxu0 %v2660_v16  ;;  %2610 = vmatpush1.bf16.msra.mxu1 %v2660_v16  ;;  %s3009_s15 = scalar_lea.vmem (%p2776_p6), %s3166_s2, %s2606_s9 }
  0x2c   : > { %882 = vmatprep.subr.bf16.mxu1 %v2665_v19  ;;  %1035 = vmatprep.subr.bf16.mxu0 %v2668_v20 }
  0x2e   : > { %2422 = vmatmul.mubr.msk.bf16.vlgmr.msra.gmra.mrb[0].mxu0 %vm692_vm0, %v2661_v17  ;;  %2428 = vmatmul.mubr.msk.bf16.vlgmr.msra.gmra.mrb[0].mxu1 %vm692_vm0, %v2808_v18 }
  0x2f   : > { %883 = vmatpush1.bf16.msra.mxu1 %v2663_v21  ;;  %1036 = vmatpush1.bf16.msra.mxu0 %v2666_v22 }
  0x30   : > { %771 = vmatprep.mubr.bf16.mxu0 %v2725_v12  ;;  %831 = vmatprep.mubr.bf16.mxu1 %v2725_v12 }
  0x31   : > { %884 = vmatprep.subr.bf16.mxu1 %v2677_v24  ;;  %1037 = vmatprep.subr.bf16.mxu0 %v2680_v26 }
  0x33   : > { %885 = vmatpush1.bf16.msra.mxu1 %v2675_v23  ;;  %1038 = vmatpush1.bf16.msra.mxu0 %v2678_v25 }
  0x36   : > { %2423 = vmatmul.mubr.msk.bf16.gmra.mrb[4].mxu0 %vm692_vm0, %v2669_v27  ;;  %2429 = vmatmul.mubr.msk.bf16.gmra.mrb[4].mxu1 %vm692_vm0, %v2670_v28 }
  0x37   : > { %781 = vmatprep.mubr.bf16.mxu0 %v2725_v12  ;;  %841 = vmatprep.mubr.bf16.mxu1 %v2725_v12 }
  0x3e   : > { %2424 = vmatmul.mubr.msk.bf16.gmra.mrb[8].mxu0 %vm692_vm0, %v2671_v29  ;;  %2430 = vmatmul.mubr.msk.bf16.gmra.mrb[8].mxu1 %vm692_vm0, %v2672_v30 }
  0x3f   : > { %791 = vmatprep.mubr.bf16.mxu0 %v2725_v12  ;;  %851 = vmatprep.mubr.bf16.mxu1 %v2725_v12 }
  0x46   : > { %2425 = vmatmul.mubr.msk.bf16.gmra.mrb[12].mxu0 %vm692_vm0, %v2673_v31  ;;  %2431 = vmatmul.mubr.msk.bf16.gmra.mrb[12].mxu1 %vm692_vm0, %v2674_v32 }
  0x47   : > { %801 = vmatprep.mubr.bf16.mxu0 %v2725_v12  ;;  %861 = vmatprep.mubr.bf16.mxu1 %v2725_v12 }
  0x4e   : > { %2426 = vmatmul.mubr.msk.bf16.gmra.mrb[16].mxu0 %vm692_vm0, %v2681_v33  ;;  %2432 = vmatmul.mubr.msk.bf16.gmra.mrb[16].mxu1 %vm692_vm0, %v2682_v34 }
  0x4f   : > { %811 = vmatprep.mubr.bf16.mxu0 %v2725_v12  ;;  %871 = vmatprep.mubr.bf16.mxu1 %v2725_v12 }
  0x56   : > { %2427 = vmatmul.mubr.msk.bf16.gmra.mrb[20].mxu0 %vm692_vm0, %v2683_v35  ;;  %2433 = vmatmul.mubr.msk.bf16.gmra.mrb[20].mxu1 %vm692_vm0, %v2684_v36 }
  0x57   : > { %914 = vmatprep.mubr.bf16.mxu1 %v2725_v12  ;;  %1067 = vmatprep.mubr.bf16.mxu0 %v2725_v12 }
  0x5e   : > { %2434 = vmatmul.mubr.msk.bf16.vlgmr.msra.gmra.mrb[24].mxu1 %vm692_vm0, %v2661_v17  ;;  %2446 = vmatmul.mubr.msk.bf16.vlgmr.msra.gmra.mrb[24].mxu0 %vm692_vm0, %v2661_v17 }
  0x5f   : > { %924 = vmatprep.mubr.bf16.mxu1 %v2725_v12  ;;  %1077 = vmatprep.mubr.bf16.mxu0 %v2725_v12 }
  0x66   : > { %2435 = vmatmul.mubr.msk.bf16.gmra.mrb[28].mxu1 %vm692_vm0, %v2669_v27  ;;  %2447 = vmatmul.mubr.msk.bf16.gmra.mrb[28].mxu0 %vm692_vm0, %v2669_v27 }
  0x67   : > { %934 = vmatprep.mubr.bf16.mxu1 %v2725_v12  ;;  %1087 = vmatprep.mubr.bf16.mxu0 %v2725_v12 }
  0x6e   : > { %2436 = vmatmul.mubr.msk.bf16.gmra.mrb[32].mxu1 %vm692_vm0, %v2671_v29  ;;  %2448 = vmatmul.mubr.msk.bf16.gmra.mrb[32].mxu0 %vm692_vm0, %v2671_v29 }
  0x6f   : > { %944 = vmatprep.mubr.bf16.mxu1 %v2725_v12  ;;  %1097 = vmatprep.mubr.bf16.mxu0 %v2725_v12 }
  0x76   : > { %2437 = vmatmul.mubr.msk.bf16.gmra.mrb[36].mxu1 %vm692_vm0, %v2673_v31  ;;  %2449 = vmatmul.mubr.msk.bf16.gmra.mrb[36].mxu0 %vm692_vm0, %v2673_v31 }
  0x77   : > { %954 = vmatprep.mubr.bf16.mxu1 %v2725_v12  ;;  %1107 = vmatprep.mubr.bf16.mxu0 %v2725_v12 }
  0x7e   : > { %2438 = vmatmul.mubr.msk.bf16.gmra.mrb[40].mxu1 %vm692_vm0, %v2681_v33  ;;  %2450 = vmatmul.mubr.msk.bf16.gmra.mrb[40].mxu0 %vm692_vm0, %v2681_v33 }
  0x7f   : > { %964 = vmatprep.mubr.bf16.mxu1 %v2725_v12  ;;  %1117 = vmatprep.mubr.bf16.mxu0 %v2725_v12 }
  0x86   : > { %2439 = vmatmul.mubr.msk.bf16.gmra.mrb[44].mxu1 %vm692_vm0, %v2683_v35  ;;  %2451 = vmatmul.mubr.msk.bf16.gmra.mrb[44].mxu0 %vm692_vm0, %v2683_v35 }
  0x87   : > { %974 = vmatprep.mubr.bf16.mxu1 %v2725_v12  ;;  %1127 = vmatprep.mubr.bf16.mxu0 %v2725_v12 }
  0x8e   : > { %2440 = vmatmul.mubr.msk.bf16.gmra.mrb[48].mxu1 %vm692_vm0, %v2808_v18  ;;  %2452 = vmatmul.mubr.msk.bf16.gmra.mrb[48].mxu0 %vm692_vm0, %v2808_v18 }
  0x8f   : > { %984 = vmatprep.mubr.bf16.mxu1 %v2725_v12  ;;  %1137 = vmatprep.mubr.bf16.mxu0 %v2725_v12 }
  0x96   : > { %2441 = vmatmul.mubr.msk.bf16.gmra.mrb[52].mxu1 %vm692_vm0, %v2670_v28  ;;  %2453 = vmatmul.mubr.msk.bf16.gmra.mrb[52].mxu0 %vm692_vm0, %v2670_v28 }
  0x97   : > { %994 = vmatprep.mubr.bf16.mxu1 %v2725_v12  ;;  %1147 = vmatprep.mubr.bf16.mxu0 %v2725_v12 }
  0x9e   : > { %2442 = vmatmul.mubr.msk.bf16.gmra.mrb[56].mxu1 %vm692_vm0, %v2672_v30  ;;  %2454 = vmatmul.mubr.msk.bf16.gmra.mrb[56].mxu0 %vm692_vm0, %v2672_v30 }
  0x9f   : > { %1004 = vmatprep.mubr.bf16.mxu1 %v2725_v12  ;;  %1157 = vmatprep.mubr.bf16.mxu0 %v2725_v12 }
  0xa6   : > { %2443 = vmatmul.mubr.msk.bf16.gmra.mrb[60].mxu1 %vm692_vm0, %v2674_v32  ;;  %2455 = vmatmul.mubr.msk.bf16.gmra.mrb[60].mxu0 %vm692_vm0, %v2674_v32 }
  0xa7   : > { %1014 = vmatprep.mubr.bf16.mxu1 %v2725_v12  ;;  %1167 = vmatprep.mubr.bf16.mxu0 %v2725_v12 }
  0xae   : > { %2444 = vmatmul.mubr.msk.bf16.gmra.mrb[64].mxu1 %vm692_vm0, %v2682_v34  ;;  %2456 = vmatmul.mubr.msk.bf16.gmra.mrb[64].mxu0 %vm692_vm0, %v2682_v34 }
  0xaf   : > { %1024 = vmatprep.mubr.bf16.mxu1 %v2725_v12  ;;  %1177 = vmatprep.mubr.bf16.mxu0 %v2725_v12 }
  0xb6   : > { %2445 = vmatmul.mubr.msk.bf16.gmra.mrb[68].mxu1 %vm692_vm0, %v2684_v36  ;;  %2457 = vmatmul.mubr.msk.bf16.gmra.mrb[68].mxu0 %vm692_vm0, %v2684_v36 }
 0x101   : > { %v763_v37 = vpop.f32.mrb[0].mxu0  ;;  %v823_v38 = vpop.f32.mrb[0].mxu1 }
 0x102   : > { %v765_v39 = vpop.f32.mrb[1].mxu0  ;;  %v825_v40 = vpop.f32.mrb[1].mxu1 }
 0x103   : > { %v2534_v41 = vpack.c.bf16 %v765_v39, %v763_v37  ;;  %v2570_v42 = vpack.c.bf16 %v825_v40, %v823_v38  ;;  %v767_v43 = vpop.f32.mrb[2].mxu0  ;;  %v827_v44 = vpop.f32.mrb[2].mxu1 }
 0x104   : > { %v769_v45 = vpop.f32.mrb[3].mxu0  ;;  %v829_v46 = vpop.f32.mrb[3].mxu1 }
 0x105   : > { %2055 = vst [vmem:[%s2923_s8] sm:$0xff] %v2534_v41  ;;  %2091 = vst [vmem:[%s2923_s8 + $0x120] sm:$0xff] %v2570_v42  ;;  %v2537_v47 = vpack.c.bf16 %v769_v45, %v767_v43  ;;  %v2573_v48 = vpack.c.bf16 %v829_v46, %v827_v44 }
 0x107   : > { %2058 = vst [vmem:[%s2923_s8 + $0x18] sm:$0xff] %v2537_v47  ;;  %2094 = vst [vmem:[%s2923_s8 + $0x138] sm:$0xff] %v2573_v48 }
 0x109   : > { %v773_v49 = vpop.f32.mrb[4].mxu0  ;;  %v833_v50 = vpop.f32.mrb[4].mxu1 }
 0x10a   : > { %v775_v51 = vpop.f32.mrb[5].mxu0  ;;  %v835_v52 = vpop.f32.mrb[5].mxu1 }
 0x10b   : > { %v2540_v53 = vpack.c.bf16 %v775_v51, %v773_v49  ;;  %v2576_v54 = vpack.c.bf16 %v835_v52, %v833_v50  ;;  %v777_v55 = vpop.f32.mrb[6].mxu0  ;;  %v837_v56 = vpop.f32.mrb[6].mxu1 }
 0x10c   : > { %v779_v57 = vpop.f32.mrb[7].mxu0  ;;  %v839_v58 = vpop.f32.mrb[7].mxu1 }
 0x10d   : > { %2061 = vst [vmem:[%s2923_s8 + $0x30] sm:$0xff] %v2540_v53  ;;  %2097 = vst [vmem:[%s2923_s8 + $0x150] sm:$0xff] %v2576_v54  ;;  %v2543_v59 = vpack.c.bf16 %v779_v57, %v777_v55  ;;  %v2579_v60 = vpack.c.bf16 %v839_v58, %v837_v56 }
 0x10f   : > { %2064 = vst [vmem:[%s2923_s8 + $0x48] sm:$0xff] %v2543_v59  ;;  %2100 = vst [vmem:[%s2923_s8 + $0x168] sm:$0xff] %v2579_v60 }
 0x111   : > { %v783_v61 = vpop.f32.mrb[8].mxu0  ;;  %v843_v62 = vpop.f32.mrb[8].mxu1 }
 0x112   : > { %v785_v63 = vpop.f32.mrb[9].mxu0  ;;  %v845_v0 = vpop.f32.mrb[9].mxu1 }
 0x113   : > { %v2546_v1 = vpack.c.bf16 %v785_v63, %v783_v61  ;;  %v2582_v2 = vpack.c.bf16 %v845_v0, %v843_v62  ;;  %v787_v3 = vpop.f32.mrb[10].mxu0  ;;  %v847_v4 = vpop.f32.mrb[10].mxu1 }
 0x114   : > { %v789_v5 = vpop.f32.mrb[11].mxu0  ;;  %v849_v6 = vpop.f32.mrb[11].mxu1 }
 0x115   : > { %2067 = vst [vmem:[%s2923_s8 + $0x60] sm:$0xff] %v2546_v1  ;;  %2103 = vst [vmem:[%s2923_s8 + $0x180] sm:$0xff] %v2582_v2  ;;  %v2549_v7 = vpack.c.bf16 %v789_v5, %v787_v3  ;;  %v2585_v8 = vpack.c.bf16 %v849_v6, %v847_v4 }
 0x117   : > { %2070 = vst [vmem:[%s2923_s8 + $0x78] sm:$0xff] %v2549_v7  ;;  %2106 = vst [vmem:[%s2923_s8 + $0x198] sm:$0xff] %v2585_v8 }
 0x119   : > { %v793_v9 = vpop.f32.mrb[12].mxu0  ;;  %v853_v10 = vpop.f32.mrb[12].mxu1 }
 0x11a   : > { %v795_v11 = vpop.f32.mrb[13].mxu0  ;;  %v855_v12 = vpop.f32.mrb[13].mxu1 }
 0x11b   : > { %v2552_v13 = vpack.c.bf16 %v795_v11, %v793_v9  ;;  %v2588_v14 = vpack.c.bf16 %v855_v12, %v853_v10  ;;  %v797_v15 = vpop.f32.mrb[14].mxu0  ;;  %v857_v16 = vpop.f32.mrb[14].mxu1 }
 0x11c   : > { %v799_v17 = vpop.f32.mrb[15].mxu0  ;;  %v859_v18 = vpop.f32.mrb[15].mxu1 }
 0x11d   : > { %2073 = vst [vmem:[%s2923_s8 + $0x90] sm:$0xff] %v2552_v13  ;;  %2109 = vst [vmem:[%s2923_s8 + $0x1b0] sm:$0xff] %v2588_v14  ;;  %v2555_v19 = vpack.c.bf16 %v799_v17, %v797_v15  ;;  %v2591_v20 = vpack.c.bf16 %v859_v18, %v857_v16 }
 0x11f   : > { %2076 = vst [vmem:[%s2923_s8 + $0xa8] sm:$0xff] %v2555_v19  ;;  %2112 = vst [vmem:[%s2923_s8 + $0x1c8] sm:$0xff] %v2591_v20 }
 0x121   : > { %v803_v21 = vpop.f32.mrb[16].mxu0  ;;  %v863_v22 = vpop.f32.mrb[16].mxu1 }
 0x122   : > { %v805_v23 = vpop.f32.mrb[17].mxu0  ;;  %v865_v24 = vpop.f32.mrb[17].mxu1 }
 0x123   : > { %v2558_v25 = vpack.c.bf16 %v805_v23, %v803_v21  ;;  %v2594_v26 = vpack.c.bf16 %v865_v24, %v863_v22  ;;  %v807_v27 = vpop.f32.mrb[18].mxu0  ;;  %v867_v28 = vpop.f32.mrb[18].mxu1 }
 0x124   : > { %v809_v29 = vpop.f32.mrb[19].mxu0  ;;  %v869_v30 = vpop.f32.mrb[19].mxu1 }
 0x125   : > { %2079 = vst [vmem:[%s2923_s8 + $0xc0] sm:$0xff] %v2558_v25  ;;  %2115 = vst [vmem:[%s2923_s8 + $0x1e0] sm:$0xff] %v2594_v26  ;;  %v2561_v31 = vpack.c.bf16 %v809_v29, %v807_v27  ;;  %v2597_v32 = vpack.c.bf16 %v869_v30, %v867_v28 }
 0x127   : > { %2082 = vst [vmem:[%s2923_s8 + $0xd8] sm:$0xff] %v2561_v31  ;;  %2118 = vst [vmem:[%s2923_s8 + $0x1f8] sm:$0xff] %v2597_v32 }
 0x129   : > { %v813_v33 = vpop.f32.mrb[20].mxu0  ;;  %v873_v34 = vpop.f32.mrb[20].mxu1 }
 0x12a   : > { %v815_v35 = vpop.f32.mrb[21].mxu0  ;;  %v875_v36 = vpop.f32.mrb[21].mxu1 }
 0x12b   : > { %v2564_v37 = vpack.c.bf16 %v815_v35, %v813_v33  ;;  %v2600_v38 = vpack.c.bf16 %v875_v36, %v873_v34  ;;  %v817_v39 = vpop.f32.mrb[22].mxu0  ;;  %v877_v40 = vpop.f32.mrb[22].mxu1 }
 0x12c   : > { %v819_v41 = vpop.f32.mrb[23].mxu0  ;;  %v879_v42 = vpop.f32.mrb[23].mxu1 }
 0x12d   : > { %2085 = vst [vmem:[%s2923_s8 + $0xf0] sm:$0xff] %v2564_v37  ;;  %2121 = vst [vmem:[%s2923_s8 + $0x210] sm:$0xff] %v2600_v38  ;;  %v2567_v43 = vpack.c.bf16 %v819_v41, %v817_v39  ;;  %v2603_v44 = vpack.c.bf16 %v879_v42, %v877_v40 }
 0x12f   : > { %2088 = vst [vmem:[%s2923_s8 + $0x108] sm:$0xff] %v2567_v43  ;;  %2124 = vst [vmem:[%s2923_s8 + $0x228] sm:$0xff] %v2603_v44 }
 0x131   : > { %v916_v45 = vpop.f32.mrb[24].mxu1  ;;  %v1069_v46 = vpop.f32.mrb[24].mxu0 }
 0x132   : > { %v918_v47 = vpop.f32.mrb[25].mxu1  ;;  %v1071_v48 = vpop.f32.mrb[25].mxu0 }
 0x133   : > { %v2535_v49 = vpack.c.bf16 %v918_v47, %v916_v45  ;;  %v2536_v50 = vpack.c.bf16 %v1071_v48, %v1069_v46  ;;  %v920_v51 = vpop.f32.mrb[26].mxu1  ;;  %v1073_v52 = vpop.f32.mrb[26].mxu0 }
 0x134   : > { %v922_v53 = vpop.f32.mrb[27].mxu1  ;;  %v1075_v54 = vpop.f32.mrb[27].mxu0 }
 0x135   : > { %2056 = vst [vmem:[%s2923_s8 + $0x8] sm:$0xff] %v2535_v49  ;;  %2057 = vst [vmem:[%s2923_s8 + $0x10] sm:$0xff] %v2536_v50  ;;  %v2538_v55 = vpack.c.bf16 %v922_v53, %v920_v51  ;;  %v2539_v56 = vpack.c.bf16 %v1075_v54, %v1073_v52 }
 0x137   : > { %2059 = vst [vmem:[%s2923_s8 + $0x20] sm:$0xff] %v2538_v55  ;;  %2060 = vst [vmem:[%s2923_s8 + $0x28] sm:$0xff] %v2539_v56 }
 0x139   : > { %v926_v57 = vpop.f32.mrb[28].mxu1  ;;  %v1079_v58 = vpop.f32.mrb[28].mxu0 }
 0x13a   : > { %v928_v59 = vpop.f32.mrb[29].mxu1  ;;  %v1081_v60 = vpop.f32.mrb[29].mxu0 }
 0x13b   : > { %v2541_v61 = vpack.c.bf16 %v928_v59, %v926_v57  ;;  %v2542_v62 = vpack.c.bf16 %v1081_v60, %v1079_v58  ;;  %v930_v63 = vpop.f32.mrb[30].mxu1  ;;  %v1083_v0 = vpop.f32.mrb[30].mxu0 }
 0x13c   : > { %v932_v1 = vpop.f32.mrb[31].mxu1  ;;  %v1085_v2 = vpop.f32.mrb[31].mxu0 }
 0x13d   : > { %2062 = vst [vmem:[%s2923_s8 + $0x38] sm:$0xff] %v2541_v61  ;;  %2063 = vst [vmem:[%s2923_s8 + $0x40] sm:$0xff] %v2542_v62  ;;  %v2544_v3 = vpack.c.bf16 %v932_v1, %v930_v63  ;;  %v2545_v4 = vpack.c.bf16 %v1085_v2, %v1083_v0 }
 0x13f   : > { %2065 = vst [vmem:[%s2923_s8 + $0x50] sm:$0xff] %v2544_v3  ;;  %2066 = vst [vmem:[%s2923_s8 + $0x58] sm:$0xff] %v2545_v4 }
 0x141   : > { %v936_v5 = vpop.f32.mrb[32].mxu1  ;;  %v1089_v6 = vpop.f32.mrb[32].mxu0 }
 0x142   : > { %v938_v7 = vpop.f32.mrb[33].mxu1  ;;  %v1091_v8 = vpop.f32.mrb[33].mxu0 }
 0x143   : > { %v2547_v9 = vpack.c.bf16 %v938_v7, %v936_v5  ;;  %v2548_v10 = vpack.c.bf16 %v1091_v8, %v1089_v6  ;;  %v940_v11 = vpop.f32.mrb[34].mxu1  ;;  %v1093_v12 = vpop.f32.mrb[34].mxu0 }
 0x144   : > { %v942_v13 = vpop.f32.mrb[35].mxu1  ;;  %v1095_v14 = vpop.f32.mrb[35].mxu0 }
 0x145   : > { %2068 = vst [vmem:[%s2923_s8 + $0x68] sm:$0xff] %v2547_v9  ;;  %2069 = vst [vmem:[%s2923_s8 + $0x70] sm:$0xff] %v2548_v10  ;;  %v2550_v15 = vpack.c.bf16 %v942_v13, %v940_v11  ;;  %v2551_v16 = vpack.c.bf16 %v1095_v14, %v1093_v12 }
 0x147   : > { %2071 = vst [vmem:[%s2923_s8 + $0x80] sm:$0xff] %v2550_v15  ;;  %2072 = vst [vmem:[%s2923_s8 + $0x88] sm:$0xff] %v2551_v16 }
 0x149   : > { %v946_v17 = vpop.f32.mrb[36].mxu1  ;;  %v1099_v18 = vpop.f32.mrb[36].mxu0 }
 0x14a   : > { %v948_v19 = vpop.f32.mrb[37].mxu1  ;;  %v1101_v20 = vpop.f32.mrb[37].mxu0 }
 0x14b   : > { %v2553_v21 = vpack.c.bf16 %v948_v19, %v946_v17  ;;  %v2554_v22 = vpack.c.bf16 %v1101_v20, %v1099_v18  ;;  %v950_v23 = vpop.f32.mrb[38].mxu1  ;;  %v1103_v24 = vpop.f32.mrb[38].mxu0 }
 0x14c   : > { %v952_v25 = vpop.f32.mrb[39].mxu1  ;;  %v1105_v26 = vpop.f32.mrb[39].mxu0 }
 0x14d   : > { %2074 = vst [vmem:[%s2923_s8 + $0x98] sm:$0xff] %v2553_v21  ;;  %2075 = vst [vmem:[%s2923_s8 + $0xa0] sm:$0xff] %v2554_v22  ;;  %v2556_v27 = vpack.c.bf16 %v952_v25, %v950_v23  ;;  %v2557_v28 = vpack.c.bf16 %v1105_v26, %v1103_v24 }
 0x14f   : > { %2077 = vst [vmem:[%s2923_s8 + $0xb0] sm:$0xff] %v2556_v27  ;;  %2078 = vst [vmem:[%s2923_s8 + $0xb8] sm:$0xff] %v2557_v28 }
 0x151   : > { %v956_v29 = vpop.f32.mrb[40].mxu1  ;;  %v1109_v30 = vpop.f32.mrb[40].mxu0 }
 0x152   : > { %v958_v31 = vpop.f32.mrb[41].mxu1  ;;  %v1111_v32 = vpop.f32.mrb[41].mxu0 }
 0x153   : > { %v2559_v33 = vpack.c.bf16 %v958_v31, %v956_v29  ;;  %v2560_v34 = vpack.c.bf16 %v1111_v32, %v1109_v30  ;;  %v960_v35 = vpop.f32.mrb[42].mxu1  ;;  %v1113_v36 = vpop.f32.mrb[42].mxu0 }
 0x154   : > { %v962_v37 = vpop.f32.mrb[43].mxu1  ;;  %v1115_v38 = vpop.f32.mrb[43].mxu0 }
 0x155   : > { %2080 = vst [vmem:[%s2923_s8 + $0xc8] sm:$0xff] %v2559_v33  ;;  %2081 = vst [vmem:[%s2923_s8 + $0xd0] sm:$0xff] %v2560_v34  ;;  %v2562_v39 = vpack.c.bf16 %v962_v37, %v960_v35  ;;  %v2563_v40 = vpack.c.bf16 %v1115_v38, %v1113_v36 }
 0x157   : > { %2083 = vst [vmem:[%s2923_s8 + $0xe0] sm:$0xff] %v2562_v39  ;;  %2084 = vst [vmem:[%s2923_s8 + $0xe8] sm:$0xff] %v2563_v40 }
 0x159   : > { %v966_v41 = vpop.f32.mrb[44].mxu1  ;;  %v1119_v42 = vpop.f32.mrb[44].mxu0 }
 0x15a   : > { %v968_v43 = vpop.f32.mrb[45].mxu1  ;;  %v1121_v44 = vpop.f32.mrb[45].mxu0 }
 0x15b   : > { %v2565_v45 = vpack.c.bf16 %v968_v43, %v966_v41  ;;  %v2566_v46 = vpack.c.bf16 %v1121_v44, %v1119_v42  ;;  %v970_v47 = vpop.f32.mrb[46].mxu1  ;;  %v1123_v48 = vpop.f32.mrb[46].mxu0 }
 0x15c   : > { %v972_v49 = vpop.f32.mrb[47].mxu1  ;;  %v1125_v50 = vpop.f32.mrb[47].mxu0 }
 0x15d   : > { %2086 = vst [vmem:[%s2923_s8 + $0xf8] sm:$0xff] %v2565_v45  ;;  %2087 = vst [vmem:[%s2923_s8 + $0x100] sm:$0xff] %v2566_v46  ;;  %v2568_v51 = vpack.c.bf16 %v972_v49, %v970_v47  ;;  %v2569_v52 = vpack.c.bf16 %v1125_v50, %v1123_v48 }
 0x15f   : > { %2089 = vst [vmem:[%s2923_s8 + $0x110] sm:$0xff] %v2568_v51  ;;  %2090 = vst [vmem:[%s2923_s8 + $0x118] sm:$0xff] %v2569_v52 }
 0x161   : > { %v976_v53 = vpop.f32.mrb[48].mxu1  ;;  %v1129_v54 = vpop.f32.mrb[48].mxu0 }
 0x162   : > { %v978_v55 = vpop.f32.mrb[49].mxu1  ;;  %v1131_v56 = vpop.f32.mrb[49].mxu0 }
 0x163   : > { %v2571_v57 = vpack.c.bf16 %v978_v55, %v976_v53  ;;  %v2572_v58 = vpack.c.bf16 %v1131_v56, %v1129_v54  ;;  %v980_v59 = vpop.f32.mrb[50].mxu1  ;;  %v1133_v60 = vpop.f32.mrb[50].mxu0 }
 0x164   : > { %v982_v61 = vpop.f32.mrb[51].mxu1  ;;  %v1135_v62 = vpop.f32.mrb[51].mxu0 }
 0x165   : > { %2092 = vst [vmem:[%s2923_s8 + $0x128] sm:$0xff] %v2571_v57  ;;  %2093 = vst [vmem:[%s2923_s8 + $0x130] sm:$0xff] %v2572_v58  ;;  %v2574_v63 = vpack.c.bf16 %v982_v61, %v980_v59  ;;  %v2575_v0 = vpack.c.bf16 %v1135_v62, %v1133_v60  ;;  %v2152_v61 = vld [vmem:[%s2923_s8] sm:$0xff] (%p2776_p6)  ;;  %v2154_v62 = vld [vmem:[%s2923_s8 + $0x8] sm:$0xff] (%p2776_p6) }
 0x166   : > { %2153 = vst [vmem:[%s3009_s15] sm:$0xff] (%p2776_p6), %v2152_v61  ;;  %2155 = vst [vmem:[%s3009_s15 + $0x8] sm:$0xff] (%p2776_p6), %v2154_v62 }
 0x167   : > { %2095 = vst [vmem:[%s2923_s8 + $0x140] sm:$0xff] %v2574_v63  ;;  %2096 = vst [vmem:[%s2923_s8 + $0x148] sm:$0xff] %v2575_v0  ;;  %v2156_v63 = vld [vmem:[%s2923_s8 + $0x10] sm:$0xff] (%p2776_p6)  ;;  %v2158_v0 = vld [vmem:[%s2923_s8 + $0x18] sm:$0xff] (%p2776_p6) }
 0x168   : > { %2157 = vst [vmem:[%s3009_s15 + $0x10] sm:$0xff] (%p2776_p6), %v2156_v63  ;;  %2159 = vst [vmem:[%s3009_s15 + $0x30] sm:$0xff] (%p2776_p6), %v2158_v0  ;;  %v2284_v63 = vld [vmem:[%s2923_s8 + $0x210] sm:$0xff] (%p2776_p6) }
 0x169   : > { %v986_v1 = vpop.f32.mrb[52].mxu1  ;;  %v1139_v2 = vpop.f32.mrb[52].mxu0  ;;  %2285 = vst [vmem:[%s3009_s15 + $0x420] sm:$0xff] (%p2776_p6), %v2284_v63 }
 0x16a   : > { %v988_v3 = vpop.f32.mrb[53].mxu1  ;;  %v1141_v4 = vpop.f32.mrb[53].mxu0 }
 0x16b   : > { %v2577_v5 = vpack.c.bf16 %v988_v3, %v986_v1  ;;  %v2578_v6 = vpack.c.bf16 %v1141_v4, %v1139_v2  ;;  %v990_v7 = vpop.f32.mrb[54].mxu1  ;;  %v1143_v8 = vpop.f32.mrb[54].mxu0  ;;  %v2160_v1 = vld [vmem:[%s2923_s8 + $0x20] sm:$0xff] (%p2776_p6)  ;;  %v2162_v2 = vld [vmem:[%s2923_s8 + $0x28] sm:$0xff] (%p2776_p6)  ;;  %v2164_v3 = vld [vmem:[%s2923_s8 + $0x30] sm:$0xff] (%p2776_p6) }
 0x16c   : > { %v992_v9 = vpop.f32.mrb[55].mxu1  ;;  %v1145_v10 = vpop.f32.mrb[55].mxu0  ;;  %v2166_v4 = vld [vmem:[%s2923_s8 + $0x38] sm:$0xff] (%p2776_p6)  ;;  %2161 = vst [vmem:[%s3009_s15 + $0x38] sm:$0xff] (%p2776_p6), %v2160_v1  ;;  %2163 = vst [vmem:[%s3009_s15 + $0x40] sm:$0xff] (%p2776_p6), %v2162_v2  ;;  %v2290_v2 = vld [vmem:[%s2923_s8 + $0x228] sm:$0xff] (%p2776_p6) }
 0x16d   : > { %2098 = vst [vmem:[%s2923_s8 + $0x158] sm:$0xff] %v2577_v5  ;;  %2099 = vst [vmem:[%s2923_s8 + $0x160] sm:$0xff] %v2578_v6  ;;  %v2580_v11 = vpack.c.bf16 %v992_v9, %v990_v7  ;;  %v2581_v12 = vpack.c.bf16 %v1145_v10, %v1143_v8  ;;  %v2168_v5 = vld [vmem:[%s2923_s8 + $0x40] sm:$0xff] (%p2776_p6)  ;;  %v2170_v6 = vld [vmem:[%s2923_s8 + $0x48] sm:$0xff] (%p2776_p6) }
 0x16e   : > { %2165 = vst [vmem:[%s3009_s15 + $0x60] sm:$0xff] (%p2776_p6), %v2164_v3  ;;  %2167 = vst [vmem:[%s3009_s15 + $0x68] sm:$0xff] (%p2776_p6), %v2166_v4  ;;  %v2172_v7 = vld [vmem:[%s2923_s8 + $0x50] sm:$0xff] (%p2776_p6)  ;;  %v2174_v8 = vld [vmem:[%s2923_s8 + $0x58] sm:$0xff] (%p2776_p6) }
 0x16f   : > { %2101 = vst [vmem:[%s2923_s8 + $0x170] sm:$0xff] %v2580_v11  ;;  %2102 = vst [vmem:[%s2923_s8 + $0x178] sm:$0xff] %v2581_v12  ;;  %v2176_v9 = vld [vmem:[%s2923_s8 + $0x60] sm:$0xff] (%p2776_p6)  ;;  %v2178_v10 = vld [vmem:[%s2923_s8 + $0x68] sm:$0xff] (%p2776_p6) }
 0x170   : > { %2169 = vst [vmem:[%s3009_s15 + $0x70] sm:$0xff] (%p2776_p6), %v2168_v5  ;;  %2171 = vst [vmem:[%s3009_s15 + $0x90] sm:$0xff] (%p2776_p6), %v2170_v6  ;;  %v2180_v11 = vld [vmem:[%s2923_s8 + $0x70] sm:$0xff] (%p2776_p6)  ;;  %v2182_v12 = vld [vmem:[%s2923_s8 + $0x78] sm:$0xff] (%p2776_p6) }
 0x171   : > { %v996_v13 = vpop.f32.mrb[56].mxu1  ;;  %v1149_v14 = vpop.f32.mrb[56].mxu0  ;;  %2173 = vst [vmem:[%s3009_s15 + $0x98] sm:$0xff] (%p2776_p6), %v2172_v7  ;;  %2175 = vst [vmem:[%s3009_s15 + $0xa0] sm:$0xff] (%p2776_p6), %v2174_v8 }
 0x172   : > { %v998_v15 = vpop.f32.mrb[57].mxu1  ;;  %v1151_v16 = vpop.f32.mrb[57].mxu0  ;;  %2177 = vst [vmem:[%s3009_s15 + $0xc0] sm:$0xff] (%p2776_p6), %v2176_v9  ;;  %2179 = vst [vmem:[%s3009_s15 + $0xc8] sm:$0xff] (%p2776_p6), %v2178_v10 }
 0x173   : > { %v2583_v17 = vpack.c.bf16 %v998_v15, %v996_v13  ;;  %v2584_v18 = vpack.c.bf16 %v1151_v16, %v1149_v14  ;;  %v1000_v19 = vpop.f32.mrb[58].mxu1  ;;  %v1153_v20 = vpop.f32.mrb[58].mxu0  ;;  %2181 = vst [vmem:[%s3009_s15 + $0xd0] sm:$0xff] (%p2776_p6), %v2180_v11  ;;  %v2184_v13 = vld [vmem:[%s2923_s8 + $0x80] sm:$0xff] (%p2776_p6)  ;;  %v2186_v14 = vld [vmem:[%s2923_s8 + $0x88] sm:$0xff] (%p2776_p6)  ;;  %2183 = vst [vmem:[%s3009_s15 + $0xf0] sm:$0xff] (%p2776_p6), %v2182_v12 }
 0x174   : > { %v1002_v21 = vpop.f32.mrb[59].mxu1  ;;  %v1155_v22 = vpop.f32.mrb[59].mxu0  ;;  %2185 = vst [vmem:[%s3009_s15 + $0xf8] sm:$0xff] (%p2776_p6), %v2184_v13  ;;  %2187 = vst [vmem:[%s3009_s15 + $0x100] sm:$0xff] (%p2776_p6), %v2186_v14  ;;  %v2188_v15 = vld [vmem:[%s2923_s8 + $0x90] sm:$0xff] (%p2776_p6)  ;;  %v2190_v16 = vld [vmem:[%s2923_s8 + $0x98] sm:$0xff] (%p2776_p6) }
 0x175   : > { %2104 = vst [vmem:[%s2923_s8 + $0x188] sm:$0xff] %v2583_v17  ;;  %2105 = vst [vmem:[%s2923_s8 + $0x190] sm:$0xff] %v2584_v18  ;;  %v2586_v23 = vpack.c.bf16 %v1002_v21, %v1000_v19  ;;  %v2587_v24 = vpack.c.bf16 %v1155_v22, %v1153_v20  ;;  %v2192_v17 = vld [vmem:[%s2923_s8 + $0xa0] sm:$0xff] (%p2776_p6)  ;;  %v2194_v18 = vld [vmem:[%s2923_s8 + $0xa8] sm:$0xff] (%p2776_p6) }
 0x176   : > { %2189 = vst [vmem:[%s3009_s15 + $0x120] sm:$0xff] (%p2776_p6), %v2188_v15  ;;  %2191 = vst [vmem:[%s3009_s15 + $0x128] sm:$0xff] (%p2776_p6), %v2190_v16  ;;  %v2196_v19 = vld [vmem:[%s2923_s8 + $0xb0] sm:$0xff] (%p2776_p6)  ;;  %v2198_v20 = vld [vmem:[%s2923_s8 + $0xb8] sm:$0xff] (%p2776_p6) }
 0x177   : > { %2107 = vst [vmem:[%s2923_s8 + $0x1a0] sm:$0xff] %v2586_v23  ;;  %2108 = vst [vmem:[%s2923_s8 + $0x1a8] sm:$0xff] %v2587_v24  ;;  %v2200_v21 = vld [vmem:[%s2923_s8 + $0xc0] sm:$0xff] (%p2776_p6)  ;;  %v2202_v22 = vld [vmem:[%s2923_s8 + $0xc8] sm:$0xff] (%p2776_p6) }
 0x178   : > { %2193 = vst [vmem:[%s3009_s15 + $0x130] sm:$0xff] (%p2776_p6), %v2192_v17  ;;  %2195 = vst [vmem:[%s3009_s15 + $0x150] sm:$0xff] (%p2776_p6), %v2194_v18  ;;  %v2204_v23 = vld [vmem:[%s2923_s8 + $0xd0] sm:$0xff] (%p2776_p6)  ;;  %v2206_v24 = vld [vmem:[%s2923_s8 + $0xd8] sm:$0xff] (%p2776_p6) }
 0x179   : > { %v1006_v25 = vpop.f32.mrb[60].mxu1  ;;  %v1159_v26 = vpop.f32.mrb[60].mxu0  ;;  %2197 = vst [vmem:[%s3009_s15 + $0x158] sm:$0xff] (%p2776_p6), %v2196_v19  ;;  %2199 = vst [vmem:[%s3009_s15 + $0x160] sm:$0xff] (%p2776_p6), %v2198_v20 }
 0x17a   : > { %v1008_v27 = vpop.f32.mrb[61].mxu1  ;;  %v1161_v28 = vpop.f32.mrb[61].mxu0  ;;  %2201 = vst [vmem:[%s3009_s15 + $0x180] sm:$0xff] (%p2776_p6), %v2200_v21  ;;  %2203 = vst [vmem:[%s3009_s15 + $0x188] sm:$0xff] (%p2776_p6), %v2202_v22 }
 0x17b   : > { %v2589_v29 = vpack.c.bf16 %v1008_v27, %v1006_v25  ;;  %v2590_v30 = vpack.c.bf16 %v1161_v28, %v1159_v26  ;;  %v1010_v31 = vpop.f32.mrb[62].mxu1  ;;  %v1163_v32 = vpop.f32.mrb[62].mxu0  ;;  %2205 = vst [vmem:[%s3009_s15 + $0x190] sm:$0xff] (%p2776_p6), %v2204_v23  ;;  %v2208_v25 = vld [vmem:[%s2923_s8 + $0xe0] sm:$0xff] (%p2776_p6)  ;;  %v2210_v26 = vld [vmem:[%s2923_s8 + $0xe8] sm:$0xff] (%p2776_p6)  ;;  %2207 = vst [vmem:[%s3009_s15 + $0x1b0] sm:$0xff] (%p2776_p6), %v2206_v24 }
 0x17c   : > { %v1012_v33 = vpop.f32.mrb[63].mxu1  ;;  %v1165_v34 = vpop.f32.mrb[63].mxu0  ;;  %2209 = vst [vmem:[%s3009_s15 + $0x1b8] sm:$0xff] (%p2776_p6), %v2208_v25  ;;  %2211 = vst [vmem:[%s3009_s15 + $0x1c0] sm:$0xff] (%p2776_p6), %v2210_v26  ;;  %v2212_v27 = vld [vmem:[%s2923_s8 + $0xf0] sm:$0xff] (%p2776_p6)  ;;  %v2214_v28 = vld [vmem:[%s2923_s8 + $0xf8] sm:$0xff] (%p2776_p6) }
 0x17d   : > { %2110 = vst [vmem:[%s2923_s8 + $0x1b8] sm:$0xff] %v2589_v29  ;;  %2111 = vst [vmem:[%s2923_s8 + $0x1c0] sm:$0xff] %v2590_v30  ;;  %v2592_v35 = vpack.c.bf16 %v1012_v33, %v1010_v31  ;;  %v2593_v36 = vpack.c.bf16 %v1165_v34, %v1163_v32  ;;  %v2216_v29 = vld [vmem:[%s2923_s8 + $0x100] sm:$0xff] (%p2776_p6)  ;;  %v2218_v30 = vld [vmem:[%s2923_s8 + $0x108] sm:$0xff] (%p2776_p6) }
 0x17e   : > { %2213 = vst [vmem:[%s3009_s15 + $0x1e0] sm:$0xff] (%p2776_p6), %v2212_v27  ;;  %2215 = vst [vmem:[%s3009_s15 + $0x1e8] sm:$0xff] (%p2776_p6), %v2214_v28  ;;  %v2220_v31 = vld [vmem:[%s2923_s8 + $0x110] sm:$0xff] (%p2776_p6)  ;;  %v2222_v32 = vld [vmem:[%s2923_s8 + $0x118] sm:$0xff] (%p2776_p6) }
 0x17f   : > { %2113 = vst [vmem:[%s2923_s8 + $0x1d0] sm:$0xff] %v2592_v35  ;;  %2114 = vst [vmem:[%s2923_s8 + $0x1d8] sm:$0xff] %v2593_v36  ;;  %v2224_v33 = vld [vmem:[%s2923_s8 + $0x120] sm:$0xff] (%p2776_p6)  ;;  %v2226_v34 = vld [vmem:[%s2923_s8 + $0x128] sm:$0xff] (%p2776_p6) }
 0x180   : > { %2217 = vst [vmem:[%s3009_s15 + $0x1f0] sm:$0xff] (%p2776_p6), %v2216_v29  ;;  %2219 = vst [vmem:[%s3009_s15 + $0x210] sm:$0xff] (%p2776_p6), %v2218_v30  ;;  %v2228_v35 = vld [vmem:[%s2923_s8 + $0x130] sm:$0xff] (%p2776_p6)  ;;  %v2230_v36 = vld [vmem:[%s2923_s8 + $0x138] sm:$0xff] (%p2776_p6) }
 0x181   : > { %v1016_v37 = vpop.f32.mrb[64].mxu1  ;;  %v1169_v38 = vpop.f32.mrb[64].mxu0  ;;  %2221 = vst [vmem:[%s3009_s15 + $0x218] sm:$0xff] (%p2776_p6), %v2220_v31  ;;  %2223 = vst [vmem:[%s3009_s15 + $0x220] sm:$0xff] (%p2776_p6), %v2222_v32 }
 0x182   : > { %v1018_v39 = vpop.f32.mrb[65].mxu1  ;;  %v1171_v40 = vpop.f32.mrb[65].mxu0  ;;  %2225 = vst [vmem:[%s3009_s15 + $0x240] sm:$0xff] (%p2776_p6), %v2224_v33  ;;  %2227 = vst [vmem:[%s3009_s15 + $0x248] sm:$0xff] (%p2776_p6), %v2226_v34 }
 0x183   : > { %v2595_v41 = vpack.c.bf16 %v1018_v39, %v1016_v37  ;;  %v2596_v42 = vpack.c.bf16 %v1171_v40, %v1169_v38  ;;  %v1020_v43 = vpop.f32.mrb[66].mxu1  ;;  %v1173_v44 = vpop.f32.mrb[66].mxu0  ;;  %2229 = vst [vmem:[%s3009_s15 + $0x250] sm:$0xff] (%p2776_p6), %v2228_v35  ;;  %v2232_v37 = vld [vmem:[%s2923_s8 + $0x140] sm:$0xff] (%p2776_p6)  ;;  %v2234_v38 = vld [vmem:[%s2923_s8 + $0x148] sm:$0xff] (%p2776_p6)  ;;  %2231 = vst [vmem:[%s3009_s15 + $0x270] sm:$0xff] (%p2776_p6), %v2230_v36 }
 0x184   : > { %v1022_v45 = vpop.f32.mrb[67].mxu1  ;;  %v1175_v46 = vpop.f32.mrb[67].mxu0  ;;  %2233 = vst [vmem:[%s3009_s15 + $0x278] sm:$0xff] (%p2776_p6), %v2232_v37  ;;  %2235 = vst [vmem:[%s3009_s15 + $0x280] sm:$0xff] (%p2776_p6), %v2234_v38  ;;  %v2236_v39 = vld [vmem:[%s2923_s8 + $0x150] sm:$0xff] (%p2776_p6)  ;;  %v2238_v40 = vld [vmem:[%s2923_s8 + $0x158] sm:$0xff] (%p2776_p6) }
 0x185   : > { %2116 = vst [vmem:[%s2923_s8 + $0x1e8] sm:$0xff] %v2595_v41  ;;  %2117 = vst [vmem:[%s2923_s8 + $0x1f0] sm:$0xff] %v2596_v42  ;;  %v2598_v47 = vpack.c.bf16 %v1022_v45, %v1020_v43  ;;  %v2599_v48 = vpack.c.bf16 %v1175_v46, %v1173_v44  ;;  %v2240_v41 = vld [vmem:[%s2923_s8 + $0x160] sm:$0xff] (%p2776_p6)  ;;  %v2242_v42 = vld [vmem:[%s2923_s8 + $0x168] sm:$0xff] (%p2776_p6) }
 0x186   : > { %2237 = vst [vmem:[%s3009_s15 + $0x2a0] sm:$0xff] (%p2776_p6), %v2236_v39  ;;  %2239 = vst [vmem:[%s3009_s15 + $0x2a8] sm:$0xff] (%p2776_p6), %v2238_v40  ;;  %v2244_v43 = vld [vmem:[%s2923_s8 + $0x170] sm:$0xff] (%p2776_p6)  ;;  %v2246_v44 = vld [vmem:[%s2923_s8 + $0x178] sm:$0xff] (%p2776_p6) }
 0x187   : > { %2119 = vst [vmem:[%s2923_s8 + $0x200] sm:$0xff] %v2598_v47  ;;  %2120 = vst [vmem:[%s2923_s8 + $0x208] sm:$0xff] %v2599_v48  ;;  %v2248_v45 = vld [vmem:[%s2923_s8 + $0x180] sm:$0xff] (%p2776_p6)  ;;  %v2250_v46 = vld [vmem:[%s2923_s8 + $0x188] sm:$0xff] (%p2776_p6) }
 0x188   : > { %2241 = vst [vmem:[%s3009_s15 + $0x2b0] sm:$0xff] (%p2776_p6), %v2240_v41  ;;  %2243 = vst [vmem:[%s3009_s15 + $0x2d0] sm:$0xff] (%p2776_p6), %v2242_v42  ;;  %v2252_v47 = vld [vmem:[%s2923_s8 + $0x190] sm:$0xff] (%p2776_p6)  ;;  %v2254_v48 = vld [vmem:[%s2923_s8 + $0x198] sm:$0xff] (%p2776_p6) }
 0x189   : > { %v1026_v49 = vpop.f32.mrb[68].mxu1  ;;  %v1179_v50 = vpop.f32.mrb[68].mxu0  ;;  %2133 = sbr.rel (!%p2776_p6) target bundleno = 408 (0x198), region = 63  ;;  %2245 = vst [vmem:[%s3009_s15 + $0x2d8] sm:$0xff] (%p2776_p6), %v2244_v43  ;;  %2247 = vst [vmem:[%s3009_s15 + $0x2e0] sm:$0xff] (%p2776_p6), %v2246_v44 }
 0x18a   : > { %v1028_v51 = vpop.f32.mrb[69].mxu1  ;;  %v1181_v52 = vpop.f32.mrb[69].mxu0  ;;  %2249 = vst [vmem:[%s3009_s15 + $0x300] sm:$0xff] (%p2776_p6), %v2248_v45  ;;  %2251 = vst [vmem:[%s3009_s15 + $0x308] sm:$0xff] (%p2776_p6), %v2250_v46 }
 0x18b   : > { %v2601_v53 = vpack.c.bf16 %v1028_v51, %v1026_v49  ;;  %v2602_v54 = vpack.c.bf16 %v1181_v52, %v1179_v50  ;;  %v1030_v55 = vpop.f32.mrb[70].mxu1  ;;  %v1183_v56 = vpop.f32.mrb[70].mxu0  ;;  %2253 = vst [vmem:[%s3009_s15 + $0x310] sm:$0xff] (%p2776_p6), %v2252_v47  ;;  %v2256_v49 = vld [vmem:[%s2923_s8 + $0x1a0] sm:$0xff] (%p2776_p6)  ;;  %v2258_v50 = vld [vmem:[%s2923_s8 + $0x1a8] sm:$0xff] (%p2776_p6)  ;;  %2255 = vst [vmem:[%s3009_s15 + $0x330] sm:$0xff] (%p2776_p6), %v2254_v48 }
 0x18c   : > { %v1032_v57 = vpop.f32.mrb[71].mxu1  ;;  %v1185_v58 = vpop.f32.mrb[71].mxu0  ;;  %2257 = vst [vmem:[%s3009_s15 + $0x338] sm:$0xff] (%p2776_p6), %v2256_v49  ;;  %2259 = vst [vmem:[%s3009_s15 + $0x340] sm:$0xff] (%p2776_p6), %v2258_v50  ;;  %v2260_v51 = vld [vmem:[%s2923_s8 + $0x1b0] sm:$0xff] (%p2776_p6)  ;;  %v2262_v52 = vld [vmem:[%s2923_s8 + $0x1b8] sm:$0xff] (%p2776_p6) }
 0x18d   : > { %2122 = vst [vmem:[%s2923_s8 + $0x218] sm:$0xff] %v2601_v53  ;;  %2123 = vst [vmem:[%s2923_s8 + $0x220] sm:$0xff] %v2602_v54  ;;  %v2604_v59 = vpack.c.bf16 %v1032_v57, %v1030_v55  ;;  %v2605_v60 = vpack.c.bf16 %v1185_v58, %v1183_v56  ;;  %v2264_v53 = vld [vmem:[%s2923_s8 + $0x1c0] sm:$0xff] (%p2776_p6)  ;;  %v2266_v54 = vld [vmem:[%s2923_s8 + $0x1c8] sm:$0xff] (%p2776_p6) }
 0x18e   : > { %2261 = vst [vmem:[%s3009_s15 + $0x360] sm:$0xff] (%p2776_p6), %v2260_v51  ;;  %2263 = vst [vmem:[%s3009_s15 + $0x368] sm:$0xff] (%p2776_p6), %v2262_v52  ;;  %v2268_v55 = vld [vmem:[%s2923_s8 + $0x1d0] sm:$0xff] (%p2776_p6)  ;;  %v2270_v56 = vld [vmem:[%s2923_s8 + $0x1d8] sm:$0xff] (%p2776_p6) }
 0x18f   : > { %2125 = vst [vmem:[%s2923_s8 + $0x230] sm:$0xff] %v2604_v59  ;;  %2126 = vst [vmem:[%s2923_s8 + $0x238] sm:$0xff] %v2605_v60  ;;  %v2272_v57 = vld [vmem:[%s2923_s8 + $0x1e0] sm:$0xff] (%p2776_p6)  ;;  %v2274_v58 = vld [vmem:[%s2923_s8 + $0x1e8] sm:$0xff] (%p2776_p6) }
 0x190   : > { %2265 = vst [vmem:[%s3009_s15 + $0x370] sm:$0xff] %v2264_v53  ;;  %2267 = vst [vmem:[%s3009_s15 + $0x390] sm:$0xff] %v2266_v54  ;;  %v2276_v59 = vld [vmem:[%s2923_s8 + $0x1f0] sm:$0xff]  ;;  %v2278_v60 = vld [vmem:[%s2923_s8 + $0x1f8] sm:$0xff] }
 0x191   : > { %2269 = vst [vmem:[%s3009_s15 + $0x398] sm:$0xff] %v2268_v55  ;;  %2271 = vst [vmem:[%s3009_s15 + $0x3a0] sm:$0xff] %v2270_v56  ;;  %v2280_v61 = vld [vmem:[%s2923_s8 + $0x200] sm:$0xff]  ;;  %v2282_v62 = vld [vmem:[%s2923_s8 + $0x208] sm:$0xff] }
 0x192   : > { %2273 = vst [vmem:[%s3009_s15 + $0x3c0] sm:$0xff] %v2272_v57  ;;  %2275 = vst [vmem:[%s3009_s15 + $0x3c8] sm:$0xff] %v2274_v58 }
 0x193   : > { %2277 = vst [vmem:[%s3009_s15 + $0x3d0] sm:$0xff] %v2276_v59  ;;  %2279 = vst [vmem:[%s3009_s15 + $0x3f0] sm:$0xff] %v2278_v60 }
 0x194   : > { %2281 = vst [vmem:[%s3009_s15 + $0x3f8] sm:$0xff] %v2280_v61  ;;  %2283 = vst [vmem:[%s3009_s15 + $0x400] sm:$0xff] %v2282_v62  ;;  %v2286_v0 = vld [vmem:[%s2923_s8 + $0x218] sm:$0xff]  ;;  %v2288_v1 = vld [vmem:[%s2923_s8 + $0x220] sm:$0xff] }
 0x195   : > { %2287 = vst [vmem:[%s3009_s15 + $0x428] sm:$0xff] %v2286_v0  ;;  %2289 = vst [vmem:[%s3009_s15 + $0x430] sm:$0xff] %v2288_v1 }
 0x196   : > { %v2292_v3 = vld [vmem:[%s2923_s8 + $0x230] sm:$0xff]  ;;  %v2294_v4 = vld [vmem:[%s2923_s8 + $0x238] sm:$0xff]  ;;  %2291 = vst [vmem:[%s3009_s15 + $0x450] sm:$0xff] %v2290_v2 }
 0x197   : > { %2293 = vst [vmem:[%s3009_s15 + $0x458] sm:$0xff] %v2292_v3  ;;  %2295 = vst [vmem:[%s3009_s15 + $0x460] sm:$0xff] %v2294_v4 }
 0x198 PF: > { %s12_s13 = sadd.s32 1, %s2723_s13   ;;  %s3168_s9 = smov %s2711_s10 }
 0x199   : > { %p9_p11 = scmp.ge.s32.totalorder %s12_s13, 4   ;;  %s3169_s10 = smov %s2781_s19 }
 0x19a   : > { %s3170_s11 = smov %s2719_s12  ;;  %s3171_s12 = smov %s3173_s14 }
 0x19b   :  { %11 = sbr.rel (!%p9_p11) target bundleno = 3 (0x3), region = 120 }

// kernel: neuron_mllama_vision_forward.29
= control target key start
LH: loop header
LB: loop body
LE: loop exit
PB: predicated region body
PF: predicated region fallthrough
CT: control target
= control target key end

     0   :  { %s3062_s0 = inlined_call_operand.vmem [shape: bf16[2,96,1536], index: 0, kind: input, shape index: {}, may-alias: {0,1,2}]   ;;  %s3063_s1 = inlined_call_operand.vmem [shape: bf16[2,96,1536], index: 1, kind: input, shape index: {}, may-alias: {0,1,2}]   ;;  %s3064_s2 = inlined_call_operand.vmem [shape: bf16[2,96,1536], index: 2, kind: input, shape index: {}, may-alias: {0,1,2}]   ;;  %s3065_s3 = inlined_call_operand.vmem [shape: f32[2,96,1], index: 3, kind: input, shape index: {}]   ;;  %s3066_s4 = inlined_call_operand.vmem [shape: f32[2,1,96], index: 4, kind: input, shape index: {}]   ;;  %s3067_s5 = inlined_call_operand.vmem [shape: f32[1,1,96], index: 5, kind: input, shape index: {}]   ;;  %s3068_s6 = inlined_call_operand.vmem [shape: bf16[2,96,512], index: 6, kind: output, shape index: {}]  }
   0x1   :  { %3070 = sst [smem:[#allocation11_spill]] %s3066_s4 }
   0x2   :  { %3071 = sst [smem:[#allocation12_spill]] %s3067_s5 }
   0x3   :  { %3072 = sst [smem:[#allocation13_spill]] %s3068_s6 }
   0x4   :  { %s2515_s21 = smov 0   ;;  %s2517_s22 = smov 0  }
   0x5   :  { %s2519_s23 = smov 0   ;;  %s2521_s24 = smov 0  }
   0x6   :  { %s2523_s25 = smov 0   ;;  %s2525_s26 = smov 0  }
   0x7   :  { %s2527_s27 = smov 0   ;;  %s2529_s28 = smov 0  }
   0x8   :  { %s2531_s29 = smov 0   ;;  %s2533_s30 = smov 0  }
   0x9   :  { %s2535_s7 = smov 0  }
   0xa LB: > { %3073 = sst [smem:[#allocation9_spill]] %s2459_s27  ;;  %s38_s9 = sadd.s32 1, %s2467_s29  ;;  %s2475_s7 = sphi %s2535_s7, %s16_s7   ;;  %s2471_s30 = sphi %s2533_s30, %s3094_s30   ;;  %s2467_s29 = sphi %s2531_s29, %s3093_s29   ;;  %s2463_s28 = sphi %s2529_s28, %s3092_s28   ;;  %s2459_s27 = sphi %s2527_s27, %s3091_s27   ;;  %s2455_s26 = sphi %s2525_s26, %s3090_s26   ;;  %s2451_s25 = sphi %s2523_s25, %s3089_s25   ;;  %s2447_s24 = sphi %s2521_s24, %s3088_s24   ;;  %s2443_s23 = sphi %s2519_s23, %s3087_s23   ;;  %s2439_s22 = sphi %s2517_s22, %s3086_s22   ;;  %s2435_s21 = sphi %s2515_s21, %s3085_s21  }
   0xb   : > { %p40_p0 = scmp.ge.s32.totalorder %s38_s9, 4  ;;  %s42_s10 = sadd.s32 1, %s2471_s30 }
   0xc   : > { %s53_s11 = sadd.s32 1, %s2455_s26  ;;  %p60_p1 = scmp.ne.s32.totalorder %s2455_s26, %s2451_s25 }
   0xd   : > { %s3096_s9 = smov (%p40_p0, %s38_s9), 0  ;;  %s3098_s10 = smov (!%p40_p0, %s42_s10), %s2471_s30 }
   0xe   : > { %s49_s12 = ssub.s32 %s2467_s29, %s3096_s9  ;;  %p61_p2 = scmp.eq.s32.totalorder %s2475_s7, 0 }
   0xf   : > { %p44_p3 = scmp.ge.s32.totalorder %s3098_s10, 2  ;;  %s76_s13 = sadd.s32 4, %s2467_s29 }
  0x10   : > { %p2588_p4 = por %p61_p2, %p60_p1  ;;  %s77_s15 = sadd.s32 4, %s3096_s9 }
  0x11   : > { %s3100_s10 = smov (%p44_p3, %s3098_s10), 0  ;;  %s81_s16 = ssub.s32 %s76_s13, %s77_s15 }
  0x12   : > { %3075 = sst [smem:[#allocation10_spill]] %s3100_s10  ;;  %s85_s17 = sadd.s32 1, %s2447_s24 }
  0x13   : > { %s46_s18 = ssub.s32 %s2471_s30, %s3100_s10  ;;  %p92_p5 = scmp.ne.s32.totalorder %s2447_s24, %s2443_s23 }
  0x14   : > { %s50_s19 = sor.u32 %s49_s12, %s46_s18  ;;  %s82_s20 = sor.u32 %s81_s16, %s46_s18 }
  0x15   : > { %p51_p6 = scmp.eq.s32.totalorder %s50_s19, 0  ;;  %p83_p7 = scmp.eq.s32.totalorder %s82_s20, 0 }
  0x16   : > { %p2602_p8 = por %p92_p5, %p61_p2  ;;  %s108_s6 = sadd.s32 8, %s2467_s29 }
  0x17   : > { %s2608_s27 = scalar_select %p51_p6, %s2455_s26, %s53_s11  }
  0x18   : > { %s2611_s13 = scalar_select %p83_p7, %s2447_s24, %s85_s17  }
  0x19   : > { %s109_s15 = sadd.s32 8, %s3096_s9  ;;  %s117_s10 = sadd.s32 1, %s2439_s22 }
  0x1a   : > { %s113_s5 = ssub.s32 %s108_s6, %s109_s15  ;;  %p124_p9 = scmp.ne.s32.totalorder %s2439_s22, %s2435_s21 }
  0x1b   : > { %s114_s12 = sor.u32 %s113_s5, %s46_s18  ;;  %s3077_s4 = sadd.s32 4294967295, %s2475_s7  }
  0x1c   : > { %p240_p10 = scmp.eq.s32.totalorder %s3077_s4, 7  ;;  %p115_p11 = scmp.eq.s32.totalorder %s114_s12, 0 }
  0x1d   : > { %p2621_p12 = por %p124_p9, %p61_p2  ;;  %p2007_p0 = scmp.ge.s32.totalorder %s2475_s7, 8 }
  0x1e   : > { %p2628_p13 = por %p240_p10, %p60_p1 }
  0x1f   : > { %s2633_s11 = scalar_select %p115_p11, %s2439_s22, %s117_s10  }
  0x20   : > { %268 = sbr.rel (%p2007_p0) target bundleno = 84 (0x54), region = 20 }
  0x27   : > { %271 = sbr.rel (!%p2588_p4) target bundleno = 54 (0x36), region = 24  ;;  %s273_s4 = sand.u32 (%p2588_p4), 1, %s2455_s26  }
  0x28   : > { %s2198_s5 = smul.u32 (%p2588_p4), 144, %s2471_s30 }
  0x29   : > { %s2197_s6 = smul.u32 (%p2588_p4), 48, %s273_s4 }
  0x2a   : > { %s280_s17 = sadd.s32 (%p2588_p4), %s2467_s29, %s2198_s5 }
  0x2b   : > { %s2008_s18 = sshll.u32 (%p2588_p4), %s280_s17, 2  ;;  %s275_s10 = scalar_lea.vmem (%p2588_p4), [#allocation5], %s2197_s6 }
  0x2c   : > { %s282_s12 = scalar_lea.vmem (%p2588_p4), %s3062_s0, %s2008_s18 }
  0x2d   : > { %v298_v0 = vld [vmem:[%s282_s12] sm:$0xf] (%p2588_p4)  ;;  %v300_v1 = vld [vmem:[%s282_s12 + $0x30] sm:$0xf] (%p2588_p4) }
  0x2e   : > { %v302_v2 = vld [vmem:[%s282_s12 + $0x60] sm:$0xf]  ;;  %299 = vst [vmem:[%s275_s10] sm:$0xf] %v298_v0  ;;  %301 = vst [vmem:[%s275_s10 + $0x4] sm:$0xf] %v300_v1 }
  0x2f   : > { %303 = vst [vmem:[%s275_s10 + $0x8] sm:$0xf] %v302_v2  ;;  %v304_v3 = vld [vmem:[%s282_s12 + $0x90] sm:$0xf]  ;;  %v306_v4 = vld [vmem:[%s282_s12 + $0xc0] sm:$0xf] }
  0x30   : > { %v308_v5 = vld [vmem:[%s282_s12 + $0xf0] sm:$0xf]  ;;  %305 = vst [vmem:[%s275_s10 + $0xc] sm:$0xf] %v304_v3  ;;  %307 = vst [vmem:[%s275_s10 + $0x10] sm:$0xf] %v306_v4 }
  0x31   : > { %309 = vst [vmem:[%s275_s10 + $0x14] sm:$0xf] %v308_v5  ;;  %v310_v6 = vld [vmem:[%s282_s12 + $0x120] sm:$0xf]  ;;  %v312_v7 = vld [vmem:[%s282_s12 + $0x150] sm:$0xf] }
  0x32   : > { %v314_v8 = vld [vmem:[%s282_s12 + $0x180] sm:$0xf]  ;;  %311 = vst [vmem:[%s275_s10 + $0x18] sm:$0xf] %v310_v6  ;;  %313 = vst [vmem:[%s275_s10 + $0x1c] sm:$0xf] %v312_v7 }
  0x33   : > { %315 = vst [vmem:[%s275_s10 + $0x20] sm:$0xf] %v314_v8  ;;  %v316_v9 = vld [vmem:[%s282_s12 + $0x1b0] sm:$0xf]  ;;  %v318_v10 = vld [vmem:[%s282_s12 + $0x1e0] sm:$0xf] }
  0x34   : > { %v320_v11 = vld [vmem:[%s282_s12 + $0x210] sm:$0xf]  ;;  %317 = vst [vmem:[%s275_s10 + $0x24] sm:$0xf] %v316_v9  ;;  %319 = vst [vmem:[%s275_s10 + $0x28] sm:$0xf] %v318_v10 }
  0x35   : > { %321 = vst [vmem:[%s275_s10 + $0x2c] sm:$0xf] %v320_v11 }
  0x36 PF: > { %368 = sbr.rel (!%p2602_p8) target bundleno = 69 (0x45), region = 65  ;;  %s370_s14 = sand.u32 (%p2602_p8), 1, %s2447_s24  }
  0x37   : > { %s1858_s4 = smul.u32 (%p2602_p8), 144, %s2471_s30 }
  0x38   : > { %s2199_s5 = smul.u32 (%p2602_p8), 48, %s370_s14 }
  0x39   : > { %s1859_s6 = sadd.s32 (%p2602_p8), %s2467_s29, %s1858_s4 }
  0x3a   : > { %s2009_s17 = sshll.u32 (%p2602_p8), %s1859_s6, 2  ;;  %s372_s12 = scalar_lea.vmem (%p2602_p8), [#allocation6], %s2199_s5 }
  0x3b   : > { %s1861_s15 = scalar_lea.vmem (%p2602_p8), %s3063_s1, %s2009_s17 }
  0x3c   : > { %v2010_v12 = vld [vmem:[%s1861_s15 + $0x10] sm:$0xf] (%p2602_p8)  ;;  %v2011_v13 = vld [vmem:[%s1861_s15 + $0x40] sm:$0xf] (%p2602_p8) }
  0x3d   : > { %v2012_v14 = vld [vmem:[%s1861_s15 + $0x70] sm:$0xf]  ;;  %397 = vst [vmem:[%s372_s12] sm:$0xf] %v2010_v12  ;;  %399 = vst [vmem:[%s372_s12 + $0x4] sm:$0xf] %v2011_v13 }
  0x3e   : > { %401 = vst [vmem:[%s372_s12 + $0x8] sm:$0xf] %v2012_v14  ;;  %v2013_v15 = vld [vmem:[%s1861_s15 + $0xa0] sm:$0xf]  ;;  %v2014_v16 = vld [vmem:[%s1861_s15 + $0xd0] sm:$0xf] }
  0x3f   : > { %v2015_v17 = vld [vmem:[%s1861_s15 + $0x100] sm:$0xf]  ;;  %403 = vst [vmem:[%s372_s12 + $0xc] sm:$0xf] %v2013_v15  ;;  %405 = vst [vmem:[%s372_s12 + $0x10] sm:$0xf] %v2014_v16 }
  0x40   : > { %407 = vst [vmem:[%s372_s12 + $0x14] sm:$0xf] %v2015_v17  ;;  %v2016_v18 = vld [vmem:[%s1861_s15 + $0x130] sm:$0xf]  ;;  %v2017_v19 = vld [vmem:[%s1861_s15 + $0x160] sm:$0xf] }
  0x41   : > { %v2018_v20 = vld [vmem:[%s1861_s15 + $0x190] sm:$0xf]  ;;  %409 = vst [vmem:[%s372_s12 + $0x18] sm:$0xf] %v2016_v18  ;;  %411 = vst [vmem:[%s372_s12 + $0x1c] sm:$0xf] %v2017_v19 }
  0x42   : > { %413 = vst [vmem:[%s372_s12 + $0x20] sm:$0xf] %v2018_v20  ;;  %v2019_v21 = vld [vmem:[%s1861_s15 + $0x1c0] sm:$0xf]  ;;  %v2020_v22 = vld [vmem:[%s1861_s15 + $0x1f0] sm:$0xf] }
  0x43   : > { %v2021_v23 = vld [vmem:[%s1861_s15 + $0x220] sm:$0xf]  ;;  %415 = vst [vmem:[%s372_s12 + $0x24] sm:$0xf] %v2019_v21  ;;  %417 = vst [vmem:[%s372_s12 + $0x28] sm:$0xf] %v2020_v22 }
  0x44   : > { %419 = vst [vmem:[%s372_s12 + $0x2c] sm:$0xf] %v2021_v23 }
  0x45 PF: > { %466 = sbr.rel (!%p2621_p12) target bundleno = 84 (0x54), region = 106  ;;  %s468_s8 = sand.u32 (%p2621_p12), 1, %s2439_s22  }
  0x46   : > { %s1867_s10 = smul.u32 (%p2621_p12), 144, %s2471_s30 }
  0x47   : > { %s2200_s14 = smul.u32 (%p2621_p12), 48, %s468_s8 }
  0x48   : > { %s1868_s4 = sadd.s32 (%p2621_p12), %s2467_s29, %s1867_s10 }
  0x49   : > { %s2022_s5 = sshll.u32 (%p2621_p12), %s1868_s4, 2  ;;  %s470_s20 = scalar_lea.vmem (%p2621_p12), [#allocation7], %s2200_s14 }
  0x4a   : > { %s1870_s18 = scalar_lea.vmem (%p2621_p12), %s3064_s2, %s2022_s5 }
  0x4b   : > { %v2023_v24 = vld [vmem:[%s1870_s18 + $0x20] sm:$0xf] (%p2621_p12)  ;;  %v2024_v25 = vld [vmem:[%s1870_s18 + $0x50] sm:$0xf] (%p2621_p12) }
  0x4c   : > { %v2025_v26 = vld [vmem:[%s1870_s18 + $0x80] sm:$0xf]  ;;  %495 = vst [vmem:[%s470_s20] sm:$0xf] %v2023_v24  ;;  %497 = vst [vmem:[%s470_s20 + $0x4] sm:$0xf] %v2024_v25 }
  0x4d   : > { %499 = vst [vmem:[%s470_s20 + $0x8] sm:$0xf] %v2025_v26  ;;  %v2026_v27 = vld [vmem:[%s1870_s18 + $0xb0] sm:$0xf]  ;;  %v2027_v28 = vld [vmem:[%s1870_s18 + $0xe0] sm:$0xf] }
  0x4e   : > { %v2028_v29 = vld [vmem:[%s1870_s18 + $0x110] sm:$0xf]  ;;  %501 = vst [vmem:[%s470_s20 + $0xc] sm:$0xf] %v2026_v27  ;;  %503 = vst [vmem:[%s470_s20 + $0x10] sm:$0xf] %v2027_v28 }
  0x4f   : > { %505 = vst [vmem:[%s470_s20 + $0x14] sm:$0xf] %v2028_v29  ;;  %v2029_v30 = vld [vmem:[%s1870_s18 + $0x140] sm:$0xf]  ;;  %v2030_v31 = vld [vmem:[%s1870_s18 + $0x170] sm:$0xf] }
  0x50   : > { %v2031_v32 = vld [vmem:[%s1870_s18 + $0x1a0] sm:$0xf]  ;;  %507 = vst [vmem:[%s470_s20 + $0x18] sm:$0xf] %v2029_v30  ;;  %509 = vst [vmem:[%s470_s20 + $0x1c] sm:$0xf] %v2030_v31 }
  0x51   : > { %511 = vst [vmem:[%s470_s20 + $0x20] sm:$0xf] %v2031_v32  ;;  %v2032_v33 = vld [vmem:[%s1870_s18 + $0x1d0] sm:$0xf]  ;;  %v2033_v34 = vld [vmem:[%s1870_s18 + $0x200] sm:$0xf] }
  0x52   : > { %v2034_v35 = vld [vmem:[%s1870_s18 + $0x230] sm:$0xf]  ;;  %513 = vst [vmem:[%s470_s20 + $0x24] sm:$0xf] %v2032_v33  ;;  %515 = vst [vmem:[%s470_s20 + $0x28] sm:$0xf] %v2033_v34 }
  0x53   : > { %517 = vst [vmem:[%s470_s20 + $0x2c] sm:$0xf] %v2034_v35 }
  0x54 PF: > { %p2035_p1 = scmp.ge.s32.totalorder %s2475_s7, 1  ;;  %p585_p2 = scmp.lt.s32.totalorder %s2475_s7, 9 }
  0x56   : > { %p586_p3 = pnand %p2035_p1, %p585_p2 }
  0x57   : > { %s599_s16 = sand.u32 (!%p586_p3), 1, %s2443_s23   ;;  %s592_s15 = sand.u32 (!%p586_p3), 1, %s2451_s25   ;;  %v2477_v36 = vmov (!%p586_p3), 0   ;;  %vm690_vm0 = vcmask (!%p586_p3), 7168   ;;  %v2478_v61 = vmov (!%p586_p3), -inf   ;;  %vm1038_vm1 = vcmask (!%p586_p3), 785408  }
  0x58   : > { %589 = sbr.rel (%p586_p3) target bundleno = 981 (0x3d5), region = 155  ;;  %2297 = vset.pattern.permute.xlu0 (!%p586_p3), %v2477_v36  ;;  %p666_p4 = scmp.lt.s32.totalorder (!%p586_p3), %s2463_s28, 1  ;;  %2298 = vset.pattern.permute.xlu1 (!%p586_p3), %v2477_v36  ;;  %691 = vst.msk [vmem:[#allocation2] sm:$0xff] (!%p586_p3), %vm690_vm0, %v2478_v61  ;;  %692 = vst.msk [vmem:[#allocation2 + $0x8] sm:$0xff] (!%p586_p3), %vm690_vm0, %v2478_v61 }
  0x59   : > { %s2202_s12 = smul.u32 (!%p586_p3), 48, %s599_s16  ;;  %693 = vst.msk [vmem:[#allocation2 + $0x10] sm:$0xff] (!%p586_p3), %vm690_vm0, %v2478_v61  ;;  %694 = vst.msk [vmem:[#allocation2 + $0x18] sm:$0xff] (!%p586_p3), %vm690_vm0, %v2478_v61  ;;  %s3080_s20 = sld [smem:[#allocation11_spill]] (!%p586_p3) }
  0x5a   : > { %s2665_s8 = smul.u32 (!%p586_p3), 48, %s592_s15  ;;  %695 = vst.msk [vmem:[#allocation2 + $0x20] sm:$0xff] (!%p586_p3), %vm690_vm0, %v2478_v61  ;;  %696 = vst.msk [vmem:[#allocation2 + $0x28] sm:$0xff] (!%p586_p3), %vm690_vm0, %v2478_v61 }
  0x5b   : > { %s2667_s10 = scalar_lea.vmem (!%p586_p3), [#allocation6], %s2202_s12  ;;  %697 = vst.msk [vmem:[#allocation2 + $0x30] sm:$0xff] (!%p586_p3), %vm690_vm0, %v2478_v61  ;;  %698 = vst.msk [vmem:[#allocation2 + $0x38] sm:$0xff] (!%p586_p3), %vm690_vm0, %v2478_v61 }
  0x5c   : > { %v2299_v37 = vld [vmem:[%s2667_s10] sm:$0xff] (!%p586_p3)   ;;  %v2300_v38 = vld [vmem:[%s2667_s10 + $0x8] sm:$0xff] (!%p586_p3)   ;;  %s2676_s25 = scalar_lea.vmem (!%p586_p3), [#allocation5], %s2665_s8  ;;  %v2301_v40 = vld [vmem:[%s2667_s10 + $0x10] sm:$0xff] (!%p586_p3)   ;;  %699 = vst.msk [vmem:[#allocation2 + $0x40] sm:$0xff] (!%p586_p3), %vm690_vm0, %v2478_v61 }
  0x5d   : > { %2149 = vmatprep.subr.bf16.mxu0 (!%p586_p3), %v2299_v37  ;;  %v2305_v39 = vld [vmem:[%s2676_s25] sm:$0xff] (!%p586_p3)   ;;  %v2302_v45 = vld [vmem:[%s2667_s10 + $0x18] sm:$0xff] (!%p586_p3)   ;;  %v2304_v55 = vld [vmem:[%s2667_s10 + $0x28] sm:$0xff] (!%p586_p3)   ;;  %700 = vst.msk [vmem:[#allocation2 + $0x48] sm:$0xff] (!%p586_p3), %vm690_vm0, %v2478_v61 }
  0x5e   : > { %2150 = vmatpush3.bf16.xpose.msra.mxu0 (!%p586_p3), %v2299_v37  ;;  %2161 = vmatprep.mubr.bf16.mxu0 (!%p586_p3), %v2305_v39  ;;  %v2303_v50 = vld [vmem:[%s2667_s10 + $0x20] sm:$0xff] (!%p586_p3)   ;;  %v2306_v56 = vld [vmem:[%s2676_s25 + $0x8] sm:$0xff] (!%p586_p3)   ;;  %v2307_v57 = vld [vmem:[%s2676_s25 + $0x10] sm:$0xff] (!%p586_p3)   ;;  %701 = vst.msk [vmem:[#allocation2 + $0x50] sm:$0xff] (!%p586_p3), %vm690_vm0, %v2478_v61  ;;  %s3081_s10 = sld [smem:[#allocation12_spill]] (!%p586_p3) }
  0x5f   : > { %s2672_s14 = scalar_select %p666_p4, %s2463_s28, 1  ;;  %2151 = vmatprep.subr.bf16.mxu0 %v2300_v38  ;;  %v2308_v58 = vld [vmem:[%s2676_s25 + $0x18] sm:$0xff]   ;;  %v2309_v59 = vld [vmem:[%s2676_s25 + $0x20] sm:$0xff]   ;;  %v2310_v60 = vld [vmem:[%s2676_s25 + $0x28] sm:$0xff]   ;;  %702 = vst.msk [vmem:[#allocation2 + $0x58] sm:$0xff] %vm690_vm0, %v2478_v61 }
  0x60   : > { %s3000_s25 = scalar_lea.vmem [#allocation8], %s2665_s8  ;;  %s3082_s8 = sld [smem:[#allocation9_spill]] (%p2628_p13) }
  0x61   : > { %s2204_s23 = smul.u32 96, %s2672_s14  ;;  %s680_s16 = scalar_lea.vmem %s3080_s20, %s2672_s14 }
  0x62   : > { %v2037_v2 = vld [vmem:[%s680_s16] ss:$0 sm:$0xff]  ;;  %s606_s14 = sand.u32 1, %s2435_s21   ;;  %s2205_s4 = smul.u32 (%p2628_p13), 48, %s2463_s28 }
  0x63   : > { %s673_s6 = scalar_lea.vmem %s3065_s3, %s2204_s23  ;;  %s2203_s23 = smul.u32 48, %s606_s14 }
  0x64   : > { %v763_v41 = vld [vmem:[%s673_s6] sm:$0xff]  ;;  %v765_v42 = vld [vmem:[%s673_s6 + $0x10] sm:$0xff]  ;;  %v764_v43 = vld [vmem:[%s673_s6 + $0x8] sm:$0xff]  ;;  %s3083_s18 = sld [smem:[#allocation13_spill]] (%p2628_p13) }
  0x65   : > { %778 = vperm.xlu0 %2297, %v763_v41   ;;  %788 = vperm.xlu1 %2298, %v765_v42   ;;  %v766_v44 = vld [vmem:[%s673_s6 + $0x18] sm:$0xff]  ;;  %v767_v46 = vld [vmem:[%s673_s6 + $0x20] sm:$0xff]  ;;  %v768_v47 = vld [vmem:[%s673_s6 + $0x28] sm:$0xff]  ;;  %s2802_s21 = scalar_lea.vmem [#allocation7], %s2203_s23 }
  0x66   : > { %2152 = vmatpush3.bf16.xpose.msra.mxu0 %v2300_v38  ;;  %v769_v48 = vld [vmem:[%s673_s6 + $0x30] sm:$0xff]  ;;  %v770_v49 = vld [vmem:[%s673_s6 + $0x38] sm:$0xff]  ;;  %v771_v51 = vld [vmem:[%s673_s6 + $0x40] sm:$0xff]  ;;  %s1747_s19 = sadd.s32 (%p2628_p13), %s3082_s8, %s2205_s4 }
  0x67   : > { %2153 = vmatprep.subr.bf16.mxu0 %v2301_v40  ;;  %v772_v52 = vld [vmem:[%s673_s6 + $0x48] sm:$0xff]  ;;  %v773_v53 = vld [vmem:[%s673_s6 + $0x50] sm:$0xff]  ;;  %v774_v54 = vld [vmem:[%s673_s6 + $0x58] sm:$0xff]  ;;  %s2075_s5 = sshll.u32 (%p2628_p13), %s1747_s19, 2 }
  0x68   : > { %v2710_v7 = vld [vmem:[%s3081_s10] ss:$0 sm:$0xff] }
  0x69   : > { %783 = vperm.xlu0 %2297, %v764_v43   ;;  %793 = vperm.xlu1 %2298, %v766_v44  }
  0x6a   : > { %s1749_s20 = scalar_lea.vmem (%p2628_p13), %s3083_s18, %s2075_s5 }
  0x6d   : > { %798 = vperm.xlu0 %2297, %v767_v46   ;;  %803 = vperm.xlu1 %2298, %v768_v47  }
  0x6e   : > { %2154 = vmatpush3.bf16.xpose.msra.mxu0 %v2301_v40 }
  0x6f   : > { %2155 = vmatprep.subr.bf16.mxu0 %v2302_v45 }
  0x71   : > { %808 = vperm.xlu0 %2297, %v769_v48   ;;  %813 = vperm.xlu1 %2298, %v770_v49  }
  0x75   : > { %818 = vperm.xlu0 %2297, %v771_v51   ;;  %823 = vperm.xlu1 %2298, %v772_v52  }
  0x76   : > { %2156 = vmatpush3.bf16.xpose.msra.mxu0 %v2302_v45 }
  0x77   : > { %2157 = vmatprep.subr.bf16.mxu0 %v2303_v50 }
  0x79   : > { %828 = vperm.xlu0 %2297, %v773_v53   ;;  %833 = vperm.xlu1 %2298, %v774_v54  }
  0x7e   : > { %2158 = vmatpush3.bf16.xpose.msra.mxu0 %v2303_v50 }
  0x7f   : > { %2159 = vmatprep.subr.bf16.mxu0 %v2304_v55 }
  0x86   : > { %2160 = vmatpush3.bf16.xpose.msra.mxu0 %v2304_v55 }
  0x8d   : > { %2162 = vmatmul.mubr.bf16.vlgmr.msra.gmra.mrb[0].mxu0 %v2306_v56 }
  0x8e   : > { %2165 = vmatprep.mubr.bf16.mxu0 %v2307_v57 }
  0x95   : > { %2166 = vmatmul.mubr.bf16.gmra.mrb[4].mxu0 %v2308_v58 }
  0x96   : > { %2169 = vmatprep.mubr.bf16.mxu0 %v2309_v59 }
  0x9d   : > { %2170 = vmatmul.mubr.bf16.gmra.mrb[8].mxu0 %v2310_v60 }
  0xe4   : > { %v779_v62 = vpop.permute.xlu0 %778  ;;  %v789_v63 = vpop.permute.xlu1 %788 }
  0xe5   : > { %v844_v5 = vmul.f32 %v2037_v2, %v789_v63  ;;  %v842_v6 = vmul.f32 %v2037_v2, %v779_v62 }
  0xe7   : > { %v863_v10 = vadd.f32 %v2710_v7, %v844_v5  ;;  %v861_v13 = vadd.f32 %v2710_v7, %v842_v6 }
  0xe8   : > { %v784_v0 = vpop.permute.xlu0 %783  ;;  %v794_v1 = vpop.permute.xlu1 %793 }
  0xe9   : > { %v845_v8 = vmul.f32 %v2037_v2, %v794_v1  ;;  %v843_v11 = vmul.f32 %v2037_v2, %v784_v0 }
  0xeb   : > { %v864_v14 = vadd.f32 %v2710_v7, %v845_v8  ;;  %v862_v21 = vadd.f32 %v2710_v7, %v843_v11  ;;  %v2479_v8 = vmov 0.0   ;;  %v2787_v11 = vld [vmem:[#allocation2 + $0x8] sm:$0xff] }
  0xec   : > { %v799_v3 = vpop.permute.xlu0 %798  ;;  %v804_v4 = vpop.permute.xlu1 %803  ;;  %704 = vst.msk [vmem:[#allocation3 + $0x8] sm:$0xff] %vm690_vm0, %v2479_v8  ;;  %703 = vst.msk [vmem:[#allocation3] sm:$0xff] %vm690_vm0, %v2479_v8 }
  0xed   : > { %v846_v25 = vmul.f32 %v2037_v2, %v799_v3  ;;  %v847_v30 = vmul.f32 %v2037_v2, %v804_v4  ;;  %705 = vst.msk [vmem:[#allocation3 + $0x10] sm:$0xff] %vm690_vm0, %v2479_v8  ;;  %706 = vst.msk [vmem:[#allocation3 + $0x18] sm:$0xff] %vm690_vm0, %v2479_v8 }
  0xee   : > { %707 = vst.msk [vmem:[#allocation3 + $0x20] sm:$0xff] %vm690_vm0, %v2479_v8  ;;  %708 = vst.msk [vmem:[#allocation3 + $0x28] sm:$0xff] %vm690_vm0, %v2479_v8 }
  0xef   : > { %v865_v35 = vadd.f32 %v2710_v7, %v846_v25  ;;  %v866_v43 = vadd.f32 %v2710_v7, %v847_v30  ;;  %709 = vst.msk [vmem:[#allocation3 + $0x30] sm:$0xff] %vm690_vm0, %v2479_v8  ;;  %710 = vst.msk [vmem:[#allocation3 + $0x38] sm:$0xff] %vm690_vm0, %v2479_v8  ;;  %v2815_v25 = vld [vmem:[#allocation2 + $0x18] sm:$0xff] }
  0xf0   : > { %v809_v9 = vpop.permute.xlu0 %808  ;;  %v814_v12 = vpop.permute.xlu1 %813  ;;  %711 = vst.msk [vmem:[#allocation3 + $0x40] sm:$0xff] %vm690_vm0, %v2479_v8  ;;  %712 = vst.msk [vmem:[#allocation3 + $0x48] sm:$0xff] %vm690_vm0, %v2479_v8 }
  0xf1   : > { %v848_v22 = vmul.f32 %v2037_v2, %v809_v9  ;;  %v849_v29 = vmul.f32 %v2037_v2, %v814_v12  ;;  %713 = vst.msk [vmem:[#allocation3 + $0x50] sm:$0xff] %vm690_vm0, %v2479_v8  ;;  %714 = vst.msk [vmem:[#allocation3 + $0x58] sm:$0xff] %vm690_vm0, %v2479_v8  ;;  %v2784_v9 = vld [vmem:[#allocation2] sm:$0xff] }
  0xf3   : > { %v867_v32 = vadd.f32 %v2710_v7, %v848_v22  ;;  %v868_v39 = vadd.f32 %v2710_v7, %v849_v29 }
  0xf4   : > { %v819_v18 = vpop.permute.xlu0 %818  ;;  %v824_v26 = vpop.permute.xlu1 %823 }
  0xf5   : > { %v850_v47 = vmul.f32 %v2037_v2, %v819_v18  ;;  %v851_v52 = vmul.f32 %v2037_v2, %v824_v26  ;;  %v2311_v18 = vld [vmem:[%s2802_s21] sm:$0xff]  }
  0xf6   : > { %2173 = vmatprep.subr.bf16.mxu1 %v2311_v18 }
  0xf7   : > { %v869_v55 = vadd.f32 %v2710_v7, %v850_v47  ;;  %v870_v63 = vadd.f32 %v2710_v7, %v851_v52  ;;  %2174 = vmatpush3.bf16.msra.mxu1 %v2311_v18 }
  0xf8   : > { %v829_v33 = vpop.permute.xlu0 %828  ;;  %v834_v40 = vpop.permute.xlu1 %833 }
  0xf9   : > { %v852_v44 = vmul.f32 %v2037_v2, %v829_v33  ;;  %v853_v51 = vmul.f32 %v2037_v2, %v834_v40  ;;  %v2829_v33 = vld [vmem:[#allocation2 + $0x30] sm:$0xff] }
  0xfb   : > { %v871_v53 = vadd.f32 %v2710_v7, %v852_v44  ;;  %v872_v60 = vadd.f32 %v2710_v7, %v853_v51  ;;  %v2850_v44 = vld [vmem:[#allocation2 + $0x40] sm:$0xff] }
 0x160   : > { %v2163_v15 = vpop.f32.mrb[0].mxu0 }
 0x161   : > { %v2715_v16 = vadd.f32 %v2163_v15, %v863_v10  ;;  %v979_v17 = vpop.f32.mrb[1].mxu0 }
 0x162   : > { %v2717_v19 = vadd.f32 %v979_v17, %v861_v13  ;;  %v2164_v20 = vpop.f32.mrb[2].mxu0 }
 0x163   : > { %v2720_v23 = vadd.f32 %v2164_v20, %v864_v14  ;;  %v982_v24 = vpop.f32.mrb[3].mxu0  ;;  %v1045_v36 = vsel %vm1038_vm1, %v2715_v16, -inf  ;;  %v2792_v14 = vld [vmem:[#allocation2 + $0x10] sm:$0xff] }
 0x164   : > { %v2722_v27 = vadd.f32 %v982_v24, %v862_v21  ;;  %v1039_v28 = vsel %vm1038_vm1, %v2717_v19, -inf  ;;  %v2805_v21 = vld [vmem:[#allocation2 + $0x20] sm:$0xff] }
 0x165   : > { %1040 = vmax.xlane.f32.xlu0 %v1039_v28  ;;  %v1048_v50 = vsel %vm1038_vm1, %v2720_v23, -inf  ;;  %v2312_v28 = vld [vmem:[%s2802_s21 + $0x8] sm:$0xff]  }
 0x166   : > { %v1042_v31 = vsel %vm1038_vm1, %v2722_v27, -inf  ;;  %2175 = vmatprep.subr.bf16.mxu1 %v2312_v28 }
 0x167   : > { %1043 = vmax.xlane.f32.xlu1 %v1042_v31  ;;  %2176 = vmatpush3.bf16.msra.mxu1 %v2312_v28 }
 0x168   : > { %v2167_v34 = vpop.f32.mrb[4].mxu0 }
 0x169   : > { %v2732_v37 = vadd.f32 %v2167_v34, %v867_v32  ;;  %v995_v38 = vpop.f32.mrb[5].mxu0  ;;  %1046 = vmax.xlane.f32.xlu0 %v1045_v36  ;;  %v2831_v34 = vld [vmem:[#allocation2 + $0x28] sm:$0xff] }
 0x16a   : > { %v2735_v41 = vadd.f32 %v995_v38, %v865_v35  ;;  %v2168_v42 = vpop.f32.mrb[6].mxu0  ;;  %v2313_v38 = vld [vmem:[%s2802_s21 + $0x10] sm:$0xff]  }
 0x16b   : > { %v2738_v45 = vadd.f32 %v2168_v42, %v868_v39  ;;  %v998_v46 = vpop.f32.mrb[7].mxu0  ;;  %v1057_v56 = vsel %vm1038_vm1, %v2732_v37, -inf  ;;  %2177 = vmatprep.subr.bf16.mxu1 %v2313_v38 }
 0x16c   : > { %v2740_v48 = vadd.f32 %v998_v46, %v866_v43  ;;  %v1051_v49 = vsel %vm1038_vm1, %v2735_v41, -inf  ;;  %v2852_v46 = vld [vmem:[#allocation2 + $0x38] sm:$0xff]  ;;  %2178 = vmatpush3.bf16.msra.mxu1 %v2313_v38 }
 0x16d   : > { %1052 = vmax.xlane.f32.xlu1 %v1051_v49  ;;  %1049 = vmax.xlane.f32.xlu0 %v1048_v50  ;;  %v1060_v4 = vsel %vm1038_vm1, %v2738_v45, -inf  ;;  %v2314_v50 = vld [vmem:[%s2802_s21 + $0x18] sm:$0xff]  }
 0x16e   : > { %v1054_v57 = vsel %vm1038_vm1, %v2740_v48, -inf  ;;  %2179 = vmatprep.subr.bf16.mxu1 %v2314_v50 }
 0x170   : > { %v2171_v54 = vpop.f32.mrb[8].mxu0  ;;  %2180 = vmatpush3.bf16.msra.mxu1 %v2314_v50 }
 0x171   : > { %v2752_v58 = vadd.f32 %v2171_v54, %v871_v53  ;;  %v1011_v59 = vpop.f32.mrb[9].mxu0  ;;  %1058 = vmax.xlane.f32.xlu1 %v1057_v56  ;;  %1055 = vmax.xlane.f32.xlu0 %v1054_v57  ;;  %v2873_v56 = vld [vmem:[#allocation2 + $0x48] sm:$0xff] }
 0x172   : > { %v2755_v61 = vadd.f32 %v1011_v59, %v869_v55  ;;  %v2172_v62 = vpop.f32.mrb[10].mxu0  ;;  %v2871_v55 = vld [vmem:[#allocation2 + $0x50] sm:$0xff] }
 0x173   : > { %v2758_v0 = vadd.f32 %v2172_v62, %v872_v60  ;;  %v1014_v1 = vpop.f32.mrb[11].mxu0  ;;  %v1069_v5 = vsel %vm1038_vm1, %v2752_v58, -inf  ;;  %v2315_v60 = vld [vmem:[%s2802_s21 + $0x20] sm:$0xff]  }
 0x174   : > { %v2760_v2 = vadd.f32 %v1014_v1, %v870_v63  ;;  %v1063_v3 = vsel %vm1038_vm1, %v2755_v61, -inf  ;;  %2181 = vmatprep.subr.bf16.mxu1 %v2315_v60 }
 0x175   : > { %1064 = vmax.xlane.f32.xlu1 %v1063_v3  ;;  %1061 = vmax.xlane.f32.xlu0 %v1060_v4  ;;  %v1072_v7 = vsel %vm1038_vm1, %v2758_v0, -inf  ;;  %v2892_v4 = vld [vmem:[#allocation2 + $0x58] sm:$0xff] }
 0x176   : > { %v1066_v6 = vsel %vm1038_vm1, %v2760_v2, -inf  ;;  %2182 = vmatpush3.bf16.msra.mxu1 %v2315_v60 }
 0x179   : > { %1070 = vmax.xlane.f32.xlu1 %v1069_v5  ;;  %1067 = vmax.xlane.f32.xlu0 %v1066_v6 }
 0x17d   : > { %1073 = vmax.xlane.f32.xlu0 %v1072_v7  ;;  %v2316_v7 = vld [vmem:[%s2802_s21 + $0x28] sm:$0xff]  }
 0x17e   : > { %2183 = vmatprep.subr.bf16.mxu1 %v2316_v7 }
 0x17f   : > { %2184 = vmatpush3.bf16.msra.mxu1 %v2316_v7 }
 0x1f2   : > { %v1041_v10 = vpop.xlane.xlu0 %1040 }
 0x1f3   : > { %v2790_v12 = vmax.f32 %v2784_v9, %v1041_v10 }
 0x1f4   : > { %v1044_v13 = vpop.xlane.xlu1 %1043 }
 0x1f5   : > { %v1087_v15 = vsub.f32 %v2784_v9, %v2790_v12  ;;  %1553 = vst.msk [vmem:[#allocation2] sm:$0xff] %vm690_vm0, %v2790_v12  ;;  %v2799_v17 = vmax.f32 %v2787_v11, %v1044_v13  ;;  %1125 = vperm.xlu1 %2298, %v2790_v12  }
 0x1f6   : > { %v1047_v20 = vpop.xlane.xlu0 %1046 }
 0x1f7   : > { %v1088_v22 = vsub.f32 %v2787_v11, %v2799_v17  ;;  %1554 = vst.msk [vmem:[#allocation2 + $0x8] sm:$0xff] %vm690_vm0, %v2799_v17  ;;  %v2812_v24 = vmax.f32 %v2792_v14, %v1047_v20  ;;  %1130 = vperm.xlu0 %2297, %v2799_v17  }
 0x1f9   : > { %v1089_v26 = vsub.f32 %v2792_v14, %v2812_v24  ;;  %1555 = vst.msk [vmem:[#allocation2 + $0x10] sm:$0xff] %vm690_vm0, %v2812_v24  ;;  %1135 = vperm.xlu1 %2298, %v2812_v24  }
 0x1fa   : > { %v1053_v29 = vpop.xlane.xlu1 %1052  ;;  %v1050_v30 = vpop.xlane.xlu0 %1049 }
 0x1fb   : > { %v2824_v31 = vmax.f32 %v2805_v21, %v1053_v29  ;;  %v2827_v32 = vmax.f32 %v2815_v25, %v1050_v30 }
 0x1fd   : > { %v1091_v35 = vsub.f32 %v2805_v21, %v2824_v31  ;;  %1557 = vst.msk [vmem:[#allocation2 + $0x20] sm:$0xff] %vm690_vm0, %v2824_v31  ;;  %v1090_v36 = vsub.f32 %v2815_v25, %v2827_v32  ;;  %1556 = vst.msk [vmem:[#allocation2 + $0x18] sm:$0xff] %vm690_vm0, %v2827_v32  ;;  %1145 = vperm.xlu0 %2297, %v2824_v31   ;;  %1140 = vperm.xlu1 %2298, %v2827_v32  }
 0x1fe   : > { %v1059_v39 = vpop.xlane.xlu1 %1058  ;;  %v1056_v40 = vpop.xlane.xlu0 %1055 }
 0x1ff   : > { %v2845_v42 = vmax.f32 %v2829_v33, %v1059_v39  ;;  %v2848_v43 = vmax.f32 %v2831_v34, %v1056_v40  ;;  %v1107_v9 = vmul.f32 1.442695, %v1091_v35 }
 0x201   : > { %v1093_v47 = vsub.f32 %v2829_v33, %v2845_v42  ;;  %1559 = vst.msk [vmem:[#allocation2 + $0x30] sm:$0xff] %vm690_vm0, %v2845_v42  ;;  %v1092_v49 = vsub.f32 %v2831_v34, %v2848_v43  ;;  %1558 = vst.msk [vmem:[#allocation2 + $0x28] sm:$0xff] %vm690_vm0, %v2848_v43  ;;  %1155 = vperm.xlu0 %2297, %v2845_v42   ;;  %1150 = vperm.xlu1 %2298, %v2848_v43  }
 0x202   : > { %v1065_v51 = vpop.xlane.xlu1 %1064  ;;  %v1062_v52 = vpop.xlane.xlu0 %1061 }
 0x203   : > { %v2866_v53 = vmax.f32 %v2850_v44, %v1065_v51  ;;  %v2869_v54 = vmax.f32 %v2852_v46, %v1062_v52  ;;  %v1109_v12 = vmul.f32 1.442695, %v1092_v49  ;;  %v1111_v11 = vmul.f32 1.442695, %v1093_v47  ;;  %v1221_v47 = vld [vmem:[#allocation3 + $0x10] sm:$0xff] }
 0x205   : > { %v1095_v57 = vsub.f32 %v2850_v44, %v2866_v53  ;;  %1561 = vst.msk [vmem:[#allocation2 + $0x40] sm:$0xff] %vm690_vm0, %v2866_v53  ;;  %v1094_v59 = vsub.f32 %v2852_v46, %v2869_v54  ;;  %1560 = vst.msk [vmem:[#allocation2 + $0x38] sm:$0xff] %vm690_vm0, %v2869_v54  ;;  %1165 = vperm.xlu0 %2297, %v2866_v53   ;;  %1160 = vperm.xlu1 %2298, %v2869_v54   ;;  %v1220_v46 = vld [vmem:[#allocation3 + $0x8] sm:$0xff] }
 0x206   : > { %v1071_v62 = vpop.xlane.xlu1 %1070  ;;  %v1068_v63 = vpop.xlane.xlu0 %1067 }
 0x207   : > { %v2887_v1 = vmax.f32 %v2871_v55, %v1071_v62  ;;  %v2890_v3 = vmax.f32 %v2873_v56, %v1068_v63  ;;  %v1115_v21 = vmul.f32 1.442695, %v1095_v57  ;;  %v1219_v57 = vld [vmem:[#allocation3] sm:$0xff] }
 0x209   : > { %v1097_v5 = vsub.f32 %v2871_v55, %v2887_v1  ;;  %1563 = vst.msk [vmem:[#allocation2 + $0x50] sm:$0xff] %vm690_vm0, %v2887_v1  ;;  %v1096_v6 = vsub.f32 %v2873_v56, %v2890_v3  ;;  %1562 = vst.msk [vmem:[#allocation2 + $0x48] sm:$0xff] %vm690_vm0, %v2890_v3  ;;  %1175 = vperm.xlu0 %2297, %v2887_v1   ;;  %1170 = vperm.xlu1 %2298, %v2890_v3  }
 0x20a   : > { %v1074_v8 = vpop.xlane.xlu0 %1073 }
 0x20b   : > { %v2906_v10 = vmax.f32 %v2892_v4, %v1074_v8 }
 0x20d   : > { %v1098_v13 = vsub.f32 %v2892_v4, %v2906_v10  ;;  %1564 = vst.msk [vmem:[#allocation2 + $0x58] sm:$0xff] %vm690_vm0, %v2906_v10  ;;  %1180 = vperm.xlu1 %2298, %v2906_v10   ;;  %v1222_v4 = vld [vmem:[#allocation3 + $0x18] sm:$0xff] }
 0x20f   : > { %v1121_v31 = vmul.f32 1.442695, %v1098_v13 }
 0x274   : > { %v1126_v18 = vpop.permute.xlu1 %1125 }
 0x275   : > { %v1183_v20 = vsub.f32 %v2717_v19, %v1126_v18 }
 0x276   : > { %v1131_v28 = vpop.permute.xlu0 %1130 }
 0x277   : > { %v1195_v29 = vmul.f32 1.442695, %v1183_v20  ;;  %v1184_v30 = vsub.f32 %v2722_v27, %v1131_v28 }
 0x278   : > { %v1136_v38 = vpop.permute.xlu1 %1135 }
 0x279   : > { %v1197_v39 = vmul.f32 1.442695, %v1184_v30  ;;  %v1185_v40 = vsub.f32 %v2715_v16, %v1136_v38  ;;  %2317 = vpow2.f32 %v1195_v29 }
 0x27b   : > { %2319 = vpow2.f32 %v1197_v39  ;;  %v1199_v50 = vmul.f32 1.442695, %v1185_v40 }
 0x27c   : > { %v1141_v51 = vpop.permute.xlu1 %1140  ;;  %v1146_v52 = vpop.permute.xlu0 %1145 }
 0x27d   : > { %2321 = vpow2.f32 %v1199_v50  ;;  %v1186_v60 = vsub.f32 %v2720_v23, %v1141_v51  ;;  %v1187_v62 = vsub.f32 %v2735_v41, %v1146_v52 }
 0x27f   : > { %v1201_v63 = vmul.f32 1.442695, %v1186_v60  ;;  %v1203_v19 = vmul.f32 1.442695, %v1187_v62 }
 0x280   : > { %v1151_v7 = vpop.permute.xlu1 %1150  ;;  %v1156_v8 = vpop.permute.xlu0 %1155 }
 0x281   : > { %2323 = vpow2.f32 %v1201_v63  ;;  %v1188_v27 = vsub.f32 %v2740_v48, %v1151_v7  ;;  %v1189_v18 = vsub.f32 %v2732_v37, %v1156_v8 }
 0x282   : > { %2325 = vpow2.f32 %v1203_v19 }
 0x283   : > { %v1205_v16 = vmul.f32 1.442695, %v1188_v27  ;;  %v1207_v20 = vmul.f32 1.442695, %v1189_v18  ;;  %v2318_v28 = vpop.eup %2317 }
 0x284   : > { %v1161_v29 = vpop.permute.xlu1 %1160  ;;  %v1166_v30 = vpop.permute.xlu0 %1165  ;;  %v1243_v8 = vsel %vm1038_vm1, %v2318_v28, 0.0 }
 0x285   : > { %v2320_v38 = vpop.eup %2319  ;;  %2327 = vpow2.f32 %v1205_v16  ;;  %v1190_v23 = vsub.f32 %v2738_v45, %v1161_v29  ;;  %v1191_v41 = vsub.f32 %v2755_v61, %v1166_v30 }
 0x286   : > { %2329 = vpow2.f32 %v1207_v20  ;;  %v1246_v39 = vsel %vm1038_vm1, %v2320_v38, 0.0  ;;  %v1388_v40 = vpack.c.bf16 %v2320_v38, %v2318_v28 }
 0x287   : > { %v2322_v50 = vpop.eup %2321  ;;  %v1209_v48 = vmul.f32 1.442695, %v1190_v23  ;;  %1247 = vadd.xlane.f32.xlu1 %v1246_v39  ;;  %v1211_v37 = vmul.f32 1.442695, %v1191_v41 }
 0x288   : > { %v1171_v51 = vpop.permute.xlu1 %1170  ;;  %2185 = vmatprep.mubr.msk.bf16.mxu1 %vm1038_vm1, %v1388_v40  ;;  %v1176_v52 = vpop.permute.xlu0 %1175  ;;  %v1249_v60 = vsel %vm1038_vm1, %v2322_v50, 0.0 }
 0x289   : > { %2331 = vpow2.f32 %v1209_v48  ;;  %v1192_v62 = vsub.f32 %v2760_v2, %v1171_v51  ;;  %v1193_v45 = vsub.f32 %v2752_v58, %v1176_v52  ;;  %1250 = vadd.xlane.f32.xlu0 %v1249_v60 }
 0x28a   : > { %2333 = vpow2.f32 %v1211_v37 }
 0x28b   : > { %v2324_v61 = vpop.eup %2323  ;;  %v1213_v63 = vmul.f32 1.442695, %v1192_v62  ;;  %v1215_v19 = vmul.f32 1.442695, %v1193_v45 }
 0x28c   : > { %v1181_v7 = vpop.permute.xlu1 %1180  ;;  %v1389_v27 = vpack.c.bf16 %v2324_v61, %v2322_v50  ;;  %v2326_v16 = vpop.eup %2325  ;;  %v1252_v58 = vsel %vm1038_vm1, %v2324_v61, 0.0  ;;  %v1099_v61 = vmul.f32 1.442695, %v1087_v15  ;;  %v1113_v15 = vmul.f32 1.442695, %v1094_v59 }
 0x28d   : > { %2335 = vpow2.f32 %v1213_v63  ;;  %v1194_v18 = vsub.f32 %v2758_v0, %v1181_v7  ;;  %1244 = vadd.xlane.f32.xlu0 %v1243_v8  ;;  %v1255_v41 = vsel %vm1038_vm1, %v2326_v16, 0.0  ;;  %v1101_v7 = vmul.f32 1.442695, %v1088_v22 }
 0x28e   : > { %2186 = vmatmul.mubr.msk.bf16.vlgmr.msra.gmra.mrb[0].mxu1 %vm1038_vm1, %v1389_v27  ;;  %2337 = vpow2.f32 %v1215_v19  ;;  %v1103_v19 = vmul.f32 1.442695, %v1089_v26  ;;  %v1105_v8 = vmul.f32 1.442695, %v1090_v36  ;;  %v1117_v22 = vmul.f32 1.442695, %v1096_v6 }
 0x28f   : > { %v2328_v20 = vpop.eup %2327  ;;  %v1217_v2 = vmul.f32 1.442695, %v1194_v18  ;;  %v1119_v26 = vmul.f32 1.442695, %v1097_v5  ;;  %v1225_v6 = vld [vmem:[#allocation3 + $0x30] sm:$0xff]  ;;  %v1226_v18 = vld [vmem:[#allocation3 + $0x38] sm:$0xff] }
 0x290   : > { %v2330_v29 = vpop.eup %2329  ;;  %v1390_v30 = vpack.c.bf16 %v2328_v20, %v2326_v16  ;;  %v1258_v50 = vsel %vm1038_vm1, %v2328_v20, 0.0 }
 0x291   : > { %2339 = vpow2.f32 %v1217_v2  ;;  %1253 = vadd.xlane.f32.xlu0 %v1252_v58  ;;  %v1261_v38 = vsel %vm1038_vm1, %v2330_v29, 0.0  ;;  %v1223_v2 = vld [vmem:[#allocation3 + $0x20] sm:$0xff] }
 0x292   : > { %1262 = vadd.xlane.f32.xlu1 %v1261_v38  ;;  %2189 = vmatprep.mubr.msk.bf16.mxu1 %vm1038_vm1, %v1390_v30  ;;  %2341 = vpow2.f32 %v1099_v61 }
 0x293   : > { %v2332_v28 = vpop.eup %2331  ;;  %2343 = vpow2.f32 %v1103_v19 }
 0x294   : > { %v1264_v0 = vsel %vm1038_vm1, %v2332_v28, 0.0  ;;  %v1391_v23 = vpack.c.bf16 %v2332_v28, %v2330_v29  ;;  %v2334_v39 = vpop.eup %2333  ;;  %2345 = vpow2.f32 %v1101_v7 }
 0x295   : > { %1265 = vadd.xlane.f32.xlu0 %v1264_v0  ;;  %v1267_v37 = vsel %vm1038_vm1, %v2334_v39, 0.0  ;;  %2347 = vpow2.f32 %v1105_v8  ;;  %v1224_v0 = vld [vmem:[#allocation3 + $0x28] sm:$0xff] }
 0x296   : > { %1256 = vadd.xlane.f32.xlu1 %v1255_v41  ;;  %2190 = vmatmul.mubr.msk.bf16.gmra.mrb[4].mxu1 %vm1038_vm1, %v1391_v23  ;;  %2349 = vpow2.f32 %v1107_v9 }
 0x297   : > { %v2336_v40 = vpop.eup %2335  ;;  %2351 = vpow2.f32 %v1109_v12  ;;  %v1230_v12 = vld [vmem:[#allocation3 + $0x58] sm:$0xff] }
 0x298   : > { %v1392_v48 = vpack.c.bf16 %v2336_v40, %v2334_v39  ;;  %v2338_v51 = vpop.eup %2337  ;;  %v1270_v60 = vsel %vm1038_vm1, %v2336_v40, 0.0  ;;  %2353 = vpow2.f32 %v1111_v11  ;;  %v1227_v39 = vld [vmem:[#allocation3 + $0x40] sm:$0xff] }
 0x299   : > { %1259 = vadd.xlane.f32.xlu0 %v1258_v50  ;;  %v1273_v45 = vsel %vm1038_vm1, %v2338_v51, 0.0  ;;  %2355 = vpow2.f32 %v1113_v15 }
 0x29a   : > { %1268 = vadd.xlane.f32.xlu1 %v1267_v37  ;;  %2193 = vmatprep.mubr.msk.bf16.mxu1 %vm1038_vm1, %v1392_v48  ;;  %2357 = vpow2.f32 %v1115_v21 }
 0x29b   : > { %v2340_v52 = vpop.eup %2339  ;;  %2359 = vpow2.f32 %v1117_v22 }
 0x29c   : > { %v1393_v62 = vpack.c.bf16 %v2340_v52, %v2338_v51  ;;  %v1276_v63 = vsel %vm1038_vm1, %v2340_v52, 0.0  ;;  %v2342_v14 = vpop.eup %2341  ;;  %2361 = vpow2.f32 %v1119_v26  ;;  %v1228_v52 = vld [vmem:[#allocation3 + $0x48] sm:$0xff] }
 0x29d   : > { %1271 = vadd.xlane.f32.xlu0 %v1270_v60  ;;  %v2344_v17 = vpop.eup %2343  ;;  %2363 = vpow2.f32 %v1121_v31  ;;  %v1231_v1 = vmul.f32 %v2342_v14, %v1219_v57 }
 0x29e   : > { %1274 = vadd.xlane.f32.xlu1 %v1273_v45  ;;  %2194 = vmatmul.mubr.msk.bf16.gmra.mrb[8].mxu1 %vm1038_vm1, %v1393_v62  ;;  %v2346_v24 = vpop.eup %2345  ;;  %v1233_v55 = vmul.f32 %v2344_v17, %v1221_v47  ;;  %v1229_v45 = vld [vmem:[#allocation3 + $0x50] sm:$0xff] }
 0x29f   : > { %v2348_v25 = vpop.eup %2347  ;;  %v1232_v49 = vmul.f32 %v2346_v24, %v1220_v46 }
 0x2a0   : > { %v2350_v32 = vpop.eup %2349  ;;  %v1234_v10 = vmul.f32 %v2348_v25, %v1222_v4 }
 0x2a1   : > { %1277 = vadd.xlane.f32.xlu0 %v1276_v63  ;;  %v2352_v33 = vpop.eup %2351  ;;  %v1235_v38 = vmul.f32 %v2350_v32, %v1223_v2 }
 0x2a2   : > { %v2354_v34 = vpop.eup %2353  ;;  %v1236_v48 = vmul.f32 %v2352_v33, %v1224_v0 }
 0x2a3   : > { %v2356_v35 = vpop.eup %2355  ;;  %v1237_v13 = vmul.f32 %v2354_v34, %v1225_v6 }
 0x2a4   : > { %v2358_v36 = vpop.eup %2357  ;;  %v1238_v30 = vmul.f32 %v2356_v35, %v1226_v18 }
 0x2a5   : > { %v2360_v42 = vpop.eup %2359  ;;  %v1239_v37 = vmul.f32 %v2358_v36, %v1227_v39 }
 0x2a6   : > { %v2362_v43 = vpop.eup %2361  ;;  %v1240_v19 = vmul.f32 %v2360_v42, %v1228_v52 }
 0x2a7   : > { %v2979_v44 = vpop.eup %2363  ;;  %v1241_v8 = vmul.f32 %v2362_v43, %v1229_v45 }
 0x2a8   : > { %v1242_v22 = vmul.f32 %v2979_v44, %v1230_v12 }
 0x2af   : > { %1318 = vperm.xlu1 %2298, %v2342_v14  }
 0x2b3   : > { %1328 = vperm.xlu1 %2298, %v2344_v17  }
 0x2b7   : > { %1333 = vperm.xlu1 %2298, %v2348_v25   ;;  %1323 = vperm.xlu0 %2297, %v2346_v24  }
 0x2bb   : > { %1343 = vperm.xlu1 %2298, %v2352_v33   ;;  %1338 = vperm.xlu0 %2297, %v2350_v32  }
 0x2bf   : > { %1353 = vperm.xlu1 %2298, %v2356_v35   ;;  %1348 = vperm.xlu0 %2297, %v2354_v34  }
 0x2c3   : > { %1363 = vperm.xlu1 %2298, %v2360_v42   ;;  %1358 = vperm.xlu0 %2297, %v2358_v36  }
 0x2c7   : > { %1373 = vperm.xlu1 %2298, %v2979_v44   ;;  %1368 = vperm.xlu0 %2297, %v2362_v43  }
 0x314   : > { %v1248_v53 = vpop.xlane.xlu1 %1247 }
 0x315   : > { %v1280_v54 = vadd.f32 %v1248_v53, %v1232_v49 }
 0x316   : > { %v1251_v56 = vpop.xlane.xlu0 %1250 }
 0x317   : > { %1293 = vst.msk [vmem:[#allocation3 + $0x8] sm:$0xff] %vm690_vm0, %v1280_v54  ;;  %v1281_v59 = vadd.f32 %v1251_v56, %v1233_v55 }
 0x319   : > { %1294 = vst.msk [vmem:[#allocation3 + $0x10] sm:$0xff] %vm690_vm0, %v1281_v59 }
 0x31a   : > { %v1245_v3 = vpop.xlane.xlu0 %1244 }
 0x31b   : > { %v1279_v5 = vadd.f32 %v1245_v3, %v1231_v1 }
 0x31d   : > { %1292 = vst.msk [vmem:[#allocation3] sm:$0xff] %vm690_vm0, %v1279_v5 }
 0x31e   : > { %v1254_v27 = vpop.xlane.xlu0 %1253  ;;  %v1569_v14 = vld [vmem:[#allocation3 + $0x8] sm:$0xff] }
 0x31f   : > { %v1263_v16 = vpop.xlane.xlu1 %1262  ;;  %v1282_v20 = vadd.f32 %v1254_v27, %v1234_v10 }
 0x320   : > { %v1285_v29 = vadd.f32 %v1263_v16, %v1237_v13  ;;  %v1570_v58 = vld [vmem:[#allocation3 + $0x10] sm:$0xff] }
 0x321   : > { %1295 = vst.msk [vmem:[#allocation3 + $0x18] sm:$0xff] %vm690_vm0, %v1282_v20  ;;  %2365 = vrcp.f32 %v1570_v58 }
 0x322   : > { %1298 = vst.msk [vmem:[#allocation3 + $0x30] sm:$0xff] %vm690_vm0, %v1285_v29  ;;  %v1266_v28 = vpop.xlane.xlu0 %1265 }
 0x323   : > { %v1257_v23 = vpop.xlane.xlu1 %1256  ;;  %v1286_v41 = vadd.f32 %v1266_v28, %v1238_v30 }
 0x324   : > { %v1283_v40 = vadd.f32 %v1257_v23, %v1235_v38  ;;  %v1568_v50 = vld [vmem:[#allocation3] sm:$0xff] }
 0x325   : > { %1299 = vst.msk [vmem:[#allocation3 + $0x38] sm:$0xff] %vm690_vm0, %v1286_v41  ;;  %2367 = vrcp.f32 %v1568_v50 }
 0x326   : > { %1296 = vst.msk [vmem:[#allocation3 + $0x20] sm:$0xff] %vm690_vm0, %v1283_v40  ;;  %v1260_v51 = vpop.xlane.xlu0 %1259 }
 0x327   : > { %v1269_v60 = vpop.xlane.xlu1 %1268  ;;  %v1284_v62 = vadd.f32 %v1260_v51, %v1236_v48 }
 0x328   : > { %v1287_v61 = vadd.f32 %v1269_v60, %v1239_v37  ;;  %v1571_v63 = vld [vmem:[#allocation3 + $0x18] sm:$0xff] }
 0x329   : > { %1297 = vst.msk [vmem:[#allocation3 + $0x28] sm:$0xff] %vm690_vm0, %v1284_v62  ;;  %v1574_v7 = vld [vmem:[#allocation3 + $0x30] sm:$0xff]  ;;  %2369 = vrcp.f32 %v1571_v63 }
 0x32a   : > { %1300 = vst.msk [vmem:[#allocation3 + $0x40] sm:$0xff] %vm690_vm0, %v1287_v61  ;;  %v1272_v9 = vpop.xlane.xlu0 %1271  ;;  %2371 = vrcp.f32 %v1574_v7 }
 0x32b   : > { %v2366_v11 = vpop.eup %2365  ;;  %v1275_v15 = vpop.xlane.xlu1 %1274  ;;  %v1288_v17 = vadd.f32 %v1272_v9, %v1240_v19  ;;  %2373 = vrcp.f32 %v1569_v14 }
 0x32c   : > { %v1289_v21 = vadd.f32 %v1275_v15, %v1241_v8  ;;  %1616 = vperm.xlu0 %2297, %v2366_v11   ;;  %v1575_v26 = vld [vmem:[#allocation3 + $0x38] sm:$0xff] }
 0x32d   : > { %1301 = vst.msk [vmem:[#allocation3 + $0x48] sm:$0xff] %vm690_vm0, %v1288_v17  ;;  %v1572_v24 = vld [vmem:[#allocation3 + $0x20] sm:$0xff] }
 0x32e   : > { %1302 = vst.msk [vmem:[#allocation3 + $0x50] sm:$0xff] %vm690_vm0, %v1289_v21  ;;  %v1278_v25 = vpop.xlane.xlu0 %1277  ;;  %2375 = vrcp.f32 %v1572_v24 }
 0x32f   : > { %v2368_v31 = vpop.eup %2367  ;;  %v1290_v32 = vadd.f32 %v1278_v25, %v1242_v22  ;;  %2377 = vrcp.f32 %v1575_v26  ;;  %v1319_v2 = vpop.permute.xlu1 %1318 }
 0x330   : > { %1606 = vperm.xlu0 %2297, %v2368_v31   ;;  %v1573_v34 = vld [vmem:[#allocation3 + $0x28] sm:$0xff]  ;;  %v1376_v61 = vmul.f32 0.0, %v1319_v2 }
 0x331   : > { %1303 = vst.msk [vmem:[#allocation3 + $0x58] sm:$0xff] %vm690_vm0, %v1290_v32  ;;  %v1576_v33 = vld [vmem:[#allocation3 + $0x40] sm:$0xff] }
 0x332   : > { %2379 = vrcp.f32 %v1576_v33 }
 0x333   : > { %v2370_v35 = vpop.eup %2369  ;;  %2381 = vrcp.f32 %v1573_v34  ;;  %v1329_v58 = vpop.permute.xlu1 %1328 }
 0x334   : > { %v2372_v36 = vpop.eup %2371  ;;  %1621 = vperm.xlu1 %2298, %v2370_v35   ;;  %v1577_v43 = vld [vmem:[#allocation3 + $0x48] sm:$0xff]  ;;  %v1378_v51 = vmul.f32 0.0, %v1329_v58 }
 0x335   : > { %1636 = vperm.xlu0 %2297, %v2372_v36   ;;  %v1578_v42 = vld [vmem:[#allocation3 + $0x50] sm:$0xff]  ;;  %v2374_v44 = vpop.eup %2373 }
 0x336   : > { %2383 = vrcp.f32 %v1578_v42  ;;  %v1324_v29 = vpop.permute.xlu0 %1323 }
 0x337   : > { %2385 = vrcp.f32 %v1577_v43  ;;  %v1334_v38 = vpop.permute.xlu1 %1333  ;;  %v1377_v63 = vmul.f32 0.0, %v1324_v29 }
 0x338   : > { %v2376_v46 = vpop.eup %2375  ;;  %1611 = vperm.xlu1 %2298, %v2374_v44   ;;  %v1579_v47 = vld [vmem:[#allocation3 + $0x58] sm:$0xff]  ;;  %v1379_v52 = vmul.f32 0.0, %v1334_v38 }
 0x339   : > { %1626 = vperm.xlu0 %2297, %v2376_v46   ;;  %v2378_v49 = vpop.eup %2377  ;;  %2387 = vrcp.f32 %v1579_v47 }
 0x33a   : > { %v1339_v30 = vpop.permute.xlu0 %1338 }
 0x33b   : > { %v1344_v0 = vpop.permute.xlu1 %1343  ;;  %v1380_v34 = vmul.f32 0.0, %v1339_v30 }
 0x33c   : > { %v2380_v53 = vpop.eup %2379  ;;  %1641 = vperm.xlu1 %2298, %v2378_v49   ;;  %v1381_v33 = vmul.f32 0.0, %v1344_v0 }
 0x33d   : > { %1646 = vperm.xlu0 %2297, %v2380_v53   ;;  %v2382_v54 = vpop.eup %2381 }
 0x33e   : > { %v1349_v28 = vpop.permute.xlu0 %1348 }
 0x33f   : > { %v1354_v41 = vpop.permute.xlu1 %1353  ;;  %v1382_v17 = vmul.f32 0.0, %v1349_v28 }
 0x340   : > { %v2384_v55 = vpop.eup %2383  ;;  %1631 = vperm.xlu1 %2298, %v2382_v54   ;;  %v1383_v15 = vmul.f32 0.0, %v1354_v41 }
 0x341   : > { %1656 = vperm.xlu0 %2297, %v2384_v55   ;;  %v2386_v56 = vpop.eup %2385 }
 0x342   : > { %v1359_v23 = vpop.permute.xlu0 %1358 }
 0x343   : > { %v2388_v57 = vpop.eup %2387  ;;  %v1364_v40 = vpop.permute.xlu1 %1363  ;;  %v1384_v53 = vmul.f32 0.0, %v1359_v23 }
 0x344   : > { %1651 = vperm.xlu1 %2298, %v2386_v56   ;;  %v1385_v49 = vmul.f32 0.0, %v1364_v40 }
 0x346   : > { %v1369_v39 = vpop.permute.xlu0 %1368 }
 0x347   : > { %v1374_v48 = vpop.permute.xlu1 %1373 }
 0x348   : > { %1661 = vperm.xlu1 %2298, %v2388_v57  }
 0x361   : > { %v2187_v59 = vpop.f32.mrb[0].mxu1 }
 0x362   : > { %v1482_v1 = vpop.f32.mrb[1].mxu1  ;;  %v1531_v60 = vadd.f32 %v2187_v59, %v1378_v51 }
 0x363   : > { %v2188_v3 = vpop.f32.mrb[2].mxu1  ;;  %v1529_v9 = vadd.f32 %v1482_v1, %v1376_v61 }
 0x364   : > { %v1485_v4 = vpop.f32.mrb[3].mxu1  ;;  %v1532_v62 = vadd.f32 %v2188_v3, %v1379_v52  ;;  %v1387_v3 = vmul.f32 0.0, %v1374_v48 }
 0x365   : > { %v1530_v12 = vadd.f32 %v1485_v4, %v1377_v63  ;;  %v1386_v4 = vmul.f32 0.0, %v1369_v39 }
 0x369   : > { %v2191_v5 = vpop.f32.mrb[4].mxu1 }
 0x36a   : > { %v1498_v6 = vpop.f32.mrb[5].mxu1  ;;  %v1535_v25 = vadd.f32 %v2191_v5, %v1382_v17 }
 0x36b   : > { %v2192_v10 = vpop.f32.mrb[6].mxu1  ;;  %v1533_v42 = vadd.f32 %v1498_v6, %v1380_v34 }
 0x36c   : > { %v1501_v13 = vpop.f32.mrb[7].mxu1  ;;  %v1536_v26 = vadd.f32 %v2192_v10, %v1383_v15 }
 0x36d   : > { %v1534_v43 = vadd.f32 %v1501_v13, %v1381_v33 }
 0x371   : > { %v2995_v27 = vpop.f32.mrb[8].mxu1 }
 0x372   : > { %v1514_v18 = vpop.f32.mrb[9].mxu1  ;;  %v1539_v13 = vadd.f32 %v2995_v27, %v1386_v4 }
 0x373   : > { %v2997_v16 = vpop.f32.mrb[10].mxu1  ;;  %v1537_v56 = vadd.f32 %v1514_v18, %v1384_v53 }
 0x374   : > { %v1517_v20 = vpop.f32.mrb[11].mxu1  ;;  %v1540_v2 = vadd.f32 %v2997_v16, %v1387_v3 }
 0x375   : > { %v1538_v57 = vadd.f32 %v1517_v20, %v1385_v49 }
 0x3ab   : > { %v1617_v50 = vpop.permute.xlu0 %1616 }
 0x3ac   : > { %v1666_v19 = vmul.f32 %v1617_v50, %v1531_v60 }
 0x3af   : > { %v1607_v37 = vpop.permute.xlu0 %1606 }
 0x3b0   : > { %v1664_v21 = vmul.f32 %v1607_v37, %v1529_v9 }
 0x3b3   : > { %v1622_v45 = vpop.permute.xlu1 %1621 }
 0x3b4   : > { %v1667_v7 = vmul.f32 %v1622_v45, %v1532_v62  ;;  %v1637_v8 = vpop.permute.xlu0 %1636 }
 0x3b5   : > { %v1670_v35 = vmul.f32 %v1637_v8, %v1535_v25 }
 0x3b6   : > { %v2098_v14 = vpack.c.bf16 %v1667_v7, %v1666_v19 }
 0x3b7   : > { %v1612_v11 = vpop.permute.xlu1 %1611 }
 0x3b8   : > { %2120 = vst [vmem:[%s3000_s25 + $0x8] sm:$0xff] %v2098_v14   ;;  %v1665_v22 = vmul.f32 %v1612_v11, %v1530_v12  ;;  %v1627_v24 = vpop.permute.xlu0 %1626 }
 0x3b9   : > { %v1668_v54 = vmul.f32 %v1627_v24, %v1533_v42 }
 0x3ba   : > { %v2093_v31 = vpack.c.bf16 %v1665_v22, %v1664_v21 }
 0x3bb   : > { %v1642_v32 = vpop.permute.xlu1 %1641 }
 0x3bc   : > { %2094 = vst [vmem:[%s3000_s25] sm:$0xff] %v2093_v31   ;;  %v1671_v36 = vmul.f32 %v1642_v32, %v1536_v26  ;;  %v1647_v46 = vpop.permute.xlu0 %1646 }
 0x3bd   : > { %v1672_v5 = vmul.f32 %v1647_v46, %v1537_v56 }
 0x3be   : > { %v2108_v44 = vpack.c.bf16 %v1671_v36, %v1670_v35 }
 0x3bf   : > { %v1632_v47 = vpop.permute.xlu1 %1631  ;;  %v1769_v20 = vld [vmem:[%s3000_s25 + $0x8] sm:$0xf] (%p2628_p13)  ;;  %v1771_v28 = vld [vmem:[%s3000_s25 + $0xc] sm:$0xf] (%p2628_p13) }
 0x3c0   : > { %2122 = vst [vmem:[%s3000_s25 + $0x18] sm:$0xff] %v2108_v44   ;;  %v1669_v55 = vmul.f32 %v1632_v47, %v1534_v43  ;;  %v1657_v10 = vpop.permute.xlu0 %1656  ;;  %1770 = vst [vmem:[%s1749_s20 + $0x20] sm:$0xf] (%p2628_p13), %v1769_v20 }
 0x3c1   : > { %v1674_v30 = vmul.f32 %v1657_v10, %v1539_v13  ;;  %1772 = vst [vmem:[%s1749_s20 + $0x30] sm:$0xf] (%p2628_p13), %v1771_v28 }
 0x3c2   : > { %v2103_v59 = vpack.c.bf16 %v1669_v55, %v1668_v54 }
 0x3c3   : > { %v1652_v1 = vpop.permute.xlu1 %1651  ;;  %v1765_v27 = vld [vmem:[%s3000_s25] sm:$0xf] (%p2628_p13)  ;;  %v1767_v16 = vld [vmem:[%s3000_s25 + $0x4] sm:$0xf] (%p2628_p13) }
 0x3c4   : > { %2121 = vst [vmem:[%s3000_s25 + $0x10] sm:$0xff] %v2103_v59   ;;  %v1673_v6 = vmul.f32 %v1652_v1, %v1538_v57  ;;  %1766 = vst [vmem:[%s1749_s20] sm:$0xf] (%p2628_p13), %v1765_v27 }
 0x3c5   : > { %1768 = vst [vmem:[%s1749_s20 + $0x10] sm:$0xf] (%p2628_p13), %v1767_v16 }
 0x3c6   : > { %v2113_v29 = vpack.c.bf16 %v1673_v6, %v1672_v5  ;;  %1742 = sbr.rel (!%p2628_p13) target bundleno = 981 (0x3d5), region = 179 }
 0x3c7   : > { %v1662_v58 = vpop.permute.xlu1 %1661  ;;  %v1777_v41 = vld [vmem:[%s3000_s25 + $0x18] sm:$0xf] (%p2628_p13)  ;;  %v1779_v39 = vld [vmem:[%s3000_s25 + $0x1c] sm:$0xf] (%p2628_p13) }
 0x3c8   : > { %2123 = vst [vmem:[%s3000_s25 + $0x20] sm:$0xff] %v2113_v29   ;;  %v1675_v38 = vmul.f32 %v1662_v58, %v1540_v2  ;;  %1778 = vst [vmem:[%s1749_s20 + $0x60] sm:$0xf] (%p2628_p13), %v1777_v41 }
 0x3c9   : > { %1780 = vst [vmem:[%s1749_s20 + $0x70] sm:$0xf] (%p2628_p13), %v1779_v39 }
 0x3ca   : > { %v2118_v18 = vpack.c.bf16 %v1675_v38, %v1674_v30 }
 0x3cb   : > { %v1773_v0 = vld [vmem:[%s3000_s25 + $0x10] sm:$0xf] (%p2628_p13)  ;;  %v1775_v23 = vld [vmem:[%s3000_s25 + $0x14] sm:$0xf] (%p2628_p13) }
 0x3cc   : > { %2124 = vst [vmem:[%s3000_s25 + $0x28] sm:$0xff] %v2118_v18   ;;  %1774 = vst [vmem:[%s1749_s20 + $0x40] sm:$0xf] (%p2628_p13), %v1773_v0 }
 0x3cd   : > { %1776 = vst [vmem:[%s1749_s20 + $0x50] sm:$0xf] %v1775_v23 }
 0x3cf   : > { %v1781_v40 = vld [vmem:[%s3000_s25 + $0x20] sm:$0xf]  ;;  %v1783_v50 = vld [vmem:[%s3000_s25 + $0x24] sm:$0xf] }
 0x3d0   : > { %1782 = vst [vmem:[%s1749_s20 + $0x80] sm:$0xf] %v1781_v40  ;;  %1784 = vst [vmem:[%s1749_s20 + $0x90] sm:$0xf] %v1783_v50 }
 0x3d3   : > { %v1785_v48 = vld [vmem:[%s3000_s25 + $0x28] sm:$0xf]  ;;  %v1787_v37 = vld [vmem:[%s3000_s25 + $0x2c] sm:$0xf] }
 0x3d4   : > { %1786 = vst [vmem:[%s1749_s20 + $0xa0] sm:$0xf] %v1785_v48  ;;  %1788 = vst [vmem:[%s1749_s20 + $0xb0] sm:$0xf] %v1787_v37 }
 0x3d5 PF: > { %s16_s7 = sadd.s32 1, %s2475_s7   ;;  %s3084_s16 = sld [smem:[#allocation10_spill]] }
 0x3d6   : > { %p13_p5 = scmp.ge.s32.totalorder %s16_s7, 10   ;;  %s3085_s21 = smov %s2439_s22 }
 0x3d7   : > { %s3086_s22 = smov %s2633_s11  ;;  %s3087_s23 = smov %s2447_s24 }
 0x3d8   : > { %s3088_s24 = smov %s2611_s13  ;;  %s3089_s25 = smov %s2455_s26 }
 0x3d9   : > { %s3090_s26 = smov %s2608_s27  ;;  %s3091_s27 = smov %s2467_s29 }
 0x3da   : > { %s3092_s28 = smov %s2471_s30  ;;  %s3093_s29 = smov %s3096_s9 }
 0x3db   : > { %s3094_s30 = smov %s3084_s16  ;;  %15 = sbr.rel (!%p13_p5) target bundleno = 10 (0xa), region = 276 }

// kernel: neuron_mllama_vision_forward.30
= control target key start
LH: loop header
LB: loop body
LE: loop exit
PB: predicated region body
PF: predicated region fallthrough
CT: control target
= control target key end

     0   :  { %v1653_v1 = vmov 0   ;;  %vm24_vm0 = vcmask 261120   ;;  %vm1153_vm1 = vcmask 257024   ;;  %s2129_s1 = inlined_call_operand.vmem [shape: bf16[512,32], index: 1, kind: input, shape index: {}]   ;;  %s2130_s3 = inlined_call_operand.<no memory space> [shape: f32[1,1], index: 3, kind: input, shape index: {}]   ;;  %s2131_s0 = inlined_call_operand.vmem [shape: bf16[192,512], index: 0, kind: input, shape index: {}]   ;;  %s2132_s2 = inlined_call_operand.vmem [shape: bf16[192,32], index: 2, kind: input, shape index: {}]   ;;  %s2133_s4 = inlined_call_operand.vmem [shape: bf16[192,32], index: 4, kind: output, shape index: {}]  }
   0x1   :  { %v1549_v0 = vld [vmem:[%s2129_s1 + $0x40] sm:$0xff]   ;;  %1548 = vset.pattern.permute.xlu0 %v1653_v1  ;;  %v9_v2 = vstv %s2130_s3  ;;  %v1553_v6 = vld [vmem:[%s2129_s1 + $0x48] sm:$0xff]   ;;  %v1557_v10 = vld [vmem:[%s2129_s1 + $0x50] sm:$0xff]  }
   0x2   :  { %v1550_v3 = vld [vmem:[%s2129_s1 + $0xc0] sm:$0xff]   ;;  %10 = vst [vmem:[#allocation3] sm:$0x1] %v9_v2  ;;  %1370 = vmatprep.subr.bf16.mxu0 %v1549_v0  ;;  %v1554_v7 = vld [vmem:[%s2129_s1 + $0xc8] sm:$0xff]   ;;  %v1558_v11 = vld [vmem:[%s2129_s1 + $0xd0] sm:$0xff]  }
   0x3   :  { %v1551_v4 = vld [vmem:[%s2129_s1] sm:$0xff]   ;;  %1458 = vmatprep.subr.bf16.mxu1 %v1550_v3  ;;  %v1555_v8 = vld [vmem:[%s2129_s1 + $0x8] sm:$0xff]   ;;  %v1559_v12 = vld [vmem:[%s2129_s1 + $0x10] sm:$0xff]  }
   0x4   :  { %v1552_v5 = vld [vmem:[%s2129_s1 + $0x80] sm:$0xff]   ;;  %1371 = vmatpush3.bf16.msra.mxu0 %v1551_v4  ;;  %v1556_v9 = vld [vmem:[%s2129_s1 + $0x88] sm:$0xff]   ;;  %v1560_v13 = vld [vmem:[%s2129_s1 + $0x90] sm:$0xff]  }
   0x5   :  { %1459 = vmatpush3.bf16.msra.mxu1 %v1552_v5  ;;  %1372 = vmatprep.subr.bf16.mxu0 %v1553_v6  ;;  %v1561_v14 = vld [vmem:[%s2129_s1 + $0x58] sm:$0xff]   ;;  %v1565_v18 = vld [vmem:[%s2129_s1 + $0x60] sm:$0xff]   ;;  %v1569_v22 = vld [vmem:[%s2129_s1 + $0x68] sm:$0xff]  }
   0x6   :  { %1460 = vmatprep.subr.bf16.mxu1 %v1554_v7  ;;  %v1562_v15 = vld [vmem:[%s2129_s1 + $0xd8] sm:$0xff]   ;;  %v1566_v19 = vld [vmem:[%s2129_s1 + $0xe0] sm:$0xff]   ;;  %v1570_v23 = vld [vmem:[%s2129_s1 + $0xe8] sm:$0xff]  }
   0x7   :  { %v1563_v16 = vld [vmem:[%s2129_s1 + $0x18] sm:$0xff]   ;;  %v1567_v20 = vld [vmem:[%s2129_s1 + $0x20] sm:$0xff]   ;;  %v1571_v24 = vld [vmem:[%s2129_s1 + $0x28] sm:$0xff]  }
   0x8   :  { %1373 = vmatpush3.bf16.msra.mxu0 %v1555_v8  ;;  %v1564_v17 = vld [vmem:[%s2129_s1 + $0x98] sm:$0xff]   ;;  %v1568_v21 = vld [vmem:[%s2129_s1 + $0xa0] sm:$0xff]   ;;  %v1572_v25 = vld [vmem:[%s2129_s1 + $0xa8] sm:$0xff]  }
   0x9   :  { %1461 = vmatpush3.bf16.msra.mxu1 %v1556_v9  ;;  %1374 = vmatprep.subr.bf16.mxu0 %v1557_v10  ;;  %v1573_v26 = vld [vmem:[%s2129_s1 + $0x70] sm:$0xff]   ;;  %v1577_v30 = vld [vmem:[%s2129_s1 + $0x78] sm:$0xff]   ;;  %v1262_v53 = vld [vmem:[#allocation3] ss:$0 sm:$0xff] }
   0xa   :  { %1462 = vmatprep.subr.bf16.mxu1 %v1558_v11  ;;  %v1574_v27 = vld [vmem:[%s2129_s1 + $0xf0] sm:$0xff]   ;;  %v1578_v31 = vld [vmem:[%s2129_s1 + $0xf8] sm:$0xff]   ;;  %1006 = vperm.xlu0 %1548, %v1262_v53  }
   0xb   :  { %v1575_v28 = vld [vmem:[%s2129_s1 + $0x30] sm:$0xff]   ;;  %v1579_v32 = vld [vmem:[%s2129_s1 + $0x38] sm:$0xff]  }
   0xc   :  { %1375 = vmatpush3.bf16.msra.mxu0 %v1559_v12  ;;  %v1576_v29 = vld [vmem:[%s2129_s1 + $0xb0] sm:$0xff]   ;;  %v1580_v33 = vld [vmem:[%s2129_s1 + $0xb8] sm:$0xff]  }
   0xd   :  { %1463 = vmatpush3.bf16.msra.mxu1 %v1560_v13  ;;  %1376 = vmatprep.subr.bf16.mxu0 %v1561_v14  ;;  %v1581_v34 = vld [vmem:[%s2131_s0] ss:$16 sps:$4 sm:$0xff]   ;;  %v1583_v35 = vld [vmem:[%s2131_s0 + $0x4] ss:$16 sps:$4 sm:$0xff]   ;;  %v1584_v36 = vld [vmem:[%s2131_s0 + $0x8] ss:$16 sps:$4 sm:$0xff]  }
   0xe   :  { %1464 = vmatprep.subr.bf16.mxu1 %v1562_v15  ;;  %v1586_v37 = vld [vmem:[%s2131_s0 + $0xc] ss:$16 sps:$4 sm:$0xff]   ;;  %649 = vmatprep.mubr.bf16.mxu0 %v1583_v35  ;;  %v1587_v38 = vld [vmem:[%s2131_s0 + $0x24] ss:$16 sps:$4 sm:$0xff]   ;;  %v1591_v40 = vld [vmem:[%s2131_s0 + $0x20] ss:$16 sps:$4 sm:$0xff]  }
   0xf   :  { %778 = vmatprep.mubr.bf16.mxu1 %v1586_v37  ;;  %v1589_v39 = vld [vmem:[%s2131_s0 + $0x2c] ss:$16 sps:$4 sm:$0xff]   ;;  %v1592_v41 = vld [vmem:[%s2131_s0 + $0x28] ss:$16 sps:$4 sm:$0xff]   ;;  %v1593_v42 = vld [vmem:[%s2131_s0 + $0x44] ss:$16 sps:$4 sm:$0xff]  }
  0x10   :  { %1377 = vmatpush3.bf16.msra.mxu0 %v1563_v16  ;;  %v1595_v43 = vld [vmem:[%s2131_s0 + $0x4c] ss:$16 sps:$4 sm:$0xff]   ;;  %v1597_v44 = vld [vmem:[%s2131_s0 + $0x40] ss:$16 sps:$4 sm:$0xff]   ;;  %v1598_v45 = vld [vmem:[%s2131_s0 + $0x48] ss:$16 sps:$4 sm:$0xff]  }
  0x11   :  { %1465 = vmatpush3.bf16.msra.mxu1 %v1564_v17  ;;  %1378 = vmatprep.subr.bf16.mxu0 %v1565_v18  ;;  %v1599_v46 = vld [vmem:[%s2131_s0 + $0x64] ss:$16 sps:$4 sm:$0xff]   ;;  %v1601_v47 = vld [vmem:[%s2131_s0 + $0x6c] ss:$16 sps:$4 sm:$0xff]   ;;  %v1603_v48 = vld [vmem:[%s2131_s0 + $0x60] ss:$16 sps:$4 sm:$0xff]  }
  0x12   :  { %1466 = vmatprep.subr.bf16.mxu1 %v1566_v19  ;;  %v1604_v49 = vld [vmem:[%s2131_s0 + $0x68] ss:$16 sps:$4 sm:$0xff]   ;;  %v1605_v50 = vld [vmem:[%s2131_s0 + $0x84] ss:$16 sps:$4 sm:$0xff]   ;;  %v1607_v51 = vld [vmem:[%s2131_s0 + $0x8c] ss:$16 sps:$4 sm:$0xff]  }
  0x13   :  { %v1609_v52 = vld [vmem:[%s2131_s0 + $0x80] ss:$16 sps:$4 sm:$0xff]   ;;  %v1610_v54 = vld [vmem:[%s2131_s0 + $0x88] ss:$16 sps:$4 sm:$0xff]   ;;  %v1611_v55 = vld [vmem:[%s2131_s0 + $0xa4] ss:$16 sps:$4 sm:$0xff]  }
  0x14   :  { %1379 = vmatpush3.bf16.msra.mxu0 %v1567_v20  ;;  %v1613_v56 = vld [vmem:[%s2131_s0 + $0xac] ss:$16 sps:$4 sm:$0xff]   ;;  %v1615_v57 = vld [vmem:[%s2131_s0 + $0xa0] ss:$16 sps:$4 sm:$0xff]   ;;  %v1616_v58 = vld [vmem:[%s2131_s0 + $0xa8] ss:$16 sps:$4 sm:$0xff]  }
  0x15   :  { %1467 = vmatpush3.bf16.msra.mxu1 %v1568_v21  ;;  %1380 = vmatprep.subr.bf16.mxu0 %v1569_v22  ;;  %v1617_v59 = vld [vmem:[%s2131_s0 + $0xc4] ss:$16 sps:$4 sm:$0xff]   ;;  %v1619_v60 = vld [vmem:[%s2131_s0 + $0xcc] ss:$16 sps:$4 sm:$0xff]   ;;  %v1621_v61 = vld [vmem:[%s2131_s0 + $0xc0] ss:$16 sps:$4 sm:$0xff]  }
  0x16   :  { %1468 = vmatprep.subr.bf16.mxu1 %v1570_v23  ;;  %v1622_v62 = vld [vmem:[%s2131_s0 + $0xc8] ss:$16 sps:$4 sm:$0xff]   ;;  %v1623_v63 = vld [vmem:[%s2131_s0 + $0xe4] ss:$16 sps:$4 sm:$0xff]   ;;  %v1625_v0 = vld [vmem:[%s2131_s0 + $0xec] ss:$16 sps:$4 sm:$0xff]  }
  0x17   :  { %v1627_v1 = vld [vmem:[%s2131_s0 + $0xe0] ss:$16 sps:$4 sm:$0xff]   ;;  %v1628_v2 = vld [vmem:[%s2131_s0 + $0xe8] ss:$16 sps:$4 sm:$0xff]   ;;  %v1629_v3 = vld [vmem:[%s2131_s0 + $0x104] ss:$16 sps:$4 sm:$0xff]  }
  0x18   :  { %1381 = vmatpush3.bf16.msra.mxu0 %v1571_v24  ;;  %v1631_v4 = vld [vmem:[%s2131_s0 + $0x10c] ss:$16 sps:$4 sm:$0xff]   ;;  %v1633_v5 = vld [vmem:[%s2131_s0 + $0x100] ss:$16 sps:$4 sm:$0xff]   ;;  %v1634_v6 = vld [vmem:[%s2131_s0 + $0x108] ss:$16 sps:$4 sm:$0xff]  }
  0x19   :  { %1469 = vmatpush3.bf16.msra.mxu1 %v1572_v25  ;;  %1382 = vmatprep.subr.bf16.mxu0 %v1573_v26  ;;  %v1635_v7 = vld [vmem:[%s2131_s0 + $0x124] ss:$16 sps:$4 sm:$0xff]   ;;  %v1637_v8 = vld [vmem:[%s2131_s0 + $0x12c] ss:$16 sps:$4 sm:$0xff]   ;;  %v1639_v9 = vld [vmem:[%s2131_s0 + $0x120] ss:$16 sps:$4 sm:$0xff]  }
  0x1a   :  { %1470 = vmatprep.subr.bf16.mxu1 %v1574_v27  ;;  %v1640_v10 = vld [vmem:[%s2131_s0 + $0x128] ss:$16 sps:$4 sm:$0xff]   ;;  %v1641_v11 = vld [vmem:[%s2131_s0 + $0x144] ss:$16 sps:$4 sm:$0xff]   ;;  %v1643_v12 = vld [vmem:[%s2131_s0 + $0x14c] ss:$16 sps:$4 sm:$0xff]  }
  0x1b   :  { %v1645_v13 = vld [vmem:[%s2131_s0 + $0x140] ss:$16 sps:$4 sm:$0xff]   ;;  %v1646_v14 = vld [vmem:[%s2131_s0 + $0x148] ss:$16 sps:$4 sm:$0xff]   ;;  %v1647_v15 = vld [vmem:[%s2131_s0 + $0x164] ss:$16 sps:$4 sm:$0xff]  }
  0x1c   :  { %1383 = vmatpush3.bf16.msra.mxu0 %v1575_v28  ;;  %v1649_v16 = vld [vmem:[%s2131_s0 + $0x16c] ss:$16 sps:$4 sm:$0xff]   ;;  %v1654_v17 = vmov 0.0   ;;  %v1651_v18 = vld [vmem:[%s2131_s0 + $0x160] ss:$16 sps:$4 sm:$0xff]  }
  0x1d   :  { %1471 = vmatpush3.bf16.msra.mxu1 %v1576_v29  ;;  %1384 = vmatprep.subr.bf16.mxu0 %v1577_v30  ;;  %25 = vst.msk [vmem:[#allocation2] sm:$0xff] %vm24_vm0, %v1654_v17  ;;  %26 = vst.msk [vmem:[#allocation2 + $0x8] sm:$0xff] %vm24_vm0, %v1654_v17  ;;  %v1652_v19 = vld [vmem:[%s2131_s0 + $0x168] ss:$16 sps:$4 sm:$0xff]  }
  0x1e   :  { %1472 = vmatprep.subr.bf16.mxu1 %v1578_v31  ;;  %27 = vst.msk [vmem:[#allocation2 + $0x10] sm:$0xff] %vm24_vm0, %v1654_v17  ;;  %28 = vst.msk [vmem:[#allocation2 + $0x18] sm:$0xff] %vm24_vm0, %v1654_v17 }
  0x1f   :  { %29 = vst.msk [vmem:[#allocation2 + $0x20] sm:$0xff] %vm24_vm0, %v1654_v17  ;;  %30 = vst.msk [vmem:[#allocation2 + $0x28] sm:$0xff] %vm24_vm0, %v1654_v17 }
  0x20   :  { %1385 = vmatpush3.bf16.msra.mxu0 %v1579_v32  ;;  %31 = vst.msk [vmem:[#allocation2 + $0x30] sm:$0xff] %vm24_vm0, %v1654_v17  ;;  %32 = vst.msk [vmem:[#allocation2 + $0x38] sm:$0xff] %vm24_vm0, %v1654_v17 }
  0x21   :  { %1473 = vmatpush3.bf16.msra.mxu1 %v1580_v33  ;;  %33 = vst.msk [vmem:[#allocation2 + $0x40] sm:$0xff] %vm24_vm0, %v1654_v17  ;;  %34 = vst.msk [vmem:[#allocation2 + $0x48] sm:$0xff] %vm24_vm0, %v1654_v17 }
  0x22   :  { %35 = vst.msk [vmem:[#allocation2 + $0x50] sm:$0xff] %vm24_vm0, %v1654_v17  ;;  %36 = vst.msk [vmem:[#allocation2 + $0x58] sm:$0xff] %vm24_vm0, %v1654_v17 }
  0x23   :  { %650 = vmatmul.mubr.bf16.vlgmr.msra.gmra.mrb[0].mxu0 %v1581_v34  ;;  %37 = vst.msk [vmem:[#allocation2 + $0x60] sm:$0xff] %vm24_vm0, %v1654_v17  ;;  %38 = vst.msk [vmem:[#allocation2 + $0x68] sm:$0xff] %vm24_vm0, %v1654_v17 }
  0x24   :  { %779 = vmatmul.mubr.bf16.vlgmr.msra.gmra.mrb[0].mxu1 %v1584_v36  ;;  %657 = vmatprep.mubr.bf16.mxu0 %v1587_v38  ;;  %39 = vst.msk [vmem:[#allocation2 + $0x70] sm:$0xff] %vm24_vm0, %v1654_v17  ;;  %40 = vst.msk [vmem:[#allocation2 + $0x78] sm:$0xff] %vm24_vm0, %v1654_v17  ;;  %v49_v29 = vld [vmem:[#allocation2] sm:$0xff]  ;;  %v50_v34 = vld [vmem:[#allocation2 + $0x8] sm:$0xff] }
  0x25   :  { %786 = vmatprep.mubr.bf16.mxu1 %v1589_v39  ;;  %41 = vst.msk [vmem:[#allocation2 + $0x80] sm:$0xff] %vm24_vm0, %v1654_v17  ;;  %42 = vst.msk [vmem:[#allocation2 + $0x88] sm:$0xff] %vm24_vm0, %v1654_v17  ;;  %v52_v53 = vld [vmem:[#allocation2 + $0x18] sm:$0xff] }
  0x26   :  { %43 = vst.msk [vmem:[#allocation2 + $0x90] sm:$0xff] %vm24_vm0, %v1654_v17  ;;  %44 = vst.msk [vmem:[#allocation2 + $0x98] sm:$0xff] %vm24_vm0, %v1654_v17 }
  0x27   :  { %45 = vst.msk [vmem:[#allocation2 + $0xa0] sm:$0xff] %vm24_vm0, %v1654_v17  ;;  %46 = vst.msk [vmem:[#allocation2 + $0xa8] sm:$0xff] %vm24_vm0, %v1654_v17 }
  0x28   :  { %47 = vst.msk [vmem:[#allocation2 + $0xb0] sm:$0xff] %vm24_vm0, %v1654_v17  ;;  %48 = vst.msk [vmem:[#allocation2 + $0xb8] sm:$0xff] %vm24_vm0, %v1654_v17 }
  0x2b   :  { %658 = vmatmul.mubr.bf16.gmra.mrb[4].mxu0 %v1591_v40 }
  0x2c   :  { %787 = vmatmul.mubr.bf16.gmra.mrb[4].mxu1 %v1592_v41  ;;  %665 = vmatprep.mubr.bf16.mxu0 %v1593_v42 }
  0x2d   :  { %794 = vmatprep.mubr.bf16.mxu1 %v1595_v43 }
  0x33   :  { %666 = vmatmul.mubr.bf16.gmra.mrb[8].mxu0 %v1597_v44 }
  0x34   :  { %795 = vmatmul.mubr.bf16.gmra.mrb[8].mxu1 %v1598_v45  ;;  %673 = vmatprep.mubr.bf16.mxu0 %v1599_v46 }
  0x35   :  { %802 = vmatprep.mubr.bf16.mxu1 %v1601_v47  ;;  %v51_v47 = vld [vmem:[#allocation2 + $0x10] sm:$0xff] }
  0x3b   :  { %674 = vmatmul.mubr.bf16.gmra.mrb[12].mxu0 %v1603_v48 }
  0x3c   :  { %803 = vmatmul.mubr.bf16.gmra.mrb[12].mxu1 %v1604_v49  ;;  %681 = vmatprep.mubr.bf16.mxu0 %v1605_v50  ;;  %v1312_v50 = vld [vmem:[%s2132_s2] sm:$0xff]  }
  0x3d   :  { %810 = vmatprep.mubr.bf16.mxu1 %v1607_v51 }
  0x43   :  { %682 = vmatmul.mubr.bf16.gmra.mrb[16].mxu0 %v1609_v52 }
  0x44   :  { %811 = vmatmul.mubr.bf16.gmra.mrb[16].mxu1 %v1610_v54  ;;  %689 = vmatprep.mubr.bf16.mxu0 %v1611_v55 }
  0x45   :  { %818 = vmatprep.mubr.bf16.mxu1 %v1613_v56 }
  0x4b   :  { %690 = vmatmul.mubr.bf16.gmra.mrb[20].mxu0 %v1615_v57  ;;  %v1313_v57 = vunpack.c.l.bf16 %v1312_v50 }
  0x4c   :  { %819 = vmatmul.mubr.bf16.gmra.mrb[20].mxu1 %v1616_v58  ;;  %697 = vmatprep.mubr.bf16.mxu0 %v1617_v59 }
  0x4d   :  { %826 = vmatprep.mubr.bf16.mxu1 %v1619_v60 }
  0x53   :  { %698 = vmatmul.mubr.bf16.gmra.mrb[24].mxu0 %v1621_v61 }
  0x54   :  { %827 = vmatmul.mubr.bf16.gmra.mrb[24].mxu1 %v1622_v62  ;;  %705 = vmatprep.mubr.bf16.mxu0 %v1623_v63  ;;  %v1314_v63 = vunpack.c.h.bf16 %v1312_v50 }
  0x55   :  { %834 = vmatprep.mubr.bf16.mxu1 %v1625_v0 }
  0x5b   :  { %706 = vmatmul.mubr.bf16.gmra.mrb[28].mxu0 %v1627_v1 }
  0x5c   :  { %835 = vmatmul.mubr.bf16.gmra.mrb[28].mxu1 %v1628_v2  ;;  %713 = vmatprep.mubr.bf16.mxu0 %v1629_v3 }
  0x5d   :  { %842 = vmatprep.mubr.bf16.mxu1 %v1631_v4 }
  0x63   :  { %714 = vmatmul.mubr.bf16.gmra.mrb[32].mxu0 %v1633_v5 }
  0x64   :  { %843 = vmatmul.mubr.bf16.gmra.mrb[32].mxu1 %v1634_v6  ;;  %721 = vmatprep.mubr.bf16.mxu0 %v1635_v7 }
  0x65   :  { %850 = vmatprep.mubr.bf16.mxu1 %v1637_v8 }
  0x6b   :  { %722 = vmatmul.mubr.bf16.gmra.mrb[36].mxu0 %v1639_v9 }
  0x6c   :  { %851 = vmatmul.mubr.bf16.gmra.mrb[36].mxu1 %v1640_v10  ;;  %729 = vmatprep.mubr.bf16.mxu0 %v1641_v11  ;;  %v53_v10 = vld [vmem:[#allocation2 + $0x20] sm:$0xff]  ;;  %v1359_v11 = vld [vmem:[%s2132_s2 + $0x8] sm:$0xff]  }
  0x6d   :  { %858 = vmatprep.mubr.bf16.mxu1 %v1643_v12 }
  0x73   :  { %730 = vmatmul.mubr.bf16.gmra.mrb[40].mxu0 %v1645_v13 }
  0x74   :  { %859 = vmatmul.mubr.bf16.gmra.mrb[40].mxu1 %v1646_v14  ;;  %737 = vmatprep.mubr.bf16.mxu0 %v1647_v15 }
  0x75   :  { %866 = vmatprep.mubr.bf16.mxu1 %v1649_v16 }
  0x7b   :  { %738 = vmatmul.mubr.bf16.gmra.mrb[44].mxu0 %v1651_v18  ;;  %v54_v18 = vld [vmem:[#allocation2 + $0x28] sm:$0xff] }
  0x7c   :  { %867 = vmatmul.mubr.bf16.gmra.mrb[44].mxu1 %v1652_v19 }
  0x89   :  { %v1952_v54 = vpop.permute.xlu0 %1006 }
  0xf6   :  { %v1386_v20 = vpop.f32.mrb[0].mxu0 }
  0xf7   :  { %v1474_v21 = vpop.f32.mrb[0].mxu1  ;;  %v1387_v22 = vpop.f32.mrb[1].mxu0 }
  0xf8   :  { %v1388_v23 = vadd.f32 %v1387_v22, %v1386_v20  ;;  %v1475_v24 = vpop.f32.mrb[1].mxu1  ;;  %v1389_v25 = vpop.f32.mrb[2].mxu0  ;;  %v1317_v20 = vunpack.c.l.bf16 %v1359_v11 }
  0xf9   :  { %v1476_v26 = vadd.f32 %v1475_v24, %v1474_v21  ;;  %v1477_v27 = vpop.f32.mrb[2].mxu1  ;;  %v1390_v28 = vpop.f32.mrb[3].mxu0 }
  0xfa   :  { %v1391_v30 = vadd.f32 %v1390_v28, %v1389_v25  ;;  %v1478_v31 = vpop.f32.mrb[3].mxu1  ;;  %v1318_v25 = vunpack.c.h.bf16 %v1359_v11 }
  0xfb   :  { %v781_v32 = vadd.f32 %v1476_v26, %v1388_v23  ;;  %v1479_v33 = vadd.f32 %v1478_v31, %v1477_v27 }
  0xfd   :  { %v875_v35 = vadd.f32 %v781_v32, %v49_v29  ;;  %v784_v36 = vadd.f32 %v1479_v33, %v1391_v30 }
  0xfe   :  { %v1392_v37 = vpop.f32.mrb[4].mxu0 }
  0xff   :  { %900 = vst.msk [vmem:[#allocation2] sm:$0xff] %vm24_vm0, %v875_v35  ;;  %v876_v38 = vadd.f32 %v784_v36, %v50_v34  ;;  %v1480_v39 = vpop.f32.mrb[4].mxu1  ;;  %v1393_v40 = vpop.f32.mrb[5].mxu0 }
 0x100   :  { %v1394_v41 = vadd.f32 %v1393_v40, %v1392_v37  ;;  %v1481_v42 = vpop.f32.mrb[5].mxu1  ;;  %v1395_v43 = vpop.f32.mrb[6].mxu0  ;;  %v55_v40 = vld [vmem:[#allocation2 + $0x30] sm:$0xff] }
 0x101   :  { %901 = vst.msk [vmem:[#allocation2 + $0x8] sm:$0xff] %vm24_vm0, %v876_v38  ;;  %v1482_v44 = vadd.f32 %v1481_v42, %v1480_v39  ;;  %v1483_v45 = vpop.f32.mrb[6].mxu1  ;;  %v1396_v46 = vpop.f32.mrb[7].mxu0  ;;  %v1360_v39 = vld [vmem:[%s2132_s2 + $0x10] sm:$0xff]  }
 0x102   :  { %v1397_v48 = vadd.f32 %v1396_v46, %v1395_v43  ;;  %v1484_v49 = vpop.f32.mrb[7].mxu1 }
 0x103   :  { %v789_v51 = vadd.f32 %v1482_v44, %v1394_v41  ;;  %v1485_v52 = vadd.f32 %v1484_v49, %v1483_v45 }
 0x105   :  { %v877_v55 = vadd.f32 %v789_v51, %v51_v47  ;;  %v792_v56 = vadd.f32 %v1485_v52, %v1397_v48  ;;  %v56_v47 = vld [vmem:[#allocation2 + $0x38] sm:$0xff]  ;;  %v1321_v48 = vunpack.c.l.bf16 %v1360_v39 }
 0x106   :  { %v927_v58 = vld [vmem:[#allocation2] sm:$0xff]  ;;  %v1398_v59 = vpop.f32.mrb[8].mxu0 }
 0x107   :  { %902 = vst.msk [vmem:[#allocation2 + $0x10] sm:$0xff] %vm24_vm0, %v877_v55  ;;  %v878_v60 = vadd.f32 %v792_v56, %v52_v53  ;;  %v1486_v61 = vpop.f32.mrb[8].mxu1  ;;  %v1399_v62 = vpop.f32.mrb[9].mxu0  ;;  %v1009_v0 = vmul.f32 %v1952_v54, %v927_v58  ;;  %v1322_v56 = vunpack.c.h.bf16 %v1360_v39 }
 0x108   :  { %v928_v1 = vld [vmem:[#allocation2 + $0x8] sm:$0xff]  ;;  %v1400_v2 = vadd.f32 %v1399_v62, %v1398_v59  ;;  %v1487_v3 = vpop.f32.mrb[9].mxu1  ;;  %v1401_v4 = vpop.f32.mrb[10].mxu0 }
 0x109   :  { %903 = vst.msk [vmem:[#allocation2 + $0x18] sm:$0xff] %vm24_vm0, %v878_v60  ;;  %v1488_v5 = vadd.f32 %v1487_v3, %v1486_v61  ;;  %v1010_v6 = vmul.f32 %v1952_v54, %v928_v1  ;;  %v1033_v7 = vadd.f32 %v1313_v57, %v1009_v0  ;;  %v1489_v8 = vpop.f32.mrb[10].mxu1  ;;  %v1402_v9 = vpop.f32.mrb[11].mxu0 }
 0x10a   :  { %v1403_v12 = vadd.f32 %v1402_v9, %v1401_v4  ;;  %v1490_v13 = vpop.f32.mrb[11].mxu1 }
 0x10b   :  { %v797_v14 = vadd.f32 %v1488_v5, %v1400_v2  ;;  %v1034_v15 = vadd.f32 %v1314_v63, %v1010_v6  ;;  %v1287_v16 = vpack.c.bf16 %v1033_v7, %v1033_v7  ;;  %v1491_v17 = vadd.f32 %v1490_v13, %v1489_v8  ;;  %v1361_v5 = vld [vmem:[%s2132_s2 + $0x18] sm:$0xff]   ;;  %v57_v6 = vld [vmem:[#allocation2 + $0x40] sm:$0xff]  ;;  %v58_v13 = vld [vmem:[#allocation2 + $0x48] sm:$0xff] }
 0x10d   :  { %v879_v19 = vadd.f32 %v797_v14, %v53_v10  ;;  %v1288_v21 = vpack.c.bf16 %v1034_v15, %v1034_v15  ;;  %1154 = vst.msk [vmem:[%s2133_s4] sm:$0xf] %vm1153_vm1, %v1287_v16  ;;  %v800_v22 = vadd.f32 %v1491_v17, %v1403_v12  ;;  %v1325_v15 = vunpack.c.l.bf16 %v1361_v5 }
 0x10e   :  { %v929_v23 = vld [vmem:[#allocation2 + $0x10] sm:$0xff]  ;;  %v1404_v24 = vpop.f32.mrb[12].mxu0 }
 0x10f   :  { %904 = vst.msk [vmem:[#allocation2 + $0x20] sm:$0xff] %vm24_vm0, %v879_v19  ;;  %v1011_v26 = vmul.f32 %v1952_v54, %v929_v23  ;;  %v880_v27 = vadd.f32 %v800_v22, %v54_v18  ;;  %v1492_v28 = vpop.f32.mrb[12].mxu1  ;;  %v1405_v29 = vpop.f32.mrb[13].mxu0 }
 0x110   :  { %1155 = vst.msk [vmem:[%s2133_s4 + $0x4] sm:$0xf] %vm1153_vm1, %v1288_v21  ;;  %v930_v30 = vld [vmem:[#allocation2 + $0x18] sm:$0xff]  ;;  %v1406_v31 = vadd.f32 %v1405_v29, %v1404_v24  ;;  %v1493_v32 = vpop.f32.mrb[13].mxu1  ;;  %v1407_v33 = vpop.f32.mrb[14].mxu0  ;;  %v1326_v21 = vunpack.c.h.bf16 %v1361_v5 }
 0x111   :  { %v1012_v34 = vmul.f32 %v1952_v54, %v930_v30  ;;  %v1035_v35 = vadd.f32 %v1317_v20, %v1011_v26  ;;  %905 = vst.msk [vmem:[#allocation2 + $0x28] sm:$0xff] %vm24_vm0, %v880_v27  ;;  %v1494_v36 = vadd.f32 %v1493_v32, %v1492_v28  ;;  %v1495_v37 = vpop.f32.mrb[14].mxu1  ;;  %v1408_v38 = vpop.f32.mrb[15].mxu0 }
 0x112   :  { %v1409_v41 = vadd.f32 %v1408_v38, %v1407_v33  ;;  %v1496_v42 = vpop.f32.mrb[15].mxu1 }
 0x113   :  { %v1036_v43 = vadd.f32 %v1318_v25, %v1012_v34  ;;  %v1289_v44 = vpack.c.bf16 %v1035_v35, %v1035_v35  ;;  %v805_v45 = vadd.f32 %v1494_v36, %v1406_v31  ;;  %v1497_v46 = vadd.f32 %v1496_v42, %v1495_v37  ;;  %v1362_v34 = vld [vmem:[%s2132_s2 + $0x20] sm:$0xff]   ;;  %v59_v35 = vld [vmem:[#allocation2 + $0x50] sm:$0xff]  ;;  %v60_v42 = vld [vmem:[#allocation2 + $0x58] sm:$0xff] }
 0x115   :  { %v1290_v49 = vpack.c.bf16 %v1036_v43, %v1036_v43  ;;  %1156 = vst.msk [vmem:[%s2133_s4 + $0x8] sm:$0xf] %vm1153_vm1, %v1289_v44  ;;  %v881_v50 = vadd.f32 %v805_v45, %v55_v40  ;;  %v808_v51 = vadd.f32 %v1497_v46, %v1409_v41  ;;  %v1329_v44 = vunpack.c.l.bf16 %v1362_v34 }
 0x116   :  { %v931_v52 = vld [vmem:[#allocation2 + $0x20] sm:$0xff]  ;;  %v1410_v53 = vpop.f32.mrb[16].mxu0 }
 0x117   :  { %v1013_v55 = vmul.f32 %v1952_v54, %v931_v52  ;;  %1157 = vst.msk [vmem:[%s2133_s4 + $0xc] sm:$0xf] %vm1153_vm1, %v1290_v49  ;;  %v882_v57 = vadd.f32 %v808_v51, %v56_v47  ;;  %v1498_v58 = vpop.f32.mrb[16].mxu1  ;;  %v1411_v59 = vpop.f32.mrb[17].mxu0 }
 0x118   :  { %906 = vst.msk [vmem:[#allocation2 + $0x30] sm:$0xff] %vm24_vm0, %v881_v50  ;;  %v932_v60 = vld [vmem:[#allocation2 + $0x28] sm:$0xff]  ;;  %v1412_v61 = vadd.f32 %v1411_v59, %v1410_v53  ;;  %v1499_v62 = vpop.f32.mrb[17].mxu1  ;;  %v1413_v63 = vpop.f32.mrb[18].mxu0  ;;  %v1330_v50 = vunpack.c.h.bf16 %v1362_v34 }
 0x119   :  { %v1037_v0 = vadd.f32 %v1321_v48, %v1013_v55  ;;  %v1014_v1 = vmul.f32 %v1952_v54, %v932_v60  ;;  %907 = vst.msk [vmem:[#allocation2 + $0x38] sm:$0xff] %vm24_vm0, %v882_v57  ;;  %v1500_v2 = vadd.f32 %v1499_v62, %v1498_v58  ;;  %v1501_v3 = vpop.f32.mrb[18].mxu1  ;;  %v1414_v4 = vpop.f32.mrb[19].mxu0 }
 0x11a   :  { %v1415_v7 = vadd.f32 %v1414_v4, %v1413_v63  ;;  %v1502_v8 = vpop.f32.mrb[19].mxu1 }
 0x11b   :  { %v1291_v9 = vpack.c.bf16 %v1037_v0, %v1037_v0  ;;  %v1038_v10 = vadd.f32 %v1322_v56, %v1014_v1  ;;  %v813_v11 = vadd.f32 %v1500_v2, %v1412_v61  ;;  %v1503_v12 = vadd.f32 %v1502_v8, %v1501_v3  ;;  %v1363_v0 = vld [vmem:[%s2132_s2 + $0x28] sm:$0xff]   ;;  %v61_v1 = vld [vmem:[#allocation2 + $0x60] sm:$0xff] }
 0x11c   :  { %v62_v8 = vld [vmem:[#allocation2 + $0x68] sm:$0xff] }
 0x11d   :  { %1158 = vst.msk [vmem:[%s2133_s4 + $0x10] sm:$0xf] %vm1153_vm1, %v1291_v9  ;;  %v1292_v14 = vpack.c.bf16 %v1038_v10, %v1038_v10  ;;  %v883_v16 = vadd.f32 %v813_v11, %v57_v6  ;;  %v816_v17 = vadd.f32 %v1503_v12, %v1415_v7  ;;  %v1333_v10 = vunpack.c.l.bf16 %v1363_v0 }
 0x11e   :  { %v1416_v19 = vpop.f32.mrb[20].mxu0 }
 0x11f   :  { %v933_v18 = vld [vmem:[#allocation2 + $0x30] sm:$0xff]  ;;  %1159 = vst.msk [vmem:[%s2133_s4 + $0x14] sm:$0xf] %vm1153_vm1, %v1292_v14  ;;  %v884_v22 = vadd.f32 %v816_v17, %v58_v13  ;;  %v1504_v23 = vpop.f32.mrb[20].mxu1  ;;  %v1417_v24 = vpop.f32.mrb[21].mxu0 }
 0x120   :  { %v1015_v20 = vmul.f32 %v1952_v54, %v933_v18  ;;  %908 = vst.msk [vmem:[#allocation2 + $0x40] sm:$0xff] %vm24_vm0, %v883_v16  ;;  %v934_v25 = vld [vmem:[#allocation2 + $0x38] sm:$0xff]  ;;  %v1418_v26 = vadd.f32 %v1417_v24, %v1416_v19  ;;  %v1505_v27 = vpop.f32.mrb[21].mxu1  ;;  %v1419_v28 = vpop.f32.mrb[22].mxu0  ;;  %v1334_v16 = vunpack.c.h.bf16 %v1363_v0 }
 0x121   :  { %v1016_v30 = vmul.f32 %v1952_v54, %v934_v25  ;;  %909 = vst.msk [vmem:[#allocation2 + $0x48] sm:$0xff] %vm24_vm0, %v884_v22  ;;  %v1506_v31 = vadd.f32 %v1505_v27, %v1504_v23  ;;  %v1507_v32 = vpop.f32.mrb[22].mxu1  ;;  %v1420_v33 = vpop.f32.mrb[23].mxu0 }
 0x122   :  { %v1039_v29 = vadd.f32 %v1325_v15, %v1015_v20  ;;  %v1421_v36 = vadd.f32 %v1420_v33, %v1419_v28  ;;  %v1508_v37 = vpop.f32.mrb[23].mxu1 }
 0x123   :  { %v1040_v39 = vadd.f32 %v1326_v21, %v1016_v30  ;;  %v821_v40 = vadd.f32 %v1506_v31, %v1418_v26  ;;  %v1509_v41 = vadd.f32 %v1508_v37, %v1507_v32  ;;  %v63_v30 = vld [vmem:[#allocation2 + $0x70] sm:$0xff]  ;;  %v64_v37 = vld [vmem:[#allocation2 + $0x78] sm:$0xff] }
 0x124   :  { %v1293_v38 = vpack.c.bf16 %v1039_v29, %v1039_v29  ;;  %v1364_v29 = vld [vmem:[%s2132_s2 + $0x30] sm:$0xff]  }
 0x125   :  { %v1294_v43 = vpack.c.bf16 %v1040_v39, %v1040_v39  ;;  %v885_v45 = vadd.f32 %v821_v40, %v59_v35  ;;  %v824_v46 = vadd.f32 %v1509_v41, %v1421_v36  ;;  %v1337_v39 = vunpack.c.l.bf16 %v1364_v29 }
 0x126   :  { %1160 = vst.msk [vmem:[%s2133_s4 + $0x18] sm:$0xf] %vm1153_vm1, %v1293_v38  ;;  %v1422_v48 = vpop.f32.mrb[24].mxu0 }
 0x127   :  { %v935_v47 = vld [vmem:[#allocation2 + $0x40] sm:$0xff]  ;;  %1161 = vst.msk [vmem:[%s2133_s4 + $0x1c] sm:$0xf] %vm1153_vm1, %v1294_v43  ;;  %v886_v51 = vadd.f32 %v824_v46, %v60_v42  ;;  %v1510_v52 = vpop.f32.mrb[24].mxu1  ;;  %v1423_v53 = vpop.f32.mrb[25].mxu0 }
 0x128   :  { %v1017_v49 = vmul.f32 %v1952_v54, %v935_v47  ;;  %910 = vst.msk [vmem:[#allocation2 + $0x50] sm:$0xff] %vm24_vm0, %v885_v45  ;;  %v936_v55 = vld [vmem:[#allocation2 + $0x48] sm:$0xff]  ;;  %v1424_v56 = vadd.f32 %v1423_v53, %v1422_v48  ;;  %v1511_v57 = vpop.f32.mrb[25].mxu1  ;;  %v1425_v58 = vpop.f32.mrb[26].mxu0  ;;  %v1338_v45 = vunpack.c.h.bf16 %v1364_v29 }
 0x129   :  { %v1018_v60 = vmul.f32 %v1952_v54, %v936_v55  ;;  %911 = vst.msk [vmem:[#allocation2 + $0x58] sm:$0xff] %vm24_vm0, %v886_v51  ;;  %v1512_v61 = vadd.f32 %v1511_v57, %v1510_v52  ;;  %v1513_v62 = vpop.f32.mrb[26].mxu1  ;;  %v1426_v63 = vpop.f32.mrb[27].mxu0 }
 0x12a   :  { %v1041_v59 = vadd.f32 %v1329_v44, %v1017_v49  ;;  %v1427_v2 = vadd.f32 %v1426_v63, %v1425_v58  ;;  %v1514_v3 = vpop.f32.mrb[27].mxu1 }
 0x12b   :  { %v1042_v5 = vadd.f32 %v1330_v50, %v1018_v60  ;;  %v829_v6 = vadd.f32 %v1512_v61, %v1424_v56  ;;  %v1515_v7 = vadd.f32 %v1514_v3, %v1513_v62  ;;  %v65_v60 = vld [vmem:[#allocation2 + $0x80] sm:$0xff]  ;;  %v66_v3 = vld [vmem:[#allocation2 + $0x88] sm:$0xff] }
 0x12c   :  { %v1295_v4 = vpack.c.bf16 %v1041_v59, %v1041_v59  ;;  %v1365_v59 = vld [vmem:[%s2132_s2 + $0x38] sm:$0xff]  }
 0x12d   :  { %v1296_v9 = vpack.c.bf16 %v1042_v5, %v1042_v5  ;;  %v887_v11 = vadd.f32 %v829_v6, %v61_v1  ;;  %v832_v12 = vadd.f32 %v1515_v7, %v1427_v2  ;;  %v1341_v5 = vunpack.c.l.bf16 %v1365_v59 }
 0x12e   :  { %1162 = vst.msk [vmem:[%s2133_s4 + $0x20] sm:$0xf] %vm1153_vm1, %v1295_v4  ;;  %v1428_v14 = vpop.f32.mrb[28].mxu0 }
 0x12f   :  { %v937_v13 = vld [vmem:[#allocation2 + $0x50] sm:$0xff]  ;;  %1163 = vst.msk [vmem:[%s2133_s4 + $0x24] sm:$0xf] %vm1153_vm1, %v1296_v9  ;;  %v888_v17 = vadd.f32 %v832_v12, %v62_v8  ;;  %v1516_v18 = vpop.f32.mrb[28].mxu1  ;;  %v1429_v19 = vpop.f32.mrb[29].mxu0 }
 0x130   :  { %v1019_v15 = vmul.f32 %v1952_v54, %v937_v13  ;;  %912 = vst.msk [vmem:[#allocation2 + $0x60] sm:$0xff] %vm24_vm0, %v887_v11  ;;  %v938_v20 = vld [vmem:[#allocation2 + $0x58] sm:$0xff]  ;;  %v1430_v21 = vadd.f32 %v1429_v19, %v1428_v14  ;;  %v1517_v22 = vpop.f32.mrb[29].mxu1  ;;  %v1431_v23 = vpop.f32.mrb[30].mxu0  ;;  %v1342_v11 = vunpack.c.h.bf16 %v1365_v59 }
 0x131   :  { %v1020_v25 = vmul.f32 %v1952_v54, %v938_v20  ;;  %913 = vst.msk [vmem:[#allocation2 + $0x68] sm:$0xff] %vm24_vm0, %v888_v17  ;;  %v1518_v26 = vadd.f32 %v1517_v22, %v1516_v18  ;;  %v1519_v27 = vpop.f32.mrb[30].mxu1  ;;  %v1432_v28 = vpop.f32.mrb[31].mxu0 }
 0x132   :  { %v1043_v24 = vadd.f32 %v1333_v10, %v1019_v15  ;;  %v1433_v31 = vadd.f32 %v1432_v28, %v1431_v23  ;;  %v1520_v32 = vpop.f32.mrb[31].mxu1 }
 0x133   :  { %v1044_v34 = vadd.f32 %v1334_v16, %v1020_v25  ;;  %v837_v35 = vadd.f32 %v1518_v26, %v1430_v21  ;;  %v1521_v36 = vadd.f32 %v1520_v32, %v1519_v27  ;;  %v67_v25 = vld [vmem:[#allocation2 + $0x90] sm:$0xff]  ;;  %v68_v32 = vld [vmem:[#allocation2 + $0x98] sm:$0xff] }
 0x134   :  { %v1297_v33 = vpack.c.bf16 %v1043_v24, %v1043_v24  ;;  %v1366_v24 = vld [vmem:[%s2132_s2 + $0x40] sm:$0xff]  }
 0x135   :  { %v1298_v38 = vpack.c.bf16 %v1044_v34, %v1044_v34  ;;  %v889_v40 = vadd.f32 %v837_v35, %v63_v30  ;;  %v840_v41 = vadd.f32 %v1521_v36, %v1433_v31  ;;  %v1345_v34 = vunpack.c.l.bf16 %v1366_v24 }
 0x136   :  { %1164 = vst.msk [vmem:[%s2133_s4 + $0x28] sm:$0xf] %vm1153_vm1, %v1297_v33  ;;  %v1434_v43 = vpop.f32.mrb[32].mxu0 }
 0x137   :  { %v939_v42 = vld [vmem:[#allocation2 + $0x60] sm:$0xff]  ;;  %1165 = vst.msk [vmem:[%s2133_s4 + $0x2c] sm:$0xf] %vm1153_vm1, %v1298_v38  ;;  %v890_v46 = vadd.f32 %v840_v41, %v64_v37  ;;  %v1522_v47 = vpop.f32.mrb[32].mxu1  ;;  %v1435_v48 = vpop.f32.mrb[33].mxu0 }
 0x138   :  { %v1021_v44 = vmul.f32 %v1952_v54, %v939_v42  ;;  %914 = vst.msk [vmem:[#allocation2 + $0x70] sm:$0xff] %vm24_vm0, %v889_v40  ;;  %v940_v49 = vld [vmem:[#allocation2 + $0x68] sm:$0xff]  ;;  %v1436_v50 = vadd.f32 %v1435_v48, %v1434_v43  ;;  %v1523_v51 = vpop.f32.mrb[33].mxu1  ;;  %v1437_v52 = vpop.f32.mrb[34].mxu0  ;;  %v1346_v40 = vunpack.c.h.bf16 %v1366_v24 }
 0x139   :  { %v1022_v55 = vmul.f32 %v1952_v54, %v940_v49  ;;  %915 = vst.msk [vmem:[#allocation2 + $0x78] sm:$0xff] %vm24_vm0, %v890_v46  ;;  %v1524_v56 = vadd.f32 %v1523_v51, %v1522_v47  ;;  %v1525_v57 = vpop.f32.mrb[34].mxu1  ;;  %v1438_v58 = vpop.f32.mrb[35].mxu0 }
 0x13a   :  { %v1045_v53 = vadd.f32 %v1337_v39, %v1021_v44  ;;  %v1439_v61 = vadd.f32 %v1438_v58, %v1437_v52  ;;  %v1526_v62 = vpop.f32.mrb[35].mxu1 }
 0x13b   :  { %v1046_v0 = vadd.f32 %v1338_v45, %v1022_v55  ;;  %v845_v1 = vadd.f32 %v1524_v56, %v1436_v50  ;;  %v1527_v2 = vadd.f32 %v1526_v62, %v1525_v57  ;;  %v69_v55 = vld [vmem:[#allocation2 + $0xa0] sm:$0xff]  ;;  %v70_v62 = vld [vmem:[#allocation2 + $0xa8] sm:$0xff] }
 0x13c   :  { %v1299_v63 = vpack.c.bf16 %v1045_v53, %v1045_v53  ;;  %v1367_v53 = vld [vmem:[%s2132_s2 + $0x48] sm:$0xff]  }
 0x13d   :  { %v1300_v4 = vpack.c.bf16 %v1046_v0, %v1046_v0  ;;  %v891_v6 = vadd.f32 %v845_v1, %v65_v60  ;;  %v848_v7 = vadd.f32 %v1527_v2, %v1439_v61  ;;  %v1349_v0 = vunpack.c.l.bf16 %v1367_v53 }
 0x13e   :  { %1166 = vst.msk [vmem:[%s2133_s4 + $0x30] sm:$0xf] %vm1153_vm1, %v1299_v63  ;;  %v1440_v9 = vpop.f32.mrb[36].mxu0 }
 0x13f   :  { %v941_v8 = vld [vmem:[#allocation2 + $0x70] sm:$0xff]  ;;  %1167 = vst.msk [vmem:[%s2133_s4 + $0x34] sm:$0xf] %vm1153_vm1, %v1300_v4  ;;  %v892_v12 = vadd.f32 %v848_v7, %v66_v3  ;;  %v1528_v13 = vpop.f32.mrb[36].mxu1  ;;  %v1441_v14 = vpop.f32.mrb[37].mxu0 }
 0x140   :  { %v1023_v10 = vmul.f32 %v1952_v54, %v941_v8  ;;  %916 = vst.msk [vmem:[#allocation2 + $0x80] sm:$0xff] %vm24_vm0, %v891_v6  ;;  %v942_v15 = vld [vmem:[#allocation2 + $0x78] sm:$0xff]  ;;  %v1442_v16 = vadd.f32 %v1441_v14, %v1440_v9  ;;  %v1529_v17 = vpop.f32.mrb[37].mxu1  ;;  %v1443_v18 = vpop.f32.mrb[38].mxu0  ;;  %v1350_v6 = vunpack.c.h.bf16 %v1367_v53 }
 0x141   :  { %v1024_v20 = vmul.f32 %v1952_v54, %v942_v15  ;;  %917 = vst.msk [vmem:[#allocation2 + $0x88] sm:$0xff] %vm24_vm0, %v892_v12  ;;  %v1530_v21 = vadd.f32 %v1529_v17, %v1528_v13  ;;  %v1531_v22 = vpop.f32.mrb[38].mxu1  ;;  %v1444_v23 = vpop.f32.mrb[39].mxu0 }
 0x142   :  { %v1047_v19 = vadd.f32 %v1341_v5, %v1023_v10  ;;  %v1445_v26 = vadd.f32 %v1444_v23, %v1443_v18  ;;  %v1532_v27 = vpop.f32.mrb[39].mxu1 }
 0x143   :  { %v1048_v29 = vadd.f32 %v1342_v11, %v1024_v20  ;;  %v853_v30 = vadd.f32 %v1530_v21, %v1442_v16  ;;  %v1533_v31 = vadd.f32 %v1532_v27, %v1531_v22  ;;  %v71_v20 = vld [vmem:[#allocation2 + $0xb0] sm:$0xff]  ;;  %v72_v27 = vld [vmem:[#allocation2 + $0xb8] sm:$0xff] }
 0x144   :  { %v1301_v28 = vpack.c.bf16 %v1047_v19, %v1047_v19  ;;  %v1368_v19 = vld [vmem:[%s2132_s2 + $0x50] sm:$0xff]  }
 0x145   :  { %v1302_v33 = vpack.c.bf16 %v1048_v29, %v1048_v29  ;;  %v893_v35 = vadd.f32 %v853_v30, %v67_v25  ;;  %v856_v36 = vadd.f32 %v1533_v31, %v1445_v26  ;;  %v1353_v29 = vunpack.c.l.bf16 %v1368_v19 }
 0x146   :  { %1168 = vst.msk [vmem:[%s2133_s4 + $0x38] sm:$0xf] %vm1153_vm1, %v1301_v28  ;;  %v1446_v38 = vpop.f32.mrb[40].mxu0 }
 0x147   :  { %v943_v37 = vld [vmem:[#allocation2 + $0x80] sm:$0xff]  ;;  %1169 = vst.msk [vmem:[%s2133_s4 + $0x3c] sm:$0xf] %vm1153_vm1, %v1302_v33  ;;  %v894_v41 = vadd.f32 %v856_v36, %v68_v32  ;;  %v1534_v42 = vpop.f32.mrb[40].mxu1  ;;  %v1447_v43 = vpop.f32.mrb[41].mxu0 }
 0x148   :  { %v1025_v39 = vmul.f32 %v1952_v54, %v943_v37  ;;  %918 = vst.msk [vmem:[#allocation2 + $0x90] sm:$0xff] %vm24_vm0, %v893_v35  ;;  %v944_v44 = vld [vmem:[#allocation2 + $0x88] sm:$0xff]  ;;  %v1448_v45 = vadd.f32 %v1447_v43, %v1446_v38  ;;  %v1535_v46 = vpop.f32.mrb[41].mxu1  ;;  %v1449_v47 = vpop.f32.mrb[42].mxu0 }
 0x149   :  { %v1026_v49 = vmul.f32 %v1952_v54, %v944_v44  ;;  %919 = vst.msk [vmem:[#allocation2 + $0x98] sm:$0xff] %vm24_vm0, %v894_v41  ;;  %v1536_v50 = vadd.f32 %v1535_v46, %v1534_v42  ;;  %v1537_v51 = vpop.f32.mrb[42].mxu1  ;;  %v1450_v52 = vpop.f32.mrb[43].mxu0 }
 0x14a   :  { %v1049_v48 = vadd.f32 %v1345_v34, %v1025_v39  ;;  %v1451_v56 = vadd.f32 %v1450_v52, %v1449_v47  ;;  %v1538_v57 = vpop.f32.mrb[43].mxu1  ;;  %v1354_v34 = vunpack.c.h.bf16 %v1368_v19  ;;  %v1369_v39 = vld [vmem:[%s2132_s2 + $0x58] sm:$0xff]  }
 0x14b   :  { %v1050_v59 = vadd.f32 %v1346_v40, %v1026_v49  ;;  %v861_v60 = vadd.f32 %v1536_v50, %v1448_v45  ;;  %v1539_v61 = vadd.f32 %v1538_v57, %v1537_v51  ;;  %v1357_v43 = vunpack.c.l.bf16 %v1369_v39 }
 0x14c   :  { %v1303_v58 = vpack.c.bf16 %v1049_v48, %v1049_v48  ;;  %v1358_v46 = vunpack.c.h.bf16 %v1369_v39 }
 0x14d   :  { %v1304_v63 = vpack.c.bf16 %v1050_v59, %v1050_v59  ;;  %v895_v1 = vadd.f32 %v861_v60, %v69_v55  ;;  %v864_v2 = vadd.f32 %v1539_v61, %v1451_v56 }
 0x14e   :  { %1170 = vst.msk [vmem:[%s2133_s4 + $0x40] sm:$0xf] %vm1153_vm1, %v1303_v58  ;;  %v1452_v4 = vpop.f32.mrb[44].mxu0 }
 0x14f   :  { %v945_v3 = vld [vmem:[#allocation2 + $0x90] sm:$0xff]  ;;  %1171 = vst.msk [vmem:[%s2133_s4 + $0x44] sm:$0xf] %vm1153_vm1, %v1304_v63  ;;  %v896_v7 = vadd.f32 %v864_v2, %v70_v62  ;;  %v1540_v8 = vpop.f32.mrb[44].mxu1  ;;  %v1453_v9 = vpop.f32.mrb[45].mxu0 }
 0x150   :  { %v1027_v5 = vmul.f32 %v1952_v54, %v945_v3  ;;  %920 = vst.msk [vmem:[#allocation2 + $0xa0] sm:$0xff] %vm24_vm0, %v895_v1  ;;  %v946_v10 = vld [vmem:[#allocation2 + $0x98] sm:$0xff]  ;;  %v1454_v11 = vadd.f32 %v1453_v9, %v1452_v4  ;;  %v1541_v12 = vpop.f32.mrb[45].mxu1  ;;  %v1455_v13 = vpop.f32.mrb[46].mxu0 }
 0x151   :  { %v1028_v15 = vmul.f32 %v1952_v54, %v946_v10  ;;  %921 = vst.msk [vmem:[#allocation2 + $0xa8] sm:$0xff] %vm24_vm0, %v896_v7  ;;  %v1542_v16 = vadd.f32 %v1541_v12, %v1540_v8  ;;  %v1543_v17 = vpop.f32.mrb[46].mxu1  ;;  %v1456_v18 = vpop.f32.mrb[47].mxu0 }
 0x152   :  { %v1051_v14 = vadd.f32 %v1349_v0, %v1027_v5  ;;  %v1457_v21 = vadd.f32 %v1456_v18, %v1455_v13  ;;  %v1544_v22 = vpop.f32.mrb[47].mxu1 }
 0x153   :  { %v1052_v24 = vadd.f32 %v1350_v6, %v1028_v15  ;;  %v869_v25 = vadd.f32 %v1542_v16, %v1454_v11  ;;  %v1545_v26 = vadd.f32 %v1544_v22, %v1543_v17 }
 0x154   :  { %v1305_v23 = vpack.c.bf16 %v1051_v14, %v1051_v14 }
 0x155   :  { %v1306_v28 = vpack.c.bf16 %v1052_v24, %v1052_v24  ;;  %v897_v30 = vadd.f32 %v869_v25, %v71_v20  ;;  %v872_v31 = vadd.f32 %v1545_v26, %v1457_v21 }
 0x156   :  { %1172 = vst.msk [vmem:[%s2133_s4 + $0x48] sm:$0xf] %vm1153_vm1, %v1305_v23 }
 0x157   :  { %v947_v32 = vld [vmem:[#allocation2 + $0xa0] sm:$0xff]  ;;  %1173 = vst.msk [vmem:[%s2133_s4 + $0x4c] sm:$0xf] %vm1153_vm1, %v1306_v28  ;;  %v898_v35 = vadd.f32 %v872_v31, %v72_v27 }
 0x158   :  { %v1029_v33 = vmul.f32 %v1952_v54, %v947_v32  ;;  %922 = vst.msk [vmem:[#allocation2 + $0xb0] sm:$0xff] %vm24_vm0, %v897_v30  ;;  %v948_v36 = vld [vmem:[#allocation2 + $0xa8] sm:$0xff] }
 0x159   :  { %v1030_v38 = vmul.f32 %v1952_v54, %v948_v36  ;;  %923 = vst.msk [vmem:[#allocation2 + $0xb8] sm:$0xff] %vm24_vm0, %v898_v35 }
 0x15a   :  { %v1053_v37 = vadd.f32 %v1353_v29, %v1029_v33 }
 0x15b   :  { %v1054_v41 = vadd.f32 %v1354_v34, %v1030_v38 }
 0x15c   :  { %v1307_v40 = vpack.c.bf16 %v1053_v37, %v1053_v37 }
 0x15d   :  { %v1308_v42 = vpack.c.bf16 %v1054_v41, %v1054_v41 }
 0x15e   :  { %1174 = vst.msk [vmem:[%s2133_s4 + $0x50] sm:$0xf] %vm1153_vm1, %v1307_v40 }
 0x15f   :  { %v949_v44 = vld [vmem:[#allocation2 + $0xb0] sm:$0xff]  ;;  %1175 = vst.msk [vmem:[%s2133_s4 + $0x54] sm:$0xf] %vm1153_vm1, %v1308_v42 }
 0x160   :  { %v1031_v45 = vmul.f32 %v1952_v54, %v949_v44  ;;  %v950_v47 = vld [vmem:[#allocation2 + $0xb8] sm:$0xff] }
 0x161   :  { %v1032_v49 = vmul.f32 %v1952_v54, %v950_v47 }
 0x162   :  { %v1055_v48 = vadd.f32 %v1357_v43, %v1031_v45 }
 0x163   :  { %v1056_v51 = vadd.f32 %v1358_v46, %v1032_v49 }
 0x164   :  { %v1309_v50 = vpack.c.bf16 %v1055_v48, %v1055_v48 }
 0x165   :  { %v1310_v52 = vpack.c.bf16 %v1056_v51, %v1056_v51 }
 0x166   :  { %1176 = vst.msk [vmem:[%s2133_s4 + $0x58] sm:$0xf] %vm1153_vm1, %v1309_v50 }
 0x167   :  { %1177 = vst.msk [vmem:[%s2133_s4 + $0x5c] sm:$0xf] %vm1153_vm1, %v1310_v52 }

// kernel: neuron_mllama_vision_forward.32
= control target key start
LH: loop header
LB: loop body
LE: loop exit
PB: predicated region body
PF: predicated region fallthrough
CT: control target
= control target key end

     0   :  { %vm167_vm0 = vcmask 261120   ;;  %v410_v14 = vlaneseq  ;;  %s2200_s1 = inlined_call_operand.vmem [shape: bf16[32,128], index: 1, kind: input, shape index: {}]   ;;  %s2201_s0 = inlined_call_operand.vmem [shape: bf16[192,32], index: 0, kind: input, shape index: {}]   ;;  %s2202_s2 = inlined_call_operand.vmem [shape: bf16[1,128], index: 2, kind: input, shape index: {}]   ;;  %s2203_s3 = inlined_call_operand.vmem [shape: bf16[192,128], index: 3, kind: output, shape index: {}]  }
   0x1   :  { %v1378_v0 = vld [vmem:[%s2200_s1] sm:$0xff]   ;;  %v1379_v1 = vld [vmem:[%s2200_s1 + $0x8] sm:$0xff]   ;;  %v1381_v3 = vld [vmem:[%s2201_s0 + $0x30] sm:$0xff]  }
   0x2   :  { %1345 = vmatprep.subr.bf16.mxu0 %v1378_v0  ;;  %1373 = vmatprep.subr.bf16.mxu1 %v1378_v0  ;;  %v1380_v2 = vld [vmem:[%s2201_s0] sm:$0xff]   ;;  %v1382_v4 = vld [vmem:[%s2201_s0 + $0x8] sm:$0xff]   ;;  %v1383_v5 = vld [vmem:[%s2201_s0 + $0x38] sm:$0xff]   ;;  %v411_v15 = vshrl.u32 %v410_v14, 7 }
   0x3   :  { %1346 = vmatpush3.bf16.msra.mxu0 %v1378_v0  ;;  %1375 = vmatpush3.bf16.msra.mxu1 %v1378_v0  ;;  %v1384_v6 = vld [vmem:[%s2201_s0 + $0x10] sm:$0xff]   ;;  %v1385_v7 = vld [vmem:[%s2201_s0 + $0x40] sm:$0xff]   ;;  %v1386_v8 = vld [vmem:[%s2201_s0 + $0x18] sm:$0xff]  }
   0x4   :  { %1347 = vmatprep.subr.bf16.mxu0 %v1379_v1  ;;  %1374 = vmatprep.subr.bf16.mxu1 %v1379_v1  ;;  %v1387_v9 = vld [vmem:[%s2201_s0 + $0x48] sm:$0xff]   ;;  %v1388_v10 = vld [vmem:[%s2201_s0 + $0x20] sm:$0xff]   ;;  %v1389_v11 = vld [vmem:[%s2201_s0 + $0x50] sm:$0xff]   ;;  %v412_v18 = vsub.s32 0, %v411_v15 }
   0x5   :  { %1349 = vmatprep.mubr.msk.bf16.mxu0 %vm167_vm0, %v1380_v2  ;;  %1361 = vmatprep.mubr.msk.bf16.mxu1 %vm167_vm0, %v1381_v3  ;;  %v1390_v12 = vld [vmem:[%s2201_s0 + $0x28] sm:$0xff]   ;;  %v1391_v13 = vld [vmem:[%s2201_s0 + $0x58] sm:$0xff]   ;;  %v408_v16 = vld [vmem:[%s2202_s2] sm:$0x1] }
   0x6   :  { %v409_v17 = vunpack.c.l.bf16 %v408_v16 }
   0x7   :  { %1348 = vmatpush3.bf16.msra.mxu0 %v1379_v1  ;;  %1376 = vmatpush3.bf16.msra.mxu1 %v1379_v1 }
   0x8   :  { %v1566_v19 = vrot.slane %v409_v17, %v412_v18 }
   0xa   :  { %1350 = vmatmul.mubr.msk.bf16.vlgmr.msra.gmra.mrb[0].mxu0 %vm167_vm0, %v1382_v4  ;;  %1362 = vmatmul.mubr.msk.bf16.vlgmr.msra.gmra.mrb[0].mxu1 %vm167_vm0, %v1383_v5 }
   0xb   :  { %1353 = vmatprep.mubr.msk.bf16.mxu0 %vm167_vm0, %v1384_v6  ;;  %1365 = vmatprep.mubr.msk.bf16.mxu1 %vm167_vm0, %v1385_v7 }
  0x12   :  { %1354 = vmatmul.mubr.msk.bf16.gmra.mrb[4].mxu0 %vm167_vm0, %v1386_v8  ;;  %1366 = vmatmul.mubr.msk.bf16.gmra.mrb[4].mxu1 %vm167_vm0, %v1387_v9  ;;  %v2204_v8 = vmov -1.0  }
  0x13   :  { %1357 = vmatprep.mubr.msk.bf16.mxu0 %vm167_vm0, %v1388_v10  ;;  %1369 = vmatprep.mubr.msk.bf16.mxu1 %vm167_vm0, %v1389_v11 }
  0x1a   :  { %1358 = vmatmul.mubr.msk.bf16.gmra.mrb[8].mxu0 %vm167_vm0, %v1390_v12  ;;  %1370 = vmatmul.mubr.msk.bf16.gmra.mrb[8].mxu1 %vm167_vm0, %v1391_v13 }
  0xdd   :  { %v1351_v20 = vpop.f32.mrb[0].mxu0  ;;  %v1363_v21 = vpop.f32.mrb[0].mxu1 }
  0xde   :  { %v416_v22 = vadd.f32 %v1351_v20, %v1566_v19  ;;  %v428_v23 = vadd.f32 %v1363_v21, %v1566_v19  ;;  %v238_v24 = vpop.f32.mrb[1].mxu0  ;;  %v286_v25 = vpop.f32.mrb[1].mxu1 }
  0xdf   :  { %v414_v26 = vadd.f32 %v1566_v19, %v238_v24  ;;  %v1572_v27 = vadd.f32 %v1566_v19, %v286_v25  ;;  %v1352_v28 = vpop.f32.mrb[2].mxu0  ;;  %v1364_v29 = vpop.f32.mrb[2].mxu1 }
  0xe0   :  { %v464_v30 = vmul.f32 0.70710677, %v416_v22  ;;  %v1574_v31 = vmul.f32 0.70710677, %v428_v23  ;;  %v241_v37 = vpop.f32.mrb[3].mxu0  ;;  %v289_v42 = vpop.f32.mrb[3].mxu1  ;;  %v417_v52 = vadd.f32 %v1352_v28, %v1566_v19  ;;  %v1609_v61 = vadd.f32 %v1364_v29, %v1566_v19 }
  0xe1   :  { %v1576_v32 = vmul.f32 0.70710677, %v414_v26  ;;  %v1581_v36 = vmul.f32 0.70710677, %v1572_v27  ;;  %v1602_v58 = vmul.f32 0.5, %v416_v22  ;;  %v1604_v59 = vmul.f32 0.5, %v428_v23 }
  0xe2   :  { %v536_v33 = vand.u32 2147483647, %v464_v30  ;;  %v548_v34 = vand.u32 2147483647, %v1574_v31  ;;  %v1606_v60 = vmul.f32 0.70710677, %v417_v52  ;;  %v1616_v1 = vadd.f32 %v1566_v19, %v241_v37 }
  0xe3   :  { %v534_v35 = vand.u32 2147483647, %v1576_v32  ;;  %v1588_v47 = vand.u32 2147483647, %v1581_v36  ;;  %vm488_vm1 = vcmp.ge.f32.partialorder %v464_v30, 0.0  ;;  %v1613_v63 = vmul.f32 0.5, %v414_v26 }
  0xe4   :  { %v560_v38 = vmul.f32 0.3275911, %v536_v33  ;;  %v572_v39 = vmul.f32 0.3275911, %v548_v34  ;;  %v848_v40 = vsub.f32 0.0, %v536_v33  ;;  %v860_v50 = vsub.f32 0.0, %v548_v34 }
  0xe5   :  { %v558_v41 = vmul.f32 0.3275911, %v534_v35  ;;  %v1583_v45 = vpop.f32.mrb[4].mxu0  ;;  %v1585_v46 = vpop.f32.mrb[4].mxu1  ;;  %v570_v56 = vmul.f32 0.3275911, %v1588_v47  ;;  %v1643_v20 = vadd.f32 %v1566_v19, %v289_v42 }
  0xe6   :  { %v584_v43 = vadd.f32 1.0, %v560_v38  ;;  %v596_v44 = vadd.f32 1.0, %v572_v39  ;;  %v1590_v48 = vpop.f32.mrb[5].mxu0  ;;  %v1592_v49 = vpop.f32.mrb[5].mxu1  ;;  %v872_v55 = vmul.f32 %v848_v40, %v536_v33  ;;  %v884_v2 = vmul.f32 %v860_v50, %v548_v34 }
  0xe7   :  { %v582_v51 = vadd.f32 1.0, %v558_v41  ;;  %v1595_v53 = vpop.f32.mrb[6].mxu0  ;;  %v1597_v54 = vpop.f32.mrb[6].mxu1  ;;  %v594_v0 = vadd.f32 1.0, %v570_v56  ;;  %v846_v3 = vsub.f32 0.0, %v534_v35  ;;  %vm500_vm2 = vcmp.ge.f32.partialorder %v1574_v31, 0.0 }
  0xe8   :  { %1392 = vrcp.f32 %v584_v43  ;;  %v1600_v57 = vpop.f32.mrb[7].mxu0  ;;  %v1611_v62 = vpop.f32.mrb[7].mxu1  ;;  %v537_v4 = vand.u32 2147483647, %v1606_v60  ;;  %v898_v5 = vmul.f32 1.442695, %v872_v55 }
  0xe9   :  { %1394 = vrcp.f32 %v596_v44  ;;  %v1621_v6 = vmul.f32 0.70710677, %v1609_v61  ;;  %v1626_v9 = vsel %vm488_vm1, 1.0, %v2204_v8  ;;  %vm486_vm3 = vcmp.ge.f32.partialorder %v1576_v32, 0.0 }
  0xea   :  { %1396 = vrcp.f32 %v582_v51  ;;  %v561_v10 = vmul.f32 0.3275911, %v537_v4  ;;  %vm498_vm4 = vcmp.ge.f32.partialorder %v1581_v36, 0.0  ;;  %v1638_v14 = vmul.f32 0.70710677, %v1616_v1 }
  0xeb   :  { %1398 = vrcp.f32 %v594_v0  ;;  %v1635_v13 = vand.u32 2147483647, %v1621_v6  ;;  %v922_v16 = vmul.f32 1.442695, %v884_v2  ;;  %v870_v17 = vmul.f32 %v846_v3, %v534_v35 }
  0xec   :  { %v585_v18 = vadd.f32 1.0, %v561_v10  ;;  %1400 = vpow2.f32 %v898_v5  ;;  %v1652_v23 = vsel %vm500_vm2, 1.0, %v2204_v8  ;;  %v1656_v25 = vand.u32 2147483647, %v1638_v14 }
  0xed   :  { %v1623_v7 = vpop.f32.mrb[8].mxu0  ;;  %v1629_v11 = vpop.f32.mrb[8].mxu1  ;;  %v573_v24 = vmul.f32 0.3275911, %v1635_v13  ;;  %v1663_v28 = vsel %vm486_vm3, 1.0, %v2204_v8  ;;  %v1668_v29 = vsel %vm498_vm4, 1.0, %v2204_v8 }
  0xee   :  { %v1631_v12 = vpop.f32.mrb[9].mxu0  ;;  %v1640_v15 = vpop.f32.mrb[9].mxu1  ;;  %v858_v30 = vsub.f32 0.0, %v1588_v47  ;;  %1402 = vrcp.f32 %v585_v18  ;;  %v849_v37 = vsub.f32 0.0, %v537_v4  ;;  %v559_v38 = vmul.f32 0.3275911, %v1656_v25 }
  0xef   :  { %2206 = vst [vmem:[#allocation3_spill] sm:$0xff] %v1640_v15  ;;  %v1645_v21 = vpop.f32.mrb[10].mxu0  ;;  %v1647_v22 = vpop.f32.mrb[10].mxu1  ;;  %v597_v32 = vadd.f32 1.0, %v573_v24  ;;  %1404 = vpow2.f32 %v922_v16  ;;  %v894_v36 = vmul.f32 1.442695, %v870_v17 }
  0xf0   :  { %2207 = vst [vmem:[#allocation4_spill] sm:$0xff] %v1645_v21  ;;  %2208 = vst [vmem:[#allocation5_spill] sm:$0xff] %v1647_v22  ;;  %v1671_v31 = vpop.f32.mrb[11].mxu0  ;;  %v1673_v33 = vpop.f32.mrb[11].mxu1  ;;  %v1681_v40 = vmul.f32 0.70710677, %v1643_v20  ;;  %v882_v51 = vmul.f32 %v858_v30, %v1588_v47  ;;  %v873_v2 = vmul.f32 %v849_v37, %v537_v4 }
  0xf1   :  { %2209 = vst [vmem:[#allocation6_spill] sm:$0xff] %v1671_v31  ;;  %2210 = vst [vmem:[#allocation7_spill] sm:$0xff] %v1673_v33  ;;  %v1683_v42 = vmul.f32 0.5, %v417_v52  ;;  %1406 = vrcp.f32 %v597_v32  ;;  %v583_v43 = vadd.f32 1.0, %v559_v38  ;;  %vm489_vm5 = vcmp.ge.f32.partialorder %v1606_v60, 0.0 }
  0xf2   :  { %v1658_v26 = vpop.eup %1392  ;;  %v1690_v55 = vand.u32 2147483647, %v1681_v40  ;;  %v1695_v52 = vmul.f32 0.5, %v1609_v61  ;;  %v861_v10 = vsub.f32 0.0, %v1635_v13  ;;  %v918_v30 = vmul.f32 1.442695, %v882_v51 }
  0xf3   :  { %v1675_v34 = vpop.eup %1394  ;;  %v632_v35 = vmul.f32 1.0614054, %v1658_v26  ;;  %1408 = vrcp.f32 %v583_v43  ;;  %v1705_v61 = vadd.f32 %v1583_v45, %v1566_v19  ;;  %v900_v43 = vmul.f32 1.442695, %v873_v2 }
  0xf4   :  { %v644_v39 = vmul.f32 1.0614054, %v1675_v34  ;;  %v1685_v44 = vpop.eup %1396  ;;  %v571_v47 = vmul.f32 0.3275911, %v1690_v55  ;;  %1410 = vpow2.f32 %v894_v36  ;;  %v847_v60 = vsub.f32 0.0, %v1656_v25 }
  0xf5   :  { %v656_v41 = vadd.f32 -1.4531521, %v632_v35  ;;  %v630_v0 = vmul.f32 1.0614054, %v1685_v44  ;;  %v1697_v3 = vpop.eup %1398  ;;  %vm501_vm6 = vcmp.ge.f32.partialorder %v1621_v6, 0.0  ;;  %vm487_vm7 = vcmp.ge.f32.partialorder %v1638_v14, 0.0 }
  0xf6   :  { %v668_v50 = vadd.f32 -1.4531521, %v644_v39  ;;  %v642_v18 = vmul.f32 1.0614054, %v1697_v3  ;;  %v595_v4 = vadd.f32 1.0, %v571_v47  ;;  %v1401_v35 = vpop.eup %1400  ;;  %v1712_v39 = vsel %vm489_vm5, 1.0, %v2204_v8 }
  0xf7   :  { %v680_v56 = vmul.f32 %v1658_v26, %v656_v41  ;;  %v654_v17 = vadd.f32 -1.4531521, %v630_v0  ;;  %vm499_vm8 = vcmp.ge.f32.partialorder %v1681_v40, 0.0  ;;  %v450_v40 = vmul.f32 0.5, %v1572_v27 }
  0xf8   :  { %v692_v5 = vmul.f32 %v1675_v34, %v668_v50  ;;  %v666_v38 = vadd.f32 -1.4531521, %v642_v18  ;;  %v1714_v36 = vpop.eup %1402  ;;  %v885_v50 = vmul.f32 %v861_v10, %v1635_v13  ;;  %1412 = vrcp.f32 %v595_v4 }
  0xf9   :  { %v704_v16 = vadd.f32 1.4214138, %v680_v56  ;;  %v678_v32 = vmul.f32 %v1685_v44, %v654_v17  ;;  %v633_v0 = vmul.f32 1.0614054, %v1714_v36  ;;  %1414 = vpow2.f32 %v918_v30 }
  0xfa   :  { %v716_v24 = vadd.f32 1.4214138, %v692_v5  ;;  %v690_v56 = vmul.f32 %v1697_v3, %v666_v38  ;;  %v1405_v5 = vpop.eup %1404  ;;  %v859_v30 = vsub.f32 0.0, %v1690_v55  ;;  %1416 = vpow2.f32 %v900_v43 }
  0xfb   :  { %v728_v37 = vmul.f32 %v1658_v26, %v704_v16  ;;  %v702_v51 = vadd.f32 1.4214138, %v678_v32  ;;  %v1722_v16 = vmul.f32 0.70710677, %v1705_v61  ;;  %v1724_v17 = vpop.eup %1406  ;;  %v657_v18 = vadd.f32 -1.4531521, %v633_v0 }
  0xfc   :  { %v740_v41 = vmul.f32 %v1675_v34, %v716_v24  ;;  %v714_v10 = vadd.f32 1.4214138, %v690_v56  ;;  %v645_v4 = vmul.f32 1.0614054, %v1724_v17  ;;  %v883_v22 = vmul.f32 %v859_v30, %v1690_v55 }
  0xfd   :  { %v752_v45 = vadd.f32 -0.28449672, %v728_v37  ;;  %v726_v13 = vmul.f32 %v1685_v44, %v702_v51  ;;  %v924_v37 = vmul.f32 1.442695, %v885_v50  ;;  %v681_v8 = vmul.f32 %v1714_v36, %v657_v18  ;;  %v1733_v33 = vpop.eup %1408 }
  0xfe   :  { %v764_v47 = vadd.f32 -0.28449672, %v740_v41  ;;  %v738_v41 = vmul.f32 %v1697_v3, %v714_v10  ;;  %v669_v31 = vadd.f32 -1.4531521, %v645_v4  ;;  %v871_v51 = vmul.f32 %v847_v60, %v1656_v25  ;;  %v1411_v0 = vpop.eup %1410 }
  0xff   :  { %v776_v2 = vmul.f32 %v1658_v26, %v752_v45  ;;  %v750_v38 = vadd.f32 -0.28449672, %v726_v13  ;;  %v1737_v56 = vand.u32 2147483647, %v1722_v16  ;;  %v705_v13 = vadd.f32 1.4214138, %v681_v8 }
 0x100   :  { %v788_v24 = vmul.f32 %v1675_v34, %v764_v47  ;;  %v693_v18 = vmul.f32 %v1724_v17, %v669_v31  ;;  %1418 = vpow2.f32 %v924_v37  ;;  %v920_v37 = vmul.f32 1.442695, %v883_v22 }
 0x101   :  { %v800_v32 = vadd.f32 0.2548296, %v776_v2  ;;  %v774_v47 = vmul.f32 %v1685_v44, %v750_v38  ;;  %v762_v2 = vadd.f32 -0.28449672, %v738_v41  ;;  %v729_v60 = vmul.f32 %v1714_v36, %v705_v13 }
 0x102   :  { %v812_v45 = vadd.f32 0.2548296, %v788_v24  ;;  %v631_v24 = vmul.f32 1.0614054, %v1733_v33  ;;  %v1747_v21 = vpop.eup %1412  ;;  %v564_v31 = vmul.f32 0.3275911, %v1737_v56 }
 0x103   :  { %v824_v50 = vmul.f32 %v1658_v26, %v800_v32  ;;  %v798_v4 = vadd.f32 0.2548296, %v774_v47  ;;  %v786_v25 = vmul.f32 %v1697_v3, %v762_v2  ;;  %v717_v26 = vadd.f32 1.4214138, %v693_v18  ;;  %v1415_v38 = vpop.eup %1414 }
 0x104   :  { %v836_v10 = vmul.f32 %v1675_v34, %v812_v45  ;;  %v655_v8 = vadd.f32 -1.4531521, %v631_v24  ;;  %v753_v43 = vadd.f32 -0.28449672, %v729_v60  ;;  %v896_v32 = vmul.f32 1.442695, %v871_v51  ;;  %v1417_v22 = vpop.eup %1416 }
 0x105   :  { %v944_v34 = vmul.f32 %v1401_v35, %v824_v50  ;;  %v741_v45 = vmul.f32 %v1724_v17, %v717_v26  ;;  %v643_v55 = vmul.f32 1.0614054, %v1747_v21  ;;  %v822_v30 = vmul.f32 %v1685_v44, %v798_v4 }
 0x106   :  { %v956_v41 = vmul.f32 %v1405_v5, %v836_v10  ;;  %v679_v47 = vmul.f32 %v1733_v33, %v655_v8  ;;  %v810_v2 = vadd.f32 0.2548296, %v786_v25  ;;  %v777_v13 = vmul.f32 %v1714_v36, %v753_v43 }
 0x107   :  { %v765_v18 = vadd.f32 -0.28449672, %v741_v45  ;;  %v667_v50 = vadd.f32 -1.4531521, %v643_v55  ;;  %v968_v51 = vsub.f32 1.0, %v944_v34  ;;  %1420 = vpow2.f32 %v896_v32 }
 0x108   :  { %v703_v35 = vadd.f32 1.4214138, %v679_v47  ;;  %v801_v24 = vadd.f32 0.2548296, %v777_v13  ;;  %v588_v60 = vadd.f32 1.0, %v564_v31  ;;  %v980_v5 = vsub.f32 1.0, %v956_v41 }
 0x109   :  { %v789_v10 = vmul.f32 %v1724_v17, %v765_v18  ;;  %v691_v8 = vmul.f32 %v1747_v21, %v667_v50  ;;  %v942_v15 = vmul.f32 %v1411_v0, %v822_v30  ;;  %v834_v44 = vmul.f32 %v1697_v3, %v810_v2 }
 0x10a   :  { %v727_v26 = vmul.f32 %v1733_v33, %v703_v35  ;;  %v825_v4 = vmul.f32 %v1714_v36, %v801_v24  ;;  %1422 = vpow2.f32 %v920_v37  ;;  %v992_v32 = vmul.f32 %v968_v51, %v1626_v9  ;;  %v1419_v0 = vpop.eup %1418 }
 0x10b   :  { %v813_v25 = vadd.f32 0.2548296, %v789_v10  ;;  %v715_v43 = vadd.f32 1.4214138, %v691_v8  ;;  %1424 = vrcp.f32 %v588_v60  ;;  %v1765_v41 = vadd.f32 %v1585_v46, %v1566_v19 }
 0x10c   :  { %v751_v34 = vadd.f32 -0.28449672, %v727_v26  ;;  %v945_v31 = vmul.f32 %v1417_v22, %v825_v4  ;;  %v1004_v3 = vmul.f32 %v980_v5, %v1652_v23  ;;  %v966_v55 = vsub.f32 1.0, %v942_v15 }
 0x10d   :  { %v837_v36 = vmul.f32 %v1724_v17, %v813_v25  ;;  %v739_v47 = vmul.f32 %v1747_v21, %v715_v43  ;;  %v954_v30 = vmul.f32 %v1415_v38, %v834_v44  ;;  %v2211_v13 = vmov -1.0  }
 0x10e   :  { %v775_v45 = vmul.f32 %v1733_v33, %v751_v34  ;;  %v969_v2 = vsub.f32 1.0, %v945_v31  ;;  %v525_v9 = vsel %vm501_vm6, 1.0, %v2211_v13  ;;  %v511_v46 = vsel %vm487_vm7, 1.0, %v2211_v13 }
 0x10f   :  { %v957_v37 = vmul.f32 %v1419_v0, %v837_v36  ;;  %v763_v23 = vadd.f32 -0.28449672, %v739_v47  ;;  %v1016_v35 = vadd.f32 1.0, %v992_v32  ;;  %v1779_v50 = vmul.f32 0.70710677, %v1765_v41 }
 0x110   :  { %v799_v18 = vadd.f32 0.2548296, %v775_v45  ;;  %v993_v17 = vmul.f32 %v969_v2, %v1712_v39  ;;  %v1783_v15 = vadd.f32 %v1566_v19, %v1590_v48  ;;  %v1028_v38 = vadd.f32 1.0, %v1004_v3 }
 0x111   :  { %v981_v6 = vsub.f32 1.0, %v957_v37  ;;  %v787_v24 = vmul.f32 %v1747_v21, %v763_v23  ;;  %v1421_v14 = vpop.eup %1420  ;;  %v990_v60 = vmul.f32 %v966_v55, %v1663_v28  ;;  %v978_v5 = vsub.f32 1.0, %v954_v30 }
 0x112   :  { %v823_v51 = vmul.f32 %v1733_v33, %v799_v18  ;;  %v1017_v10 = vadd.f32 1.0, %v993_v17  ;;  %v1789_v39 = vand.u32 2147483647, %v1779_v50  ;;  %v1040_v44 = vmul.f32 %v1016_v35, %v1602_v58 }
 0x113   :  { %v1005_v26 = vmul.f32 %v981_v6, %v525_v9  ;;  %v811_v48 = vadd.f32 0.2548296, %v787_v24  ;;  %v1796_v22 = vmul.f32 0.70710677, %v1783_v15  ;;  %v1052_v25 = vmul.f32 %v1028_v38, %v1604_v59 }
 0x114   :  { %v943_v8 = vmul.f32 %v1421_v14, %v823_v51  ;;  %v1041_v4 = vmul.f32 %v1017_v10, %v1683_v42  ;;  %v576_v33 = vmul.f32 0.3275911, %v1789_v39  ;;  %v1423_v28 = vpop.eup %1422  ;;  %v1014_v0 = vadd.f32 1.0, %v990_v60 }
 0x115   :  { %v1029_v34 = vadd.f32 1.0, %v1005_v26  ;;  %v835_v32 = vmul.f32 %v1747_v21, %v811_v48  ;;  %v1800_v31 = vpop.eup %1424  ;;  %v1002_v3 = vmul.f32 %v978_v5, %v1668_v29  ;;  %v439_v59 = vmul.f32 0.5, %v1616_v1 }
 0x116   :  { %v967_v43 = vsub.f32 1.0, %v943_v8  ;;  %v1268_v58 = vpack.c.bf16 %v1041_v4, %v1040_v44  ;;  %v600_v36 = vadd.f32 1.0, %v576_v33  ;;  %v636_v55 = vmul.f32 1.0614054, %v1800_v31 }
 0x117   :  { %v1053_v42 = vmul.f32 %v1029_v34, %v1695_v52  ;;  %v955_v47 = vmul.f32 %v1423_v28, %v835_v32  ;;  %v1810_v21 = vand.u32 2147483647, %v1796_v22  ;;  %v1814_v29 = vadd.f32 %v1566_v19, %v1592_v49 }
 0x118   :  { %v991_v45 = vmul.f32 %v967_v43, %v511_v46  ;;  %1320 = vst [vmem:[%s2203_s3 + $0x8] sm:$0xff] %v1268_v58   ;;  %1426 = vrcp.f32 %v600_v36  ;;  %v660_v9 = vadd.f32 -1.4531521, %v636_v55  ;;  %v1038_v37 = vmul.f32 %v1014_v0, %v1613_v63 }
 0x119   :  { %v1298_v30 = vpack.c.bf16 %v1053_v42, %v1052_v25  ;;  %v979_v2 = vsub.f32 1.0, %v955_v47  ;;  %v1026_v46 = vadd.f32 1.0, %v1002_v3  ;;  %v523_v18 = vsel %vm499_vm8, 1.0, %v2211_v13 }
 0x11a   :  { %v1015_v52 = vadd.f32 1.0, %v991_v45  ;;  %v562_v1 = vmul.f32 0.3275911, %v1810_v21  ;;  %v684_v35 = vmul.f32 %v1800_v31, %v660_v9  ;;  %v1826_v17 = vmul.f32 0.70710677, %v1814_v29 }
 0x11b   :  { %1326 = vst [vmem:[%s2203_s3 + $0x38] sm:$0xff] %v1298_v30   ;;  %v1003_v49 = vmul.f32 %v979_v2, %v523_v18  ;;  %v1830_v63 = vadd.f32 %v1595_v53, %v1566_v19  ;;  %v451_v51 = vmul.f32 0.5, %v1643_v20  ;;  %v852_v14 = vsub.f32 0.0, %v1737_v56 }
 0x11c   :  { %v1039_v23 = vmul.f32 %v1015_v52, %v439_v59  ;;  %v586_v38 = vadd.f32 1.0, %v562_v1  ;;  %v1836_v60 = vand.u32 2147483647, %v1826_v17  ;;  %v1840_v5 = vadd.f32 %v1597_v54, %v1566_v19 }
 0x11d   :  { %v1027_v24 = vadd.f32 1.0, %v1003_v49  ;;  %v1050_v10 = vmul.f32 %v1026_v46, %v450_v40  ;;  %v708_v53 = vadd.f32 1.4214138, %v684_v35  ;;  %v1846_v20 = vmul.f32 0.70710677, %v1830_v63 }
 0x11e   :  { %v1263_v6 = vpack.c.bf16 %v1039_v23, %v1038_v37  ;;  %1428 = vrcp.f32 %v586_v38  ;;  %v574_v26 = vmul.f32 0.3275911, %v1836_v60  ;;  %vm492_vm9 = vcmp.ge.f32.partialorder %v1722_v16, 0.0 }
 0x11f   :  { %v1051_v27 = vmul.f32 %v1027_v24, %v451_v51  ;;  %v541_v48 = vand.u32 2147483647, %v1846_v20  ;;  %v1854_v4 = vmul.f32 0.70710677, %v1840_v5  ;;  %v732_v33 = vmul.f32 %v1800_v31, %v708_v53 }
 0x120   :  { %1264 = vst [vmem:[%s2203_s3] sm:$0xff] %v1263_v6   ;;  %v598_v54 = vadd.f32 1.0, %v574_v26  ;;  %v876_v28 = vmul.f32 %v852_v14, %v1737_v56  ;;  %v864_v43 = vsub.f32 0.0, %v1789_v39  ;;  %v1867_v3 = vmul.f32 0.5, %v1705_v61 }
 0x121   :  { %v1293_v8 = vpack.c.bf16 %v1051_v27, %v1050_v10  ;;  %v565_v34 = vmul.f32 0.3275911, %v541_v48  ;;  %v1864_v16 = vand.u32 2147483647, %v1854_v4  ;;  %v1870_v58 = vsel %vm492_vm9, 1.0, %v2211_v13 }
 0x122   :  { %v1850_v44 = vpop.eup %1426  ;;  %1430 = vrcp.f32 %v598_v54  ;;  %v756_v56 = vadd.f32 -0.28449672, %v732_v33  ;;  %v906_v42 = vmul.f32 1.442695, %v876_v28  ;;  %v888_v55 = vmul.f32 %v864_v43, %v1789_v39 }
 0x123   :  { %1325 = vst [vmem:[%s2203_s3 + $0x30] sm:$0xff] %v1293_v8   ;;  %v648_v25 = vmul.f32 1.0614054, %v1850_v44  ;;  %v589_v0 = vadd.f32 1.0, %v565_v34  ;;  %v577_v36 = vmul.f32 0.3275911, %v1864_v16  ;;  %v1879_v30 = vadd.f32 %v1566_v19, %v1600_v57 }
 0x124   :  { %v1883_v61 = vadd.f32 %v1566_v19, %v1611_v62  ;;  %v1886_v52 = vmul.f32 0.5, %v1765_v41  ;;  %v850_v37 = vsub.f32 0.0, %v1810_v21  ;;  %vm504_vm10 = vcmp.ge.f32.partialorder %v1779_v50, 0.0 }
 0x125   :  { %v672_v32 = vadd.f32 -1.4531521, %v648_v25  ;;  %1432 = vrcp.f32 %v589_v0  ;;  %v601_v59 = vadd.f32 1.0, %v577_v36  ;;  %vm490_vm11 = vcmp.ge.f32.partialorder %v1796_v22, 0.0 }
 0x126   :  { %v1893_v57 = vmul.f32 0.70710677, %v1879_v30  ;;  %v780_v39 = vmul.f32 %v1800_v31, %v756_v56  ;;  %v853_v41 = vsub.f32 0.0, %v541_v48  ;;  %v930_v18 = vmul.f32 1.442695, %v888_v55 }
 0x127   :  { %v696_v45 = vmul.f32 %v1850_v44, %v672_v32  ;;  %1434 = vrcp.f32 %v601_v59  ;;  %v1899_v23 = vmul.f32 0.70710677, %v1883_v61  ;;  %v1902_v50 = vsel %vm504_vm10, 1.0, %v2211_v13 }
 0x128   :  { %v1874_v47 = vpop.eup %1428  ;;  %1436 = vpow2.f32 %v906_v42  ;;  %v539_v1 = vand.u32 2147483647, %v1893_v57  ;;  %v874_v38 = vmul.f32 %v850_v37, %v1810_v21  ;;  %v1911_v6 = vsel %vm490_vm11, 1.0, %v2211_v13 }
 0x129   :  { %v720_v2 = vadd.f32 1.4214138, %v696_v45  ;;  %v634_v9 = vmul.f32 1.0614054, %v1874_v47  ;;  %v862_v51 = vsub.f32 0.0, %v1836_v60  ;;  %v877_v26 = vmul.f32 %v853_v41, %v541_v48 }
 0x12a   :  { %v563_v24 = vmul.f32 0.3275911, %v539_v1  ;;  %v1915_v14 = vand.u32 2147483647, %v1899_v23  ;;  %v804_v10 = vadd.f32 0.2548296, %v780_v39  ;;  %1438 = vpow2.f32 %v930_v18 }
 0x12b   :  { %v744_v62 = vmul.f32 %v1850_v44, %v720_v2  ;;  %v658_v46 = vadd.f32 -1.4531521, %v634_v9  ;;  %v865_v21 = vsub.f32 0.0, %v1864_v16  ;;  %v902_v28 = vmul.f32 1.442695, %v874_v38 }
 0x12c   :  { %v1906_v40 = vpop.eup %1430  ;;  %v587_v8 = vadd.f32 1.0, %v563_v24  ;;  %v575_v54 = vmul.f32 0.3275911, %v1915_v14  ;;  %v1924_v34 = vmul.f32 0.5, %v1830_v63  ;;  %v828_v0 = vmul.f32 %v1800_v31, %v804_v10 }
 0x12d   :  { %v768_v49 = vadd.f32 -0.28449672, %v744_v62  ;;  %v682_v35 = vmul.f32 %v1874_v47, %v658_v46  ;;  %v646_v53 = vmul.f32 1.0614054, %v1906_v40  ;;  %v886_v56 = vmul.f32 %v862_v51, %v1836_v60 }
 0x12e   :  { %1440 = vrcp.f32 %v587_v8  ;;  %v599_v48 = vadd.f32 1.0, %v575_v54  ;;  %v908_v42 = vmul.f32 1.442695, %v877_v26  ;;  %v889_v59 = vmul.f32 %v865_v21, %v1864_v16 }
 0x12f   :  { %v706_v27 = vadd.f32 1.4214138, %v682_v35  ;;  %v1920_v22 = vpop.eup %1432  ;;  %v792_v33 = vmul.f32 %v1850_v44, %v768_v49  ;;  %v670_v25 = vadd.f32 -1.4531521, %v646_v53  ;;  %v851_v63 = vsub.f32 0.0, %v539_v1 }
 0x130   :  { %v637_v32 = vmul.f32 1.0614054, %v1920_v22  ;;  %v1936_v2 = vadd.f32 %v1623_v7, %v1566_v19  ;;  %vm493_vm12 = vcmp.ge.f32.partialorder %v1846_v20, 0.0  ;;  %1442 = vrcp.f32 %v599_v48 }
 0x131   :  { %v730_v43 = vmul.f32 %v1874_v47, %v706_v27  ;;  %v694_v36 = vmul.f32 %v1906_v40, %v670_v25  ;;  %v1931_v45 = vpop.eup %1434  ;;  %v816_v9 = vadd.f32 0.2548296, %v792_v33  ;;  %v926_v16 = vmul.f32 1.442695, %v886_v56 }
 0x132   :  { %v661_v55 = vadd.f32 -1.4531521, %v637_v32  ;;  %v649_v39 = vmul.f32 1.0614054, %v1931_v45  ;;  %v1437_v31 = vpop.eup %1436  ;;  %1444 = vpow2.f32 %v902_v28  ;;  %v932_v7 = vmul.f32 1.442695, %v889_v59 }
 0x133   :  { %v718_v37 = vadd.f32 1.4214138, %v694_v36  ;;  %v754_v62 = vadd.f32 -0.28449672, %v730_v43  ;;  %v948_v46 = vmul.f32 %v1437_v31, %v828_v0  ;;  %v1943_v35 = vmul.f32 0.70710677, %v1936_v2 }
 0x134   :  { %v685_v60 = vmul.f32 %v1920_v22, %v661_v55  ;;  %v673_v18 = vadd.f32 -1.4531521, %v649_v39  ;;  %v840_v38 = vmul.f32 %v1850_v44, %v816_v9  ;;  %1446 = vpow2.f32 %v908_v42  ;;  %v1439_v10 = vpop.eup %1438 }
 0x135   :  { %v742_v41 = vmul.f32 %v1906_v40, %v718_v37  ;;  %v875_v24 = vmul.f32 %v851_v63, %v539_v1  ;;  %v778_v27 = vmul.f32 %v1874_v47, %v754_v62  ;;  %v517_v53 = vsel %vm493_vm12, 1.0, %v2211_v13 }
 0x136   :  { %v709_v49 = vadd.f32 1.4214138, %v685_v60  ;;  %v697_v51 = vmul.f32 %v1931_v45, %v673_v18  ;;  %v1953_v21 = vand.u32 2147483647, %v1943_v35  ;;  %v972_v8 = vsub.f32 1.0, %v948_v46 }
 0x137   :  { %v766_v54 = vadd.f32 -0.28449672, %v742_v41  ;;  %vm505_vm13 = vcmp.ge.f32.partialorder %v1854_v4, 0.0  ;;  %1448 = vpow2.f32 %v932_v7  ;;  %v863_v28 = vsub.f32 0.0, %v1915_v14 }
 0x138   :  { %v733_v26 = vmul.f32 %v1920_v22, %v709_v49  ;;  %v721_v44 = vadd.f32 1.4214138, %v697_v51  ;;  %v1956_v33 = vpop.eup %1440  ;;  %v568_v25 = vmul.f32 0.3275911, %v1953_v21  ;;  %v960_v20 = vmul.f32 %v1439_v10, %v840_v38 }
 0x139   :  { %1450 = vpow2.f32 %v926_v16  ;;  %v904_v32 = vmul.f32 1.442695, %v875_v24  ;;  %v802_v48 = vadd.f32 0.2548296, %v778_v27  ;;  %v635_v36 = vmul.f32 1.0614054, %v1956_v33 }
 0x13a   :  { %v757_v1 = vadd.f32 -0.28449672, %v733_v26  ;;  %v745_v43 = vmul.f32 %v1931_v45, %v721_v44  ;;  %v1965_v56 = vadd.f32 %v1629_v11, %v1566_v19  ;;  %v790_v42 = vmul.f32 %v1906_v40, %v766_v54  ;;  %v1971_v9 = vpop.eup %1442 }
 0x13b   :  { %v529_v55 = vsel %vm505_vm13, 1.0, %v2211_v13  ;;  %v592_v63 = vadd.f32 1.0, %v568_v25  ;;  %v996_v37 = vmul.f32 %v972_v8, %v1870_v58  ;;  %v659_v31 = vadd.f32 -1.4531521, %v635_v36 }
 0x13c   :  { %v781_v0 = vmul.f32 %v1920_v22, %v757_v1  ;;  %v769_v59 = vadd.f32 -0.28449672, %v745_v43  ;;  %v887_v62 = vmul.f32 %v863_v28, %v1915_v14  ;;  %v984_v60 = vsub.f32 1.0, %v960_v20  ;;  %v1445_v41 = vpop.eup %1444 }
 0x13d   :  { %1452 = vpow2.f32 %v904_v32  ;;  %v647_v46 = vmul.f32 1.0614054, %v1971_v9  ;;  %v826_v4 = vmul.f32 %v1874_v47, %v802_v48  ;;  %v683_v18 = vmul.f32 %v1956_v33, %v659_v31 }
 0x13e   :  { %v805_v39 = vadd.f32 0.2548296, %v781_v0  ;;  %v793_v11 = vmul.f32 %v1931_v45, %v769_v59  ;;  %v1981_v49 = vmul.f32 0.70710677, %v1965_v56  ;;  %v1447_v58 = vpop.eup %1446  ;;  %v814_v7 = vadd.f32 0.2548296, %v790_v42 }
 0x13f   :  { %v671_v14 = vadd.f32 -1.4531521, %v647_v46  ;;  %1454 = vrcp.f32 %v592_v63  ;;  %v707_v24 = vadd.f32 1.4214138, %v683_v18  ;;  %v928_v10 = vmul.f32 1.442695, %v887_v62 }
 0x140   :  { %v829_v16 = vmul.f32 %v1920_v22, %v805_v39  ;;  %v817_v38 = vadd.f32 0.2548296, %v793_v11  ;;  %v1984_v27 = vand.u32 2147483647, %v1981_v49  ;;  %v1008_v47 = vmul.f32 %v984_v60, %v1902_v50 }
 0x141   :  { %vm502_vm14 = vcmp.ge.f32.partialorder %v1826_v17, 0.0  ;;  %v695_v26 = vmul.f32 %v1971_v9, %v671_v14  ;;  %v1992_v8 = vadd.f32 %v1566_v19, %v1631_v12  ;;  %v1449_v54 = vpop.eup %1448  ;;  %v946_v44 = vmul.f32 %v1445_v41, %v826_v4  ;;  %v2212_v14 = vld [vmem:[#allocation3_spill] sm:$0xff] }
 0x142   :  { %v949_v51 = vmul.f32 %v1447_v58, %v829_v16  ;;  %v841_v22 = vmul.f32 %v1931_v45, %v817_v38  ;;  %v731_v28 = vmul.f32 %v1956_v33, %v707_v24  ;;  %v580_v25 = vmul.f32 0.3275911, %v1984_v27 }
 0x143   :  { %v1451_v20 = vpop.eup %1450  ;;  %v1020_v43 = vadd.f32 1.0, %v996_v37  ;;  %v838_v50 = vmul.f32 %v1906_v40, %v814_v7  ;;  %v719_v48 = vadd.f32 1.4214138, %v695_v26  ;;  %1456 = vpow2.f32 %v928_v10 }
 0x144   :  { %v973_v1 = vsub.f32 1.0, %v949_v51  ;;  %v961_v32 = vmul.f32 %v1449_v54, %v841_v22  ;;  %v755_v0 = vadd.f32 -0.28449672, %v731_v28  ;;  %v604_v36 = vadd.f32 1.0, %v580_v25 }
 0x145   :  { %v1032_v42 = vadd.f32 1.0, %v1008_v47  ;;  %v743_v59 = vmul.f32 %v1971_v9, %v719_v48  ;;  %v1999_v63 = vmul.f32 0.70710677, %v1992_v8  ;;  %v970_v39 = vsub.f32 1.0, %v946_v44 }
 0x146   :  { %v997_v45 = vmul.f32 %v973_v1, %v517_v53  ;;  %v985_v12 = vsub.f32 1.0, %v961_v32  ;;  %v779_v62 = vmul.f32 %v1956_v33, %v755_v0  ;;  %1458 = vrcp.f32 %v604_v36 }
 0x147   :  { %v1453_v37 = vpop.eup %1452  ;;  %v958_v40 = vmul.f32 %v1451_v20, %v838_v50  ;;  %v457_v60 = vmul.f32 0.5, %v1840_v5  ;;  %v767_v11 = vadd.f32 -0.28449672, %v743_v59  ;;  %v1044_v46 = vmul.f32 %v1020_v43, %v1867_v3 }
 0x148   :  { %v1021_v31 = vadd.f32 1.0, %v997_v45  ;;  %v1009_v53 = vmul.f32 %v985_v12, %v529_v55  ;;  %vm491_vm15 = vcmp.ge.f32.partialorder %v1893_v57, 0.0  ;;  %v803_v4 = vadd.f32 0.2548296, %v779_v62  ;;  %v2213_v57 = vld [vmem:[#allocation4_spill] sm:$0xff] }
 0x149   :  { %v2006_v16 = vpop.eup %1454  ;;  %v1056_v18 = vmul.f32 %v1032_v42, %v1886_v52  ;;  %v791_v7 = vmul.f32 %v1971_v9, %v767_v11  ;;  %v2011_v38 = vand.u32 2147483647, %v1999_v63  ;;  %v994_v5 = vmul.f32 %v970_v39, %v1911_v6 }
 0x14a   :  { %v1045_v41 = vmul.f32 %v1021_v31, %v1924_v34  ;;  %v1033_v58 = vadd.f32 1.0, %v1009_v53  ;;  %v827_v3 = vmul.f32 %v1956_v33, %v803_v4  ;;  %v2017_v34 = vadd.f32 %v1566_v19, %v2212_v14 }
 0x14b   :  { %v982_v51 = vsub.f32 1.0, %v958_v40  ;;  %v815_v10 = vadd.f32 0.2548296, %v791_v7  ;;  %v566_v52 = vmul.f32 0.3275911, %v2011_v38  ;;  %v526_v47 = vsel %vm502_vm14, 1.0, %v2211_v13 }
 0x14c   :  { %v1278_v55 = vpack.c.bf16 %v1045_v41, %v1044_v46  ;;  %v1057_v24 = vmul.f32 %v1033_v58, %v457_v60  ;;  %v947_v6 = vmul.f32 %v1453_v37, %v827_v3  ;;  %v640_v33 = vmul.f32 1.0614054, %v2006_v16 }
 0x14d   :  { %v2028_v22 = vmul.f32 0.70710677, %v2017_v34  ;;  %v515_v54 = vsel %vm491_vm15, 1.0, %v2211_v13  ;;  %v839_v44 = vmul.f32 %v1971_v9, %v815_v10  ;;  %v590_v1 = vadd.f32 1.0, %v566_v52  ;;  %v1457_v17 = vpop.eup %1456 }
 0x14e   :  { %1322 = vst [vmem:[%s2203_s3 + $0x18] sm:$0xff] %v1278_v55   ;;  %v1308_v26 = vpack.c.bf16 %v1057_v24, %v1056_v18  ;;  %v1018_v28 = vadd.f32 1.0, %v994_v5  ;;  %v971_v25 = vsub.f32 1.0, %v947_v6  ;;  %vm503_vm0 = vcmp.ge.f32.partialorder %v1899_v23, 0.0  ;;  %v2215_v6 = vld [vmem:[#allocation6_spill] sm:$0xff] }
 0x14f   :  { %v2036_v20 = vand.u32 2147483647, %v2028_v22  ;;  %v1006_v43 = vmul.f32 %v982_v51, %v526_v47  ;;  %v959_v50 = vmul.f32 %v1457_v17, %v839_v44  ;;  %1460 = vrcp.f32 %v590_v1 }
 0x150   :  { %1328 = vst [vmem:[%s2203_s3 + $0x48] sm:$0xff] %v1308_v26   ;;  %v2043_v32 = vadd.f32 %v2213_v57, %v1566_v19  ;;  %v2045_v9 = vpop.eup %1458  ;;  %v995_v48 = vmul.f32 %v971_v25, %v515_v54  ;;  %v664_v45 = vadd.f32 -1.4531521, %v640_v33  ;;  %v442_v0 = vmul.f32 0.5, %v1783_v15  ;;  %v2214_v15 = vld [vmem:[#allocation5_spill] sm:$0xff] }
 0x151   :  { %v578_v23 = vmul.f32 0.3275911, %v2036_v20  ;;  %v443_v36 = vmul.f32 0.5, %v1879_v30  ;;  %v983_v42 = vsub.f32 1.0, %v959_v50  ;;  %v527_v59 = vsel %vm503_vm0, 1.0, %v2211_v13 }
 0x152   :  { %v1019_v12 = vadd.f32 1.0, %v995_v48  ;;  %v652_v39 = vmul.f32 1.0614054, %v2045_v9  ;;  %v1042_v62 = vmul.f32 %v1018_v28, %v442_v0  ;;  %v1030_v37 = vadd.f32 1.0, %v1006_v43 }
 0x153   :  { %v602_v31 = vadd.f32 1.0, %v578_v23  ;;  %v1007_v40 = vmul.f32 %v983_v42, %v527_v59  ;;  %v2053_v60 = vmul.f32 0.70710677, %v2043_v32  ;;  %v688_v11 = vmul.f32 %v2006_v16, %v664_v45  ;;  %v2216_v23 = vld [vmem:[#allocation7_spill] sm:$0xff] }
 0x154   :  { %v1043_v53 = vmul.f32 %v1019_v12, %v443_v36  ;;  %v2058_v30 = vadd.f32 %v2214_v15, %v1566_v19  ;;  %v454_v46 = vmul.f32 0.5, %v1814_v29  ;;  %v455_v41 = vmul.f32 0.5, %v1883_v61 }
 0x155   :  { %1462 = vrcp.f32 %v602_v31  ;;  %v1031_v4 = vadd.f32 1.0, %v1007_v40  ;;  %v676_v58 = vadd.f32 -1.4531521, %v652_v39  ;;  %v545_v7 = vand.u32 2147483647, %v2053_v60 }
 0x156   :  { %v1273_v18 = vpack.c.bf16 %v1043_v53, %v1042_v62  ;;  %v1054_v5 = vmul.f32 %v1030_v37, %v454_v46  ;;  %v712_v3 = vadd.f32 1.4214138, %v688_v11  ;;  %v2067_v51 = vmul.f32 0.70710677, %v2058_v30 }
 0x157   :  { %v1055_v55 = vmul.f32 %v1031_v4, %v455_v41  ;;  %v569_v14 = vmul.f32 0.3275911, %v545_v7  ;;  %v856_v61 = vsub.f32 0.0, %v1953_v21  ;;  %v700_v10 = vmul.f32 %v2045_v9, %v676_v58 }
 0x158   :  { %1321 = vst [vmem:[%s2203_s3 + $0x10] sm:$0xff] %v1273_v18   ;;  %v2076_v33 = vadd.f32 %v1566_v19, %v2215_v6  ;;  %v557_v26 = vand.u32 2147483647, %v2067_v51  ;;  %v736_v54 = vmul.f32 %v2006_v16, %v712_v3  ;;  %v868_v17 = vsub.f32 0.0, %v1984_v27 }
 0x159   :  { %v2069_v24 = vpop.eup %1460  ;;  %v1303_v29 = vpack.c.bf16 %v1055_v55, %v1054_v5  ;;  %v593_v47 = vadd.f32 1.0, %v569_v14  ;;  %v880_v1 = vmul.f32 %v856_v61, %v1953_v21  ;;  %v724_v43 = vadd.f32 1.4214138, %v700_v10 }
 0x15a   :  { %v638_v52 = vmul.f32 1.0614054, %v2069_v24  ;;  %v581_v28 = vmul.f32 0.3275911, %v557_v26  ;;  %v2088_v50 = vmul.f32 0.70710677, %v2076_v33  ;;  %v2094_v0 = vadd.f32 %v1566_v19, %v2216_v23 }
 0x15b   :  { %1327 = vst [vmem:[%s2203_s3 + $0x40] sm:$0xff] %v1303_v29   ;;  %1464 = vrcp.f32 %v593_v47  ;;  %v760_v36 = vadd.f32 -0.28449672, %v736_v54  ;;  %v914_v42 = vmul.f32 1.442695, %v880_v1  ;;  %v892_v12 = vmul.f32 %v868_v17, %v1984_v27 }
 0x15c   :  { %v662_v44 = vadd.f32 -1.4531521, %v638_v52  ;;  %v605_v45 = vadd.f32 1.0, %v581_v28  ;;  %v543_v21 = vand.u32 2147483647, %v2088_v50  ;;  %v748_v39 = vmul.f32 %v2045_v9, %v724_v43 }
 0x15d   :  { %v857_v31 = vsub.f32 0.0, %v545_v7  ;;  %v854_v40 = vsub.f32 0.0, %v2011_v38  ;;  %v2101_v53 = vmul.f32 0.70710677, %v2094_v0  ;;  %v784_v19 = vmul.f32 %v2006_v16, %v760_v36 }
 0x15e   :  { %v686_v57 = vmul.f32 %v2069_v24, %v662_v44  ;;  %1466 = vrcp.f32 %v605_v45  ;;  %v567_v62 = vmul.f32 0.3275911, %v543_v21  ;;  %v938_v15 = vmul.f32 1.442695, %v892_v12 }
 0x15f   :  { %v2085_v25 = vpop.eup %1462  ;;  %1468 = vpow2.f32 %v914_v42  ;;  %v772_v41 = vadd.f32 -0.28449672, %v748_v39  ;;  %v881_v4 = vmul.f32 %v857_v31, %v545_v7  ;;  %v2108_v18 = vand.u32 2147483647, %v2101_v53 }
 0x160   :  { %v650_v48 = vmul.f32 1.0614054, %v2085_v25  ;;  %v710_v37 = vadd.f32 1.4214138, %v686_v57  ;;  %v591_v11 = vadd.f32 1.0, %v567_v62  ;;  %v878_v5 = vmul.f32 %v854_v40, %v2011_v38 }
 0x161   :  { %v869_v3 = vsub.f32 0.0, %v557_v26  ;;  %v808_v14 = vadd.f32 0.2548296, %v784_v19  ;;  %v579_v29 = vmul.f32 0.3275911, %v2108_v18  ;;  %v796_v52 = vmul.f32 %v2045_v9, %v772_v41 }
 0x162   :  { %v674_v59 = vadd.f32 -1.4531521, %v650_v48  ;;  %1470 = vrcp.f32 %v591_v11  ;;  %v734_v58 = vmul.f32 %v2069_v24, %v710_v37  ;;  %v866_v7 = vsub.f32 0.0, %v2036_v20 }
 0x163   :  { %1472 = vpow2.f32 %v938_v15  ;;  %v916_v47 = vmul.f32 1.442695, %v881_v4  ;;  %v603_v6 = vadd.f32 1.0, %v579_v29  ;;  %v910_v1 = vmul.f32 1.442695, %v878_v5 }
 0x164   :  { %v698_v46 = vmul.f32 %v2085_v25, %v674_v59  ;;  %v758_v44 = vadd.f32 -0.28449672, %v734_v58  ;;  %v893_v17 = vmul.f32 %v869_v3, %v557_v26  ;;  %v832_v28 = vmul.f32 %v2006_v16, %v808_v14 }
 0x165   :  { %v2105_v27 = vpop.eup %1464  ;;  %v855_v57 = vsub.f32 0.0, %v543_v21  ;;  %1474 = vrcp.f32 %v603_v6  ;;  %v2122_v48 = vmul.f32 0.5, %v1936_v2  ;;  %vm496_vm1 = vcmp.ge.f32.partialorder %v1943_v35, 0.0 }
 0x166   :  { %v641_v55 = vmul.f32 1.0614054, %v2105_v27  ;;  %v722_v61 = vadd.f32 1.4214138, %v698_v46  ;;  %v820_v36 = vadd.f32 0.2548296, %v796_v52  ;;  %v890_v42 = vmul.f32 %v866_v7, %v2036_v20 }
 0x167   :  { %1476 = vpow2.f32 %v916_v47  ;;  %vm508_vm2 = vcmp.ge.f32.partialorder %v1981_v49, 0.0  ;;  %v782_v16 = vmul.f32 %v2069_v24, %v758_v44  ;;  %v940_v39 = vmul.f32 1.442695, %v893_v17 }
 0x168   :  { %v665_v10 = vadd.f32 -1.4531521, %v641_v55  ;;  %v2116_v54 = vpop.eup %1466  ;;  %v746_v45 = vmul.f32 %v2085_v25, %v722_v61  ;;  %1478 = vpow2.f32 %v910_v1  ;;  %v879_v37 = vmul.f32 %v855_v57, %v543_v21 }
 0x169   :  { %v653_v43 = vmul.f32 1.0614054, %v2116_v54  ;;  %v1469_v26 = vpop.eup %1468  ;;  %v844_v11 = vmul.f32 %v2045_v9, %v820_v36  ;;  %v934_v15 = vmul.f32 1.442695, %v890_v42  ;;  %v867_v41 = vsub.f32 0.0, %v2108_v18 }
 0x16a   :  { %v689_v38 = vmul.f32 %v2105_v27, %v665_v10  ;;  %v952_v31 = vmul.f32 %v1469_v26, %v832_v28  ;;  %v770_v40 = vadd.f32 -0.28449672, %v746_v45  ;;  %v806_v58 = vadd.f32 0.2548296, %v782_v16 }
 0x16b   :  { %v677_v12 = vadd.f32 -1.4531521, %v653_v43  ;;  %1480 = vpow2.f32 %v940_v39  ;;  %v520_v21 = vsel %vm496_vm1, 1.0, %v2211_v13  ;;  %v912_v29 = vmul.f32 1.442695, %v879_v37 }
 0x16c   :  { %v713_v23 = vadd.f32 1.4214138, %v689_v38  ;;  %v2130_v2 = vpop.eup %1470  ;;  %v976_v3 = vsub.f32 1.0, %v952_v31  ;;  %v532_v9 = vsel %vm508_vm2, 1.0, %v2211_v13  ;;  %v794_v61 = vmul.f32 %v2085_v25, %v770_v40 }
 0x16d   :  { %v701_v62 = vmul.f32 %v2116_v54, %v677_v12  ;;  %v639_v20 = vmul.f32 1.0614054, %v2130_v2  ;;  %v1473_v4 = vpop.eup %1472  ;;  %1482 = vpow2.f32 %v934_v15  ;;  %v891_v35 = vmul.f32 %v867_v41, %v2108_v18 }
 0x16e   :  { %v737_v59 = vmul.f32 %v2105_v27, %v713_v23  ;;  %v964_v47 = vmul.f32 %v1473_v4, %v844_v11  ;;  %v830_v44 = vmul.f32 %v2069_v24, %v806_v58  ;;  %v1000_v28 = vmul.f32 %v976_v3, %v520_v21 }
 0x16f   :  { %v725_v46 = vadd.f32 1.4214138, %v701_v62  ;;  %v663_v55 = vadd.f32 -1.4531521, %v639_v20  ;;  %v2146_v7 = vpop.eup %1474  ;;  %vm497_vm3 = vcmp.ge.f32.partialorder %v2053_v60, 0.0  ;;  %1484 = vpow2.f32 %v912_v29 }
 0x170   :  { %v761_v19 = vadd.f32 -0.28449672, %v737_v59  ;;  %v651_v49 = vmul.f32 1.0614054, %v2146_v7  ;;  %v818_v57 = vadd.f32 0.2548296, %v794_v61 }
 0x171   :  { %v749_v14 = vmul.f32 %v2116_v54, %v725_v46  ;;  %v687_v52 = vmul.f32 %v2130_v2, %v663_v55  ;;  %v1477_v17 = vpop.eup %1476  ;;  %v988_v42 = vsub.f32 1.0, %v964_v47  ;;  %vm494_vm4 = vcmp.ge.f32.partialorder %v1999_v63, 0.0 }
 0x172   :  { %v785_v5 = vmul.f32 %v2105_v27, %v761_v19  ;;  %v675_v36 = vadd.f32 -1.4531521, %v651_v49  ;;  %v1479_v18 = vpop.eup %1478  ;;  %v1024_v39 = vadd.f32 1.0, %v1000_v28  ;;  %v521_v31 = vsel %vm497_vm3, 1.0, %v2211_v13 }
 0x173   :  { %v773_v6 = vadd.f32 -0.28449672, %v749_v14  ;;  %v711_v38 = vadd.f32 1.4214138, %v687_v52  ;;  %v950_v12 = vmul.f32 %v1479_v18, %v830_v44  ;;  %vm509_vm5 = vcmp.ge.f32.partialorder %v2067_v51, 0.0 }
 0x174   :  { %v809_v10 = vadd.f32 0.2548296, %v785_v5  ;;  %v699_v59 = vmul.f32 %v2146_v7, %v675_v36  ;;  %v842_v40 = vmul.f32 %v2085_v25, %v818_v57  ;;  %v1012_v15 = vmul.f32 %v988_v42, %v532_v9 }
 0x175   :  { %v797_v43 = vmul.f32 %v2116_v54, %v773_v6  ;;  %v735_v23 = vmul.f32 %v2130_v2, %v711_v38  ;;  %v1481_v37 = vpop.eup %1480  ;;  %v449_v46 = vmul.f32 0.5, %v2043_v32  ;;  %v974_v4 = vsub.f32 1.0, %v950_v12 }
 0x176   :  { %v833_v1 = vmul.f32 %v2105_v27, %v809_v10  ;;  %v936_v27 = vmul.f32 1.442695, %v891_v35  ;;  %v723_v11 = vadd.f32 1.4214138, %v699_v59  ;;  %v533_v25 = vsel %vm509_vm5, 1.0, %v2211_v13 }
 0x177   :  { %v821_v24 = vadd.f32 0.2548296, %v797_v43  ;;  %v759_v16 = vadd.f32 -0.28449672, %v735_v23  ;;  %v1483_v55 = vpop.eup %1482  ;;  %v1036_v61 = vadd.f32 1.0, %v1012_v15  ;;  %v518_v10 = vsel %vm494_vm4, 1.0, %v2211_v13 }
 0x178   :  { %v953_v45 = vmul.f32 %v1477_v17, %v833_v1  ;;  %1486 = vpow2.f32 %v936_v27  ;;  %v747_v5 = vmul.f32 %v2146_v7, %v723_v11  ;;  %v962_v3 = vmul.f32 %v1483_v55, %v842_v40 }
 0x179   :  { %v845_v62 = vmul.f32 %v2116_v54, %v821_v24  ;;  %v783_v20 = vmul.f32 %v2130_v2, %v759_v16  ;;  %v1048_v54 = vmul.f32 %v1024_v39, %v2122_v48  ;;  %v1485_v9 = vpop.eup %1484  ;;  %vm495_vm6 = vcmp.ge.f32.partialorder %v2088_v50, 0.0 }
 0x17a   :  { %v977_v26 = vsub.f32 1.0, %v953_v45  ;;  %v771_v32 = vadd.f32 -0.28449672, %v747_v5  ;;  %v998_v48 = vmul.f32 %v974_v4, %v518_v10  ;;  %v460_v35 = vmul.f32 0.5, %v1965_v56 }
 0x17b   :  { %v965_v41 = vmul.f32 %v1481_v37, %v845_v62  ;;  %v807_v60 = vadd.f32 0.2548296, %v783_v20  ;;  %v461_v44 = vmul.f32 0.5, %v2058_v30  ;;  %vm506_vm7 = vcmp.ge.f32.partialorder %v2028_v22, 0.0 }
 0x17c   :  { %v1001_v19 = vmul.f32 %v977_v26, %v521_v31  ;;  %v795_v51 = vmul.f32 %v2146_v7, %v771_v32  ;;  %v986_v1 = vsub.f32 1.0, %v962_v3  ;;  %v1060_v50 = vmul.f32 %v1036_v61, %v460_v35 }
 0x17d   :  { %v989_v21 = vsub.f32 1.0, %v965_v41  ;;  %v831_v29 = vmul.f32 %v2130_v2, %v807_v60  ;;  %v519_v17 = vsel %vm495_vm6, 1.0, %v2211_v13  ;;  %v1022_v28 = vadd.f32 1.0, %v998_v48 }
 0x17e   :  { %v1025_v58 = vadd.f32 1.0, %v1001_v19  ;;  %v819_v38 = vadd.f32 0.2548296, %v795_v51  ;;  %v446_v30 = vmul.f32 0.5, %v1992_v8  ;;  %v530_v22 = vsel %vm506_vm7, 1.0, %v2211_v13 }
 0x17f   :  { %v1013_v52 = vmul.f32 %v989_v21, %v533_v25  ;;  %v951_v6 = vmul.f32 %v1485_v9, %v831_v29  ;;  %v447_v23 = vmul.f32 0.5, %v2076_v33  ;;  %v1010_v36 = vmul.f32 %v986_v1, %v530_v22 }
 0x180   :  { %v1049_v14 = vmul.f32 %v1025_v58, %v449_v46  ;;  %v843_v56 = vmul.f32 %v2146_v7, %v819_v38  ;;  %vm507_vm8 = vcmp.ge.f32.partialorder %v2101_v53, 0.0  ;;  %v1046_v24 = vmul.f32 %v1022_v28, %v446_v30 }
 0x181   :  { %v1037_v2 = vadd.f32 1.0, %v1013_v52  ;;  %v975_v63 = vsub.f32 1.0, %v951_v6  ;;  %v531_v12 = vsel %vm507_vm8, 1.0, %v2211_v13  ;;  %v1034_v8 = vadd.f32 1.0, %v1010_v36 }
 0x182   :  { %v1288_v47 = vpack.c.bf16 %v1049_v14, %v1048_v54  ;;  %v1487_v57 = vpop.eup %1486  ;;  %v458_v59 = vmul.f32 0.5, %v2017_v34  ;;  %v459_v33 = vmul.f32 0.5, %v2094_v0 }
 0x183   :  { %v1061_v49 = vmul.f32 %v1037_v2, %v461_v44  ;;  %v999_v43 = vmul.f32 %v975_v63, %v519_v17  ;;  %v963_v42 = vmul.f32 %v1487_v57, %v843_v56 }
 0x184   :  { %1324 = vst [vmem:[%s2203_s3 + $0x28] sm:$0xff] %v1288_v47   ;;  %v1058_v39 = vmul.f32 %v1034_v8, %v458_v59 }
 0x185   :  { %v1318_v45 = vpack.c.bf16 %v1061_v49, %v1060_v50  ;;  %v1023_v18 = vadd.f32 1.0, %v999_v43  ;;  %v987_v7 = vsub.f32 1.0, %v963_v42 }
 0x187   :  { %1330 = vst [vmem:[%s2203_s3 + $0x58] sm:$0xff] %v1318_v45   ;;  %v1047_v27 = vmul.f32 %v1023_v18, %v447_v23  ;;  %v1011_v16 = vmul.f32 %v987_v7, %v531_v12 }
 0x189   :  { %v1283_v26 = vpack.c.bf16 %v1047_v27, %v1046_v24  ;;  %v1035_v53 = vadd.f32 1.0, %v1011_v16 }
 0x18b   :  { %1323 = vst [vmem:[%s2203_s3 + $0x20] sm:$0xff] %v1283_v26   ;;  %v1059_v31 = vmul.f32 %v1035_v53, %v459_v33 }
 0x18d   :  { %v1313_v62 = vpack.c.bf16 %v1059_v31, %v1058_v39 }
 0x18f   :  { %1329 = vst [vmem:[%s2203_s3 + $0x50] sm:$0xff] %v1313_v62  }

// kernel: neuron_mllama_vision_forward.49
= control target key start
LH: loop header
LB: loop body
LE: loop exit
PB: predicated region body
PF: predicated region fallthrough
CT: control target
= control target key end

     0   :  { %vm19_vm0 = vcmask 523264   ;;  %v582_v0 = vmov 0.0   ;;  %vm583_vm1 = vmmov 0   ;;  %v334_v14 = vlaneseq  ;;  %s819_s1 = inlined_call_operand.vmem [shape: bf16[64,64], index: 1, kind: input, shape index: {}]   ;;  %s820_s0 = inlined_call_operand.vmem [shape: bf16[136,64], index: 0, kind: input, shape index: {}]   ;;  %s821_s2 = inlined_call_operand.vmem [shape: bf16[1,64], index: 2, kind: input, shape index: {}]   ;;  %s822_s3 = inlined_call_operand.vmem [shape: bf16[136,64], index: 3, kind: output, shape index: {}]  }
   0x1   :  { %515 = vmatprep.subr.bf16.mxu0 %v582_v0  ;;  %v569_v1 = vld [vmem:[%s819_s1] sm:$0xff]   ;;  %559 = vmatprep.subr.bf16.mxu1 %v582_v0  ;;  %20 = vst.msk [vmem:[#allocation2] sm:$0xff] %vm19_vm0, %v582_v0  ;;  %21 = vst.msk [vmem:[#allocation2 + $0x8] sm:$0xff] %vm19_vm0, %v582_v0  ;;  %v570_v2 = vld [vmem:[%s819_s1 + $0x8] sm:$0xff]   ;;  %vm424_vm2 = vcmask 519168  }
   0x2   :  { %22 = vst.msk [vmem:[#allocation2 + $0x10] sm:$0xff] %vm19_vm0, %v582_v0  ;;  %23 = vst.msk [vmem:[#allocation2 + $0x18] sm:$0xff] %vm19_vm0, %v582_v0  ;;  %523 = vmatprep.mubr.msk.bf16.mxu0 %vm583_vm1, %v582_v0  ;;  %543 = vmatprep.mubr.msk.bf16.mxu1 %vm583_vm1, %v582_v0  ;;  %v571_v3 = vld [vmem:[%s819_s1 + $0x10] sm:$0xff]   ;;  %v572_v4 = vld [vmem:[%s819_s1 + $0x18] sm:$0xff]   ;;  %v335_v17 = vshrl.u32 %v334_v14, 7 }
   0x3   :  { %24 = vst.msk [vmem:[#allocation2 + $0x20] sm:$0xff] %vm19_vm0, %v582_v0  ;;  %25 = vst.msk [vmem:[#allocation2 + $0x28] sm:$0xff] %vm19_vm0, %v582_v0  ;;  %516 = vmatpush3.bf16.msra.mxu0 %v569_v1  ;;  %563 = vmatpush3.bf16.msra.mxu1 %v569_v1  ;;  %v573_v5 = vld [vmem:[%s820_s0] sm:$0xff]   ;;  %v574_v6 = vld [vmem:[%s820_s0 + $0x28] sm:$0xff]  }
   0x4   :  { %26 = vst.msk [vmem:[#allocation2 + $0x30] sm:$0xff] %vm19_vm0, %v582_v0  ;;  %27 = vst.msk [vmem:[#allocation2 + $0x38] sm:$0xff] %vm19_vm0, %v582_v0  ;;  %517 = vmatprep.subr.bf16.mxu0 %v582_v0  ;;  %560 = vmatprep.subr.bf16.mxu1 %v582_v0  ;;  %v575_v7 = vld [vmem:[%s820_s0 + $0x8] sm:$0xff]   ;;  %v576_v8 = vld [vmem:[%s820_s0 + $0x30] sm:$0xff]   ;;  %v336_v30 = vsub.s32 0, %v335_v17 }
   0x5   :  { %28 = vst.msk [vmem:[#allocation2 + $0x40] sm:$0xff] %vm19_vm0, %v582_v0  ;;  %29 = vst.msk [vmem:[#allocation2 + $0x48] sm:$0xff] %vm19_vm0, %v582_v0  ;;  %v577_v9 = vld [vmem:[%s820_s0 + $0x10] sm:$0xff]   ;;  %v578_v10 = vld [vmem:[%s820_s0 + $0x38] sm:$0xff]  }
   0x6   :  { %30 = vst.msk [vmem:[#allocation2 + $0x50] sm:$0xff] %vm19_vm0, %v582_v0  ;;  %31 = vst.msk [vmem:[#allocation2 + $0x58] sm:$0xff] %vm19_vm0, %v582_v0  ;;  %v579_v11 = vld [vmem:[%s820_s0 + $0x18] sm:$0xff]   ;;  %v580_v12 = vld [vmem:[%s820_s0 + $0x40] ss:$0 sps:$4 sm:$0xff]  }
   0x7   :  { %32 = vst.msk [vmem:[#allocation2 + $0x60] sm:$0xff] %vm19_vm0, %v582_v0  ;;  %33 = vst.msk [vmem:[#allocation2 + $0x68] sm:$0xff] %vm19_vm0, %v582_v0  ;;  %518 = vmatpush3.bf16.msra.mxu0 %v570_v2  ;;  %564 = vmatpush3.bf16.msra.mxu1 %v570_v2  ;;  %v581_v13 = vld [vmem:[%s820_s0 + $0x20] sm:$0xff]  }
   0x8   :  { %34 = vst.msk [vmem:[#allocation2 + $0x70] sm:$0xff] %vm19_vm0, %v582_v0  ;;  %35 = vst.msk [vmem:[#allocation2 + $0x78] sm:$0xff] %vm19_vm0, %v582_v0  ;;  %519 = vmatprep.subr.bf16.mxu0 %v582_v0  ;;  %561 = vmatprep.subr.bf16.mxu1 %v582_v0  ;;  %v37_v15 = vld [vmem:[#allocation2] sm:$0xff]  ;;  %v38_v20 = vld [vmem:[#allocation2 + $0x8] sm:$0xff] }
   0x9   :  { %36 = vst.msk [vmem:[#allocation2 + $0x80] sm:$0xff] %vm19_vm0, %v582_v0  ;;  %v332_v19 = vld [vmem:[%s821_s2] sm:$0x1]  ;;  %v39_v35 = vld [vmem:[#allocation2 + $0x10] sm:$0xff]  ;;  %v40_v39 = vld [vmem:[#allocation2 + $0x18] sm:$0xff] }
   0xa   :  { %v333_v29 = vunpack.c.l.bf16 %v332_v19  ;;  %v41_v62 = vld [vmem:[#allocation2 + $0x20] sm:$0xff] }
   0xb   :  { %520 = vmatpush3.bf16.msra.mxu0 %v571_v3  ;;  %565 = vmatpush3.bf16.msra.mxu1 %v571_v3  ;;  %v42_v3 = vld [vmem:[#allocation2 + $0x28] sm:$0xff] }
   0xc   :  { %521 = vmatprep.subr.bf16.mxu0 %v582_v0  ;;  %562 = vmatprep.subr.bf16.mxu1 %v582_v0  ;;  %v719_v37 = vrot.slane %v333_v29, %v336_v30 }
   0xd   :  { %v47_v16 = vld [vmem:[#allocation2 + $0x50] sm:$0xff]  ;;  %v48_v22 = vld [vmem:[#allocation2 + $0x58] sm:$0xff] }
   0xe   :  { %v49_v36 = vld [vmem:[#allocation2 + $0x60] sm:$0xff]  ;;  %v50_v41 = vld [vmem:[#allocation2 + $0x68] sm:$0xff] }
   0xf   :  { %522 = vmatpush3.bf16.msra.mxu0 %v572_v4  ;;  %566 = vmatpush3.bf16.msra.mxu1 %v572_v4  ;;  %v51_v63 = vld [vmem:[#allocation2 + $0x70] sm:$0xff] }
  0x12   :  { %524 = vmatmul.mubr.msk.bf16.vlgmr.msra.gmra.mrb[0].mxu0 %vm19_vm0, %v573_v5  ;;  %544 = vmatmul.mubr.msk.bf16.vlgmr.msra.gmra.mrb[0].mxu1 %vm19_vm0, %v574_v6  ;;  %v52_v5 = vld [vmem:[#allocation2 + $0x78] sm:$0xff] }
  0x13   :  { %527 = vmatprep.mubr.msk.bf16.mxu0 %vm583_vm1, %v582_v0  ;;  %547 = vmatprep.mubr.msk.bf16.mxu1 %vm583_vm1, %v582_v0 }
  0x1a   :  { %528 = vmatmul.mubr.msk.bf16.gmra.mrb[4].mxu0 %vm19_vm0, %v575_v7  ;;  %548 = vmatmul.mubr.msk.bf16.gmra.mrb[4].mxu1 %vm19_vm0, %v576_v8 }
  0x1b   :  { %531 = vmatprep.mubr.msk.bf16.mxu0 %vm583_vm1, %v582_v0  ;;  %551 = vmatprep.mubr.msk.bf16.mxu1 %vm583_vm1, %v582_v0 }
  0x22   :  { %532 = vmatmul.mubr.msk.bf16.gmra.mrb[8].mxu0 %vm19_vm0, %v577_v9  ;;  %552 = vmatmul.mubr.msk.bf16.gmra.mrb[8].mxu1 %vm19_vm0, %v578_v10 }
  0x23   :  { %535 = vmatprep.mubr.msk.bf16.mxu0 %vm583_vm1, %v582_v0  ;;  %555 = vmatprep.mubr.msk.bf16.mxu1 %vm583_vm1, %v582_v0 }
  0x2a   :  { %536 = vmatmul.mubr.msk.bf16.gmra.mrb[12].mxu0 %vm19_vm0, %v579_v11  ;;  %556 = vmatmul.mubr.msk.bf16.gmra.mrb[12].mxu1 %vm19_vm0, %v580_v12 }
  0x2b   :  { %539 = vmatprep.mubr.msk.bf16.mxu0 %vm583_vm1, %v582_v0 }
  0x32   :  { %540 = vmatmul.mubr.msk.bf16.gmra.mrb[16].mxu0 %vm19_vm0, %v581_v13 }
  0xe5   :  { %v208_v18 = vpop.f32.mrb[0].mxu0  ;;  %v248_v21 = vpop.f32.mrb[0].mxu1 }
  0xe6   :  { %v278_v23 = vadd.f32 %v208_v18, %v37_v15  ;;  %v525_v24 = vpop.f32.mrb[1].mxu0  ;;  %v288_v25 = vadd.f32 %v248_v21, %v47_v16  ;;  %v545_v26 = vpop.f32.mrb[1].mxu1 }
  0xe7   :  { %v211_v27 = vpop.f32.mrb[2].mxu0  ;;  %v251_v28 = vpop.f32.mrb[2].mxu1  ;;  %v43_v26 = vld [vmem:[#allocation2 + $0x30] sm:$0xff] }
  0xe8   :  { %295 = vst.msk [vmem:[#allocation2] sm:$0xff] %vm19_vm0, %v278_v23  ;;  %v279_v31 = vadd.f32 %v211_v27, %v38_v20  ;;  %v526_v32 = vpop.f32.mrb[3].mxu0  ;;  %305 = vst.msk [vmem:[#allocation2 + $0x50] sm:$0xff] %vm19_vm0, %v288_v25  ;;  %v289_v33 = vadd.f32 %v251_v28, %v48_v22  ;;  %v546_v34 = vpop.f32.mrb[3].mxu1  ;;  %v53_v27 = vld [vmem:[#allocation2 + $0x80] sm:$0xff] }
  0xea   :  { %296 = vst.msk [vmem:[#allocation2 + $0x8] sm:$0xff] %vm19_vm0, %v279_v31  ;;  %306 = vst.msk [vmem:[#allocation2 + $0x58] sm:$0xff] %vm19_vm0, %v289_v33  ;;  %v44_v31 = vld [vmem:[#allocation2 + $0x38] sm:$0xff] }
  0xed   :  { %v216_v38 = vpop.f32.mrb[4].mxu0  ;;  %v256_v40 = vpop.f32.mrb[4].mxu1 }
  0xee   :  { %v280_v42 = vadd.f32 %v216_v38, %v39_v35  ;;  %v529_v43 = vpop.f32.mrb[5].mxu0  ;;  %v290_v44 = vadd.f32 %v256_v40, %v49_v36  ;;  %v549_v45 = vpop.f32.mrb[5].mxu1 }
  0xef   :  { %v315_v46 = vld [vmem:[#allocation2] sm:$0xff]  ;;  %v325_v47 = vld [vmem:[#allocation2 + $0x50] sm:$0xff]  ;;  %v219_v48 = vpop.f32.mrb[6].mxu0  ;;  %v259_v49 = vpop.f32.mrb[6].mxu1 }
  0xf0   :  { %v338_v50 = vadd.f32 %v719_v37, %v315_v46  ;;  %v348_v51 = vadd.f32 %v719_v37, %v325_v47  ;;  %297 = vst.msk [vmem:[#allocation2 + $0x10] sm:$0xff] %vm19_vm0, %v280_v42  ;;  %v281_v52 = vadd.f32 %v219_v48, %v40_v39  ;;  %v530_v53 = vpop.f32.mrb[7].mxu0  ;;  %307 = vst.msk [vmem:[#allocation2 + $0x60] sm:$0xff] %vm19_vm0, %v290_v44  ;;  %v550_v55 = vpop.f32.mrb[7].mxu1 }
  0xf1   :  { %v291_v54 = vadd.f32 %v259_v49, %v50_v41  ;;  %v316_v56 = vld [vmem:[#allocation2 + $0x8] sm:$0xff]  ;;  %v326_v57 = vld [vmem:[#allocation2 + $0x58] sm:$0xff]  ;;  %v45_v53 = vld [vmem:[#allocation2 + $0x40] sm:$0xff] }
  0xf2   :  { %v485_v58 = vpack.c.bf16 %v338_v50, %v338_v50  ;;  %v339_v59 = vadd.f32 %v719_v37, %v316_v56  ;;  %v495_v60 = vpack.c.bf16 %v348_v51, %v348_v51  ;;  %v349_v61 = vadd.f32 %v719_v37, %v326_v57  ;;  %298 = vst.msk [vmem:[#allocation2 + $0x18] sm:$0xff] %vm19_vm0, %v281_v52  ;;  %v46_v57 = vld [vmem:[#allocation2 + $0x48] sm:$0xff] }
  0xf3   :  { %308 = vst.msk [vmem:[#allocation2 + $0x68] sm:$0xff] %vm19_vm0, %v291_v54 }
  0xf4   :  { %425 = vst.msk [vmem:[%s822_s3] sm:$0xf] %vm424_vm2, %v485_v58  ;;  %v486_v0 = vpack.c.bf16 %v339_v59, %v339_v59  ;;  %435 = vst.msk [vmem:[%s822_s3 + $0x28] sm:$0xf] %vm424_vm2, %v495_v60  ;;  %v496_v1 = vpack.c.bf16 %v349_v61, %v349_v61 }
  0xf5   :  { %v224_v2 = vpop.f32.mrb[8].mxu0  ;;  %v264_v4 = vpop.f32.mrb[8].mxu1 }
  0xf6   :  { %426 = vst.msk [vmem:[%s822_s3 + $0x4] sm:$0xf] %vm424_vm2, %v486_v0  ;;  %436 = vst.msk [vmem:[%s822_s3 + $0x2c] sm:$0xf] %vm424_vm2, %v496_v1  ;;  %v282_v6 = vadd.f32 %v224_v2, %v41_v62  ;;  %v533_v7 = vpop.f32.mrb[9].mxu0  ;;  %v292_v8 = vadd.f32 %v264_v4, %v51_v63  ;;  %v553_v9 = vpop.f32.mrb[9].mxu1 }
  0xf7   :  { %v317_v10 = vld [vmem:[#allocation2 + $0x10] sm:$0xff]  ;;  %v327_v11 = vld [vmem:[#allocation2 + $0x60] sm:$0xff]  ;;  %v227_v12 = vpop.f32.mrb[10].mxu0  ;;  %v267_v13 = vpop.f32.mrb[10].mxu1 }
  0xf8   :  { %v340_v14 = vadd.f32 %v719_v37, %v317_v10  ;;  %v350_v15 = vadd.f32 %v719_v37, %v327_v11  ;;  %299 = vst.msk [vmem:[#allocation2 + $0x20] sm:$0xff] %vm19_vm0, %v282_v6  ;;  %v283_v16 = vadd.f32 %v227_v12, %v42_v3  ;;  %v534_v17 = vpop.f32.mrb[11].mxu0  ;;  %309 = vst.msk [vmem:[#allocation2 + $0x70] sm:$0xff] %vm19_vm0, %v292_v8  ;;  %v554_v19 = vpop.f32.mrb[11].mxu1 }
  0xf9   :  { %v293_v18 = vadd.f32 %v267_v13, %v52_v5  ;;  %v318_v20 = vld [vmem:[#allocation2 + $0x18] sm:$0xff] }
  0xfa   :  { %v328_v21 = vld [vmem:[#allocation2 + $0x68] sm:$0xff]  ;;  %v487_v22 = vpack.c.bf16 %v340_v14, %v340_v14  ;;  %v341_v23 = vadd.f32 %v719_v37, %v318_v20  ;;  %v497_v24 = vpack.c.bf16 %v350_v15, %v350_v15  ;;  %300 = vst.msk [vmem:[#allocation2 + $0x28] sm:$0xff] %vm19_vm0, %v283_v16 }
  0xfb   :  { %v351_v25 = vadd.f32 %v719_v37, %v328_v21  ;;  %310 = vst.msk [vmem:[#allocation2 + $0x78] sm:$0xff] %vm19_vm0, %v293_v18 }
  0xfc   :  { %427 = vst.msk [vmem:[%s822_s3 + $0x8] sm:$0xf] %vm424_vm2, %v487_v22  ;;  %v488_v28 = vpack.c.bf16 %v341_v23, %v341_v23  ;;  %437 = vst.msk [vmem:[%s822_s3 + $0x30] sm:$0xf] %vm424_vm2, %v497_v24 }
  0xfd   :  { %v498_v29 = vpack.c.bf16 %v351_v25, %v351_v25  ;;  %v232_v30 = vpop.f32.mrb[12].mxu0  ;;  %v272_v32 = vpop.f32.mrb[12].mxu1 }
  0xfe   :  { %428 = vst.msk [vmem:[%s822_s3 + $0xc] sm:$0xf] %vm424_vm2, %v488_v28  ;;  %v284_v33 = vadd.f32 %v232_v30, %v43_v26  ;;  %v537_v34 = vpop.f32.mrb[13].mxu0  ;;  %v294_v35 = vadd.f32 %v272_v32, %v53_v27  ;;  %v557_v36 = vpop.f32.mrb[13].mxu1 }
  0xff   :  { %438 = vst.msk [vmem:[%s822_s3 + $0x34] sm:$0xf] %vm424_vm2, %v498_v29  ;;  %v319_v38 = vld [vmem:[#allocation2 + $0x20] sm:$0xff]  ;;  %v329_v39 = vld [vmem:[#allocation2 + $0x70] sm:$0xff]  ;;  %v235_v40 = vpop.f32.mrb[14].mxu0  ;;  %v275_v41 = vpop.f32.mrb[14].mxu1 }
 0x100   :  { %v342_v42 = vadd.f32 %v719_v37, %v319_v38  ;;  %v352_v43 = vadd.f32 %v719_v37, %v329_v39  ;;  %301 = vst.msk [vmem:[#allocation2 + $0x30] sm:$0xff] %vm19_vm0, %v284_v33  ;;  %v285_v44 = vadd.f32 %v235_v40, %v44_v31  ;;  %v538_v45 = vpop.f32.mrb[15].mxu0  ;;  %311 = vst.msk [vmem:[#allocation2 + $0x80] sm:$0xff] %vm19_vm0, %v294_v35  ;;  %v558_v46 = vpop.f32.mrb[15].mxu1 }
 0x101   :  { %v320_v47 = vld [vmem:[#allocation2 + $0x28] sm:$0xff] }
 0x102   :  { %v330_v48 = vld [vmem:[#allocation2 + $0x78] sm:$0xff]  ;;  %v489_v49 = vpack.c.bf16 %v342_v42, %v342_v42  ;;  %v343_v50 = vadd.f32 %v719_v37, %v320_v47  ;;  %v499_v51 = vpack.c.bf16 %v352_v43, %v352_v43  ;;  %302 = vst.msk [vmem:[#allocation2 + $0x38] sm:$0xff] %vm19_vm0, %v285_v44 }
 0x103   :  { %v353_v52 = vadd.f32 %v719_v37, %v330_v48 }
 0x104   :  { %429 = vst.msk [vmem:[%s822_s3 + $0x10] sm:$0xf] %vm424_vm2, %v489_v49  ;;  %v490_v54 = vpack.c.bf16 %v343_v50, %v343_v50  ;;  %439 = vst.msk [vmem:[%s822_s3 + $0x38] sm:$0xf] %vm424_vm2, %v499_v51 }
 0x105   :  { %v500_v55 = vpack.c.bf16 %v353_v52, %v353_v52  ;;  %v240_v56 = vpop.f32.mrb[16].mxu0 }
 0x106   :  { %430 = vst.msk [vmem:[%s822_s3 + $0x14] sm:$0xf] %vm424_vm2, %v490_v54  ;;  %v286_v58 = vadd.f32 %v240_v56, %v45_v53  ;;  %v541_v59 = vpop.f32.mrb[17].mxu0 }
 0x107   :  { %440 = vst.msk [vmem:[%s822_s3 + $0x3c] sm:$0xf] %vm424_vm2, %v500_v55  ;;  %v321_v60 = vld [vmem:[#allocation2 + $0x30] sm:$0xff]  ;;  %v331_v61 = vld [vmem:[#allocation2 + $0x80] sm:$0xff]  ;;  %v243_v62 = vpop.f32.mrb[18].mxu0 }
 0x108   :  { %v344_v63 = vadd.f32 %v719_v37, %v321_v60  ;;  %v354_v0 = vadd.f32 %v719_v37, %v331_v61  ;;  %303 = vst.msk [vmem:[#allocation2 + $0x40] sm:$0xff] %vm19_vm0, %v286_v58  ;;  %v287_v1 = vadd.f32 %v243_v62, %v46_v57  ;;  %v542_v2 = vpop.f32.mrb[19].mxu0 }
 0x109   :  { %v322_v3 = vld [vmem:[#allocation2 + $0x38] sm:$0xff] }
 0x10a   :  { %v491_v4 = vpack.c.bf16 %v344_v63, %v344_v63  ;;  %v345_v5 = vadd.f32 %v719_v37, %v322_v3  ;;  %v501_v6 = vpack.c.bf16 %v354_v0, %v354_v0  ;;  %304 = vst.msk [vmem:[#allocation2 + $0x48] sm:$0xff] %vm19_vm0, %v287_v1 }
 0x10c   :  { %431 = vst.msk [vmem:[%s822_s3 + $0x18] sm:$0xf] %vm424_vm2, %v491_v4  ;;  %v492_v7 = vpack.c.bf16 %v345_v5, %v345_v5  ;;  %441 = vst.msk [vmem:[%s822_s3 + $0x40] sm:$0xf] %vm424_vm2, %v501_v6 }
 0x10e   :  { %432 = vst.msk [vmem:[%s822_s3 + $0x1c] sm:$0xf] %vm424_vm2, %v492_v7 }
 0x10f   :  { %v323_v8 = vld [vmem:[#allocation2 + $0x40] sm:$0xff] }
 0x110   :  { %v346_v9 = vadd.f32 %v719_v37, %v323_v8 }
 0x111   :  { %v324_v10 = vld [vmem:[#allocation2 + $0x48] sm:$0xff] }
 0x112   :  { %v493_v11 = vpack.c.bf16 %v346_v9, %v346_v9  ;;  %v347_v12 = vadd.f32 %v719_v37, %v324_v10 }
 0x114   :  { %433 = vst.msk [vmem:[%s822_s3 + $0x20] sm:$0xf] %vm424_vm2, %v493_v11  ;;  %v494_v13 = vpack.c.bf16 %v347_v12, %v347_v12 }
 0x116   :  { %434 = vst.msk [vmem:[%s822_s3 + $0x24] sm:$0xf] %vm424_vm2, %v494_v13 }

// kernel: neuron_mllama_vision_forward.33
= control target key start
LH: loop header
LB: loop body
LE: loop exit
PB: predicated region body
PF: predicated region fallthrough
CT: control target
= control target key end

     0   :  { %vm27_vm0 = vcmask 261120   ;;  %v929_v1 = vmov 0   ;;  %v930_v3 = vmov 0.0   ;;  %v443_v24 = vlaneseq  ;;  %s1354_s1 = inlined_call_operand.vmem [shape: bf16[128,32], index: 1, kind: input, shape index: {}]   ;;  %s1355_s4 = inlined_call_operand.<no memory space> [shape: f32[1,1], index: 4, kind: input, shape index: {}]   ;;  %s1356_s0 = inlined_call_operand.vmem [shape: bf16[192,128], index: 0, kind: input, shape index: {}]   ;;  %s1357_s2 = inlined_call_operand.vmem [shape: bf16[1,32], index: 2, kind: input, shape index: {}]   ;;  %s1358_s3 = inlined_call_operand.vmem [shape: bf16[192,32], index: 3, kind: input, shape index: {}]   ;;  %s1359_s5 = inlined_call_operand.vmem [shape: bf16[192,32], index: 5, kind: output, shape index: {}]  }
   0x1   :  { %v909_v0 = vld [vmem:[%s1354_s1] sm:$0xff]   ;;  %908 = vset.pattern.permute.xlu0 %v929_v1  ;;  %v10_v2 = vstv %s1355_s4  ;;  %30 = vst.msk [vmem:[#allocation2 + $0x10] sm:$0xff] %vm27_vm0, %v930_v3  ;;  %28 = vst.msk [vmem:[#allocation2] sm:$0xff] %vm27_vm0, %v930_v3  ;;  %v910_v4 = vld [vmem:[%s1354_s1 + $0x8] sm:$0xff]   ;;  %vm673_vm1 = vcmask 257024  }
   0x2   :  { %29 = vst.msk [vmem:[#allocation2 + $0x8] sm:$0xff] %vm27_vm0, %v930_v3  ;;  %31 = vst.msk [vmem:[#allocation2 + $0x18] sm:$0xff] %vm27_vm0, %v930_v3  ;;  %850 = vmatprep.subr.bf16.mxu0 %v909_v0  ;;  %890 = vmatprep.subr.bf16.mxu1 %v909_v0  ;;  %v911_v5 = vld [vmem:[%s1354_s1 + $0x10] sm:$0xff]   ;;  %v912_v6 = vld [vmem:[%s1354_s1 + $0x18] sm:$0xff]   ;;  %v444_v25 = vshrl.u32 %v443_v24, 7 }
   0x3   :  { %32 = vst.msk [vmem:[#allocation2 + $0x20] sm:$0xff] %vm27_vm0, %v930_v3  ;;  %33 = vst.msk [vmem:[#allocation2 + $0x28] sm:$0xff] %vm27_vm0, %v930_v3  ;;  %851 = vmatpush3.bf16.msra.mxu0 %v909_v0  ;;  %898 = vmatpush3.bf16.msra.mxu1 %v909_v0  ;;  %v917_v7 = vld [vmem:[%s1356_s0] sm:$0xff]   ;;  %v918_v8 = vld [vmem:[%s1356_s0 + $0x30] sm:$0xff]  }
   0x4   :  { %34 = vst.msk [vmem:[#allocation2 + $0x30] sm:$0xff] %vm27_vm0, %v930_v3  ;;  %35 = vst.msk [vmem:[#allocation2 + $0x38] sm:$0xff] %vm27_vm0, %v930_v3  ;;  %852 = vmatprep.subr.bf16.mxu0 %v910_v4  ;;  %891 = vmatprep.subr.bf16.mxu1 %v910_v4  ;;  %v913_v9 = vld [vmem:[%s1354_s1 + $0x20] sm:$0xff]   ;;  %v914_v10 = vld [vmem:[%s1354_s1 + $0x28] sm:$0xff]   ;;  %v445_v37 = vsub.s32 0, %v444_v25 }
   0x5   :  { %36 = vst.msk [vmem:[#allocation2 + $0x40] sm:$0xff] %vm27_vm0, %v930_v3  ;;  %37 = vst.msk [vmem:[#allocation2 + $0x48] sm:$0xff] %vm27_vm0, %v930_v3  ;;  %866 = vmatprep.mubr.bf16.mxu0 %v917_v7  ;;  %878 = vmatprep.mubr.bf16.mxu1 %v918_v8  ;;  %v915_v11 = vld [vmem:[%s1354_s1 + $0x30] sm:$0xff]   ;;  %v916_v13 = vld [vmem:[%s1354_s1 + $0x38] sm:$0xff]  }
   0x6   :  { %38 = vst.msk [vmem:[#allocation2 + $0x50] sm:$0xff] %vm27_vm0, %v930_v3  ;;  %39 = vst.msk [vmem:[#allocation2 + $0x58] sm:$0xff] %vm27_vm0, %v930_v3  ;;  %v919_v14 = vld [vmem:[%s1356_s0 + $0x8] sm:$0xff]   ;;  %v920_v15 = vld [vmem:[%s1356_s0 + $0x38] sm:$0xff]  }
   0x7   :  { %40 = vst.msk [vmem:[#allocation2 + $0x60] sm:$0xff] %vm27_vm0, %v930_v3  ;;  %41 = vst.msk [vmem:[#allocation2 + $0x68] sm:$0xff] %vm27_vm0, %v930_v3  ;;  %853 = vmatpush3.bf16.msra.mxu0 %v910_v4  ;;  %899 = vmatpush3.bf16.msra.mxu1 %v910_v4  ;;  %v921_v16 = vld [vmem:[%s1356_s0 + $0x10] sm:$0xff]   ;;  %v922_v17 = vld [vmem:[%s1356_s0 + $0x40] sm:$0xff]  }
   0x8   :  { %42 = vst.msk [vmem:[#allocation2 + $0x70] sm:$0xff] %vm27_vm0, %v930_v3  ;;  %43 = vst.msk [vmem:[#allocation2 + $0x78] sm:$0xff] %vm27_vm0, %v930_v3  ;;  %854 = vmatprep.subr.bf16.mxu0 %v911_v5  ;;  %892 = vmatprep.subr.bf16.mxu1 %v911_v5  ;;  %v923_v18 = vld [vmem:[%s1356_s0 + $0x18] sm:$0xff]   ;;  %v924_v19 = vld [vmem:[%s1356_s0 + $0x48] sm:$0xff]  }
   0x9   :  { %44 = vst.msk [vmem:[#allocation2 + $0x80] sm:$0xff] %vm27_vm0, %v930_v3  ;;  %45 = vst.msk [vmem:[#allocation2 + $0x88] sm:$0xff] %vm27_vm0, %v930_v3  ;;  %v925_v20 = vld [vmem:[%s1356_s0 + $0x20] sm:$0xff]   ;;  %v926_v21 = vld [vmem:[%s1356_s0 + $0x50] sm:$0xff]  }
   0xa   :  { %46 = vst.msk [vmem:[#allocation2 + $0x90] sm:$0xff] %vm27_vm0, %v930_v3  ;;  %47 = vst.msk [vmem:[#allocation2 + $0x98] sm:$0xff] %vm27_vm0, %v930_v3  ;;  %v927_v22 = vld [vmem:[%s1356_s0 + $0x28] sm:$0xff]   ;;  %v928_v23 = vld [vmem:[%s1356_s0 + $0x58] sm:$0xff]  }
   0xb   :  { %48 = vst.msk [vmem:[#allocation2 + $0xa0] sm:$0xff] %vm27_vm0, %v930_v3  ;;  %49 = vst.msk [vmem:[#allocation2 + $0xa8] sm:$0xff] %vm27_vm0, %v930_v3  ;;  %855 = vmatpush3.bf16.msra.mxu0 %v911_v5  ;;  %900 = vmatpush3.bf16.msra.mxu1 %v911_v5  ;;  %v54_v26 = vld [vmem:[#allocation2 + $0x10] sm:$0xff]  ;;  %v441_v27 = vld [vmem:[%s1357_s2] sm:$0x1] }
   0xc   :  { %50 = vst.msk [vmem:[#allocation2 + $0xb0] sm:$0xff] %vm27_vm0, %v930_v3  ;;  %51 = vst.msk [vmem:[#allocation2 + $0xb8] sm:$0xff] %vm27_vm0, %v930_v3  ;;  %856 = vmatprep.subr.bf16.mxu0 %v912_v6  ;;  %893 = vmatprep.subr.bf16.mxu1 %v912_v6  ;;  %v52_v29 = vld [vmem:[#allocation2] sm:$0xff]  ;;  %v55_v33 = vld [vmem:[#allocation2 + $0x18] sm:$0xff]  ;;  %v442_v36 = vunpack.c.l.bf16 %v441_v27 }
   0xd   :  { %11 = vst [vmem:[#allocation3] sm:$0x1] %v10_v2  ;;  %v53_v41 = vld [vmem:[#allocation2 + $0x8] sm:$0xff]  ;;  %v1059_v48 = vld [vmem:[%s1358_s3 + $0x38] sm:$0xff]   ;;  %v1066_v53 = vld [vmem:[%s1358_s3] sm:$0xff]  }
   0xe   :  { %v64_v30 = vld [vmem:[#allocation2 + $0x60] sm:$0xff]  ;;  %v65_v42 = vld [vmem:[#allocation2 + $0x68] sm:$0xff]  ;;  %v1071_v54 = vld [vmem:[%s1358_s3 + $0x30] sm:$0xff]   ;;  %v1085_v59 = vrot.slane %v442_v36, %v445_v37  ;;  %v801_v62 = vunpack.c.l.bf16 %v1059_v48  ;;  %v773_v2 = vunpack.c.l.bf16 %v1066_v53  ;;  %v802_v5 = vunpack.c.h.bf16 %v1059_v48 }
   0xf   :  { %857 = vmatpush3.bf16.msra.mxu0 %v912_v6  ;;  %901 = vmatpush3.bf16.msra.mxu1 %v912_v6  ;;  %v66_v28 = vld [vmem:[#allocation2 + $0x70] sm:$0xff]  ;;  %v67_v34 = vld [vmem:[#allocation2 + $0x78] sm:$0xff]  ;;  %v1054_v47 = vld [vmem:[%s1358_s3 + $0x8] sm:$0xff]   ;;  %v797_v4 = vunpack.c.l.bf16 %v1071_v54 }
  0x10   :  { %858 = vmatprep.subr.bf16.mxu0 %v913_v9  ;;  %894 = vmatprep.subr.bf16.mxu1 %v913_v9  ;;  %v1078_v57 = vld [vmem:[%s1358_s3 + $0x18] sm:$0xff]   ;;  %v1083_v58 = vld [vmem:[%s1358_s3 + $0x48] sm:$0xff]   ;;  %v777_v60 = vunpack.c.l.bf16 %v1054_v47  ;;  %v1093_v61 = vld [vmem:[%s1358_s3 + $0x10] sm:$0xff]   ;;  %v778_v3 = vunpack.c.h.bf16 %v1054_v47 }
  0x11   :  { %v1099_v63 = vld [vmem:[%s1358_s3 + $0x40] sm:$0xff]   ;;  %v58_v0 = vld [vmem:[#allocation2 + $0x30] sm:$0xff]  ;;  %v69_v27 = vld [vmem:[#allocation2 + $0x88] sm:$0xff] }
  0x12   :  { %v70_v1 = vld [vmem:[#allocation2 + $0x90] sm:$0xff]  ;;  %v56_v6 = vld [vmem:[#allocation2 + $0x20] sm:$0xff] }
  0x13   :  { %859 = vmatpush3.bf16.msra.mxu0 %v913_v9  ;;  %902 = vmatpush3.bf16.msra.mxu1 %v913_v9  ;;  %v68_v7 = vld [vmem:[#allocation2 + $0x80] sm:$0xff]  ;;  %v774_v9 = vunpack.c.h.bf16 %v1066_v53 }
  0x14   :  { %860 = vmatprep.subr.bf16.mxu0 %v914_v10  ;;  %895 = vmatprep.subr.bf16.mxu1 %v914_v10  ;;  %v722_v12 = vld [vmem:[#allocation3] ss:$0 sm:$0xff] }
  0x15   :  { %526 = vperm.xlu0 %908, %v722_v12   ;;  %v798_v12 = vunpack.c.h.bf16 %v1071_v54 }
  0x17   :  { %861 = vmatpush3.bf16.msra.mxu0 %v914_v10  ;;  %903 = vmatpush3.bf16.msra.mxu1 %v914_v10  ;;  %v785_v10 = vunpack.c.l.bf16 %v1078_v57 }
  0x18   :  { %862 = vmatprep.subr.bf16.mxu0 %v915_v11  ;;  %896 = vmatprep.subr.bf16.mxu1 %v915_v11 }
  0x1b   :  { %863 = vmatpush3.bf16.msra.mxu0 %v915_v11  ;;  %904 = vmatpush3.bf16.msra.mxu1 %v915_v11  ;;  %v1114_v11 = vld [vmem:[%s1358_s3 + $0x28] sm:$0xff]  }
  0x1c   :  { %864 = vmatprep.subr.bf16.mxu0 %v916_v13  ;;  %897 = vmatprep.subr.bf16.mxu1 %v916_v13  ;;  %v793_v36 = vunpack.c.l.bf16 %v1114_v11 }
  0x1f   :  { %865 = vmatpush3.bf16.msra.mxu0 %v916_v13  ;;  %905 = vmatpush3.bf16.msra.mxu1 %v916_v13  ;;  %v809_v13 = vunpack.c.l.bf16 %v1083_v58 }
  0x22   :  { %867 = vmatmul.mubr.bf16.vlgmr.msra.gmra.mrb[0].mxu0 %v919_v14  ;;  %879 = vmatmul.mubr.bf16.vlgmr.msra.gmra.mrb[0].mxu1 %v920_v15 }
  0x23   :  { %870 = vmatprep.mubr.bf16.mxu0 %v921_v16  ;;  %882 = vmatprep.mubr.bf16.mxu1 %v922_v17  ;;  %v59_v16 = vld [vmem:[#allocation2 + $0x38] sm:$0xff] }
  0x24   :  { %v71_v17 = vld [vmem:[#allocation2 + $0x98] sm:$0xff] }
  0x2a   :  { %871 = vmatmul.mubr.bf16.gmra.mrb[4].mxu0 %v923_v18  ;;  %883 = vmatmul.mubr.bf16.gmra.mrb[4].mxu1 %v924_v19  ;;  %v781_v18 = vunpack.c.l.bf16 %v1093_v61  ;;  %v786_v19 = vunpack.c.h.bf16 %v1078_v57 }
  0x2b   :  { %874 = vmatprep.mubr.bf16.mxu0 %v925_v20  ;;  %886 = vmatprep.mubr.bf16.mxu1 %v926_v21  ;;  %v805_v20 = vunpack.c.l.bf16 %v1099_v63  ;;  %v810_v21 = vunpack.c.h.bf16 %v1083_v58 }
  0x32   :  { %875 = vmatmul.mubr.bf16.gmra.mrb[8].mxu0 %v927_v22  ;;  %887 = vmatmul.mubr.bf16.gmra.mrb[8].mxu1 %v928_v23 }
  0x94   :  { %v1107_v8 = vpop.permute.xlu0 %526 }
  0xf5   :  { %v868_v31 = vpop.f32.mrb[0].mxu0  ;;  %v880_v32 = vpop.f32.mrb[0].mxu1 }
  0xf6   :  { %v367_v35 = vadd.f32 %v868_v31, %v54_v26  ;;  %v379_v38 = vadd.f32 %v880_v32, %v66_v28  ;;  %v270_v39 = vpop.f32.mrb[1].mxu0  ;;  %v318_v40 = vpop.f32.mrb[1].mxu1  ;;  %v57_v26 = vld [vmem:[#allocation2 + $0x28] sm:$0xff]  ;;  %v782_v28 = vunpack.c.h.bf16 %v1093_v61 }
  0xf7   :  { %v365_v43 = vadd.f32 %v270_v39, %v52_v29  ;;  %v377_v44 = vadd.f32 %v318_v40, %v64_v30  ;;  %v869_v45 = vpop.f32.mrb[2].mxu0  ;;  %v881_v46 = vpop.f32.mrb[2].mxu1  ;;  %v806_v29 = vunpack.c.h.bf16 %v1099_v63  ;;  %v61_v61 = vld [vmem:[#allocation2 + $0x48] sm:$0xff] }
  0xf8   :  { %392 = vst.msk [vmem:[#allocation2 + $0x10] sm:$0xff] %vm27_vm0, %v367_v35  ;;  %404 = vst.msk [vmem:[#allocation2 + $0x70] sm:$0xff] %vm27_vm0, %v379_v38  ;;  %v368_v49 = vadd.f32 %v869_v45, %v55_v33  ;;  %v380_v50 = vadd.f32 %v881_v46, %v67_v34  ;;  %v273_v51 = vpop.f32.mrb[3].mxu0  ;;  %v321_v52 = vpop.f32.mrb[3].mxu1  ;;  %v73_v63 = vld [vmem:[#allocation2 + $0xa8] sm:$0xff] }
  0xf9   :  { %390 = vst.msk [vmem:[#allocation2] sm:$0xff] %vm27_vm0, %v365_v43  ;;  %402 = vst.msk [vmem:[#allocation2 + $0x60] sm:$0xff] %vm27_vm0, %v377_v44  ;;  %v366_v55 = vadd.f32 %v273_v51, %v53_v41  ;;  %v378_v56 = vadd.f32 %v321_v52, %v65_v42 }
  0xfa   :  { %393 = vst.msk [vmem:[#allocation2 + $0x18] sm:$0xff] %vm27_vm0, %v368_v49  ;;  %405 = vst.msk [vmem:[#allocation2 + $0x78] sm:$0xff] %vm27_vm0, %v380_v50 }
  0xfb   :  { %391 = vst.msk [vmem:[#allocation2 + $0x8] sm:$0xff] %vm27_vm0, %v366_v55  ;;  %403 = vst.msk [vmem:[#allocation2 + $0x68] sm:$0xff] %vm27_vm0, %v378_v56 }
  0xfd   :  { %v872_v14 = vpop.f32.mrb[4].mxu0  ;;  %v884_v15 = vpop.f32.mrb[4].mxu1 }
  0xfe   :  { %v371_v22 = vadd.f32 %v872_v14, %v58_v0  ;;  %v383_v23 = vadd.f32 %v884_v15, %v70_v1  ;;  %v286_v24 = vpop.f32.mrb[5].mxu0  ;;  %v334_v25 = vpop.f32.mrb[5].mxu1 }
  0xff   :  { %v419_v30 = vld [vmem:[#allocation2 + $0x10] sm:$0xff]  ;;  %v369_v32 = vadd.f32 %v286_v24, %v56_v6  ;;  %v381_v33 = vadd.f32 %v334_v25, %v68_v7  ;;  %v873_v34 = vpop.f32.mrb[6].mxu0  ;;  %v885_v35 = vpop.f32.mrb[6].mxu1 }
 0x100   :  { %v431_v31 = vld [vmem:[#allocation2 + $0x70] sm:$0xff]  ;;  %v449_v37 = vadd.f32 %v1085_v59, %v419_v30  ;;  %v417_v39 = vld [vmem:[#allocation2] sm:$0xff]  ;;  %396 = vst.msk [vmem:[#allocation2 + $0x30] sm:$0xff] %vm27_vm0, %v371_v22  ;;  %408 = vst.msk [vmem:[#allocation2 + $0x90] sm:$0xff] %vm27_vm0, %v383_v23  ;;  %v372_v41 = vadd.f32 %v873_v34, %v59_v16  ;;  %v384_v42 = vadd.f32 %v885_v35, %v71_v17  ;;  %v289_v43 = vpop.f32.mrb[7].mxu0  ;;  %v337_v44 = vpop.f32.mrb[7].mxu1 }
 0x101   :  { %v461_v38 = vadd.f32 %v1085_v59, %v431_v31  ;;  %v429_v40 = vld [vmem:[#allocation2 + $0x60] sm:$0xff]  ;;  %v447_v45 = vadd.f32 %v1085_v59, %v417_v39  ;;  %v420_v49 = vld [vmem:[#allocation2 + $0x18] sm:$0xff]  ;;  %394 = vst.msk [vmem:[#allocation2 + $0x20] sm:$0xff] %vm27_vm0, %v369_v32  ;;  %406 = vst.msk [vmem:[#allocation2 + $0x80] sm:$0xff] %vm27_vm0, %v381_v33  ;;  %v370_v51 = vadd.f32 %v289_v43, %v57_v26 }
 0x102   :  { %v459_v46 = vadd.f32 %v1085_v59, %v429_v40  ;;  %v432_v50 = vld [vmem:[#allocation2 + $0x78] sm:$0xff]  ;;  %v382_v52 = vadd.f32 %v337_v44, %v69_v27  ;;  %v450_v55 = vadd.f32 %v1085_v59, %v420_v49  ;;  %v418_v0 = vld [vmem:[#allocation2 + $0x8] sm:$0xff]  ;;  %397 = vst.msk [vmem:[#allocation2 + $0x38] sm:$0xff] %vm27_vm0, %v372_v41  ;;  %409 = vst.msk [vmem:[#allocation2 + $0x98] sm:$0xff] %vm27_vm0, %v384_v42 }
 0x103   :  { %v462_v56 = vadd.f32 %v1085_v59, %v432_v50  ;;  %v430_v1 = vld [vmem:[#allocation2 + $0x68] sm:$0xff]  ;;  %v531_v6 = vmul.f32 %v1107_v8, %v449_v37  ;;  %v543_v7 = vmul.f32 %v1107_v8, %v461_v38  ;;  %v448_v14 = vadd.f32 %v1085_v59, %v418_v0  ;;  %395 = vst.msk [vmem:[#allocation2 + $0x28] sm:$0xff] %vm27_vm0, %v370_v51  ;;  %v62_v16 = vld [vmem:[#allocation2 + $0x50] sm:$0xff] }
 0x104   :  { %v460_v15 = vadd.f32 %v1085_v59, %v430_v1  ;;  %407 = vst.msk [vmem:[#allocation2 + $0x88] sm:$0xff] %vm27_vm0, %v382_v52  ;;  %v529_v17 = vmul.f32 %v1107_v8, %v447_v45  ;;  %v541_v22 = vmul.f32 %v1107_v8, %v459_v46  ;;  %v532_v23 = vmul.f32 %v1107_v8, %v450_v55 }
 0x105   :  { %v544_v24 = vmul.f32 %v1107_v8, %v462_v56  ;;  %v555_v25 = vadd.f32 %v777_v60, %v531_v6  ;;  %v567_v26 = vadd.f32 %v801_v62, %v543_v7  ;;  %v876_v27 = vpop.f32.mrb[8].mxu0  ;;  %v530_v30 = vmul.f32 %v1107_v8, %v448_v14  ;;  %v1157_v34 = vpop.f32.mrb[8].mxu1 }
 0x106   :  { %v542_v31 = vmul.f32 %v1107_v8, %v460_v15  ;;  %v553_v32 = vadd.f32 %v773_v2, %v529_v17  ;;  %v565_v33 = vadd.f32 %v797_v4, %v541_v22  ;;  %v375_v35 = vadd.f32 %v876_v27, %v62_v16  ;;  %v1165_v38 = vpop.f32.mrb[9].mxu0  ;;  %v1167_v39 = vpop.f32.mrb[9].mxu1 }
 0x107   :  { %v556_v60 = vadd.f32 %v778_v3, %v532_v23  ;;  %v1163_v62 = vadd.f32 %v802_v5, %v544_v24  ;;  %v749_v37 = vpack.c.bf16 %v555_v25, %v555_v25  ;;  %v423_v40 = vld [vmem:[#allocation2 + $0x30] sm:$0xff]  ;;  %v554_v4 = vadd.f32 %v774_v9, %v530_v30  ;;  %v1173_v3 = vpop.f32.mrb[10].mxu0  ;;  %v1175_v48 = vpop.f32.mrb[10].mxu1 }
 0x108   :  { %v435_v2 = vld [vmem:[#allocation2 + $0x90] sm:$0xff]  ;;  %v566_v41 = vadd.f32 %v798_v12, %v542_v31  ;;  %v747_v42 = vpack.c.bf16 %v553_v32, %v553_v32  ;;  %v759_v47 = vpack.c.bf16 %v565_v33, %v565_v33  ;;  %v453_v5 = vadd.f32 %v1085_v59, %v423_v40  ;;  %v421_v44 = vld [vmem:[#allocation2 + $0x20] sm:$0xff]  ;;  %400 = vst.msk [vmem:[#allocation2 + $0x50] sm:$0xff] %vm27_vm0, %v375_v35  ;;  %v1184_v54 = vpop.f32.mrb[11].mxu0  ;;  %v1186_v9 = vpop.f32.mrb[11].mxu1 }
 0x109   :  { %v465_v43 = vadd.f32 %v1085_v59, %v435_v2  ;;  %v433_v45 = vld [vmem:[#allocation2 + $0x80] sm:$0xff]  ;;  %v750_v46 = vpack.c.bf16 %v556_v60, %v556_v60  ;;  %v761_v53 = vpack.c.bf16 %v567_v26, %v567_v26  ;;  %676 = vst.msk [vmem:[%s1359_s5 + $0x8] sm:$0xf] %vm673_vm1, %v749_v37  ;;  %v451_v12 = vadd.f32 %v1085_v59, %v421_v44  ;;  %v424_v50 = vld [vmem:[#allocation2 + $0x38] sm:$0xff]  ;;  %v74_v60 = vld [vmem:[#allocation2 + $0xb0] sm:$0xff] }
 0x10a   :  { %v463_v49 = vadd.f32 %v1085_v59, %v433_v45  ;;  %v436_v51 = vld [vmem:[#allocation2 + $0x98] sm:$0xff]  ;;  %v748_v52 = vpack.c.bf16 %v554_v4, %v554_v4  ;;  %v760_v55 = vpack.c.bf16 %v566_v41, %v566_v41  ;;  %674 = vst.msk [vmem:[%s1359_s5] sm:$0xf] %vm673_vm1, %v747_v42  ;;  %686 = vst.msk [vmem:[%s1359_s5 + $0x30] sm:$0xf] %vm673_vm1, %v759_v47  ;;  %v422_v1 = vld [vmem:[#allocation2 + $0x28] sm:$0xff] }
 0x10b   :  { %v454_v56 = vadd.f32 %v1085_v59, %v424_v50  ;;  %v466_v0 = vadd.f32 %v1085_v59, %v436_v51  ;;  %v434_v6 = vld [vmem:[#allocation2 + $0x88] sm:$0xff]  ;;  %v535_v7 = vmul.f32 %v1107_v8, %v453_v5  ;;  %v547_v14 = vmul.f32 %v1107_v8, %v465_v43  ;;  %677 = vst.msk [vmem:[%s1359_s5 + $0xc] sm:$0xf] %vm673_vm1, %v750_v46  ;;  %v60_v37 = vld [vmem:[#allocation2 + $0x40] sm:$0xff]  ;;  %v75_v41 = vld [vmem:[#allocation2 + $0xb8] sm:$0xff] }
 0x10c   :  { %688 = vst.msk [vmem:[%s1359_s5 + $0x38] sm:$0xf] %vm673_vm1, %v761_v53  ;;  %v452_v15 = vadd.f32 %v1085_v59, %v422_v1  ;;  %v464_v16 = vadd.f32 %v1085_v59, %v434_v6  ;;  %v533_v17 = vmul.f32 %v1107_v8, %v451_v12  ;;  %v545_v22 = vmul.f32 %v1107_v8, %v463_v49  ;;  %v72_v40 = vld [vmem:[#allocation2 + $0xa0] sm:$0xff]  ;;  %v829_v46 = vld [vmem:[%s1358_s3 + $0x58] sm:$0xff]  }
 0x10d   :  { %675 = vst.msk [vmem:[%s1359_s5 + $0x4] sm:$0xf] %vm673_vm1, %v748_v52  ;;  %687 = vst.msk [vmem:[%s1359_s5 + $0x34] sm:$0xf] %vm673_vm1, %v760_v55  ;;  %v536_v23 = vmul.f32 %v1107_v8, %v454_v56  ;;  %v548_v24 = vmul.f32 %v1107_v8, %v466_v0  ;;  %v559_v25 = vadd.f32 %v785_v10, %v535_v7  ;;  %v822_v53 = vld [vmem:[%s1358_s3 + $0x20] sm:$0xff]   ;;  %v794_v51 = vunpack.c.h.bf16 %v1114_v11 }
 0x10e   :  { %v571_v26 = vadd.f32 %v809_v13, %v547_v14  ;;  %v534_v27 = vmul.f32 %v1107_v8, %v452_v15  ;;  %v546_v30 = vmul.f32 %v1107_v8, %v464_v16  ;;  %v557_v31 = vadd.f32 %v781_v18, %v533_v17 }
 0x10f   :  { %v569_v32 = vadd.f32 %v805_v20, %v545_v22  ;;  %v560_v33 = vadd.f32 %v786_v19, %v536_v23  ;;  %v572_v35 = vadd.f32 %v810_v21, %v548_v24  ;;  %v753_v10 = vpack.c.bf16 %v559_v25, %v559_v25  ;;  %v427_v2 = vld [vmem:[#allocation2 + $0x50] sm:$0xff]  ;;  %v63_v19 = vld [vmem:[#allocation2 + $0x58] sm:$0xff] }
 0x110   :  { %v762_v13 = vpack.c.bf16 %v1163_v62, %v1163_v62  ;;  %v558_v18 = vadd.f32 %v782_v28, %v534_v27  ;;  %v570_v20 = vadd.f32 %v806_v29, %v546_v30  ;;  %v751_v4 = vpack.c.bf16 %v557_v31, %v557_v31 }
 0x111   :  { %v763_v57 = vpack.c.bf16 %v569_v32, %v569_v32  ;;  %v457_v58 = vadd.f32 %v1085_v59, %v427_v2  ;;  %v754_v21 = vpack.c.bf16 %v560_v33, %v560_v33  ;;  %v765_v42 = vpack.c.bf16 %v571_v26, %v571_v26  ;;  %680 = vst.msk [vmem:[%s1359_s5 + $0x18] sm:$0xf] %vm673_vm1, %v753_v10 }
 0x112   :  { %v766_v47 = vpack.c.bf16 %v572_v35, %v572_v35  ;;  %689 = vst.msk [vmem:[%s1359_s5 + $0x3c] sm:$0xf] %vm673_vm1, %v762_v13  ;;  %v752_v28 = vpack.c.bf16 %v558_v18, %v558_v18  ;;  %v764_v29 = vpack.c.bf16 %v570_v20, %v570_v20  ;;  %678 = vst.msk [vmem:[%s1359_s5 + $0x10] sm:$0xf] %vm673_vm1, %v751_v4  ;;  %v789_v49 = vunpack.c.l.bf16 %v822_v53 }
 0x113   :  { %690 = vst.msk [vmem:[%s1359_s5 + $0x40] sm:$0xf] %vm673_vm1, %v763_v57  ;;  %v387_v62 = vadd.f32 %v1157_v34, %v74_v60  ;;  %v373_v5 = vadd.f32 %v1165_v38, %v60_v37  ;;  %v539_v43 = vmul.f32 %v1107_v8, %v457_v58  ;;  %681 = vst.msk [vmem:[%s1359_s5 + $0x1c] sm:$0xf] %vm673_vm1, %v754_v21  ;;  %v818_v6 = vunpack.c.h.bf16 %v829_v46 }
 0x114   :  { %692 = vst.msk [vmem:[%s1359_s5 + $0x48] sm:$0xf] %vm673_vm1, %v765_v42  ;;  %693 = vst.msk [vmem:[%s1359_s5 + $0x4c] sm:$0xf] %vm673_vm1, %v766_v47  ;;  %v385_v34 = vadd.f32 %v1167_v39, %v72_v40  ;;  %v376_v38 = vadd.f32 %v1173_v3, %v63_v19  ;;  %v388_v44 = vadd.f32 %v1175_v48, %v75_v41  ;;  %v790_v7 = vunpack.c.h.bf16 %v822_v53 }
 0x115   :  { %679 = vst.msk [vmem:[%s1359_s5 + $0x14] sm:$0xf] %vm673_vm1, %v752_v28  ;;  %691 = vst.msk [vmem:[%s1359_s5 + $0x44] sm:$0xf] %vm673_vm1, %v764_v29  ;;  %v374_v39 = vadd.f32 %v1184_v54, %v61_v61  ;;  %v386_v3 = vadd.f32 %v1186_v9, %v73_v63  ;;  %v563_v48 = vadd.f32 %v793_v36, %v539_v43  ;;  %v828_v36 = vld [vmem:[%s1358_s3 + $0x50] sm:$0xff]   ;;  %v817_v9 = vunpack.c.l.bf16 %v829_v46 }
 0x116   :  { %412 = vst.msk [vmem:[#allocation2 + $0xb0] sm:$0xff] %vm27_vm0, %v387_v62  ;;  %398 = vst.msk [vmem:[#allocation2 + $0x40] sm:$0xff] %vm27_vm0, %v373_v5  ;;  %v813_v50 = vunpack.c.l.bf16 %v828_v36  ;;  %v814_v23 = vunpack.c.h.bf16 %v828_v36 }
 0x117   :  { %410 = vst.msk [vmem:[#allocation2 + $0xa0] sm:$0xff] %vm27_vm0, %v385_v34  ;;  %401 = vst.msk [vmem:[#allocation2 + $0x58] sm:$0xff] %vm27_vm0, %v376_v38  ;;  %v757_v45 = vpack.c.bf16 %v563_v48, %v563_v48 }
 0x118   :  { %413 = vst.msk [vmem:[#allocation2 + $0xb8] sm:$0xff] %vm27_vm0, %v388_v44  ;;  %399 = vst.msk [vmem:[#allocation2 + $0x48] sm:$0xff] %vm27_vm0, %v374_v39 }
 0x119   :  { %411 = vst.msk [vmem:[#allocation2 + $0xa8] sm:$0xff] %vm27_vm0, %v386_v3 }
 0x11a   :  { %684 = vst.msk [vmem:[%s1359_s5 + $0x28] sm:$0xf] %vm673_vm1, %v757_v45 }
 0x11d   :  { %v439_v54 = vld [vmem:[#allocation2 + $0xb0] sm:$0xff]  ;;  %v425_v12 = vld [vmem:[#allocation2 + $0x40] sm:$0xff] }
 0x11e   :  { %v469_v52 = vadd.f32 %v1085_v59, %v439_v54  ;;  %v455_v55 = vadd.f32 %v1085_v59, %v425_v12  ;;  %v437_v56 = vld [vmem:[#allocation2 + $0xa0] sm:$0xff]  ;;  %v428_v0 = vld [vmem:[#allocation2 + $0x58] sm:$0xff] }
 0x11f   :  { %v440_v1 = vld [vmem:[#allocation2 + $0xb8] sm:$0xff]  ;;  %v467_v14 = vadd.f32 %v1085_v59, %v437_v56  ;;  %v458_v15 = vadd.f32 %v1085_v59, %v428_v0  ;;  %v426_v17 = vld [vmem:[#allocation2 + $0x48] sm:$0xff] }
 0x120   :  { %v470_v16 = vadd.f32 %v1085_v59, %v440_v1  ;;  %v438_v22 = vld [vmem:[#allocation2 + $0xa8] sm:$0xff]  ;;  %v551_v11 = vmul.f32 %v1107_v8, %v469_v52  ;;  %v537_v24 = vmul.f32 %v1107_v8, %v455_v55  ;;  %v456_v25 = vadd.f32 %v1085_v59, %v426_v17 }
 0x121   :  { %v468_v26 = vadd.f32 %v1085_v59, %v438_v22  ;;  %v549_v27 = vmul.f32 %v1107_v8, %v467_v14  ;;  %v540_v30 = vmul.f32 %v1107_v8, %v458_v15 }
 0x122   :  { %v552_v31 = vmul.f32 %v1107_v8, %v470_v16  ;;  %v575_v32 = vadd.f32 %v817_v9, %v551_v11  ;;  %v561_v33 = vadd.f32 %v789_v49, %v537_v24  ;;  %v538_v35 = vmul.f32 %v1107_v8, %v456_v25 }
 0x123   :  { %v550_v10 = vmul.f32 %v1107_v8, %v468_v26  ;;  %v573_v13 = vadd.f32 %v813_v50, %v549_v27  ;;  %v564_v60 = vadd.f32 %v794_v51, %v540_v30 }
 0x124   :  { %v576_v37 = vadd.f32 %v818_v6, %v552_v31  ;;  %v769_v40 = vpack.c.bf16 %v575_v32, %v575_v32  ;;  %v755_v2 = vpack.c.bf16 %v561_v33, %v561_v33  ;;  %v562_v18 = vadd.f32 %v790_v7, %v538_v35 }
 0x125   :  { %v574_v20 = vadd.f32 %v814_v23, %v550_v10  ;;  %v767_v59 = vpack.c.bf16 %v573_v13, %v573_v13  ;;  %v758_v4 = vpack.c.bf16 %v564_v60, %v564_v60 }
 0x126   :  { %v770_v57 = vpack.c.bf16 %v576_v37, %v576_v37  ;;  %696 = vst.msk [vmem:[%s1359_s5 + $0x58] sm:$0xf] %vm673_vm1, %v769_v40  ;;  %682 = vst.msk [vmem:[%s1359_s5 + $0x20] sm:$0xf] %vm673_vm1, %v755_v2  ;;  %v756_v8 = vpack.c.bf16 %v562_v18, %v562_v18 }
 0x127   :  { %v768_v19 = vpack.c.bf16 %v574_v20, %v574_v20  ;;  %694 = vst.msk [vmem:[%s1359_s5 + $0x50] sm:$0xf] %vm673_vm1, %v767_v59  ;;  %685 = vst.msk [vmem:[%s1359_s5 + $0x2c] sm:$0xf] %vm673_vm1, %v758_v4 }
 0x128   :  { %697 = vst.msk [vmem:[%s1359_s5 + $0x5c] sm:$0xf] %vm673_vm1, %v770_v57  ;;  %683 = vst.msk [vmem:[%s1359_s5 + $0x24] sm:$0xf] %vm673_vm1, %v756_v8 }
 0x129   :  { %695 = vst.msk [vmem:[%s1359_s5 + $0x54] sm:$0xf] %vm673_vm1, %v768_v19 }

</bundles_post_ra>
